<compile_context>
chip_gen: v7x
topology: tpu7x:2x2x1
jax: 0.10.0
libtpu: 0.0.40
codegen_flags: <defaults>
</compile_context>

<pallas_src>
import jax
import jax.numpy as jnp
from jax.experimental import pallas as pl
from jax.experimental.pallas import tpu as pltpu

IN_DIM = 8 * 8 * 12 + 1 + 4 + 64 + 2   # 839
PAD_IN = 896                            # 7 * 128, lane-dense K for fc1
H1, H2, OUT = 1024, 512, 4096
TB = 256                                # max batch tile (MXU-friendly)


def _round_up(n, m):
    return ((n + m - 1) // m) * m


def chessnet_kernel(x_ref, w1_ref, b1_ref, w2_ref, b2_ref, w3_ref, b3_ref, o_ref):
    # fc1 + ReLU  (bf16 MXU matmul, f32 accumulate)
    h = jnp.dot(x_ref[...], w1_ref[...], preferred_element_type=jnp.float32)
    h = jnp.maximum(h + b1_ref[...], 0.0).astype(jnp.bfloat16)
    # fc2 + ReLU
    h = jnp.dot(h, w2_ref[...], preferred_element_type=jnp.float32)
    h = jnp.maximum(h + b2_ref[...], 0.0).astype(jnp.bfloat16)
    # fc3 (no activation), f32 output
    o = jnp.dot(h, w3_ref[...], preferred_element_type=jnp.float32)
    o_ref[...] = (o + b3_ref[...]).astype(o_ref.dtype)


def chessnet_forward(x, params, *, tb=TB):
    """x: (B, 839) f32.  params: f32 (in,out) weights and (1,out) biases."""
    w1, b1, w2, b2, w3, b3 = params
    B = x.shape[0]
    # Adapt the batch tile to small batches; 16 keeps bf16 sublane packing happy.
    tb = min(tb, _round_up(B, 16))
    Bp = _round_up(B, tb)

    # One-time prep (outside the kernel): pad batch + feature dim, cast to bf16.
    xp = jnp.pad(x.astype(jnp.bfloat16), ((0, Bp - B), (0, PAD_IN - IN_DIM)))
    w1p = jnp.pad(w1.astype(jnp.bfloat16), ((0, PAD_IN - IN_DIM), (0, 0)))
    w2b = w2.astype(jnp.bfloat16)
    w3b = w3.astype(jnp.bfloat16)

    grid = (Bp // tb,)
    const = lambda i: (0, 0)          # weights/biases: VMEM-resident across steps
    batch_tile = lambda i: (i, 0)     # activations / output: tiled over batch

    flops = 2 * Bp * (PAD_IN * H1 + H1 * H2 + H2 * OUT)
    bytes_accessed = (
        xp.size * 2 + w1p.size * 2 + w2b.size * 2 + w3b.size * 2
        + (b1.size + b2.size + b3.size) * 4 + Bp * OUT * 4
    )

    out = pl.pallas_call(
        chessnet_kernel,
        out_shape=jax.ShapeDtypeStruct((Bp, OUT), jnp.float32),
        grid=grid,
        in_specs=[
            pl.BlockSpec((tb, PAD_IN), batch_tile),   # x tile
            pl.BlockSpec((PAD_IN, H1), const),        # w1
            pl.BlockSpec((1, H1), const),             # b1
            pl.BlockSpec((H1, H2), const),            # w2
            pl.BlockSpec((1, H2), const),             # b2
            pl.BlockSpec((H2, OUT), const),           # w3
            pl.BlockSpec((1, OUT), const),            # b3
        ],
        out_specs=pl.BlockSpec((tb, OUT), batch_tile),
        compiler_params=pltpu.CompilerParams(
            dimension_semantics=("parallel",),
            vmem_limit_bytes=48 << 20,                # fits v7x's 64 MiB VMEM
        ),
        cost_estimate=pl.CostEstimate(
            flops=flops, transcendentals=0, bytes_accessed=bytes_accessed
        ),
    )(xp, w1p, b1, w2b, b2, w3b, b3)
    return out[:B]


def init_params(key):
    """Deterministic init mimicking PyTorch's default Linear init:
    U(-1/sqrt(fan_in), 1/sqrt(fan_in)) for weights and biases.
    Weights stored as (in, out) so the kernel computes x @ W + b."""
    def linear(key, fan_in, fan_out):
        kw, kb = jax.random.split(key)
        bound = 1.0 / jnp.sqrt(fan_in)
        w = jax.random.uniform(kw, (fan_in, fan_out), jnp.float32, -bound, bound)
        b = jax.random.uniform(kb, (1, fan_out), jnp.float32, -bound, bound)
        return w, b

    k1, k2, k3 = jax.random.split(key, 3)
    w1, b1 = linear(k1, IN_DIM, H1)
    w2, b2 = linear(k2, H1, H2)
    w3, b3 = linear(k3, H2, OUT)
    return (w1, b1, w2, b2, w3, b3)


def reference_forward(x, params):
    """Pure-JAX f32 reference matching the PyTorch forward."""
    w1, b1, w2, b2, w3, b3 = params
    h = jnp.maximum(x @ w1 + b1, 0.0)
    h = jnp.maximum(h @ w2 + b2, 0.0)
    return h @ w3 + b3


if __name__ == "__main__":
    key = jax.random.PRNGKey(0)
    kx, kp = jax.random.split(key)

    batch = 2
    x = jax.random.normal(kx, (batch, IN_DIM), dtype=jnp.float32)
    params = init_params(kp)

    out = chessnet_forward(x, params)
    out = jax.block_until_ready(out)

    ref = reference_forward(x, params)
    assert out.shape == (batch, OUT), out.shape
    # bf16 weights/activations with f32 accumulation: loose tolerance vs f32 ref.
    assert jnp.allclose(out, ref, atol=5e-2, rtol=5e-2), "mismatch vs reference"

    print("KERNEL_OK")
</pallas_src>

<mosaic_0001>
module attributes {stable_mosaic.version = 11 : i64} {
  func.func @chessnet_kernel(%arg0: i32, %arg1: memref<16x896xbf16, #tpu.memory_space<vmem>>, %arg2: memref<896x1024xbf16, #tpu.memory_space<vmem>>, %arg3: memref<1x1024xf32, #tpu.memory_space<vmem>>, %arg4: memref<1024x512xbf16, #tpu.memory_space<vmem>>, %arg5: memref<1x512xf32, #tpu.memory_space<vmem>>, %arg6: memref<512x4096xbf16, #tpu.memory_space<vmem>>, %arg7: memref<1x4096xf32, #tpu.memory_space<vmem>>, %arg8: memref<16x4096xf32, #tpu.memory_space<vmem>>) attributes {dimension_semantics = [#tpu.dimension_semantics<parallel>], iteration_bounds = array<i64: 1>, scalar_prefetch = 0 : i64, scratch_operands = 0 : i64, tpu.core_type = #tpu.core_type<tc>, window_params = [{transform_indices = @transform_0, window_bounds = array<i64: 16, 896>}, {pipeline_mode = #tpu.pipeline_mode<synchronous>, transform_indices = @transform_1, window_bounds = array<i64: 896, 1024>}, {pipeline_mode = #tpu.pipeline_mode<synchronous>, transform_indices = @transform_2, window_bounds = array<i64: 1, 1024>}, {pipeline_mode = #tpu.pipeline_mode<synchronous>, transform_indices = @transform_3, window_bounds = array<i64: 1024, 512>}, {pipeline_mode = #tpu.pipeline_mode<synchronous>, transform_indices = @transform_4, window_bounds = array<i64: 1, 512>}, {pipeline_mode = #tpu.pipeline_mode<synchronous>, transform_indices = @transform_5, window_bounds = array<i64: 512, 4096>}, {pipeline_mode = #tpu.pipeline_mode<synchronous>, transform_indices = @transform_6, window_bounds = array<i64: 1, 4096>}, {transform_indices = @transform_7, window_bounds = array<i64: 16, 4096>}]} {
    %c0 = arith.constant 0 : index
    %c0_0 = arith.constant 0 : index
    %0 = vector.load %arg1[%c0, %c0_0] : memref<16x896xbf16, #tpu.memory_space<vmem>>, vector<16x896xbf16>
    %c0_1 = arith.constant 0 : index
    %c0_2 = arith.constant 0 : index
    %1 = vector.load %arg2[%c0_1, %c0_2] : memref<896x1024xbf16, #tpu.memory_space<vmem>>, vector<896x1024xbf16>
    %cst = arith.constant dense<0.000000e+00> : vector<16x1024xf32>
    %2 = tpu.matmul %0, %1, %cst {dimension_numbers = #tpu.dot_dimension_numbers<[1], [0], [0], [1], [0, 0, 1, 1], [], []>} : vector<16x896xbf16>, vector<896x1024xbf16>, vector<16x1024xf32> -> vector<16x1024xf32>
    %c0_3 = arith.constant 0 : index
    %c0_4 = arith.constant 0 : index
    %3 = vector.load %arg3[%c0_3, %c0_4] : memref<1x1024xf32, #tpu.memory_space<vmem>>, vector<1x1024xf32>
    %4 = vector.broadcast %3 : vector<1x1024xf32> to vector<16x1024xf32>
    %5 = arith.addf %2, %4 : vector<16x1024xf32>
    %cst_5 = arith.constant 0.000000e+00 : f32
    %6 = vector.broadcast %cst_5 : f32 to vector<16x1024xf32>
    %7 = arith.maximumf %5, %6 : vector<16x1024xf32>
    %8 = arith.truncf %7 : vector<16x1024xf32> to vector<16x1024xbf16>
    %c0_6 = arith.constant 0 : index
    %c0_7 = arith.constant 0 : index
    %9 = vector.load %arg4[%c0_6, %c0_7] : memref<1024x512xbf16, #tpu.memory_space<vmem>>, vector<1024x512xbf16>
    %cst_8 = arith.constant dense<0.000000e+00> : vector<16x512xf32>
    %10 = tpu.matmul %8, %9, %cst_8 {dimension_numbers = #tpu.dot_dimension_numbers<[1], [0], [0], [1], [0, 0, 1, 1], [], []>} : vector<16x1024xbf16>, vector<1024x512xbf16>, vector<16x512xf32> -> vector<16x512xf32>
    %c0_9 = arith.constant 0 : index
    %c0_10 = arith.constant 0 : index
    %11 = vector.load %arg5[%c0_9, %c0_10] : memref<1x512xf32, #tpu.memory_space<vmem>>, vector<1x512xf32>
    %12 = vector.broadcast %11 : vector<1x512xf32> to vector<16x512xf32>
    %13 = arith.addf %10, %12 : vector<16x512xf32>
    %cst_11 = arith.constant 0.000000e+00 : f32
    %14 = vector.broadcast %cst_11 : f32 to vector<16x512xf32>
    %15 = arith.maximumf %13, %14 : vector<16x512xf32>
    %16 = arith.truncf %15 : vector<16x512xf32> to vector<16x512xbf16>
    %c0_12 = arith.constant 0 : index
    %c0_13 = arith.constant 0 : index
    %17 = vector.load %arg6[%c0_12, %c0_13] : memref<512x4096xbf16, #tpu.memory_space<vmem>>, vector<512x4096xbf16>
    %cst_14 = arith.constant dense<0.000000e+00> : vector<16x4096xf32>
    %18 = tpu.matmul %16, %17, %cst_14 {dimension_numbers = #tpu.dot_dimension_numbers<[1], [0], [0], [1], [0, 0, 1, 1], [], []>} : vector<16x512xbf16>, vector<512x4096xbf16>, vector<16x4096xf32> -> vector<16x4096xf32>
    %c0_15 = arith.constant 0 : index
    %c0_16 = arith.constant 0 : index
    %19 = vector.load %arg7[%c0_15, %c0_16] : memref<1x4096xf32, #tpu.memory_space<vmem>>, vector<1x4096xf32>
    %20 = vector.broadcast %19 : vector<1x4096xf32> to vector<16x4096xf32>
    %21 = arith.addf %18, %20 : vector<16x4096xf32>
    %c0_17 = arith.constant 0 : index
    %c0_18 = arith.constant 0 : index
    %22 = vector.load %arg8[%c0_17, %c0_18] : memref<16x4096xf32, #tpu.memory_space<vmem>>, vector<16x4096xf32>
    tpu.vector_store %arg8[%c0_17, %c0_18], %21 {strides = array<i32>} : memref<16x4096xf32, #tpu.memory_space<vmem>>, vector<16x4096xf32>,
    return
  }
  func.func @transform_0(%arg0: i32) -> (i32, i32) {
    %c0_i32 = arith.constant 0 : i32
    %c0_i32_0 = arith.constant 0 : i32
    return %arg0, %c0_i32 : i32, i32
  }
  func.func @transform_1(%arg0: i32) -> (i32, i32) {
    %c0_i32 = arith.constant 0 : i32
    %c0_i32_0 = arith.constant 0 : i32
    %c0_i32_1 = arith.constant 0 : i32
    return %c0_i32, %c0_i32_0 : i32, i32
  }
  func.func @transform_2(%arg0: i32) -> (i32, i32) {
    %c0_i32 = arith.constant 0 : i32
    %c0_i32_0 = arith.constant 0 : i32
    %c0_i32_1 = arith.constant 0 : i32
    return %c0_i32, %c0_i32_0 : i32, i32
  }
  func.func @transform_3(%arg0: i32) -> (i32, i32) {
    %c0_i32 = arith.constant 0 : i32
    %c0_i32_0 = arith.constant 0 : i32
    %c0_i32_1 = arith.constant 0 : i32
    return %c0_i32, %c0_i32_0 : i32, i32
  }
  func.func @transform_4(%arg0: i32) -> (i32, i32) {
    %c0_i32 = arith.constant 0 : i32
    %c0_i32_0 = arith.constant 0 : i32
    %c0_i32_1 = arith.constant 0 : i32
    return %c0_i32, %c0_i32_0 : i32, i32
  }
  func.func @transform_5(%arg0: i32) -> (i32, i32) {
    %c0_i32 = arith.constant 0 : i32
    %c0_i32_0 = arith.constant 0 : i32
    %c0_i32_1 = arith.constant 0 : i32
    return %c0_i32, %c0_i32_0 : i32, i32
  }
  func.func @transform_6(%arg0: i32) -> (i32, i32) {
    %c0_i32 = arith.constant 0 : i32
    %c0_i32_0 = arith.constant 0 : i32
    %c0_i32_1 = arith.constant 0 : i32
    return %c0_i32, %c0_i32_0 : i32, i32
  }
  func.func @transform_7(%arg0: i32) -> (i32, i32) {
    %c0_i32 = arith.constant 0 : i32
    %c0_i32_0 = arith.constant 0 : i32
    return %arg0, %c0_i32 : i32, i32
  }
}

</mosaic_0001>

<bundles_post_ra>
// kernel: tpu_custom_call.1
= control target key start
LH: loop header
LB: loop body
LE: loop exit
PB: predicated region body
PF: predicated region fallthrough
CT: control target
= control target key end

     0   :  { %12 = vsyncpa [#allocation3], 0  ;;  %s16212_s0 = inlined_call_operand.hbm [shape: bf16[16,896], index: 0, kind: input, shape index: {}]   ;;  %s16213_s1 = inlined_call_operand.hbm [shape: bf16[896,1024], index: 1, kind: input, shape index: {}]   ;;  %s16214_s2 = inlined_call_operand.hbm [shape: f32[1,1024], index: 2, kind: input, shape index: {}]   ;;  %s16215_s3 = inlined_call_operand.hbm [shape: bf16[1024,512], index: 3, kind: input, shape index: {}]   ;;  %s16216_s4 = inlined_call_operand.hbm [shape: f32[1,512], index: 4, kind: input, shape index: {}]   ;;  %s16217_s5 = inlined_call_operand.hbm [shape: bf16[512,4096], index: 5, kind: input, shape index: {}]   ;;  %s16218_s6 = inlined_call_operand.hbm [shape: f32[1,4096], index: 6, kind: input, shape index: {}]   ;;  %s16219_s7 = inlined_call_operand.hbm [shape: f32[16,4096], index: 7, kind: output, shape index: {}]  }
   0x1   :  { %13 = vsyncpa [#allocation6], 0 }
   0x2   :  { %14 = vsyncpa [#allocation9], 0 }
   0x3   :  { %15 = vsyncpa [#allocation12], 0 }
   0x4   :  { %16 = vsyncpa [#allocation4], 0  ;;  %s15853_s24 = smov [#allocation5]   ;;  %s15667_s28 = scalar_lea.hbm %s16213_s1, 57344 }
   0x5   :  { %s34_s25 = sshll.u32 %s15853_s24, 4  ;;  %p15668_p0 = scmp.ne.s32.totalorder %s16213_s1, %s15667_s28  ;;  %s35_s25 = int_to_ptr.vmem [resolvable:$true] %s34_s25 }
   0x6   :  { %p15671_p1 = scmp.lt.u32.totalorder %s15667_s28, %s16213_s1 }
   0x8   :  { %p15673_p2 = pnand %p15671_p1, %p15668_p0 }
   0xa   :  { %15676 = shalt.err (!%p15673_p2)
}
   0xb   :  { %s15677_s10 = scalar_lea.vmem %s35_s25, 57344  ;;  %p15682_p4 = scmp.lt.s32.totalorder %s35_s25, %s35_s25 }
   0xc   :  { %p15678_p3 = scmp.ne.s32.totalorder %s35_s25, %s15677_s10  ;;  %p15683_p5 = scmp.lt.s32.totalorder %s15677_s10, %s15677_s10 }
   0xe   :  { %p15684_p6 = por %p15683_p5, %p15682_p4 }
  0x10   :  { %p15685_p7 = pnand %p15684_p6, %p15678_p3 }
  0x12   :  { %15688 = shalt.err (!%p15685_p7)
}
  0x13   :  { %s15854_s11 = smov 512   ;;  %s15855_s12 = smov 32  }
  0x14   :  { %40 = dma.hbm_to_vmem [thread:$0]  %s16213_s1, 57344, %s35_s25, [#allocation6], %s15854_s11, %s15854_s11, %s15855_s12  }
  0x15   :  { %s15856_s15 = smov [#allocation8]   ;;  %s15689_s19 = scalar_lea.hbm %s16215_s3, 32768 }
  0x16   :  { %s56_s16 = sshll.u32 %s15856_s15, 4  ;;  %p15690_p8 = scmp.ne.s32.totalorder %s16215_s3, %s15689_s19  ;;  %s57_s16 = int_to_ptr.vmem [resolvable:$true] %s56_s16 }
  0x17   :  { %p15693_p9 = scmp.lt.u32.totalorder %s15689_s19, %s16215_s3 }
  0x19   :  { %p15695_p10 = pnand %p15693_p9, %p15690_p8 }
  0x1b   :  { %15698 = shalt.err (!%p15695_p10)
}
  0x1c   :  { %s15699_s24 = scalar_lea.vmem %s57_s16, 32768  ;;  %p15704_p12 = scmp.lt.s32.totalorder %s57_s16, %s57_s16 }
  0x1d   :  { %p15700_p11 = scmp.ne.s32.totalorder %s57_s16, %s15699_s24  ;;  %p15705_p13 = scmp.lt.s32.totalorder %s15699_s24, %s15699_s24 }
  0x1f   :  { %p15706_p0 = por %p15705_p13, %p15704_p12 }
  0x21   :  { %p15707_p1 = pnand %p15706_p0, %p15700_p11 }
  0x23   :  { %15710 = shalt.err (!%p15707_p1)
}
  0x24   :  { %s15857_s1 = smov 256   ;;  %s15858_s25 = smov 16  }
  0x25   :  { %62 = dma.hbm_to_vmem [thread:$0]  %s16215_s3, 32768, %s57_s16, [#allocation9], %s15857_s1, %s15857_s1, %s15858_s25  }
  0x26   :  { %s15859_s28 = smov [#allocation11]   ;;  %s15711_s9 = scalar_lea.hbm %s16217_s5, 131072 }
  0x27   :  { %s78_s29 = sshll.u32 %s15859_s28, 4  ;;  %p15712_p2 = scmp.ne.s32.totalorder %s16217_s5, %s15711_s9  ;;  %s79_s29 = int_to_ptr.vmem [resolvable:$true] %s78_s29 }
  0x28   :  { %p15715_p3 = scmp.lt.u32.totalorder %s15711_s9, %s16217_s5 }
  0x2a   :  { %p15717_p4 = pnand %p15715_p3, %p15712_p2 }
  0x2c   :  { %15720 = shalt.err (!%p15717_p4)
}
  0x2d   :  { %s15721_s14 = scalar_lea.vmem %s79_s29, 131072  ;;  %p15726_p6 = scmp.lt.s32.totalorder %s79_s29, %s79_s29 }
  0x2e   :  { %p15722_p5 = scmp.ne.s32.totalorder %s79_s29, %s15721_s14  ;;  %p15727_p7 = scmp.lt.s32.totalorder %s15721_s14, %s15721_s14 }
  0x30   :  { %p15728_p8 = por %p15727_p7, %p15726_p6 }
  0x32   :  { %p15729_p9 = pnand %p15728_p8, %p15722_p5 }
  0x34   :  { %15732 = shalt.err (!%p15729_p9)
}
  0x35   :  { %s15860_s3 = smov 2048   ;;  %s15861_s15 = smov 128  }
  0x36   :  { %84 = dma.hbm_to_vmem [thread:$0]  %s16217_s5, 131072, %s79_s29, [#allocation12], %s15860_s3, %s15860_s3, %s15861_s15  }
  0x37   :  { %s15862_s18 = smov [#allocation2]   ;;  %s15733_s22 = scalar_lea.hbm %s16212_s0, 896 }
  0x38   :  { %s22_s19 = sshll.u32 %s15862_s18, 4  ;;  %p15734_p10 = scmp.ne.s32.totalorder %s16212_s0, %s15733_s22  ;;  %s23_s19 = int_to_ptr.vmem [resolvable:$true] %s22_s19 }
  0x39   :  { %p15737_p11 = scmp.lt.u32.totalorder %s15733_s22, %s16212_s0 }
  0x3b   :  { %p15739_p12 = pnand %p15737_p11, %p15734_p10 }
  0x3d   :  { %15742 = shalt.err (!%p15739_p12)
}
  0x3e   :  { %s15743_s27 = scalar_lea.vmem %s23_s19, 896  ;;  %p15748_p0 = scmp.lt.s32.totalorder %s23_s19, %s23_s19 }
  0x3f   :  { %p15744_p13 = scmp.ne.s32.totalorder %s23_s19, %s15743_s27  ;;  %p15749_p1 = scmp.lt.s32.totalorder %s15743_s27, %s15743_s27 }
  0x41   :  { %p15750_p2 = por %p15749_p1, %p15748_p0 }
  0x43   :  { %p15751_p3 = pnand %p15750_p2, %p15744_p13 }
  0x45   :  { %15754 = shalt.err (!%p15751_p3)
}
  0x46   :  { %s15863_s5 = smov 448   ;;  %s15864_s28 = smov 28  }
  0x47   :  { %28 = dma.hbm_to_vmem [thread:$0]  %s16212_s0, 896, %s23_s19, [#allocation3], %s15863_s5, %s15863_s5, %s15864_s28  }
  0x48   :  { %s15865_s8 = smov [#allocation7]   ;;  %s15866_s10 = smov [#allocation10]  }
  0x49   :  { %s47_s9 = sshll.u32 %s15865_s8, 4  ;;  %s69_s11 = sshll.u32 %s15866_s10, 4  ;;  %s48_s9 = int_to_ptr.vmem [resolvable:$true] %s47_s9  ;;  %s70_s11 = int_to_ptr.vmem [resolvable:$true] %s69_s11 }
  0x4a   :  { %s15755_s14 = scalar_lea.hbm %s16214_s2, 128 }
  0x4b   :  { %p15756_p4 = scmp.ne.s32.totalorder %s16214_s2, %s15755_s14  ;;  %p15759_p5 = scmp.lt.u32.totalorder %s15755_s14, %s16214_s2 }
  0x4d   :  { %p15761_p6 = pnand %p15759_p5, %p15756_p4 }
  0x4f   :  { %15764 = shalt.err (!%p15761_p6)
}
  0x50   :  { %s15765_s0 = scalar_lea.vmem %s48_s9, 128  ;;  %p15770_p8 = scmp.lt.s32.totalorder %s48_s9, %s48_s9 }
  0x51   :  { %p15766_p7 = scmp.ne.s32.totalorder %s48_s9, %s15765_s0  ;;  %p15771_p9 = scmp.lt.s32.totalorder %s15765_s0, %s15765_s0 }
  0x53   :  { %p15772_p10 = por %p15771_p9, %p15770_p8 }
  0x55   :  { %p15773_p11 = pnand %p15772_p10, %p15766_p7 }
  0x57   :  { %15776 = shalt.err (!%p15773_p11)
}
  0x58   :  { %50 = dma.hbm_to_vmem [thread:$0]  %s16214_s2, 128, %s48_s9, [#allocation6]  }
  0x59   :  { %s15777_s22 = scalar_lea.hbm %s16216_s4, 64 }
  0x5a   :  { %p15778_p12 = scmp.ne.s32.totalorder %s16216_s4, %s15777_s22  ;;  %p15781_p13 = scmp.lt.u32.totalorder %s15777_s22, %s16216_s4 }
  0x5c   :  { %p15783_p0 = pnand %p15781_p13, %p15778_p12 }
  0x5e   :  { %15786 = shalt.err (!%p15783_p0)
}
  0x5f   :  { %s15787_s27 = scalar_lea.vmem %s70_s11, 64  ;;  %p15792_p2 = scmp.lt.s32.totalorder %s70_s11, %s70_s11 }
  0x60   :  { %p15788_p1 = scmp.ne.s32.totalorder %s70_s11, %s15787_s27  ;;  %p15793_p3 = scmp.lt.s32.totalorder %s15787_s27, %s15787_s27 }
  0x62   :  { %p15794_p4 = por %p15793_p3, %p15792_p2 }
  0x64   :  { %p15795_p5 = pnand %p15794_p4, %p15788_p1 }
  0x66   :  { %15798 = shalt.err (!%p15795_p5)
}
  0x67   :  { %72 = dma.hbm_to_vmem [thread:$0]  %s16216_s4, 64, %s70_s11, [#allocation9]  }
  0x68   :  { %s15867_s28 = smov [#allocation13]   ;;  %s15799_s9 = scalar_lea.hbm %s16218_s6, 512 }
  0x69   :  { %s91_s29 = sshll.u32 %s15867_s28, 4  ;;  %p15800_p6 = scmp.ne.s32.totalorder %s16218_s6, %s15799_s9  ;;  %s92_s29 = int_to_ptr.vmem [resolvable:$true] %s91_s29 }
  0x6a   :  { %p15803_p7 = scmp.lt.u32.totalorder %s15799_s9, %s16218_s6 }
  0x6c   :  { %p15805_p8 = pnand %p15803_p7, %p15800_p6 }
  0x6e   :  { %15808 = shalt.err (!%p15805_p8)
}
  0x6f   :  { %s15809_s3 = scalar_lea.vmem %s92_s29, 512  ;;  %p15814_p10 = scmp.lt.s32.totalorder %s92_s29, %s92_s29 }
  0x70   :  { %p15810_p9 = scmp.ne.s32.totalorder %s92_s29, %s15809_s3  ;;  %p15815_p11 = scmp.lt.s32.totalorder %s15809_s3, %s15809_s3 }
  0x72   :  { %p15816_p12 = por %p15815_p11, %p15814_p10 }
  0x74   :  { %p15817_p13 = pnand %p15816_p12, %p15810_p9 }
  0x76   :  { %15820 = shalt.err (!%p15817_p13)
}
  0x77   :  { %94 = dma.hbm_to_vmem [thread:$0]  %s16218_s6, 512, %s92_s29, [#allocation12]  }
  0x78   :  { %15843 = dma.done.wait [#allocation3], 896  }
  0x79   :  { %15844 = vsyncadd [#allocation3], 4294966400 }
  0x7a   :  { %15845 = dma.done.wait [#allocation6], 57472  }
  0x7b   :  { %15846 = vsyncadd [#allocation6], 4294909824 }
  0x7c   :  { %15847 = dma.done.wait [#allocation9], 32832  }
  0x7d   :  { %15848 = vsyncadd [#allocation9], 4294934464 }
  0x7e   :  { %15849 = dma.done.wait [#allocation12], 131584  }
  0x7f   :  { %15850 = vsyncadd [#allocation12], 4294835712  ;;  %v125_v0 = vld [vmem:[#allocation5] sm:$0xff]  ;;  %v126_v2 = vld [vmem:[#allocation5 + $0x8] sm:$0xff]  ;;  %s15869_s6 = smov [#allocation14]  }
  0x80   :  { %v129_v1 = vld [vmem:[#allocation5 + $0x20] sm:$0xff]  ;;  %v130_v4 = vld [vmem:[#allocation5 + $0x28] sm:$0xff]  ;;  %s13274_s15 = sshll.u32 %s15869_s6, 4  ;;  %s13275_s15 = int_to_ptr.vmem [resolvable:$true] %s13274_s15 }
  0x81   :  { %v13297_v3 = vcombine.high %v125_v0, %v129_v1  ;;  %v13296_v5 = vcombine.low %v125_v0, %v129_v1  ;;  %v133_v6 = vld [vmem:[#allocation5 + $0x40] sm:$0xff]  ;;  %v13299_v8 = vcombine.high %v126_v2, %v130_v4  ;;  %v13298_v9 = vcombine.low %v126_v2, %v130_v4  ;;  %v134_v11 = vld [vmem:[#allocation5 + $0x48] sm:$0xff]  ;;  %s15821_s16 = scalar_lea.vmem %s13275_s15, 8192  ;;  %p15826_p1 = scmp.lt.s32.totalorder %s13275_s15, %s13275_s15 }
  0x82   :  { %v137_v7 = vld [vmem:[#allocation5 + $0x60] sm:$0xff]  ;;  %v138_v12 = vld [vmem:[#allocation5 + $0x68] sm:$0xff]  ;;  %p15822_p0 = scmp.ne.s32.totalorder %s13275_s15, %s15821_s16  ;;  %p15827_p2 = scmp.lt.s32.totalorder %s15821_s16, %s15821_s16 }
  0x83   :  { %v13305_v10 = vcombine.high %v133_v6, %v137_v7  ;;  %v141_v13 = vld [vmem:[#allocation5 + $0x80] sm:$0xff]  ;;  %2891 = vmatprep.subr.bf16.mxu0 %v13297_v3  ;;  %v13307_v14 = vcombine.high %v134_v11, %v138_v12  ;;  %v142_v16 = vld [vmem:[#allocation5 + $0x88] sm:$0xff]  ;;  %3063 = vmatprep.subr.bf16.mxu1 %v13299_v8  ;;  %v13304_v18 = vcombine.low %v133_v6, %v137_v7 }
  0x84   :  { %v145_v15 = vld [vmem:[#allocation5 + $0xa0] sm:$0xff]  ;;  %v146_v17 = vld [vmem:[#allocation5 + $0xa8] sm:$0xff]  ;;  %2892 = vmatpush1.bf16.msra.mxu0 %v13296_v5  ;;  %3064 = vmatpush1.bf16.msra.mxu1 %v13298_v9  ;;  %v13306_v19 = vcombine.low %v134_v11, %v138_v12  ;;  %p15828_p3 = por %p15827_p2, %p15826_p1 }
  0x85   :  { %2893 = vmatprep.subr.bf16.mxu0 %v13305_v10  ;;  %v13313_v20 = vcombine.high %v141_v13, %v145_v15  ;;  %3065 = vmatprep.subr.bf16.mxu1 %v13307_v14  ;;  %v13315_v21 = vcombine.high %v142_v16, %v146_v17  ;;  %v149_v22 = vld [vmem:[#allocation5 + $0xc0] sm:$0xff]  ;;  %v150_v24 = vld [vmem:[#allocation5 + $0xc8] sm:$0xff]  ;;  %v13312_v26 = vcombine.low %v141_v13, %v145_v15 }
  0x86   :  { %v153_v23 = vld [vmem:[#allocation5 + $0xe0] sm:$0xff]  ;;  %v154_v25 = vld [vmem:[#allocation5 + $0xe8] sm:$0xff]  ;;  %v13314_v27 = vcombine.low %v142_v16, %v146_v17  ;;  %p15829_p4 = pnand %p15828_p3, %p15822_p0 }
  0x87   :  { %v13321_v28 = vcombine.high %v149_v22, %v153_v23  ;;  %v13323_v29 = vcombine.high %v150_v24, %v154_v25  ;;  %v157_v30 = vld [vmem:[#allocation5 + $0x100] sm:$0xff]  ;;  %v158_v32 = vld [vmem:[#allocation5 + $0x108] sm:$0xff]  ;;  %v13320_v34 = vcombine.low %v149_v22, %v153_v23  ;;  %v13322_v35 = vcombine.low %v150_v24, %v154_v25 }
  0x88   :  { %2894 = vmatpush1.bf16.msra.mxu0 %v13304_v18  ;;  %3066 = vmatpush1.bf16.msra.mxu1 %v13306_v19  ;;  %v161_v31 = vld [vmem:[#allocation5 + $0x120] sm:$0xff]  ;;  %v162_v33 = vld [vmem:[#allocation5 + $0x128] sm:$0xff] }
  0x89   :  { %2895 = vmatprep.subr.bf16.mxu0 %v13313_v20  ;;  %3067 = vmatprep.subr.bf16.mxu1 %v13315_v21  ;;  %v13329_v36 = vcombine.high %v157_v30, %v161_v31  ;;  %v13331_v37 = vcombine.high %v158_v32, %v162_v33  ;;  %v165_v38 = vld [vmem:[#allocation5 + $0x140] sm:$0xff]  ;;  %v166_v40 = vld [vmem:[#allocation5 + $0x148] sm:$0xff]  ;;  %v13328_v42 = vcombine.low %v157_v30, %v161_v31 }
  0x8a   :  { %v169_v39 = vld [vmem:[#allocation5 + $0x160] sm:$0xff]  ;;  %v170_v41 = vld [vmem:[#allocation5 + $0x168] sm:$0xff]  ;;  %v13330_v43 = vcombine.low %v158_v32, %v162_v33 }
  0x8b   :  { %v13337_v44 = vcombine.high %v165_v38, %v169_v39  ;;  %v13339_v45 = vcombine.high %v166_v40, %v170_v41  ;;  %v173_v46 = vld [vmem:[#allocation5 + $0x180] sm:$0xff]  ;;  %v174_v48 = vld [vmem:[#allocation5 + $0x188] sm:$0xff]  ;;  %v13336_v50 = vcombine.low %v165_v38, %v169_v39  ;;  %v13338_v51 = vcombine.low %v166_v40, %v170_v41 }
  0x8c   :  { %2896 = vmatpush1.bf16.msra.mxu0 %v13312_v26  ;;  %3068 = vmatpush1.bf16.msra.mxu1 %v13314_v27  ;;  %v177_v47 = vld [vmem:[#allocation5 + $0x1a0] sm:$0xff]  ;;  %v178_v49 = vld [vmem:[#allocation5 + $0x1a8] sm:$0xff] }
  0x8d   :  { %2897 = vmatprep.subr.bf16.mxu0 %v13321_v28  ;;  %3069 = vmatprep.subr.bf16.mxu1 %v13323_v29  ;;  %v13345_v52 = vcombine.high %v173_v46, %v177_v47  ;;  %v13347_v53 = vcombine.high %v174_v48, %v178_v49  ;;  %v181_v54 = vld [vmem:[#allocation5 + $0x1c0] sm:$0xff]  ;;  %v15266_v56 = vld [vmem:[#allocation2 + $0x4] ss:$28 sps:$4 sm:$0xff]   ;;  %v13344_v59 = vcombine.low %v173_v46, %v177_v47 }
  0x8e   :  { %v185_v55 = vld [vmem:[#allocation5 + $0x1e0] sm:$0xff]  ;;  %v182_v57 = vld [vmem:[#allocation5 + $0x1c8] sm:$0xff]  ;;  %2923 = vmatprep.mubr.bf16.mxu0 %v15266_v56  ;;  %v13346_v60 = vcombine.low %v174_v48, %v178_v49  ;;  %3095 = vmatprep.mubr.bf16.mxu1 %v15266_v56 }
  0x8f   :  { %v186_v58 = vld [vmem:[#allocation5 + $0x1e8] sm:$0xff]  ;;  %v13353_v61 = vcombine.high %v181_v54, %v185_v55  ;;  %v189_v63 = vld [vmem:[#allocation5 + $0x200] sm:$0xff]  ;;  %v13352_v3 = vcombine.low %v181_v54, %v185_v55 }
  0x90   :  { %2898 = vmatpush1.bf16.msra.mxu0 %v13320_v34  ;;  %3070 = vmatpush1.bf16.msra.mxu1 %v13322_v35  ;;  %v13355_v62 = vcombine.high %v182_v57, %v186_v58  ;;  %v193_v0 = vld [vmem:[#allocation5 + $0x220] sm:$0xff]  ;;  %v190_v1 = vld [vmem:[#allocation5 + $0x208] sm:$0xff]  ;;  %v13354_v4 = vcombine.low %v182_v57, %v186_v58 }
  0x91   :  { %2899 = vmatprep.subr.bf16.mxu0 %v13329_v36  ;;  %3071 = vmatprep.subr.bf16.mxu1 %v13331_v37  ;;  %v194_v2 = vld [vmem:[#allocation5 + $0x228] sm:$0xff]  ;;  %v13361_v5 = vcombine.high %v189_v63, %v193_v0  ;;  %v197_v7 = vld [vmem:[#allocation5 + $0x240] sm:$0xff]  ;;  %v13360_v11 = vcombine.low %v189_v63, %v193_v0 }
  0x92   :  { %v13363_v6 = vcombine.high %v190_v1, %v194_v2  ;;  %v201_v8 = vld [vmem:[#allocation5 + $0x260] sm:$0xff]  ;;  %v198_v9 = vld [vmem:[#allocation5 + $0x248] sm:$0xff]  ;;  %v13362_v12 = vcombine.low %v190_v1, %v194_v2 }
  0x93   :  { %v202_v10 = vld [vmem:[#allocation5 + $0x268] sm:$0xff]  ;;  %v13369_v13 = vcombine.high %v197_v7, %v201_v8  ;;  %v205_v15 = vld [vmem:[#allocation5 + $0x280] sm:$0xff]  ;;  %v13368_v19 = vcombine.low %v197_v7, %v201_v8 }
  0x94   :  { %2900 = vmatpush1.bf16.msra.mxu0 %v13328_v42  ;;  %3072 = vmatpush1.bf16.msra.mxu1 %v13330_v43  ;;  %v13371_v14 = vcombine.high %v198_v9, %v202_v10  ;;  %v209_v16 = vld [vmem:[#allocation5 + $0x2a0] sm:$0xff]  ;;  %v206_v17 = vld [vmem:[#allocation5 + $0x288] sm:$0xff]  ;;  %v13370_v20 = vcombine.low %v198_v9, %v202_v10 }
  0x95   :  { %2901 = vmatprep.subr.bf16.mxu0 %v13337_v44  ;;  %3073 = vmatprep.subr.bf16.mxu1 %v13339_v45  ;;  %v210_v18 = vld [vmem:[#allocation5 + $0x2a8] sm:$0xff]  ;;  %v13377_v21 = vcombine.high %v205_v15, %v209_v16  ;;  %v213_v23 = vld [vmem:[#allocation5 + $0x2c0] sm:$0xff]  ;;  %v13376_v27 = vcombine.low %v205_v15, %v209_v16 }
  0x96   :  { %v13379_v22 = vcombine.high %v206_v17, %v210_v18  ;;  %v217_v24 = vld [vmem:[#allocation5 + $0x2e0] sm:$0xff]  ;;  %v214_v25 = vld [vmem:[#allocation5 + $0x2c8] sm:$0xff]  ;;  %v13378_v28 = vcombine.low %v206_v17, %v210_v18  ;;  %v15269_v18 = vld [vmem:[#allocation2 + $0xc] ss:$28 sps:$4 sm:$0xff]  }
  0x97   :  { %v218_v26 = vld [vmem:[#allocation5 + $0x2e8] sm:$0xff]  ;;  %v13385_v29 = vcombine.high %v213_v23, %v217_v24  ;;  %v221_v31 = vld [vmem:[#allocation5 + $0x300] sm:$0xff]  ;;  %v13384_v35 = vcombine.low %v213_v23, %v217_v24 }
  0x98   :  { %2902 = vmatpush1.bf16.msra.mxu0 %v13336_v50  ;;  %3074 = vmatpush1.bf16.msra.mxu1 %v13338_v51  ;;  %v13387_v30 = vcombine.high %v214_v25, %v218_v26  ;;  %v225_v32 = vld [vmem:[#allocation5 + $0x320] sm:$0xff]  ;;  %v222_v33 = vld [vmem:[#allocation5 + $0x308] sm:$0xff]  ;;  %v13386_v36 = vcombine.low %v214_v25, %v218_v26 }
  0x99   :  { %2903 = vmatprep.subr.bf16.mxu0 %v13345_v52  ;;  %3075 = vmatprep.subr.bf16.mxu1 %v13347_v53  ;;  %v226_v34 = vld [vmem:[#allocation5 + $0x328] sm:$0xff]  ;;  %v13393_v37 = vcombine.high %v221_v31, %v225_v32  ;;  %v229_v39 = vld [vmem:[#allocation5 + $0x340] sm:$0xff]  ;;  %v13392_v43 = vcombine.low %v221_v31, %v225_v32 }
  0x9a   :  { %v13395_v38 = vcombine.high %v222_v33, %v226_v34  ;;  %v233_v40 = vld [vmem:[#allocation5 + $0x360] sm:$0xff]  ;;  %v230_v41 = vld [vmem:[#allocation5 + $0x348] sm:$0xff]  ;;  %v13394_v44 = vcombine.low %v222_v33, %v226_v34 }
  0x9b   :  { %v234_v42 = vld [vmem:[#allocation5 + $0x368] sm:$0xff]  ;;  %v13401_v45 = vcombine.high %v229_v39, %v233_v40  ;;  %v237_v47 = vld [vmem:[#allocation5 + $0x380] sm:$0xff]  ;;  %v13400_v51 = vcombine.low %v229_v39, %v233_v40 }
  0x9c   :  { %2904 = vmatpush1.bf16.msra.mxu0 %v13344_v59  ;;  %3076 = vmatpush1.bf16.msra.mxu1 %v13346_v60  ;;  %v13403_v46 = vcombine.high %v230_v41, %v234_v42  ;;  %v241_v48 = vld [vmem:[#allocation5 + $0x3a0] sm:$0xff]  ;;  %v238_v49 = vld [vmem:[#allocation5 + $0x388] sm:$0xff]  ;;  %v13402_v52 = vcombine.low %v230_v41, %v234_v42 }
  0x9d   :  { %2905 = vmatprep.subr.bf16.mxu0 %v13353_v61  ;;  %3077 = vmatprep.subr.bf16.mxu1 %v13355_v62  ;;  %v242_v50 = vld [vmem:[#allocation5 + $0x3a8] sm:$0xff]  ;;  %v13409_v53 = vcombine.high %v237_v47, %v241_v48  ;;  %v245_v55 = vld [vmem:[#allocation5 + $0x3c0] sm:$0xff]  ;;  %v13408_v59 = vcombine.low %v237_v47, %v241_v48 }
  0x9e   :  { %v13411_v54 = vcombine.high %v238_v49, %v242_v50  ;;  %v249_v56 = vld [vmem:[#allocation5 + $0x3e0] sm:$0xff]  ;;  %v246_v57 = vld [vmem:[#allocation5 + $0x3c8] sm:$0xff]  ;;  %v13410_v60 = vcombine.low %v238_v49, %v242_v50 }
  0x9f   :  { %v250_v58 = vld [vmem:[#allocation5 + $0x3e8] sm:$0xff]  ;;  %v13417_v61 = vcombine.high %v245_v55, %v249_v56  ;;  %v253_v63 = vld [vmem:[#allocation5 + $0x400] sm:$0xff] }
  0xa0   :  { %2906 = vmatpush1.bf16.msra.mxu0 %v13352_v3  ;;  %3078 = vmatpush1.bf16.msra.mxu1 %v13354_v4  ;;  %v13419_v62 = vcombine.high %v246_v57, %v250_v58  ;;  %v257_v0 = vld [vmem:[#allocation5 + $0x420] sm:$0xff]  ;;  %v254_v1 = vld [vmem:[#allocation5 + $0x408] sm:$0xff]  ;;  %v13416_v3 = vcombine.low %v245_v55, %v249_v56  ;;  %v13418_v4 = vcombine.low %v246_v57, %v250_v58 }
  0xa1   :  { %2907 = vmatprep.subr.bf16.mxu0 %v13361_v5  ;;  %3079 = vmatprep.subr.bf16.mxu1 %v13363_v6  ;;  %v258_v2 = vld [vmem:[#allocation5 + $0x428] sm:$0xff]  ;;  %v13425_v5 = vcombine.high %v253_v63, %v257_v0  ;;  %v261_v7 = vld [vmem:[#allocation5 + $0x440] sm:$0xff] }
  0xa2   :  { %v13427_v6 = vcombine.high %v254_v1, %v258_v2  ;;  %v265_v8 = vld [vmem:[#allocation5 + $0x460] sm:$0xff]  ;;  %v262_v10 = vld [vmem:[#allocation5 + $0x448] sm:$0xff] }
  0xa3   :  { %v15268_v9 = vld [vmem:[#allocation2] ss:$28 sps:$4 sm:$0xff]  }
  0xa4   :  { %2908 = vmatpush1.bf16.msra.mxu0 %v13360_v11  ;;  %3080 = vmatpush1.bf16.msra.mxu1 %v13362_v12  ;;  %v266_v11 = vld [vmem:[#allocation5 + $0x468] sm:$0xff]  ;;  %v13424_v12 = vcombine.low %v253_v63, %v257_v0  ;;  %v269_v15 = vld [vmem:[#allocation5 + $0x480] sm:$0xff] }
  0xa5   :  { %2909 = vmatprep.subr.bf16.mxu0 %v13369_v13  ;;  %3081 = vmatprep.subr.bf16.mxu1 %v13371_v14  ;;  %v13426_v13 = vcombine.low %v254_v1, %v258_v2  ;;  %v13433_v14 = vcombine.high %v261_v7, %v265_v8  ;;  %v13435_v16 = vcombine.high %v262_v10, %v266_v11  ;;  %v273_v17 = vld [vmem:[#allocation5 + $0x4a0] sm:$0xff]  ;;  %v286_v34 = vld [vmem:[#allocation5 + $0x508] sm:$0xff] }
  0xa6   :  { %v13441_v23 = vcombine.high %v269_v15, %v273_v17  ;;  %v277_v24 = vld [vmem:[#allocation5 + $0x4c0] sm:$0xff]  ;;  %v294_v42 = vld [vmem:[#allocation5 + $0x548] sm:$0xff] }
  0xa7   :  { %v281_v25 = vld [vmem:[#allocation5 + $0x4e0] sm:$0xff]  ;;  %v302_v50 = vld [vmem:[#allocation5 + $0x588] sm:$0xff] }
  0xa8   :  { %2910 = vmatpush1.bf16.msra.mxu0 %v13368_v19  ;;  %3082 = vmatpush1.bf16.msra.mxu1 %v13370_v20  ;;  %v270_v19 = vld [vmem:[#allocation5 + $0x488] sm:$0xff]  ;;  %v13449_v31 = vcombine.high %v277_v24, %v281_v25  ;;  %v285_v32 = vld [vmem:[#allocation5 + $0x500] sm:$0xff] }
  0xa9   :  { %2911 = vmatprep.subr.bf16.mxu0 %v13377_v21  ;;  %3083 = vmatprep.subr.bf16.mxu1 %v13379_v22  ;;  %v274_v20 = vld [vmem:[#allocation5 + $0x4a8] sm:$0xff]  ;;  %v13432_v21 = vcombine.low %v261_v7, %v265_v8  ;;  %v13434_v22 = vcombine.low %v262_v10, %v266_v11  ;;  %v289_v33 = vld [vmem:[#allocation5 + $0x520] sm:$0xff] }
  0xaa   :  { %v13443_v26 = vcombine.high %v270_v19, %v274_v20  ;;  %v13457_v39 = vcombine.high %v285_v32, %v289_v33  ;;  %v293_v40 = vld [vmem:[#allocation5 + $0x540] sm:$0xff]  ;;  %v310_v58 = vld [vmem:[#allocation5 + $0x5c8] sm:$0xff] }
  0xab   :  { %v297_v41 = vld [vmem:[#allocation5 + $0x560] sm:$0xff]  ;;  %v318_v2 = vld [vmem:[#allocation5 + $0x608] sm:$0xff] }
  0xac   :  { %2912 = vmatpush1.bf16.msra.mxu0 %v13376_v27  ;;  %3084 = vmatpush1.bf16.msra.mxu1 %v13378_v28  ;;  %v278_v27 = vld [vmem:[#allocation5 + $0x4c8] sm:$0xff]  ;;  %v13465_v47 = vcombine.high %v293_v40, %v297_v41  ;;  %v301_v48 = vld [vmem:[#allocation5 + $0x580] sm:$0xff] }
  0xad   :  { %2913 = vmatprep.subr.bf16.mxu0 %v13385_v29  ;;  %3085 = vmatprep.subr.bf16.mxu1 %v13387_v30  ;;  %v282_v28 = vld [vmem:[#allocation5 + $0x4e8] sm:$0xff]  ;;  %v13440_v29 = vcombine.low %v269_v15, %v273_v17  ;;  %v13442_v30 = vcombine.low %v270_v19, %v274_v20  ;;  %v305_v49 = vld [vmem:[#allocation5 + $0x5a0] sm:$0xff] }
  0xae   :  { %v13473_v55 = vcombine.high %v301_v48, %v305_v49  ;;  %v309_v56 = vld [vmem:[#allocation5 + $0x5c0] sm:$0xff]  ;;  %v326_v10 = vld [vmem:[#allocation5 + $0x648] sm:$0xff] }
  0xaf   :  { %v313_v57 = vld [vmem:[#allocation5 + $0x5e0] sm:$0xff]  ;;  %v334_v19 = vld [vmem:[#allocation5 + $0x688] sm:$0xff] }
  0xb0   :  { %2914 = vmatpush1.bf16.msra.mxu0 %v13384_v35  ;;  %3086 = vmatpush1.bf16.msra.mxu1 %v13386_v36  ;;  %v13451_v35 = vcombine.high %v278_v27, %v282_v28  ;;  %v290_v36 = vld [vmem:[#allocation5 + $0x528] sm:$0xff]  ;;  %v13481_v63 = vcombine.high %v309_v56, %v313_v57  ;;  %v317_v0 = vld [vmem:[#allocation5 + $0x600] sm:$0xff] }
  0xb1   :  { %2915 = vmatprep.subr.bf16.mxu0 %v13393_v37  ;;  %3087 = vmatprep.subr.bf16.mxu1 %v13395_v38  ;;  %v13448_v37 = vcombine.low %v277_v24, %v281_v25  ;;  %v13450_v38 = vcombine.low %v278_v27, %v282_v28  ;;  %v321_v1 = vld [vmem:[#allocation5 + $0x620] sm:$0xff]  ;;  %v338_v20 = vld [vmem:[#allocation5 + $0x6a8] sm:$0xff] }
  0xb2   :  { %v13489_v7 = vcombine.high %v317_v0, %v321_v1  ;;  %v325_v8 = vld [vmem:[#allocation5 + $0x640] sm:$0xff]  ;;  %v13507_v27 = vcombine.high %v334_v19, %v338_v20  ;;  %v346_v28 = vld [vmem:[#allocation5 + $0x6e8] sm:$0xff] }
  0xb3   :  { %v337_v17 = vld [vmem:[#allocation5 + $0x6a0] sm:$0xff] }
  0xb4   :  { %2916 = vmatpush1.bf16.msra.mxu0 %v13392_v43  ;;  %3088 = vmatpush1.bf16.msra.mxu1 %v13394_v44  ;;  %v13459_v43 = vcombine.high %v286_v34, %v290_v36  ;;  %v298_v44 = vld [vmem:[#allocation5 + $0x568] sm:$0xff]  ;;  %v341_v24 = vld [vmem:[#allocation5 + $0x6c0] sm:$0xff] }
  0xb5   :  { %2917 = vmatprep.subr.bf16.mxu0 %v13401_v45  ;;  %3089 = vmatprep.subr.bf16.mxu1 %v13403_v46  ;;  %v13456_v45 = vcombine.low %v285_v32, %v289_v33  ;;  %v13458_v46 = vcombine.low %v286_v34, %v290_v36  ;;  %v345_v25 = vld [vmem:[#allocation5 + $0x6e0] sm:$0xff]  ;;  %v350_v34 = vld [vmem:[#allocation5 + $0x708] sm:$0xff] }
  0xb6   :  { %v349_v32 = vld [vmem:[#allocation5 + $0x700] sm:$0xff]  ;;  %v354_v36 = vld [vmem:[#allocation5 + $0x728] sm:$0xff] }
  0xb7   :  { %v353_v33 = vld [vmem:[#allocation5 + $0x720] sm:$0xff] }
  0xb8   :  { %2918 = vmatpush1.bf16.msra.mxu0 %v13400_v51  ;;  %3090 = vmatpush1.bf16.msra.mxu1 %v13402_v52  ;;  %v13467_v51 = vcombine.high %v294_v42, %v298_v44  ;;  %v306_v52 = vld [vmem:[#allocation5 + $0x5a8] sm:$0xff] }
  0xb9   :  { %2919 = vmatprep.subr.bf16.mxu0 %v13409_v53  ;;  %3091 = vmatprep.subr.bf16.mxu1 %v13411_v54  ;;  %v13464_v53 = vcombine.low %v293_v40, %v297_v41  ;;  %v13466_v54 = vcombine.low %v294_v42, %v298_v44  ;;  %v357_v40 = vld [vmem:[#allocation5 + $0x740] sm:$0xff]  ;;  %v358_v42 = vld [vmem:[#allocation5 + $0x748] sm:$0xff] }
  0xba   :  { %v361_v41 = vld [vmem:[#allocation5 + $0x760] sm:$0xff]  ;;  %v362_v44 = vld [vmem:[#allocation5 + $0x768] sm:$0xff] }
  0xbc   :  { %2920 = vmatpush1.bf16.msra.mxu0 %v13408_v59  ;;  %3092 = vmatpush1.bf16.msra.mxu1 %v13410_v60  ;;  %v13475_v59 = vcombine.high %v302_v50, %v306_v52  ;;  %v314_v60 = vld [vmem:[#allocation5 + $0x5e8] sm:$0xff] }
  0xbd   :  { %2921 = vmatprep.subr.bf16.mxu0 %v13417_v61  ;;  %3093 = vmatprep.subr.bf16.mxu1 %v13419_v62  ;;  %v13472_v61 = vcombine.low %v301_v48, %v305_v49  ;;  %v13474_v62 = vcombine.low %v302_v50, %v306_v52  ;;  %v365_v48 = vld [vmem:[#allocation5 + $0x780] sm:$0xff]  ;;  %v366_v50 = vld [vmem:[#allocation5 + $0x788] sm:$0xff] }
  0xbe   :  { %v369_v49 = vld [vmem:[#allocation5 + $0x7a0] sm:$0xff]  ;;  %v370_v52 = vld [vmem:[#allocation5 + $0x7a8] sm:$0xff] }
  0xc0   :  { %2922 = vmatpush1.bf16.msra.mxu0 %v13416_v3  ;;  %3094 = vmatpush1.bf16.msra.mxu1 %v13418_v4  ;;  %v13483_v3 = vcombine.high %v310_v58, %v314_v60  ;;  %v322_v4 = vld [vmem:[#allocation5 + $0x628] sm:$0xff] }
  0xc1   :  { %2934 = vmatprep.subr.bf16.mxu0 %v13425_v5  ;;  %3106 = vmatprep.subr.bf16.mxu1 %v13427_v6  ;;  %v13480_v5 = vcombine.low %v309_v56, %v313_v57  ;;  %v13482_v6 = vcombine.low %v310_v58, %v314_v60  ;;  %v13491_v11 = vcombine.high %v318_v2, %v322_v4  ;;  %v373_v56 = vld [vmem:[#allocation5 + $0x7c0] sm:$0xff]  ;;  %v374_v58 = vld [vmem:[#allocation5 + $0x7c8] sm:$0xff] }
  0xc2   :  { %v377_v57 = vld [vmem:[#allocation5 + $0x7e0] sm:$0xff]  ;;  %v378_v60 = vld [vmem:[#allocation5 + $0x7e8] sm:$0xff] }
  0xc3   :  { %2924 = vmatmul.mubr.bf16.vlgmr.msra.gmra.mrb[0].mxu0 %v15268_v9  ;;  %3096 = vmatmul.mubr.bf16.vlgmr.msra.gmra.mrb[0].mxu1 %v15268_v9  ;;  %v329_v9 = vld [vmem:[#allocation5 + $0x660] sm:$0xff] }
  0xc4   :  { %2935 = vmatpush1.bf16.msra.mxu0 %v13424_v12  ;;  %3107 = vmatpush1.bf16.msra.mxu1 %v13426_v13  ;;  %v330_v12 = vld [vmem:[#allocation5 + $0x668] sm:$0xff]  ;;  %v13488_v13 = vcombine.low %v317_v0, %v321_v1  ;;  %v13497_v15 = vcombine.high %v325_v8, %v329_v9  ;;  %v381_v0 = vld [vmem:[#allocation5 + $0x800] sm:$0xff] }
  0xc5   :  { %2936 = vmatprep.subr.bf16.mxu0 %v13433_v14  ;;  %3108 = vmatprep.subr.bf16.mxu1 %v13435_v16  ;;  %v13490_v14 = vcombine.low %v318_v2, %v322_v4  ;;  %v333_v16 = vld [vmem:[#allocation5 + $0x680] sm:$0xff]  ;;  %v382_v2 = vld [vmem:[#allocation5 + $0x808] sm:$0xff] }
  0xc6   :  { %2966 = vmatprep.mubr.bf16.mxu0 %v15269_v18  ;;  %3138 = vmatprep.mubr.bf16.mxu1 %v15269_v18  ;;  %v13499_v18 = vcombine.high %v326_v10, %v330_v12  ;;  %v385_v1 = vld [vmem:[#allocation5 + $0x820] sm:$0xff]  ;;  %v386_v4 = vld [vmem:[#allocation5 + $0x828] sm:$0xff] }
  0xc8   :  { %2937 = vmatpush1.bf16.msra.mxu0 %v13432_v21  ;;  %3109 = vmatpush1.bf16.msra.mxu1 %v13434_v22  ;;  %v13496_v21 = vcombine.low %v325_v8, %v329_v9  ;;  %v13498_v22 = vcombine.low %v326_v10, %v330_v12  ;;  %v15271_v8 = vld [vmem:[#allocation2 + $0x8] ss:$28 sps:$4 sm:$0xff]   ;;  %v389_v9 = vld [vmem:[#allocation5 + $0x840] sm:$0xff]  ;;  %v13555_v12 = vcombine.high %v382_v2, %v386_v4 }
  0xc9   :  { %2938 = vmatprep.subr.bf16.mxu0 %v13441_v23  ;;  %3110 = vmatprep.subr.bf16.mxu1 %v13443_v26  ;;  %v13505_v23 = vcombine.high %v333_v16, %v337_v17  ;;  %v342_v26 = vld [vmem:[#allocation5 + $0x6c8] sm:$0xff]  ;;  %v393_v10 = vld [vmem:[#allocation5 + $0x860] sm:$0xff] }
  0xcc   :  { %2939 = vmatpush1.bf16.msra.mxu0 %v13440_v29  ;;  %3111 = vmatpush1.bf16.msra.mxu1 %v13442_v30  ;;  %v13504_v29 = vcombine.low %v333_v16, %v337_v17  ;;  %v13506_v30 = vcombine.low %v334_v19, %v338_v20  ;;  %v13554_v16 = vcombine.low %v382_v2, %v386_v4  ;;  %v398_v19 = vld [vmem:[#allocation5 + $0x888] sm:$0xff]  ;;  %v445_v2 = vld [vmem:[#allocation5 + $0xa00] sm:$0xff] }
  0xcd   :  { %2940 = vmatprep.subr.bf16.mxu0 %v13449_v31  ;;  %3112 = vmatprep.subr.bf16.mxu1 %v13451_v35  ;;  %v13513_v31 = vcombine.high %v341_v24, %v345_v25  ;;  %v13515_v35 = vcombine.high %v342_v26, %v346_v28  ;;  %v13561_v17 = vcombine.high %v389_v9, %v393_v10  ;;  %v402_v20 = vld [vmem:[#allocation5 + $0x8a8] sm:$0xff] }
  0xce   :  { %v446_v4 = vld [vmem:[#allocation5 + $0xa08] sm:$0xff] }
  0xd0   :  { %2941 = vmatpush1.bf16.msra.mxu0 %v13448_v37  ;;  %3113 = vmatpush1.bf16.msra.mxu1 %v13450_v38  ;;  %v13512_v37 = vcombine.low %v341_v24, %v345_v25  ;;  %v13514_v38 = vcombine.low %v342_v26, %v346_v28  ;;  %v405_v26 = vld [vmem:[#allocation5 + $0x8c0] sm:$0xff]  ;;  %v406_v28 = vld [vmem:[#allocation5 + $0x8c8] sm:$0xff] }
  0xd1   :  { %2942 = vmatprep.subr.bf16.mxu0 %v13457_v39  ;;  %3114 = vmatprep.subr.bf16.mxu1 %v13459_v43  ;;  %v13521_v39 = vcombine.high %v349_v32, %v353_v33  ;;  %v13523_v43 = vcombine.high %v350_v34, %v354_v36 }
  0xd4   :  { %2943 = vmatpush1.bf16.msra.mxu0 %v13456_v45  ;;  %3115 = vmatpush1.bf16.msra.mxu1 %v13458_v46  ;;  %v13520_v45 = vcombine.low %v349_v32, %v353_v33  ;;  %v13522_v46 = vcombine.low %v350_v34, %v354_v36  ;;  %v13570_v32 = vcombine.low %v398_v19, %v402_v20  ;;  %v413_v34 = vld [vmem:[#allocation5 + $0x900] sm:$0xff]  ;;  %v414_v36 = vld [vmem:[#allocation5 + $0x908] sm:$0xff] }
  0xd5   :  { %2944 = vmatprep.subr.bf16.mxu0 %v13465_v47  ;;  %3116 = vmatprep.subr.bf16.mxu1 %v13467_v51  ;;  %v13529_v47 = vcombine.high %v357_v40, %v361_v41  ;;  %v13531_v51 = vcombine.high %v358_v42, %v362_v44 }
  0xd8   :  { %2945 = vmatpush1.bf16.msra.mxu0 %v13464_v53  ;;  %3117 = vmatpush1.bf16.msra.mxu1 %v13466_v54  ;;  %v13528_v53 = vcombine.low %v357_v40, %v361_v41  ;;  %v13530_v54 = vcombine.low %v358_v42, %v362_v44  ;;  %v421_v42 = vld [vmem:[#allocation5 + $0x940] sm:$0xff]  ;;  %v422_v44 = vld [vmem:[#allocation5 + $0x948] sm:$0xff] }
  0xd9   :  { %2946 = vmatprep.subr.bf16.mxu0 %v13473_v55  ;;  %3118 = vmatprep.subr.bf16.mxu1 %v13475_v59  ;;  %v13537_v55 = vcombine.high %v365_v48, %v369_v49  ;;  %v13539_v59 = vcombine.high %v366_v50, %v370_v52 }
  0xdc   :  { %2947 = vmatpush1.bf16.msra.mxu0 %v13472_v61  ;;  %3119 = vmatpush1.bf16.msra.mxu1 %v13474_v62  ;;  %v13536_v61 = vcombine.low %v365_v48, %v369_v49  ;;  %v13538_v62 = vcombine.low %v366_v50, %v370_v52  ;;  %v429_v50 = vld [vmem:[#allocation5 + $0x980] sm:$0xff]  ;;  %v430_v52 = vld [vmem:[#allocation5 + $0x988] sm:$0xff] }
  0xdd   :  { %2948 = vmatprep.subr.bf16.mxu0 %v13481_v63  ;;  %3120 = vmatprep.subr.bf16.mxu1 %v13483_v3  ;;  %v13545_v63 = vcombine.high %v373_v56, %v377_v57  ;;  %v13547_v3 = vcombine.high %v374_v58, %v378_v60 }
  0xe0   :  { %2949 = vmatpush1.bf16.msra.mxu0 %v13480_v5  ;;  %3121 = vmatpush1.bf16.msra.mxu1 %v13482_v6  ;;  %v13544_v5 = vcombine.low %v373_v56, %v377_v57  ;;  %v13546_v6 = vcombine.low %v374_v58, %v378_v60  ;;  %v437_v58 = vld [vmem:[#allocation5 + $0x9c0] sm:$0xff]  ;;  %v438_v60 = vld [vmem:[#allocation5 + $0x9c8] sm:$0xff] }
  0xe1   :  { %2950 = vmatprep.subr.bf16.mxu0 %v13489_v7  ;;  %3122 = vmatprep.subr.bf16.mxu1 %v13491_v11  ;;  %v13553_v7 = vcombine.high %v381_v0, %v385_v1  ;;  %v390_v11 = vld [vmem:[#allocation5 + $0x848] sm:$0xff] }
  0xe4   :  { %2951 = vmatpush1.bf16.msra.mxu0 %v13488_v13  ;;  %3123 = vmatpush1.bf16.msra.mxu1 %v13490_v14  ;;  %v394_v13 = vld [vmem:[#allocation5 + $0x868] sm:$0xff]  ;;  %v13552_v14 = vcombine.low %v381_v0, %v385_v1 }
  0xe5   :  { %2952 = vmatprep.subr.bf16.mxu0 %v13497_v15  ;;  %3124 = vmatprep.subr.bf16.mxu1 %v13499_v18  ;;  %v397_v15 = vld [vmem:[#allocation5 + $0x880] sm:$0xff]  ;;  %v13562_v24 = vcombine.low %v390_v11, %v394_v13 }
  0xe6   :  { %v401_v18 = vld [vmem:[#allocation5 + $0x8a0] sm:$0xff] }
  0xe7   :  { %v13569_v25 = vcombine.high %v397_v15, %v401_v18 }
  0xe8   :  { %2953 = vmatpush1.bf16.msra.mxu0 %v13496_v21  ;;  %3125 = vmatpush1.bf16.msra.mxu1 %v13498_v22  ;;  %v13563_v21 = vcombine.high %v390_v11, %v394_v13  ;;  %v15272_v22 = vld [vmem:[#allocation2 + $0x14] ss:$28 sps:$4 sm:$0xff]   ;;  %v457_v11 = vld [vmem:[#allocation5 + $0xa60] sm:$0xff] }
  0xe9   :  { %2954 = vmatprep.subr.bf16.mxu0 %v13505_v23  ;;  %3126 = vmatprep.subr.bf16.mxu1 %v13507_v27  ;;  %v13560_v23 = vcombine.low %v389_v9, %v393_v10  ;;  %v409_v27 = vld [vmem:[#allocation5 + $0x8e0] sm:$0xff] }
  0xea   :  { %v13577_v33 = vcombine.high %v405_v26, %v409_v27  ;;  %v453_v10 = vld [vmem:[#allocation5 + $0xa40] sm:$0xff] }
  0xec   :  { %2955 = vmatpush1.bf16.msra.mxu0 %v13504_v29  ;;  %3127 = vmatpush1.bf16.msra.mxu1 %v13506_v30  ;;  %v13571_v29 = vcombine.high %v398_v19, %v402_v20  ;;  %v410_v30 = vld [vmem:[#allocation5 + $0x8e8] sm:$0xff]  ;;  %v465_v19 = vld [vmem:[#allocation5 + $0xaa0] sm:$0xff] }
  0xed   :  { %2956 = vmatprep.subr.bf16.mxu0 %v13513_v31  ;;  %3128 = vmatprep.subr.bf16.mxu1 %v13515_v35  ;;  %v13568_v31 = vcombine.low %v397_v15, %v401_v18  ;;  %v417_v35 = vld [vmem:[#allocation5 + $0x920] sm:$0xff]  ;;  %v13578_v40 = vcombine.low %v406_v28, %v410_v30  ;;  %v462_v20 = vld [vmem:[#allocation5 + $0xa88] sm:$0xff] }
  0xee   :  { %v13585_v41 = vcombine.high %v413_v34, %v417_v35  ;;  %v461_v18 = vld [vmem:[#allocation5 + $0xa80] sm:$0xff] }
  0xf0   :  { %2957 = vmatpush1.bf16.msra.mxu0 %v13512_v37  ;;  %3129 = vmatpush1.bf16.msra.mxu1 %v13514_v38  ;;  %v13579_v37 = vcombine.high %v406_v28, %v410_v30  ;;  %v418_v38 = vld [vmem:[#allocation5 + $0x928] sm:$0xff] }
  0xf1   :  { %2958 = vmatprep.subr.bf16.mxu0 %v13521_v39  ;;  %3130 = vmatprep.subr.bf16.mxu1 %v13523_v43  ;;  %v13576_v39 = vcombine.low %v405_v26, %v409_v27  ;;  %v425_v43 = vld [vmem:[#allocation5 + $0x960] sm:$0xff]  ;;  %v13586_v48 = vcombine.low %v414_v36, %v418_v38  ;;  %v470_v28 = vld [vmem:[#allocation5 + $0xac8] sm:$0xff] }
  0xf2   :  { %v13593_v49 = vcombine.high %v421_v42, %v425_v43  ;;  %v469_v26 = vld [vmem:[#allocation5 + $0xac0] sm:$0xff]  ;;  %v474_v30 = vld [vmem:[#allocation5 + $0xae8] sm:$0xff] }
  0xf3   :  { %v473_v27 = vld [vmem:[#allocation5 + $0xae0] sm:$0xff] }
  0xf4   :  { %2959 = vmatpush1.bf16.msra.mxu0 %v13520_v45  ;;  %3131 = vmatpush1.bf16.msra.mxu1 %v13522_v46  ;;  %v13587_v45 = vcombine.high %v414_v36, %v418_v38  ;;  %v426_v46 = vld [vmem:[#allocation5 + $0x968] sm:$0xff] }
  0xf5   :  { %2960 = vmatprep.subr.bf16.mxu0 %v13529_v47  ;;  %3132 = vmatprep.subr.bf16.mxu1 %v13531_v51  ;;  %v13584_v47 = vcombine.low %v413_v34, %v417_v35  ;;  %v433_v51 = vld [vmem:[#allocation5 + $0x9a0] sm:$0xff]  ;;  %v13594_v56 = vcombine.low %v422_v44, %v426_v46  ;;  %v478_v36 = vld [vmem:[#allocation5 + $0xb08] sm:$0xff] }
  0xf6   :  { %v13601_v57 = vcombine.high %v429_v50, %v433_v51  ;;  %v477_v34 = vld [vmem:[#allocation5 + $0xb00] sm:$0xff]  ;;  %v482_v38 = vld [vmem:[#allocation5 + $0xb28] sm:$0xff] }
  0xf7   :  { %v481_v35 = vld [vmem:[#allocation5 + $0xb20] sm:$0xff] }
  0xf8   :  { %2961 = vmatpush1.bf16.msra.mxu0 %v13528_v53  ;;  %3133 = vmatpush1.bf16.msra.mxu1 %v13530_v54  ;;  %v13595_v53 = vcombine.high %v422_v44, %v426_v46  ;;  %v434_v54 = vld [vmem:[#allocation5 + $0x9a8] sm:$0xff] }
  0xf9   :  { %2962 = vmatprep.subr.bf16.mxu0 %v13537_v55  ;;  %3134 = vmatprep.subr.bf16.mxu1 %v13539_v59  ;;  %v13592_v55 = vcombine.low %v421_v42, %v425_v43  ;;  %v441_v59 = vld [vmem:[#allocation5 + $0x9e0] sm:$0xff]  ;;  %v13602_v0 = vcombine.low %v430_v52, %v434_v54  ;;  %v486_v44 = vld [vmem:[#allocation5 + $0xb48] sm:$0xff] }
  0xfa   :  { %v13609_v1 = vcombine.high %v437_v58, %v441_v59  ;;  %v485_v42 = vld [vmem:[#allocation5 + $0xb40] sm:$0xff]  ;;  %v490_v46 = vld [vmem:[#allocation5 + $0xb68] sm:$0xff] }
  0xfb   :  { %v489_v43 = vld [vmem:[#allocation5 + $0xb60] sm:$0xff] }
  0xfc   :  { %2963 = vmatpush1.bf16.msra.mxu0 %v13536_v61  ;;  %3135 = vmatpush1.bf16.msra.mxu1 %v13538_v62  ;;  %v13603_v61 = vcombine.high %v430_v52, %v434_v54  ;;  %v442_v62 = vld [vmem:[#allocation5 + $0x9e8] sm:$0xff] }
  0xfd   :  { %2964 = vmatprep.subr.bf16.mxu0 %v13545_v63  ;;  %3136 = vmatprep.subr.bf16.mxu1 %v13547_v3  ;;  %v13600_v63 = vcombine.low %v429_v50, %v433_v51  ;;  %v449_v3 = vld [vmem:[#allocation5 + $0xa20] sm:$0xff]  ;;  %v494_v52 = vld [vmem:[#allocation5 + $0xb88] sm:$0xff] }
  0xfe   :  { %v13617_v9 = vcombine.high %v445_v2, %v449_v3  ;;  %v13616_v15 = vcombine.low %v445_v2, %v449_v3  ;;  %v493_v50 = vld [vmem:[#allocation5 + $0xb80] sm:$0xff]  ;;  %v498_v54 = vld [vmem:[#allocation5 + $0xba8] sm:$0xff] }
  0xff   :  { %v497_v51 = vld [vmem:[#allocation5 + $0xba0] sm:$0xff] }
 0x100   :  { %2965 = vmatpush1.bf16.msra.mxu0 %v13544_v5  ;;  %3137 = vmatpush1.bf16.msra.mxu1 %v13546_v6  ;;  %v13611_v5 = vcombine.high %v438_v60, %v442_v62  ;;  %v450_v6 = vld [vmem:[#allocation5 + $0xa28] sm:$0xff]  ;;  %v509_v2 = vld [vmem:[#allocation5 + $0xc00] sm:$0xff] }
 0x101   :  { %2977 = vmatprep.subr.bf16.mxu0 %v13553_v7  ;;  %3149 = vmatprep.subr.bf16.mxu1 %v13555_v12  ;;  %v13608_v7 = vcombine.low %v437_v58, %v441_v59  ;;  %v454_v12 = vld [vmem:[#allocation5 + $0xa48] sm:$0xff]  ;;  %v13619_v13 = vcombine.high %v446_v4, %v450_v6  ;;  %v501_v58 = vld [vmem:[#allocation5 + $0xbc0] sm:$0xff] }
 0x102   :  { %v505_v59 = vld [vmem:[#allocation5 + $0xbe0] sm:$0xff] }
 0x103   :  { %2967 = vmatmul.mubr.bf16.vlgmr.msra.gmra.mrb[0].mxu0 %v15271_v8  ;;  %3139 = vmatmul.mubr.bf16.vlgmr.msra.gmra.mrb[0].mxu1 %v15271_v8  ;;  %v13610_v8 = vcombine.low %v438_v60, %v442_v62  ;;  %v502_v60 = vld [vmem:[#allocation5 + $0xbc8] sm:$0xff]  ;;  %v513_v3 = vld [vmem:[#allocation5 + $0xc20] sm:$0xff] }
 0x104   :  { %2978 = vmatpush1.bf16.msra.mxu0 %v13552_v14  ;;  %3150 = vmatpush1.bf16.msra.mxu1 %v13554_v16  ;;  %v458_v14 = vld [vmem:[#allocation5 + $0xa68] sm:$0xff]  ;;  %v13618_v16 = vcombine.low %v446_v4, %v450_v6 }
 0x105   :  { %2979 = vmatprep.subr.bf16.mxu0 %v13561_v17  ;;  %3151 = vmatprep.subr.bf16.mxu1 %v13563_v21  ;;  %v13625_v17 = vcombine.high %v453_v10, %v457_v11  ;;  %v13627_v21 = vcombine.high %v454_v12, %v458_v14  ;;  %v506_v62 = vld [vmem:[#allocation5 + $0xbe8] sm:$0xff] }
 0x106   :  { %3009 = vmatprep.mubr.bf16.mxu0 %v15272_v22  ;;  %3181 = vmatprep.mubr.bf16.mxu1 %v15272_v22  ;;  %v466_v22 = vld [vmem:[#allocation5 + $0xaa8] sm:$0xff] }
 0x107   :  { %v510_v4 = vld [vmem:[#allocation5 + $0xc08] sm:$0xff] }
 0x108   :  { %2980 = vmatpush1.bf16.msra.mxu0 %v13560_v23  ;;  %3152 = vmatpush1.bf16.msra.mxu1 %v13562_v24  ;;  %v13624_v23 = vcombine.low %v453_v10, %v457_v11  ;;  %v13626_v24 = vcombine.low %v454_v12, %v458_v14  ;;  %v514_v6 = vld [vmem:[#allocation5 + $0xc28] sm:$0xff]  ;;  %v15274_v10 = vld [vmem:[#allocation2 + $0x10] ss:$28 sps:$4 sm:$0xff]   ;;  %v517_v11 = vld [vmem:[#allocation5 + $0xc40] sm:$0xff] }
 0x109   :  { %2981 = vmatprep.subr.bf16.mxu0 %v13569_v25  ;;  %3153 = vmatprep.subr.bf16.mxu1 %v13571_v29  ;;  %v13633_v25 = vcombine.high %v461_v18, %v465_v19  ;;  %v13635_v29 = vcombine.high %v462_v20, %v466_v22  ;;  %v521_v12 = vld [vmem:[#allocation5 + $0xc60] sm:$0xff]  ;;  %v13683_v14 = vcombine.high %v510_v4, %v514_v6 }
 0x10c   :  { %2982 = vmatpush1.bf16.msra.mxu0 %v13568_v31  ;;  %3154 = vmatpush1.bf16.msra.mxu1 %v13570_v32  ;;  %v13632_v31 = vcombine.low %v461_v18, %v465_v19  ;;  %v13634_v32 = vcombine.low %v462_v20, %v466_v22  ;;  %v13689_v18 = vcombine.high %v517_v11, %v521_v12  ;;  %v525_v19 = vld [vmem:[#allocation5 + $0xc80] sm:$0xff] }
 0x10d   :  { %2983 = vmatprep.subr.bf16.mxu0 %v13577_v33  ;;  %3155 = vmatprep.subr.bf16.mxu1 %v13579_v37  ;;  %v13641_v33 = vcombine.high %v469_v26, %v473_v27  ;;  %v13643_v37 = vcombine.high %v470_v28, %v474_v30  ;;  %v529_v20 = vld [vmem:[#allocation5 + $0xca0] sm:$0xff] }
 0x110   :  { %2984 = vmatpush1.bf16.msra.mxu0 %v13576_v39  ;;  %3156 = vmatpush1.bf16.msra.mxu1 %v13578_v40  ;;  %v13640_v39 = vcombine.low %v469_v26, %v473_v27  ;;  %v13642_v40 = vcombine.low %v470_v28, %v474_v30  ;;  %v13697_v26 = vcombine.high %v525_v19, %v529_v20  ;;  %v533_v27 = vld [vmem:[#allocation5 + $0xcc0] sm:$0xff]  ;;  %v534_v30 = vld [vmem:[#allocation5 + $0xcc8] sm:$0xff] }
 0x111   :  { %2985 = vmatprep.subr.bf16.mxu0 %v13585_v41  ;;  %3157 = vmatprep.subr.bf16.mxu1 %v13587_v45  ;;  %v13649_v41 = vcombine.high %v477_v34, %v481_v35  ;;  %v13651_v45 = vcombine.high %v478_v36, %v482_v38  ;;  %v537_v28 = vld [vmem:[#allocation5 + $0xce0] sm:$0xff] }
 0x114   :  { %2986 = vmatpush1.bf16.msra.mxu0 %v13584_v47  ;;  %3158 = vmatpush1.bf16.msra.mxu1 %v13586_v48  ;;  %v13648_v47 = vcombine.low %v477_v34, %v481_v35  ;;  %v13650_v48 = vcombine.low %v478_v36, %v482_v38  ;;  %v13705_v35 = vcombine.high %v533_v27, %v537_v28  ;;  %v545_v38 = vld [vmem:[#allocation5 + $0xd20] sm:$0xff] }
 0x115   :  { %2987 = vmatprep.subr.bf16.mxu0 %v13593_v49  ;;  %3159 = vmatprep.subr.bf16.mxu1 %v13595_v53  ;;  %v13657_v49 = vcombine.high %v485_v42, %v489_v43  ;;  %v13659_v53 = vcombine.high %v486_v44, %v490_v46 }
 0x118   :  { %2988 = vmatpush1.bf16.msra.mxu0 %v13592_v55  ;;  %3160 = vmatpush1.bf16.msra.mxu1 %v13594_v56  ;;  %v13656_v55 = vcombine.low %v485_v42, %v489_v43  ;;  %v13658_v56 = vcombine.low %v486_v44, %v490_v46  ;;  %v553_v46 = vld [vmem:[#allocation5 + $0xd60] sm:$0xff] }
 0x119   :  { %2989 = vmatprep.subr.bf16.mxu0 %v13601_v57  ;;  %3161 = vmatprep.subr.bf16.mxu1 %v13603_v61  ;;  %v13665_v57 = vcombine.high %v493_v50, %v497_v51  ;;  %v13667_v61 = vcombine.high %v494_v52, %v498_v54 }
 0x11c   :  { %2990 = vmatpush1.bf16.msra.mxu0 %v13600_v63  ;;  %3162 = vmatpush1.bf16.msra.mxu1 %v13602_v0  ;;  %v13664_v63 = vcombine.low %v493_v50, %v497_v51  ;;  %v13666_v0 = vcombine.low %v494_v52, %v498_v54  ;;  %v561_v54 = vld [vmem:[#allocation5 + $0xda0] sm:$0xff] }
 0x11d   :  { %2991 = vmatprep.subr.bf16.mxu0 %v13609_v1  ;;  %3163 = vmatprep.subr.bf16.mxu1 %v13611_v5  ;;  %v13673_v1 = vcombine.high %v501_v58, %v505_v59  ;;  %v13675_v5 = vcombine.high %v502_v60, %v506_v62 }
 0x120   :  { %2992 = vmatpush1.bf16.msra.mxu0 %v13608_v7  ;;  %3164 = vmatpush1.bf16.msra.mxu1 %v13610_v8  ;;  %v13672_v7 = vcombine.low %v501_v58, %v505_v59  ;;  %v13674_v8 = vcombine.low %v502_v60, %v506_v62  ;;  %v569_v62 = vld [vmem:[#allocation5 + $0xde0] sm:$0xff] }
 0x121   :  { %2993 = vmatprep.subr.bf16.mxu0 %v13617_v9  ;;  %3165 = vmatprep.subr.bf16.mxu1 %v13619_v13  ;;  %v13681_v9 = vcombine.high %v509_v2, %v513_v3  ;;  %v518_v13 = vld [vmem:[#allocation5 + $0xc48] sm:$0xff] }
 0x124   :  { %2994 = vmatpush1.bf16.msra.mxu0 %v13616_v15  ;;  %3166 = vmatpush1.bf16.msra.mxu1 %v13618_v16  ;;  %v522_v15 = vld [vmem:[#allocation5 + $0xc68] sm:$0xff]  ;;  %v13680_v16 = vcombine.low %v509_v2, %v513_v3 }
 0x125   :  { %2995 = vmatprep.subr.bf16.mxu0 %v13625_v17  ;;  %3167 = vmatprep.subr.bf16.mxu1 %v13627_v21  ;;  %v13682_v17 = vcombine.low %v510_v4, %v514_v6  ;;  %v526_v21 = vld [vmem:[#allocation5 + $0xc88] sm:$0xff]  ;;  %v13691_v22 = vcombine.high %v518_v13, %v522_v15  ;;  %v131_v6 = vld [vmem:[#allocation5 + $0x30] sm:$0xff] }
 0x128   :  { %2996 = vmatpush1.bf16.msra.mxu0 %v13624_v23  ;;  %3168 = vmatpush1.bf16.msra.mxu1 %v13626_v24  ;;  %v530_v23 = vld [vmem:[#allocation5 + $0xca8] sm:$0xff]  ;;  %v13688_v24 = vcombine.low %v517_v11, %v521_v12 }
 0x129   :  { %2997 = vmatprep.subr.bf16.mxu0 %v13633_v25  ;;  %3169 = vmatprep.subr.bf16.mxu1 %v13635_v29  ;;  %v13690_v25 = vcombine.low %v518_v13, %v522_v15  ;;  %v13699_v29 = vcombine.high %v526_v21, %v530_v23  ;;  %v13698_v34 = vcombine.low %v526_v21, %v530_v23  ;;  %v135_v13 = vld [vmem:[#allocation5 + $0x50] sm:$0xff]  ;;  %v15275_v15 = vld [vmem:[#allocation2 + $0x18] ss:$28 sps:$4 sm:$0xff]  }
 0x12a   :  { %v147_v23 = vld [vmem:[#allocation5 + $0xb0] sm:$0xff] }
 0x12c   :  { %2998 = vmatpush1.bf16.msra.mxu0 %v13632_v31  ;;  %3170 = vmatpush1.bf16.msra.mxu1 %v13634_v32  ;;  %v15868_v31 = vmov 0   ;;  %v538_v32 = vld [vmem:[#allocation5 + $0xce8] sm:$0xff] }
 0x12d   :  { %2999 = vmatprep.subr.bf16.mxu0 %v13641_v33  ;;  %3171 = vmatprep.subr.bf16.mxu1 %v13643_v37  ;;  %v13696_v33 = vcombine.low %v525_v19, %v529_v20  ;;  %v13707_v36 = vcombine.high %v534_v30, %v538_v32  ;;  %v541_v37 = vld [vmem:[#allocation5 + $0xd00] sm:$0xff]  ;;  %v13706_v42 = vcombine.low %v534_v30, %v538_v32  ;;  %v151_v30 = vld [vmem:[#allocation5 + $0xd0] sm:$0xff] }
 0x12e   :  { %v13713_v43 = vcombine.high %v541_v37, %v545_v38  ;;  %v155_v32 = vld [vmem:[#allocation5 + $0xf0] sm:$0xff] }
 0x130   :  { %3000 = vmatpush1.bf16.msra.mxu0 %v13640_v39  ;;  %3172 = vmatpush1.bf16.msra.mxu1 %v13642_v40  ;;  %v542_v39 = vld [vmem:[#allocation5 + $0xd08] sm:$0xff] }
 0x131   :  { %3001 = vmatprep.subr.bf16.mxu0 %v13649_v41  ;;  %3173 = vmatprep.subr.bf16.mxu1 %v13651_v45  ;;  %v546_v40 = vld [vmem:[#allocation5 + $0xd28] sm:$0xff]  ;;  %v13704_v41 = vcombine.low %v533_v27, %v537_v28  ;;  %v549_v45 = vld [vmem:[#allocation5 + $0xd40] sm:$0xff] }
 0x132   :  { %v13715_v44 = vcombine.high %v542_v39, %v546_v40  ;;  %v13714_v50 = vcombine.low %v542_v39, %v546_v40  ;;  %v13721_v51 = vcombine.high %v549_v45, %v553_v46  ;;  %v159_v40 = vld [vmem:[#allocation5 + $0x110] sm:$0xff] }
 0x134   :  { %3002 = vmatpush1.bf16.msra.mxu0 %v13648_v47  ;;  %3174 = vmatpush1.bf16.msra.mxu1 %v13650_v48  ;;  %v550_v47 = vld [vmem:[#allocation5 + $0xd48] sm:$0xff] }
 0x135   :  { %3003 = vmatprep.subr.bf16.mxu0 %v13657_v49  ;;  %3175 = vmatprep.subr.bf16.mxu1 %v13659_v53  ;;  %v554_v48 = vld [vmem:[#allocation5 + $0xd68] sm:$0xff]  ;;  %v13712_v49 = vcombine.low %v541_v37, %v545_v38  ;;  %v557_v53 = vld [vmem:[#allocation5 + $0xd80] sm:$0xff]  ;;  %v13325_v38 = vcombine.high %v151_v30, %v155_v32 }
 0x136   :  { %v13723_v52 = vcombine.high %v550_v47, %v554_v48  ;;  %v13722_v58 = vcombine.low %v550_v47, %v554_v48  ;;  %v13729_v59 = vcombine.high %v557_v53, %v561_v54  ;;  %v167_v48 = vld [vmem:[#allocation5 + $0x150] sm:$0xff] }
 0x138   :  { %3004 = vmatpush1.bf16.msra.mxu0 %v13656_v55  ;;  %3176 = vmatpush1.bf16.msra.mxu1 %v13658_v56  ;;  %v558_v55 = vld [vmem:[#allocation5 + $0xd88] sm:$0xff] }
 0x139   :  { %3005 = vmatprep.subr.bf16.mxu0 %v13665_v57  ;;  %3177 = vmatprep.subr.bf16.mxu1 %v13667_v61  ;;  %v562_v56 = vld [vmem:[#allocation5 + $0xda8] sm:$0xff]  ;;  %v13720_v57 = vcombine.low %v549_v45, %v553_v46  ;;  %v565_v61 = vld [vmem:[#allocation5 + $0xdc0] sm:$0xff] }
 0x13a   :  { %v13731_v60 = vcombine.high %v558_v55, %v562_v56  ;;  %v13730_v2 = vcombine.low %v558_v55, %v562_v56  ;;  %v13737_v3 = vcombine.high %v565_v61, %v569_v62  ;;  %v175_v56 = vld [vmem:[#allocation5 + $0x190] sm:$0xff] }
 0x13c   :  { %3006 = vmatpush1.bf16.msra.mxu0 %v13664_v63  ;;  %3178 = vmatpush1.bf16.msra.mxu1 %v13666_v0  ;;  %v566_v63 = vld [vmem:[#allocation5 + $0xdc8] sm:$0xff] }
 0x13d   :  { %3007 = vmatprep.subr.bf16.mxu0 %v13673_v1  ;;  %3179 = vmatprep.subr.bf16.mxu1 %v13675_v5  ;;  %v570_v0 = vld [vmem:[#allocation5 + $0xde8] sm:$0xff]  ;;  %v13728_v1 = vcombine.low %v557_v53, %v561_v54  ;;  %v127_v5 = vld [vmem:[#allocation5 + $0x10] sm:$0xff] }
 0x13e   :  { %v13739_v4 = vcombine.high %v566_v63, %v570_v0  ;;  %v13301_v11 = vcombine.high %v127_v5, %v131_v6 }
 0x140   :  { %3008 = vmatpush1.bf16.msra.mxu0 %v13672_v7  ;;  %3180 = vmatpush1.bf16.msra.mxu1 %v13674_v8  ;;  %v128_v7 = vld [vmem:[#allocation5 + $0x18] sm:$0xff] }
 0x141   :  { %3020 = vmatprep.subr.bf16.mxu0 %v13681_v9  ;;  %3192 = vmatprep.subr.bf16.mxu1 %v13683_v14  ;;  %v132_v8 = vld [vmem:[#allocation5 + $0x38] sm:$0xff]  ;;  %v13736_v9 = vcombine.low %v565_v61, %v569_v62  ;;  %v139_v14 = vld [vmem:[#allocation5 + $0x70] sm:$0xff] }
 0x142   :  { %v13303_v12 = vcombine.high %v128_v7, %v132_v8  ;;  %v13302_v19 = vcombine.low %v128_v7, %v132_v8  ;;  %v13309_v20 = vcombine.high %v135_v13, %v139_v14  ;;  %v191_v8 = vld [vmem:[#allocation5 + $0x210] sm:$0xff] }
 0x143   :  { %3010 = vmatmul.mubr.bf16.vlgmr.msra.gmra.mrb[0].mxu0 %v15274_v10  ;;  %3182 = vmatmul.mubr.bf16.vlgmr.msra.gmra.mrb[0].mxu1 %v15274_v10  ;;  %v13738_v10 = vcombine.low %v566_v63, %v570_v0  ;;  %v183_v0 = vld [vmem:[#allocation5 + $0x1d0] sm:$0xff] }
 0x144   :  { %3021 = vmatpush1.bf16.msra.mxu0 %v13680_v16  ;;  %3193 = vmatpush1.bf16.msra.mxu1 %v13682_v17  ;;  %v136_v16 = vld [vmem:[#allocation5 + $0x58] sm:$0xff] }
 0x145   :  { %3022 = vmatprep.subr.bf16.mxu0 %v13689_v18  ;;  %3194 = vmatprep.subr.bf16.mxu1 %v13691_v22  ;;  %v140_v17 = vld [vmem:[#allocation5 + $0x78] sm:$0xff]  ;;  %v13300_v18 = vcombine.low %v127_v5, %v131_v6  ;;  %v143_v22 = vld [vmem:[#allocation5 + $0x90] sm:$0xff] }
 0x146   :  { %3052 = vmatprep.mubr.bf16.mxu0 %v15868_v31  ;;  %3224 = vmatprep.mubr.bf16.mxu1 %v15868_v31  ;;  %v13311_v21 = vcombine.high %v136_v16, %v140_v17  ;;  %v13310_v27 = vcombine.low %v136_v16, %v140_v17  ;;  %v13317_v28 = vcombine.high %v143_v22, %v147_v23  ;;  %v199_v16 = vld [vmem:[#allocation5 + $0x250] sm:$0xff] }
 0x147   :  { %v203_v17 = vld [vmem:[#allocation5 + $0x270] sm:$0xff] }
 0x148   :  { %3023 = vmatpush1.bf16.msra.mxu0 %v13688_v24  ;;  %3195 = vmatpush1.bf16.msra.mxu1 %v13690_v25  ;;  %v144_v24 = vld [vmem:[#allocation5 + $0x98] sm:$0xff] }
 0x149   :  { %3024 = vmatprep.subr.bf16.mxu0 %v13697_v26  ;;  %3196 = vmatprep.subr.bf16.mxu1 %v13699_v29  ;;  %v148_v25 = vld [vmem:[#allocation5 + $0xb8] sm:$0xff]  ;;  %v13308_v26 = vcombine.low %v135_v13, %v139_v14 }
 0x14a   :  { %v13319_v29 = vcombine.high %v144_v24, %v148_v25  ;;  %v13318_v37 = vcombine.low %v144_v24, %v148_v25  ;;  %v207_v24 = vld [vmem:[#allocation5 + $0x290] sm:$0xff] }
 0x14b   :  { %v211_v25 = vld [vmem:[#allocation5 + $0x2b0] sm:$0xff] }
 0x14c   :  { %3025 = vmatpush1.bf16.msra.mxu0 %v13696_v33  ;;  %3197 = vmatpush1.bf16.msra.mxu1 %v13698_v34  ;;  %v15660_v33 = vld [vmem:[#allocation2 + $0x4] ss:$28 sps:$4 sm:$0xff]   ;;  %v152_v34 = vld [vmem:[#allocation5 + $0xd8] sm:$0xff] }
 0x14d   :  { %3026 = vmatprep.subr.bf16.mxu0 %v13705_v35  ;;  %3198 = vmatprep.subr.bf16.mxu1 %v13707_v36  ;;  %v156_v35 = vld [vmem:[#allocation5 + $0xf8] sm:$0xff]  ;;  %v13316_v36 = vcombine.low %v143_v22, %v147_v23  ;;  %v13373_v22 = vcombine.high %v199_v16, %v203_v17 }
 0x14e   :  { %v13327_v39 = vcombine.high %v152_v34, %v156_v35  ;;  %v13326_v45 = vcombine.low %v152_v34, %v156_v35  ;;  %v219_v34 = vld [vmem:[#allocation5 + $0x2f0] sm:$0xff]  ;;  %v216_v35 = vld [vmem:[#allocation5 + $0x2d8] sm:$0xff] }
 0x150   :  { %3027 = vmatpush1.bf16.msra.mxu0 %v13704_v41  ;;  %3199 = vmatpush1.bf16.msra.mxu1 %v13706_v42  ;;  %v163_v41 = vld [vmem:[#allocation5 + $0x130] sm:$0xff]  ;;  %v160_v42 = vld [vmem:[#allocation5 + $0x118] sm:$0xff] }
 0x151   :  { %3028 = vmatprep.subr.bf16.mxu0 %v13713_v43  ;;  %3200 = vmatprep.subr.bf16.mxu1 %v13715_v44  ;;  %v164_v43 = vld [vmem:[#allocation5 + $0x138] sm:$0xff]  ;;  %v13324_v44 = vcombine.low %v151_v30, %v155_v32  ;;  %v13333_v46 = vcombine.high %v159_v40, %v163_v41  ;;  %v13381_v30 = vcombine.high %v207_v24, %v211_v25 }
 0x152   :  { %v13335_v47 = vcombine.high %v160_v42, %v164_v43  ;;  %v13334_v53 = vcombine.low %v160_v42, %v164_v43  ;;  %v227_v42 = vld [vmem:[#allocation5 + $0x330] sm:$0xff]  ;;  %v224_v43 = vld [vmem:[#allocation5 + $0x318] sm:$0xff] }
 0x154   :  { %3029 = vmatpush1.bf16.msra.mxu0 %v13712_v49  ;;  %3201 = vmatpush1.bf16.msra.mxu1 %v13714_v50  ;;  %v171_v49 = vld [vmem:[#allocation5 + $0x170] sm:$0xff]  ;;  %v168_v50 = vld [vmem:[#allocation5 + $0x158] sm:$0xff] }
 0x155   :  { %3030 = vmatprep.subr.bf16.mxu0 %v13721_v51  ;;  %3202 = vmatprep.subr.bf16.mxu1 %v13723_v52  ;;  %v172_v51 = vld [vmem:[#allocation5 + $0x178] sm:$0xff]  ;;  %v13332_v52 = vcombine.low %v159_v40, %v163_v41  ;;  %v13341_v54 = vcombine.high %v167_v48, %v171_v49  ;;  %v223_v41 = vld [vmem:[#allocation5 + $0x310] sm:$0xff] }
 0x156   :  { %v13343_v55 = vcombine.high %v168_v50, %v172_v51  ;;  %v13342_v61 = vcombine.low %v168_v50, %v172_v51  ;;  %v235_v50 = vld [vmem:[#allocation5 + $0x370] sm:$0xff]  ;;  %v232_v51 = vld [vmem:[#allocation5 + $0x358] sm:$0xff] }
 0x158   :  { %3031 = vmatpush1.bf16.msra.mxu0 %v13720_v57  ;;  %3203 = vmatpush1.bf16.msra.mxu1 %v13722_v58  ;;  %v179_v57 = vld [vmem:[#allocation5 + $0x1b0] sm:$0xff]  ;;  %v176_v58 = vld [vmem:[#allocation5 + $0x198] sm:$0xff] }
 0x159   :  { %3032 = vmatprep.subr.bf16.mxu0 %v13729_v59  ;;  %3204 = vmatprep.subr.bf16.mxu1 %v13731_v60  ;;  %v180_v59 = vld [vmem:[#allocation5 + $0x1b8] sm:$0xff]  ;;  %v13340_v60 = vcombine.low %v167_v48, %v171_v49  ;;  %v13349_v62 = vcombine.high %v175_v56, %v179_v57  ;;  %v231_v49 = vld [vmem:[#allocation5 + $0x350] sm:$0xff] }
 0x15a   :  { %v13351_v63 = vcombine.high %v176_v58, %v180_v59  ;;  %v13350_v5 = vcombine.low %v176_v58, %v180_v59  ;;  %v243_v58 = vld [vmem:[#allocation5 + $0x3b0] sm:$0xff]  ;;  %v240_v59 = vld [vmem:[#allocation5 + $0x398] sm:$0xff] }
 0x15c   :  { %3033 = vmatpush1.bf16.msra.mxu0 %v13728_v1  ;;  %3205 = vmatpush1.bf16.msra.mxu1 %v13730_v2  ;;  %v187_v1 = vld [vmem:[#allocation5 + $0x1f0] sm:$0xff]  ;;  %v184_v2 = vld [vmem:[#allocation5 + $0x1d8] sm:$0xff] }
 0x15d   :  { %3034 = vmatprep.subr.bf16.mxu0 %v13737_v3  ;;  %3206 = vmatprep.subr.bf16.mxu1 %v13739_v4  ;;  %v188_v3 = vld [vmem:[#allocation5 + $0x1f8] sm:$0xff]  ;;  %v13348_v4 = vcombine.low %v175_v56, %v179_v57  ;;  %v13357_v6 = vcombine.high %v183_v0, %v187_v1  ;;  %v239_v57 = vld [vmem:[#allocation5 + $0x390] sm:$0xff] }
 0x15e   :  { %v13359_v7 = vcombine.high %v184_v2, %v188_v3  ;;  %v13358_v13 = vcombine.low %v184_v2, %v188_v3  ;;  %v251_v2 = vld [vmem:[#allocation5 + $0x3f0] sm:$0xff]  ;;  %v248_v3 = vld [vmem:[#allocation5 + $0x3d8] sm:$0xff] }
 0x160   :  { %3035 = vmatpush1.bf16.msra.mxu0 %v13736_v9  ;;  %3207 = vmatpush1.bf16.msra.mxu1 %v13738_v10  ;;  %v195_v9 = vld [vmem:[#allocation5 + $0x230] sm:$0xff]  ;;  %v192_v10 = vld [vmem:[#allocation5 + $0x218] sm:$0xff] }
 0x161   :  { %3235 = vmatprep.subr.bf16.mxu0 %v13301_v11  ;;  %3407 = vmatprep.subr.bf16.mxu1 %v13303_v12  ;;  %v196_v11 = vld [vmem:[#allocation5 + $0x238] sm:$0xff]  ;;  %v13356_v12 = vcombine.low %v183_v0, %v187_v1  ;;  %v13365_v14 = vcombine.high %v191_v8, %v195_v9  ;;  %v247_v1 = vld [vmem:[#allocation5 + $0x3d0] sm:$0xff] }
 0x163   :  { %3053 = vmatmul.mubr.bf16.vlgmr.msra.gmra.mrb[0].mxu0 %v15275_v15  ;;  %3225 = vmatmul.mubr.bf16.vlgmr.msra.gmra.mrb[0].mxu1 %v15275_v15  ;;  %v13367_v15 = vcombine.high %v192_v10, %v196_v11 }
 0x164   :  { %3236 = vmatpush1.bf16.msra.mxu0 %v13300_v18  ;;  %3408 = vmatpush1.bf16.msra.mxu1 %v13302_v19  ;;  %v200_v18 = vld [vmem:[#allocation5 + $0x258] sm:$0xff] }
 0x165   :  { %3237 = vmatprep.subr.bf16.mxu0 %v13309_v20  ;;  %3409 = vmatprep.subr.bf16.mxu1 %v13311_v21  ;;  %v204_v19 = vld [vmem:[#allocation5 + $0x278] sm:$0xff]  ;;  %v13364_v20 = vcombine.low %v191_v8, %v195_v9  ;;  %v13366_v21 = vcombine.low %v192_v10, %v196_v11  ;;  %v255_v9 = vld [vmem:[#allocation5 + $0x410] sm:$0xff] }
 0x166   :  { %3267 = vmatprep.mubr.bf16.mxu0 %v15660_v33  ;;  %3439 = vmatprep.mubr.bf16.mxu1 %v15660_v33  ;;  %v13375_v23 = vcombine.high %v200_v18, %v204_v19  ;;  %v215_v33 = vld [vmem:[#allocation5 + $0x2d0] sm:$0xff]  ;;  %v256_v11 = vld [vmem:[#allocation5 + $0x418] sm:$0xff] }
 0x167   :  { %v259_v10 = vld [vmem:[#allocation5 + $0x430] sm:$0xff] }
 0x168   :  { %3238 = vmatpush1.bf16.msra.mxu0 %v13308_v26  ;;  %3410 = vmatpush1.bf16.msra.mxu1 %v13310_v27  ;;  %v208_v26 = vld [vmem:[#allocation5 + $0x298] sm:$0xff] }
 0x169   :  { %3239 = vmatprep.subr.bf16.mxu0 %v13317_v28  ;;  %3411 = vmatprep.subr.bf16.mxu1 %v13319_v29  ;;  %v212_v27 = vld [vmem:[#allocation5 + $0x2b8] sm:$0xff]  ;;  %v13372_v28 = vcombine.low %v199_v16, %v203_v17  ;;  %v13374_v29 = vcombine.low %v200_v18, %v204_v19  ;;  %v263_v17 = vld [vmem:[#allocation5 + $0x450] sm:$0xff] }
 0x16a   :  { %v13383_v32 = vcombine.high %v208_v26, %v212_v27  ;;  %v267_v18 = vld [vmem:[#allocation5 + $0x470] sm:$0xff]  ;;  %v264_v19 = vld [vmem:[#allocation5 + $0x458] sm:$0xff] }
 0x16c   :  { %3240 = vmatpush1.bf16.msra.mxu0 %v13316_v36  ;;  %3412 = vmatpush1.bf16.msra.mxu1 %v13318_v37  ;;  %v220_v36 = vld [vmem:[#allocation5 + $0x2f8] sm:$0xff]  ;;  %v13380_v37 = vcombine.low %v207_v24, %v211_v25  ;;  %v271_v25 = vld [vmem:[#allocation5 + $0x490] sm:$0xff] }
 0x16d   :  { %3241 = vmatprep.subr.bf16.mxu0 %v13325_v38  ;;  %3413 = vmatprep.subr.bf16.mxu1 %v13327_v39  ;;  %v13382_v38 = vcombine.low %v208_v26, %v212_v27  ;;  %v13389_v39 = vcombine.high %v215_v33, %v219_v34  ;;  %v13391_v40 = vcombine.high %v216_v35, %v220_v36  ;;  %v275_v26 = vld [vmem:[#allocation5 + $0x4b0] sm:$0xff]  ;;  %v15661_v27 = vld [vmem:[#allocation2] ss:$28 sps:$4 sm:$0xff]  }
 0x170   :  { %3242 = vmatpush1.bf16.msra.mxu0 %v13324_v44  ;;  %3414 = vmatpush1.bf16.msra.mxu1 %v13326_v45  ;;  %v228_v44 = vld [vmem:[#allocation5 + $0x338] sm:$0xff]  ;;  %v13388_v45 = vcombine.low %v215_v33, %v219_v34  ;;  %v13445_v33 = vcombine.high %v271_v25, %v275_v26 }
 0x171   :  { %3243 = vmatprep.subr.bf16.mxu0 %v13333_v46  ;;  %3415 = vmatprep.subr.bf16.mxu1 %v13335_v47  ;;  %v13390_v46 = vcombine.low %v216_v35, %v220_v36  ;;  %v13397_v47 = vcombine.high %v223_v41, %v227_v42  ;;  %v13399_v48 = vcombine.high %v224_v43, %v228_v44  ;;  %v279_v35 = vld [vmem:[#allocation5 + $0x4d0] sm:$0xff] }
 0x172   :  { %v283_v36 = vld [vmem:[#allocation5 + $0x4f0] sm:$0xff] }
 0x174   :  { %3244 = vmatpush1.bf16.msra.mxu0 %v13332_v52  ;;  %3416 = vmatpush1.bf16.msra.mxu1 %v13334_v53  ;;  %v236_v52 = vld [vmem:[#allocation5 + $0x378] sm:$0xff]  ;;  %v13396_v53 = vcombine.low %v223_v41, %v227_v42  ;;  %v13453_v42 = vcombine.high %v279_v35, %v283_v36 }
 0x175   :  { %3245 = vmatprep.subr.bf16.mxu0 %v13341_v54  ;;  %3417 = vmatprep.subr.bf16.mxu1 %v13343_v55  ;;  %v13398_v54 = vcombine.low %v224_v43, %v228_v44  ;;  %v13405_v55 = vcombine.high %v231_v49, %v235_v50  ;;  %v13407_v56 = vcombine.high %v232_v51, %v236_v52  ;;  %v287_v44 = vld [vmem:[#allocation5 + $0x510] sm:$0xff] }
 0x178   :  { %3246 = vmatpush1.bf16.msra.mxu0 %v13340_v60  ;;  %3418 = vmatpush1.bf16.msra.mxu1 %v13342_v61  ;;  %v244_v60 = vld [vmem:[#allocation5 + $0x3b8] sm:$0xff]  ;;  %v13404_v61 = vcombine.low %v231_v49, %v235_v50 }
 0x179   :  { %3247 = vmatprep.subr.bf16.mxu0 %v13349_v62  ;;  %3419 = vmatprep.subr.bf16.mxu1 %v13351_v63  ;;  %v13406_v62 = vcombine.low %v232_v51, %v236_v52  ;;  %v13413_v63 = vcombine.high %v239_v57, %v243_v58  ;;  %v13415_v0 = vcombine.high %v240_v59, %v244_v60  ;;  %v295_v52 = vld [vmem:[#allocation5 + $0x550] sm:$0xff] }
 0x17c   :  { %3248 = vmatpush1.bf16.msra.mxu0 %v13348_v4  ;;  %3420 = vmatpush1.bf16.msra.mxu1 %v13350_v5  ;;  %v252_v4 = vld [vmem:[#allocation5 + $0x3f8] sm:$0xff]  ;;  %v13412_v5 = vcombine.low %v239_v57, %v243_v58 }
 0x17d   :  { %3249 = vmatprep.subr.bf16.mxu0 %v13357_v6  ;;  %3421 = vmatprep.subr.bf16.mxu1 %v13359_v7  ;;  %v13414_v6 = vcombine.low %v240_v59, %v244_v60  ;;  %v13421_v7 = vcombine.high %v247_v1, %v251_v2  ;;  %v13423_v8 = vcombine.high %v248_v3, %v252_v4  ;;  %v303_v60 = vld [vmem:[#allocation5 + $0x590] sm:$0xff] }
 0x180   :  { %3250 = vmatpush1.bf16.msra.mxu0 %v13356_v12  ;;  %3422 = vmatpush1.bf16.msra.mxu1 %v13358_v13  ;;  %v260_v12 = vld [vmem:[#allocation5 + $0x438] sm:$0xff]  ;;  %v13420_v13 = vcombine.low %v247_v1, %v251_v2 }
 0x181   :  { %3251 = vmatprep.subr.bf16.mxu0 %v13365_v14  ;;  %3423 = vmatprep.subr.bf16.mxu1 %v13367_v15  ;;  %v13422_v14 = vcombine.low %v248_v3, %v252_v4  ;;  %v13429_v15 = vcombine.high %v255_v9, %v259_v10  ;;  %v13431_v16 = vcombine.high %v256_v11, %v260_v12  ;;  %v311_v4 = vld [vmem:[#allocation5 + $0x5d0] sm:$0xff] }
 0x184   :  { %3252 = vmatpush1.bf16.msra.mxu0 %v13364_v20  ;;  %3424 = vmatpush1.bf16.msra.mxu1 %v13366_v21  ;;  %v268_v20 = vld [vmem:[#allocation5 + $0x478] sm:$0xff]  ;;  %v13428_v21 = vcombine.low %v255_v9, %v259_v10 }
 0x185   :  { %3253 = vmatprep.subr.bf16.mxu0 %v13373_v22  ;;  %3425 = vmatprep.subr.bf16.mxu1 %v13375_v23  ;;  %v13430_v22 = vcombine.low %v256_v11, %v260_v12  ;;  %v13437_v23 = vcombine.high %v263_v17, %v267_v18  ;;  %v13439_v24 = vcombine.high %v264_v19, %v268_v20  ;;  %v319_v12 = vld [vmem:[#allocation5 + $0x610] sm:$0xff] }
 0x188   :  { %3254 = vmatpush1.bf16.msra.mxu0 %v13372_v28  ;;  %3426 = vmatpush1.bf16.msra.mxu1 %v13374_v29  ;;  %v272_v28 = vld [vmem:[#allocation5 + $0x498] sm:$0xff] }
 0x189   :  { %3255 = vmatprep.subr.bf16.mxu0 %v13381_v30  ;;  %3427 = vmatprep.subr.bf16.mxu1 %v13383_v32  ;;  %v276_v29 = vld [vmem:[#allocation5 + $0x4b8] sm:$0xff]  ;;  %v13436_v30 = vcombine.low %v263_v17, %v267_v18  ;;  %v13438_v32 = vcombine.low %v264_v19, %v268_v20  ;;  %v327_v20 = vld [vmem:[#allocation5 + $0x650] sm:$0xff] }
 0x18a   :  { %v13447_v34 = vcombine.high %v272_v28, %v276_v29  ;;  %v13446_v41 = vcombine.low %v272_v28, %v276_v29  ;;  %v335_v28 = vld [vmem:[#allocation5 + $0x690] sm:$0xff] }
 0x18b   :  { %v339_v29 = vld [vmem:[#allocation5 + $0x6b0] sm:$0xff] }
 0x18c   :  { %3256 = vmatpush1.bf16.msra.mxu0 %v13380_v37  ;;  %3428 = vmatpush1.bf16.msra.mxu1 %v13382_v38  ;;  %v15662_v37 = vld [vmem:[#allocation2 + $0xc] ss:$28 sps:$4 sm:$0xff]   ;;  %v280_v38 = vld [vmem:[#allocation5 + $0x4d8] sm:$0xff] }
 0x18d   :  { %3257 = vmatprep.subr.bf16.mxu0 %v13389_v39  ;;  %3429 = vmatprep.subr.bf16.mxu1 %v13391_v40  ;;  %v284_v39 = vld [vmem:[#allocation5 + $0x4f8] sm:$0xff]  ;;  %v13444_v40 = vcombine.low %v271_v25, %v275_v26 }
 0x18e   :  { %v13455_v43 = vcombine.high %v280_v38, %v284_v39  ;;  %v13454_v49 = vcombine.low %v280_v38, %v284_v39  ;;  %v347_v38 = vld [vmem:[#allocation5 + $0x6f0] sm:$0xff]  ;;  %v344_v39 = vld [vmem:[#allocation5 + $0x6d8] sm:$0xff] }
 0x190   :  { %3258 = vmatpush1.bf16.msra.mxu0 %v13388_v45  ;;  %3430 = vmatpush1.bf16.msra.mxu1 %v13390_v46  ;;  %v291_v45 = vld [vmem:[#allocation5 + $0x530] sm:$0xff]  ;;  %v288_v46 = vld [vmem:[#allocation5 + $0x518] sm:$0xff] }
 0x191   :  { %3259 = vmatprep.subr.bf16.mxu0 %v13397_v47  ;;  %3431 = vmatprep.subr.bf16.mxu1 %v13399_v48  ;;  %v292_v47 = vld [vmem:[#allocation5 + $0x538] sm:$0xff]  ;;  %v13452_v48 = vcombine.low %v279_v35, %v283_v36  ;;  %v13461_v50 = vcombine.high %v287_v44, %v291_v45  ;;  %v13509_v35 = vcombine.high %v335_v28, %v339_v29 }
 0x192   :  { %v13463_v51 = vcombine.high %v288_v46, %v292_v47  ;;  %v13462_v57 = vcombine.low %v288_v46, %v292_v47  ;;  %v355_v46 = vld [vmem:[#allocation5 + $0x730] sm:$0xff]  ;;  %v352_v47 = vld [vmem:[#allocation5 + $0x718] sm:$0xff] }
 0x194   :  { %3260 = vmatpush1.bf16.msra.mxu0 %v13396_v53  ;;  %3432 = vmatpush1.bf16.msra.mxu1 %v13398_v54  ;;  %v299_v53 = vld [vmem:[#allocation5 + $0x570] sm:$0xff]  ;;  %v296_v54 = vld [vmem:[#allocation5 + $0x558] sm:$0xff] }
 0x195   :  { %3261 = vmatprep.subr.bf16.mxu0 %v13405_v55  ;;  %3433 = vmatprep.subr.bf16.mxu1 %v13407_v56  ;;  %v300_v55 = vld [vmem:[#allocation5 + $0x578] sm:$0xff]  ;;  %v13460_v56 = vcombine.low %v287_v44, %v291_v45  ;;  %v13469_v58 = vcombine.high %v295_v52, %v299_v53  ;;  %v351_v45 = vld [vmem:[#allocation5 + $0x710] sm:$0xff] }
 0x196   :  { %v13471_v59 = vcombine.high %v296_v54, %v300_v55  ;;  %v13470_v1 = vcombine.low %v296_v54, %v300_v55  ;;  %v363_v54 = vld [vmem:[#allocation5 + $0x770] sm:$0xff]  ;;  %v360_v55 = vld [vmem:[#allocation5 + $0x758] sm:$0xff] }
 0x198   :  { %3262 = vmatpush1.bf16.msra.mxu0 %v13404_v61  ;;  %3434 = vmatpush1.bf16.msra.mxu1 %v13406_v62  ;;  %v307_v61 = vld [vmem:[#allocation5 + $0x5b0] sm:$0xff]  ;;  %v304_v62 = vld [vmem:[#allocation5 + $0x598] sm:$0xff] }
 0x199   :  { %3263 = vmatprep.subr.bf16.mxu0 %v13413_v63  ;;  %3435 = vmatprep.subr.bf16.mxu1 %v13415_v0  ;;  %v308_v63 = vld [vmem:[#allocation5 + $0x5b8] sm:$0xff]  ;;  %v13468_v0 = vcombine.low %v295_v52, %v299_v53  ;;  %v13477_v2 = vcombine.high %v303_v60, %v307_v61  ;;  %v359_v53 = vld [vmem:[#allocation5 + $0x750] sm:$0xff] }
 0x19a   :  { %v13479_v3 = vcombine.high %v304_v62, %v308_v63  ;;  %v13478_v9 = vcombine.low %v304_v62, %v308_v63  ;;  %v371_v62 = vld [vmem:[#allocation5 + $0x7b0] sm:$0xff]  ;;  %v368_v63 = vld [vmem:[#allocation5 + $0x798] sm:$0xff] }
 0x19c   :  { %3264 = vmatpush1.bf16.msra.mxu0 %v13412_v5  ;;  %3436 = vmatpush1.bf16.msra.mxu1 %v13414_v6  ;;  %v315_v5 = vld [vmem:[#allocation5 + $0x5f0] sm:$0xff]  ;;  %v312_v6 = vld [vmem:[#allocation5 + $0x5d8] sm:$0xff] }
 0x19d   :  { %3265 = vmatprep.subr.bf16.mxu0 %v13421_v7  ;;  %3437 = vmatprep.subr.bf16.mxu1 %v13423_v8  ;;  %v316_v7 = vld [vmem:[#allocation5 + $0x5f8] sm:$0xff]  ;;  %v13476_v8 = vcombine.low %v303_v60, %v307_v61  ;;  %v13485_v10 = vcombine.high %v311_v4, %v315_v5  ;;  %v367_v61 = vld [vmem:[#allocation5 + $0x790] sm:$0xff] }
 0x19e   :  { %v13487_v11 = vcombine.high %v312_v6, %v316_v7  ;;  %v13486_v17 = vcombine.low %v312_v6, %v316_v7  ;;  %v379_v6 = vld [vmem:[#allocation5 + $0x7f0] sm:$0xff]  ;;  %v376_v7 = vld [vmem:[#allocation5 + $0x7d8] sm:$0xff] }
 0x1a0   :  { %3266 = vmatpush1.bf16.msra.mxu0 %v13420_v13  ;;  %3438 = vmatpush1.bf16.msra.mxu1 %v13422_v14  ;;  %v323_v13 = vld [vmem:[#allocation5 + $0x630] sm:$0xff]  ;;  %v320_v14 = vld [vmem:[#allocation5 + $0x618] sm:$0xff] }
 0x1a1   :  { %3278 = vmatprep.subr.bf16.mxu0 %v13429_v15  ;;  %3450 = vmatprep.subr.bf16.mxu1 %v13431_v16  ;;  %v324_v15 = vld [vmem:[#allocation5 + $0x638] sm:$0xff]  ;;  %v13484_v16 = vcombine.low %v311_v4, %v315_v5  ;;  %v13493_v18 = vcombine.high %v319_v12, %v323_v13  ;;  %v375_v5 = vld [vmem:[#allocation5 + $0x7d0] sm:$0xff] }
 0x1a2   :  { %v13495_v19 = vcombine.high %v320_v14, %v324_v15  ;;  %v13494_v25 = vcombine.low %v320_v14, %v324_v15  ;;  %v387_v14 = vld [vmem:[#allocation5 + $0x830] sm:$0xff]  ;;  %v384_v15 = vld [vmem:[#allocation5 + $0x818] sm:$0xff] }
 0x1a3   :  { %3268 = vmatmul.mubr.bf16.vlgmr.msra.gmra.mrb[4].mxu0 %v15661_v27  ;;  %3440 = vmatmul.mubr.bf16.vlgmr.msra.gmra.mrb[4].mxu1 %v15661_v27 }
 0x1a4   :  { %3279 = vmatpush1.bf16.msra.mxu0 %v13428_v21  ;;  %3451 = vmatpush1.bf16.msra.mxu1 %v13430_v22  ;;  %v331_v21 = vld [vmem:[#allocation5 + $0x670] sm:$0xff]  ;;  %v328_v22 = vld [vmem:[#allocation5 + $0x658] sm:$0xff] }
 0x1a5   :  { %3280 = vmatprep.subr.bf16.mxu0 %v13437_v23  ;;  %3452 = vmatprep.subr.bf16.mxu1 %v13439_v24  ;;  %v332_v23 = vld [vmem:[#allocation5 + $0x678] sm:$0xff]  ;;  %v13492_v24 = vcombine.low %v319_v12, %v323_v13  ;;  %v13501_v26 = vcombine.high %v327_v20, %v331_v21  ;;  %v383_v13 = vld [vmem:[#allocation5 + $0x810] sm:$0xff] }
 0x1a6   :  { %3310 = vmatprep.mubr.bf16.mxu0 %v15662_v37  ;;  %3482 = vmatprep.mubr.bf16.mxu1 %v15662_v37  ;;  %v13503_v27 = vcombine.high %v328_v22, %v332_v23  ;;  %v343_v37 = vld [vmem:[#allocation5 + $0x6d0] sm:$0xff] }
 0x1a8   :  { %3281 = vmatpush1.bf16.msra.mxu0 %v13436_v30  ;;  %3453 = vmatpush1.bf16.msra.mxu1 %v13438_v32  ;;  %v336_v30 = vld [vmem:[#allocation5 + $0x698] sm:$0xff] }
 0x1a9   :  { %3282 = vmatprep.subr.bf16.mxu0 %v13445_v33  ;;  %3454 = vmatprep.subr.bf16.mxu1 %v13447_v34  ;;  %v340_v32 = vld [vmem:[#allocation5 + $0x6b8] sm:$0xff]  ;;  %v13500_v33 = vcombine.low %v327_v20, %v331_v21  ;;  %v13502_v34 = vcombine.low %v328_v22, %v332_v23  ;;  %v391_v21 = vld [vmem:[#allocation5 + $0x850] sm:$0xff] }
 0x1aa   :  { %v13511_v36 = vcombine.high %v336_v30, %v340_v32  ;;  %v395_v22 = vld [vmem:[#allocation5 + $0x870] sm:$0xff]  ;;  %v392_v23 = vld [vmem:[#allocation5 + $0x858] sm:$0xff] }
 0x1ac   :  { %3283 = vmatpush1.bf16.msra.mxu0 %v13444_v40  ;;  %3455 = vmatpush1.bf16.msra.mxu1 %v13446_v41  ;;  %v348_v40 = vld [vmem:[#allocation5 + $0x6f8] sm:$0xff]  ;;  %v13508_v41 = vcombine.low %v335_v28, %v339_v29  ;;  %v399_v29 = vld [vmem:[#allocation5 + $0x890] sm:$0xff] }
 0x1ad   :  { %3284 = vmatprep.subr.bf16.mxu0 %v13453_v42  ;;  %3456 = vmatprep.subr.bf16.mxu1 %v13455_v43  ;;  %v13510_v42 = vcombine.low %v336_v30, %v340_v32  ;;  %v13517_v43 = vcombine.high %v343_v37, %v347_v38  ;;  %v13519_v44 = vcombine.high %v344_v39, %v348_v40  ;;  %v403_v30 = vld [vmem:[#allocation5 + $0x8b0] sm:$0xff] }
 0x1ae   :  { %v15663_v32 = vld [vmem:[#allocation2 + $0x8] ss:$28 sps:$4 sm:$0xff]  }
 0x1b0   :  { %3285 = vmatpush1.bf16.msra.mxu0 %v13452_v48  ;;  %3457 = vmatpush1.bf16.msra.mxu1 %v13454_v49  ;;  %v356_v48 = vld [vmem:[#allocation5 + $0x738] sm:$0xff]  ;;  %v13516_v49 = vcombine.low %v343_v37, %v347_v38  ;;  %v13573_v37 = vcombine.high %v399_v29, %v403_v30 }
 0x1b1   :  { %3286 = vmatprep.subr.bf16.mxu0 %v13461_v50  ;;  %3458 = vmatprep.subr.bf16.mxu1 %v13463_v51  ;;  %v13518_v50 = vcombine.low %v344_v39, %v348_v40  ;;  %v13525_v51 = vcombine.high %v351_v45, %v355_v46  ;;  %v13527_v52 = vcombine.high %v352_v47, %v356_v48  ;;  %v407_v39 = vld [vmem:[#allocation5 + $0x8d0] sm:$0xff] }
 0x1b2   :  { %v411_v40 = vld [vmem:[#allocation5 + $0x8f0] sm:$0xff] }
 0x1b4   :  { %3287 = vmatpush1.bf16.msra.mxu0 %v13460_v56  ;;  %3459 = vmatpush1.bf16.msra.mxu1 %v13462_v57  ;;  %v364_v56 = vld [vmem:[#allocation5 + $0x778] sm:$0xff]  ;;  %v13524_v57 = vcombine.low %v351_v45, %v355_v46  ;;  %v13581_v46 = vcombine.high %v407_v39, %v411_v40 }
 0x1b5   :  { %3288 = vmatprep.subr.bf16.mxu0 %v13469_v58  ;;  %3460 = vmatprep.subr.bf16.mxu1 %v13471_v59  ;;  %v13526_v58 = vcombine.low %v352_v47, %v356_v48  ;;  %v13533_v59 = vcombine.high %v359_v53, %v363_v54  ;;  %v13535_v60 = vcombine.high %v360_v55, %v364_v56  ;;  %v415_v48 = vld [vmem:[#allocation5 + $0x910] sm:$0xff] }
 0x1b8   :  { %3289 = vmatpush1.bf16.msra.mxu0 %v13468_v0  ;;  %3461 = vmatpush1.bf16.msra.mxu1 %v13470_v1  ;;  %v372_v0 = vld [vmem:[#allocation5 + $0x7b8] sm:$0xff]  ;;  %v13532_v1 = vcombine.low %v359_v53, %v363_v54 }
 0x1b9   :  { %3290 = vmatprep.subr.bf16.mxu0 %v13477_v2  ;;  %3462 = vmatprep.subr.bf16.mxu1 %v13479_v3  ;;  %v13534_v2 = vcombine.low %v360_v55, %v364_v56  ;;  %v13541_v3 = vcombine.high %v367_v61, %v371_v62  ;;  %v13543_v4 = vcombine.high %v368_v63, %v372_v0  ;;  %v423_v56 = vld [vmem:[#allocation5 + $0x950] sm:$0xff] }
 0x1bc   :  { %3291 = vmatpush1.bf16.msra.mxu0 %v13476_v8  ;;  %3463 = vmatpush1.bf16.msra.mxu1 %v13478_v9  ;;  %v380_v8 = vld [vmem:[#allocation5 + $0x7f8] sm:$0xff]  ;;  %v13540_v9 = vcombine.low %v367_v61, %v371_v62 }
 0x1bd   :  { %3292 = vmatprep.subr.bf16.mxu0 %v13485_v10  ;;  %3464 = vmatprep.subr.bf16.mxu1 %v13487_v11  ;;  %v13542_v10 = vcombine.low %v368_v63, %v372_v0  ;;  %v13549_v11 = vcombine.high %v375_v5, %v379_v6  ;;  %v13551_v12 = vcombine.high %v376_v7, %v380_v8  ;;  %v431_v0 = vld [vmem:[#allocation5 + $0x990] sm:$0xff] }
 0x1c0   :  { %3293 = vmatpush1.bf16.msra.mxu0 %v13484_v16  ;;  %3465 = vmatpush1.bf16.msra.mxu1 %v13486_v17  ;;  %v388_v16 = vld [vmem:[#allocation5 + $0x838] sm:$0xff]  ;;  %v13548_v17 = vcombine.low %v375_v5, %v379_v6 }
 0x1c1   :  { %3294 = vmatprep.subr.bf16.mxu0 %v13493_v18  ;;  %3466 = vmatprep.subr.bf16.mxu1 %v13495_v19  ;;  %v13550_v18 = vcombine.low %v376_v7, %v380_v8  ;;  %v13557_v19 = vcombine.high %v383_v13, %v387_v14  ;;  %v13559_v20 = vcombine.high %v384_v15, %v388_v16  ;;  %v439_v8 = vld [vmem:[#allocation5 + $0x9d0] sm:$0xff] }
 0x1c4   :  { %3295 = vmatpush1.bf16.msra.mxu0 %v13492_v24  ;;  %3467 = vmatpush1.bf16.msra.mxu1 %v13494_v25  ;;  %v396_v24 = vld [vmem:[#allocation5 + $0x878] sm:$0xff]  ;;  %v13556_v25 = vcombine.low %v383_v13, %v387_v14 }
 0x1c5   :  { %3296 = vmatprep.subr.bf16.mxu0 %v13501_v26  ;;  %3468 = vmatprep.subr.bf16.mxu1 %v13503_v27  ;;  %v13558_v26 = vcombine.low %v384_v15, %v388_v16  ;;  %v13565_v27 = vcombine.high %v391_v21, %v395_v22  ;;  %v13567_v28 = vcombine.high %v392_v23, %v396_v24  ;;  %v447_v16 = vld [vmem:[#allocation5 + $0xa10] sm:$0xff] }
 0x1c8   :  { %3297 = vmatpush1.bf16.msra.mxu0 %v13500_v33  ;;  %3469 = vmatpush1.bf16.msra.mxu1 %v13502_v34  ;;  %v400_v33 = vld [vmem:[#allocation5 + $0x898] sm:$0xff] }
 0x1c9   :  { %3298 = vmatprep.subr.bf16.mxu0 %v13509_v35  ;;  %3470 = vmatprep.subr.bf16.mxu1 %v13511_v36  ;;  %v404_v34 = vld [vmem:[#allocation5 + $0x8b8] sm:$0xff]  ;;  %v13564_v35 = vcombine.low %v391_v21, %v395_v22  ;;  %v13566_v36 = vcombine.low %v392_v23, %v396_v24  ;;  %v455_v24 = vld [vmem:[#allocation5 + $0xa50] sm:$0xff] }
 0x1ca   :  { %v13575_v38 = vcombine.high %v400_v33, %v404_v34  ;;  %v13574_v45 = vcombine.low %v400_v33, %v404_v34  ;;  %v463_v33 = vld [vmem:[#allocation5 + $0xa90] sm:$0xff] }
 0x1cb   :  { %v467_v34 = vld [vmem:[#allocation5 + $0xab0] sm:$0xff] }
 0x1cc   :  { %3299 = vmatpush1.bf16.msra.mxu0 %v13508_v41  ;;  %3471 = vmatpush1.bf16.msra.mxu1 %v13510_v42  ;;  %v15664_v41 = vld [vmem:[#allocation2 + $0x14] ss:$28 sps:$4 sm:$0xff]  }
 0x1cd   :  { %3300 = vmatprep.subr.bf16.mxu0 %v13517_v43  ;;  %3472 = vmatprep.subr.bf16.mxu1 %v13519_v44  ;;  %v408_v42 = vld [vmem:[#allocation5 + $0x8d8] sm:$0xff]  ;;  %v13572_v44 = vcombine.low %v399_v29, %v403_v30 }
 0x1ce   :  { %v412_v43 = vld [vmem:[#allocation5 + $0x8f8] sm:$0xff] }
 0x1cf   :  { %v13583_v47 = vcombine.high %v408_v42, %v412_v43  ;;  %v13582_v53 = vcombine.low %v408_v42, %v412_v43  ;;  %v475_v42 = vld [vmem:[#allocation5 + $0xaf0] sm:$0xff]  ;;  %v472_v43 = vld [vmem:[#allocation5 + $0xad8] sm:$0xff] }
 0x1d0   :  { %3301 = vmatpush1.bf16.msra.mxu0 %v13516_v49  ;;  %3473 = vmatpush1.bf16.msra.mxu1 %v13518_v50  ;;  %v419_v49 = vld [vmem:[#allocation5 + $0x930] sm:$0xff]  ;;  %v416_v50 = vld [vmem:[#allocation5 + $0x918] sm:$0xff] }
 0x1d1   :  { %3302 = vmatprep.subr.bf16.mxu0 %v13525_v51  ;;  %3474 = vmatprep.subr.bf16.mxu1 %v13527_v52  ;;  %v420_v51 = vld [vmem:[#allocation5 + $0x938] sm:$0xff]  ;;  %v13580_v52 = vcombine.low %v407_v39, %v411_v40  ;;  %v13589_v54 = vcombine.high %v415_v48, %v419_v49  ;;  %v13637_v39 = vcombine.high %v463_v33, %v467_v34 }
 0x1d2   :  { %v13591_v55 = vcombine.high %v416_v50, %v420_v51  ;;  %v13590_v61 = vcombine.low %v416_v50, %v420_v51  ;;  %v483_v50 = vld [vmem:[#allocation5 + $0xb30] sm:$0xff]  ;;  %v480_v51 = vld [vmem:[#allocation5 + $0xb18] sm:$0xff] }
 0x1d4   :  { %3303 = vmatpush1.bf16.msra.mxu0 %v13524_v57  ;;  %3475 = vmatpush1.bf16.msra.mxu1 %v13526_v58  ;;  %v427_v57 = vld [vmem:[#allocation5 + $0x970] sm:$0xff]  ;;  %v424_v58 = vld [vmem:[#allocation5 + $0x958] sm:$0xff] }
 0x1d5   :  { %3304 = vmatprep.subr.bf16.mxu0 %v13533_v59  ;;  %3476 = vmatprep.subr.bf16.mxu1 %v13535_v60  ;;  %v428_v59 = vld [vmem:[#allocation5 + $0x978] sm:$0xff]  ;;  %v13588_v60 = vcombine.low %v415_v48, %v419_v49  ;;  %v13597_v62 = vcombine.high %v423_v56, %v427_v57  ;;  %v479_v49 = vld [vmem:[#allocation5 + $0xb10] sm:$0xff] }
 0x1d6   :  { %v13599_v63 = vcombine.high %v424_v58, %v428_v59  ;;  %v13598_v5 = vcombine.low %v424_v58, %v428_v59  ;;  %v491_v58 = vld [vmem:[#allocation5 + $0xb70] sm:$0xff]  ;;  %v488_v59 = vld [vmem:[#allocation5 + $0xb58] sm:$0xff] }
 0x1d8   :  { %3305 = vmatpush1.bf16.msra.mxu0 %v13532_v1  ;;  %3477 = vmatpush1.bf16.msra.mxu1 %v13534_v2  ;;  %v435_v1 = vld [vmem:[#allocation5 + $0x9b0] sm:$0xff]  ;;  %v432_v2 = vld [vmem:[#allocation5 + $0x998] sm:$0xff] }
 0x1d9   :  { %3306 = vmatprep.subr.bf16.mxu0 %v13541_v3  ;;  %3478 = vmatprep.subr.bf16.mxu1 %v13543_v4  ;;  %v436_v3 = vld [vmem:[#allocation5 + $0x9b8] sm:$0xff]  ;;  %v13596_v4 = vcombine.low %v423_v56, %v427_v57  ;;  %v13605_v6 = vcombine.high %v431_v0, %v435_v1  ;;  %v487_v57 = vld [vmem:[#allocation5 + $0xb50] sm:$0xff] }
 0x1da   :  { %v13607_v7 = vcombine.high %v432_v2, %v436_v3  ;;  %v13606_v13 = vcombine.low %v432_v2, %v436_v3  ;;  %v499_v2 = vld [vmem:[#allocation5 + $0xbb0] sm:$0xff]  ;;  %v496_v3 = vld [vmem:[#allocation5 + $0xb98] sm:$0xff] }
 0x1dc   :  { %3307 = vmatpush1.bf16.msra.mxu0 %v13540_v9  ;;  %3479 = vmatpush1.bf16.msra.mxu1 %v13542_v10  ;;  %v443_v9 = vld [vmem:[#allocation5 + $0x9f0] sm:$0xff]  ;;  %v440_v10 = vld [vmem:[#allocation5 + $0x9d8] sm:$0xff] }
 0x1dd   :  { %3308 = vmatprep.subr.bf16.mxu0 %v13549_v11  ;;  %3480 = vmatprep.subr.bf16.mxu1 %v13551_v12  ;;  %v444_v11 = vld [vmem:[#allocation5 + $0x9f8] sm:$0xff]  ;;  %v13604_v12 = vcombine.low %v431_v0, %v435_v1  ;;  %v13613_v14 = vcombine.high %v439_v8, %v443_v9  ;;  %v495_v1 = vld [vmem:[#allocation5 + $0xb90] sm:$0xff] }
 0x1de   :  { %v13615_v15 = vcombine.high %v440_v10, %v444_v11  ;;  %v13614_v21 = vcombine.low %v440_v10, %v444_v11  ;;  %v507_v10 = vld [vmem:[#allocation5 + $0xbf0] sm:$0xff]  ;;  %v504_v11 = vld [vmem:[#allocation5 + $0xbd8] sm:$0xff] }
 0x1e0   :  { %3309 = vmatpush1.bf16.msra.mxu0 %v13548_v17  ;;  %3481 = vmatpush1.bf16.msra.mxu1 %v13550_v18  ;;  %v451_v17 = vld [vmem:[#allocation5 + $0xa30] sm:$0xff]  ;;  %v448_v18 = vld [vmem:[#allocation5 + $0xa18] sm:$0xff] }
 0x1e1   :  { %3321 = vmatprep.subr.bf16.mxu0 %v13557_v19  ;;  %3493 = vmatprep.subr.bf16.mxu1 %v13559_v20  ;;  %v452_v19 = vld [vmem:[#allocation5 + $0xa38] sm:$0xff]  ;;  %v13612_v20 = vcombine.low %v439_v8, %v443_v9  ;;  %v13621_v22 = vcombine.high %v447_v16, %v451_v17  ;;  %v503_v9 = vld [vmem:[#allocation5 + $0xbd0] sm:$0xff] }
 0x1e2   :  { %v13623_v23 = vcombine.high %v448_v18, %v452_v19  ;;  %v13622_v29 = vcombine.low %v448_v18, %v452_v19  ;;  %v515_v18 = vld [vmem:[#allocation5 + $0xc30] sm:$0xff]  ;;  %v512_v19 = vld [vmem:[#allocation5 + $0xc18] sm:$0xff] }
 0x1e3   :  { %3311 = vmatmul.mubr.bf16.vlgmr.msra.gmra.mrb[4].mxu0 %v15663_v32  ;;  %3483 = vmatmul.mubr.bf16.vlgmr.msra.gmra.mrb[4].mxu1 %v15663_v32 }
 0x1e4   :  { %3322 = vmatpush1.bf16.msra.mxu0 %v13556_v25  ;;  %3494 = vmatpush1.bf16.msra.mxu1 %v13558_v26  ;;  %v459_v25 = vld [vmem:[#allocation5 + $0xa70] sm:$0xff]  ;;  %v456_v26 = vld [vmem:[#allocation5 + $0xa58] sm:$0xff] }
 0x1e5   :  { %3323 = vmatprep.subr.bf16.mxu0 %v13565_v27  ;;  %3495 = vmatprep.subr.bf16.mxu1 %v13567_v28  ;;  %v460_v27 = vld [vmem:[#allocation5 + $0xa78] sm:$0xff]  ;;  %v13620_v28 = vcombine.low %v447_v16, %v451_v17  ;;  %v13629_v30 = vcombine.high %v455_v24, %v459_v25  ;;  %v511_v17 = vld [vmem:[#allocation5 + $0xc10] sm:$0xff] }
 0x1e6   :  { %3353 = vmatprep.mubr.bf16.mxu0 %v15664_v41  ;;  %3525 = vmatprep.mubr.bf16.mxu1 %v15664_v41  ;;  %v13631_v32 = vcombine.high %v456_v26, %v460_v27  ;;  %v471_v41 = vld [vmem:[#allocation5 + $0xad0] sm:$0xff] }
 0x1e8   :  { %3324 = vmatpush1.bf16.msra.mxu0 %v13564_v35  ;;  %3496 = vmatpush1.bf16.msra.mxu1 %v13566_v36  ;;  %v464_v35 = vld [vmem:[#allocation5 + $0xa98] sm:$0xff] }
 0x1e9   :  { %3325 = vmatprep.subr.bf16.mxu0 %v13573_v37  ;;  %3497 = vmatprep.subr.bf16.mxu1 %v13575_v38  ;;  %v468_v36 = vld [vmem:[#allocation5 + $0xab8] sm:$0xff]  ;;  %v13628_v37 = vcombine.low %v455_v24, %v459_v25  ;;  %v13630_v38 = vcombine.low %v456_v26, %v460_v27  ;;  %v519_v25 = vld [vmem:[#allocation5 + $0xc50] sm:$0xff] }
 0x1ea   :  { %v13639_v40 = vcombine.high %v464_v35, %v468_v36  ;;  %v523_v26 = vld [vmem:[#allocation5 + $0xc70] sm:$0xff]  ;;  %v520_v27 = vld [vmem:[#allocation5 + $0xc58] sm:$0xff] }
 0x1ec   :  { %3326 = vmatpush1.bf16.msra.mxu0 %v13572_v44  ;;  %3498 = vmatpush1.bf16.msra.mxu1 %v13574_v45  ;;  %v476_v44 = vld [vmem:[#allocation5 + $0xaf8] sm:$0xff]  ;;  %v13636_v45 = vcombine.low %v463_v33, %v467_v34  ;;  %v527_v34 = vld [vmem:[#allocation5 + $0xc90] sm:$0xff] }
 0x1ed   :  { %3327 = vmatprep.subr.bf16.mxu0 %v13581_v46  ;;  %3499 = vmatprep.subr.bf16.mxu1 %v13583_v47  ;;  %v13638_v46 = vcombine.low %v464_v35, %v468_v36  ;;  %v13645_v47 = vcombine.high %v471_v41, %v475_v42  ;;  %v13647_v48 = vcombine.high %v472_v43, %v476_v44  ;;  %v531_v35 = vld [vmem:[#allocation5 + $0xcb0] sm:$0xff] }
 0x1ee   :  { %v15665_v36 = vld [vmem:[#allocation2 + $0x10] ss:$28 sps:$4 sm:$0xff]  }
 0x1f0   :  { %3328 = vmatpush1.bf16.msra.mxu0 %v13580_v52  ;;  %3500 = vmatpush1.bf16.msra.mxu1 %v13582_v53  ;;  %v484_v52 = vld [vmem:[#allocation5 + $0xb38] sm:$0xff]  ;;  %v13644_v53 = vcombine.low %v471_v41, %v475_v42  ;;  %v13701_v41 = vcombine.high %v527_v34, %v531_v35 }
 0x1f1   :  { %3329 = vmatprep.subr.bf16.mxu0 %v13589_v54  ;;  %3501 = vmatprep.subr.bf16.mxu1 %v13591_v55  ;;  %v13646_v54 = vcombine.low %v472_v43, %v476_v44  ;;  %v13653_v55 = vcombine.high %v479_v49, %v483_v50  ;;  %v13655_v56 = vcombine.high %v480_v51, %v484_v52  ;;  %v535_v43 = vld [vmem:[#allocation5 + $0xcd0] sm:$0xff] }
 0x1f2   :  { %v539_v44 = vld [vmem:[#allocation5 + $0xcf0] sm:$0xff] }
 0x1f4   :  { %3330 = vmatpush1.bf16.msra.mxu0 %v13588_v60  ;;  %3502 = vmatpush1.bf16.msra.mxu1 %v13590_v61  ;;  %v492_v60 = vld [vmem:[#allocation5 + $0xb78] sm:$0xff]  ;;  %v13652_v61 = vcombine.low %v479_v49, %v483_v50  ;;  %v13709_v50 = vcombine.high %v535_v43, %v539_v44 }
 0x1f5   :  { %3331 = vmatprep.subr.bf16.mxu0 %v13597_v62  ;;  %3503 = vmatprep.subr.bf16.mxu1 %v13599_v63  ;;  %v13654_v62 = vcombine.low %v480_v51, %v484_v52  ;;  %v13661_v63 = vcombine.high %v487_v57, %v491_v58  ;;  %v13663_v0 = vcombine.high %v488_v59, %v492_v60  ;;  %v543_v52 = vld [vmem:[#allocation5 + $0xd10] sm:$0xff] }
 0x1f8   :  { %3332 = vmatpush1.bf16.msra.mxu0 %v13596_v4  ;;  %3504 = vmatpush1.bf16.msra.mxu1 %v13598_v5  ;;  %v500_v4 = vld [vmem:[#allocation5 + $0xbb8] sm:$0xff]  ;;  %v13660_v5 = vcombine.low %v487_v57, %v491_v58  ;;  %v13708_v57 = vcombine.low %v535_v43, %v539_v44 }
 0x1f9   :  { %3333 = vmatprep.subr.bf16.mxu0 %v13605_v6  ;;  %3505 = vmatprep.subr.bf16.mxu1 %v13607_v7  ;;  %v13662_v6 = vcombine.low %v488_v59, %v492_v60  ;;  %v13669_v7 = vcombine.high %v495_v1, %v499_v2  ;;  %v13671_v8 = vcombine.high %v496_v3, %v500_v4  ;;  %v551_v60 = vld [vmem:[#allocation5 + $0xd50] sm:$0xff] }
 0x1fc   :  { %3334 = vmatpush1.bf16.msra.mxu0 %v13604_v12  ;;  %3506 = vmatpush1.bf16.msra.mxu1 %v13606_v13  ;;  %v508_v12 = vld [vmem:[#allocation5 + $0xbf8] sm:$0xff]  ;;  %v13668_v13 = vcombine.low %v495_v1, %v499_v2  ;;  %v16006_v2 = vld [vmem:[#allocation7] sm:$0xff] }
 0x1fd   :  { %3335 = vmatprep.subr.bf16.mxu0 %v13613_v14  ;;  %3507 = vmatprep.subr.bf16.mxu1 %v13615_v15  ;;  %v13670_v14 = vcombine.low %v496_v3, %v500_v4  ;;  %v13677_v15 = vcombine.high %v503_v9, %v507_v10  ;;  %v13679_v16 = vcombine.high %v504_v11, %v508_v12 }
 0x200   :  { %3336 = vmatpush1.bf16.msra.mxu0 %v13612_v20  ;;  %3508 = vmatpush1.bf16.msra.mxu1 %v13614_v21  ;;  %v516_v20 = vld [vmem:[#allocation5 + $0xc38] sm:$0xff]  ;;  %v13676_v21 = vcombine.low %v503_v9, %v507_v10  ;;  %v559_v9 = vld [vmem:[#allocation5 + $0xd90] sm:$0xff] }
 0x201   :  { %3337 = vmatprep.subr.bf16.mxu0 %v13621_v22  ;;  %3509 = vmatprep.subr.bf16.mxu1 %v13623_v23  ;;  %v13678_v22 = vcombine.low %v504_v11, %v508_v12  ;;  %v13685_v23 = vcombine.high %v511_v17, %v515_v18  ;;  %v13687_v24 = vcombine.high %v512_v19, %v516_v20  ;;  %v563_v10 = vld [vmem:[#allocation5 + $0xdb0] sm:$0xff]  ;;  %v560_v12 = vld [vmem:[#allocation5 + $0xd98] sm:$0xff] }
 0x204   :  { %3338 = vmatpush1.bf16.msra.mxu0 %v13620_v28  ;;  %3510 = vmatpush1.bf16.msra.mxu1 %v13622_v29  ;;  %v524_v28 = vld [vmem:[#allocation5 + $0xc78] sm:$0xff]  ;;  %v13684_v29 = vcombine.low %v511_v17, %v515_v18 }
 0x205   :  { %3339 = vmatprep.subr.bf16.mxu0 %v13629_v30  ;;  %3511 = vmatprep.subr.bf16.mxu1 %v13631_v32  ;;  %v13686_v30 = vcombine.low %v512_v19, %v516_v20  ;;  %v13693_v32 = vcombine.high %v519_v25, %v523_v26  ;;  %v13695_v33 = vcombine.high %v520_v27, %v524_v28 }
 0x206   :  { %v13733_v19 = vcombine.high %v559_v9, %v563_v10 }
 0x208   :  { %3340 = vmatpush1.bf16.msra.mxu0 %v13628_v37  ;;  %3512 = vmatpush1.bf16.msra.mxu1 %v13630_v38  ;;  %v528_v37 = vld [vmem:[#allocation5 + $0xc98] sm:$0xff] }
 0x209   :  { %3341 = vmatprep.subr.bf16.mxu0 %v13637_v39  ;;  %3513 = vmatprep.subr.bf16.mxu1 %v13639_v40  ;;  %v532_v38 = vld [vmem:[#allocation5 + $0xcb8] sm:$0xff]  ;;  %v13692_v39 = vcombine.low %v519_v25, %v523_v26  ;;  %v13694_v40 = vcombine.low %v520_v27, %v524_v28 }
 0x20a   :  { %v13703_v42 = vcombine.high %v528_v37, %v532_v38  ;;  %v13702_v49 = vcombine.low %v528_v37, %v532_v38  ;;  %v568_v27 = vld [vmem:[#allocation5 + $0xdd8] sm:$0xff] }
 0x20b   :  { %v572_v28 = vld [vmem:[#allocation5 + $0xdf8] sm:$0xff] }
 0x20c   :  { %3342 = vmatpush1.bf16.msra.mxu0 %v13636_v45  ;;  %3514 = vmatpush1.bf16.msra.mxu1 %v13638_v46  ;;  %v536_v45 = vld [vmem:[#allocation5 + $0xcd8] sm:$0xff]  ;;  %v13743_v44 = vcombine.high %v568_v27, %v572_v28 }
 0x20d   :  { %3343 = vmatprep.subr.bf16.mxu0 %v13645_v47  ;;  %3515 = vmatprep.subr.bf16.mxu1 %v13647_v48  ;;  %v540_v46 = vld [vmem:[#allocation5 + $0xcf8] sm:$0xff]  ;;  %v575_v47 = vlaneseq  ;;  %v13700_v48 = vcombine.low %v527_v34, %v531_v35  ;;  %v13732_v34 = vcombine.low %v559_v9, %v563_v10  ;;  %v15285_v9 = vld [vmem:[#allocation8 + $0x28] ss:$16 sps:$4 sm:$0xff]  }
 0x20e   :  { %v13711_v51 = vcombine.high %v536_v45, %v540_v46  ;;  %v13710_v58 = vcombine.low %v536_v45, %v540_v46  ;;  %v15290_v10 = vld [vmem:[#allocation8 + $0x44] ss:$16 sps:$4 sm:$0xff]  }
 0x210   :  { %3344 = vmatpush1.bf16.msra.mxu0 %v13644_v53  ;;  %3516 = vmatpush1.bf16.msra.mxu1 %v13646_v54  ;;  %v547_v53 = vld [vmem:[#allocation5 + $0xd30] sm:$0xff]  ;;  %v544_v54 = vld [vmem:[#allocation5 + $0xd18] sm:$0xff] }
 0x211   :  { %3345 = vmatprep.subr.bf16.mxu0 %v13653_v55  ;;  %3517 = vmatprep.subr.bf16.mxu1 %v13655_v56  ;;  %v548_v55 = vld [vmem:[#allocation5 + $0xd38] sm:$0xff]  ;;  %v16001_v56 = vshrl.u32 %v575_v47, 7  ;;  %v13716_v1 = vcombine.low %v543_v52, %v547_v53 }
 0x212   :  { %v13719_v59 = vcombine.high %v544_v54, %v548_v55 }
 0x213   :  { %v16009_v3 = vsub.s32 2, %v16001_v56  ;;  %v16012_v4 = vsub.s32 1, %v16001_v56 }
 0x214   :  { %3346 = vmatpush1.bf16.msra.mxu0 %v13652_v61  ;;  %3518 = vmatpush1.bf16.msra.mxu1 %v13654_v62  ;;  %v555_v61 = vld [vmem:[#allocation5 + $0xd70] sm:$0xff]  ;;  %v16004_v62 = vsub.s32 0, %v16001_v56 }
 0x215   :  { %3347 = vmatprep.subr.bf16.mxu0 %v13661_v63  ;;  %3519 = vmatprep.subr.bf16.mxu1 %v13663_v0  ;;  %v552_v63 = vld [vmem:[#allocation5 + $0xd58] sm:$0xff] }
 0x216   :  { %v556_v0 = vld [vmem:[#allocation5 + $0xd78] sm:$0xff]  ;;  %v578_v11 = vrot.slane %v16006_v2, %v16004_v62 }
 0x217   :  { %v13726_v18 = vcombine.low %v552_v63, %v556_v0 }
 0x218   :  { %3348 = vmatpush1.bf16.msra.mxu0 %v13660_v5  ;;  %3520 = vmatpush1.bf16.msra.mxu1 %v13662_v6  ;;  %v13718_v5 = vcombine.low %v544_v54, %v548_v55  ;;  %v16015_v6 = vsub.s32 3, %v16001_v56 }
 0x219   :  { %3349 = vmatprep.subr.bf16.mxu0 %v13669_v7  ;;  %3521 = vmatprep.subr.bf16.mxu1 %v13671_v8  ;;  %v13725_v7 = vcombine.high %v551_v60, %v555_v61  ;;  %v13727_v8 = vcombine.high %v552_v63, %v556_v0  ;;  %v15276_v63 = vld [vmem:[#allocation8] ss:$16 sps:$4 sm:$0xff]   ;;  %v15279_v0 = vld [vmem:[#allocation8 + $0x8] ss:$16 sps:$4 sm:$0xff]  }
 0x21a   :  { %v590_v17 = vrot.slane %v16006_v2, %v16015_v6 }
 0x21c   :  { %3350 = vmatpush1.bf16.msra.mxu0 %v13668_v13  ;;  %3522 = vmatpush1.bf16.msra.mxu1 %v13670_v14  ;;  %v564_v13 = vld [vmem:[#allocation5 + $0xdb8] sm:$0xff]  ;;  %v586_v14 = vrot.slane %v16006_v2, %v16009_v3 }
 0x21d   :  { %3351 = vmatprep.subr.bf16.mxu0 %v13677_v15  ;;  %3523 = vmatprep.subr.bf16.mxu1 %v13679_v16  ;;  %v582_v15 = vrot.slane %v16006_v2, %v16012_v4  ;;  %v13724_v16 = vcombine.low %v551_v60, %v555_v61  ;;  %v13734_v35 = vcombine.low %v560_v12, %v564_v13  ;;  %v15281_v60 = vld [vmem:[#allocation8 + $0xc] ss:$16 sps:$4 sm:$0xff]  }
 0x220   :  { %3352 = vmatpush1.bf16.msra.mxu0 %v13676_v21  ;;  %3524 = vmatpush1.bf16.msra.mxu1 %v13678_v22  ;;  %v13735_v21 = vcombine.high %v560_v12, %v564_v13  ;;  %v567_v22 = vld [vmem:[#allocation5 + $0xdd0] sm:$0xff]  ;;  %v15288_v12 = vld [vmem:[#allocation8 + $0x40] ss:$16 sps:$4 sm:$0xff]  }
 0x221   :  { %3364 = vmatprep.subr.bf16.mxu0 %v13685_v23  ;;  %3536 = vmatprep.subr.bf16.mxu1 %v13687_v24  ;;  %v571_v23 = vld [vmem:[#allocation5 + $0xdf0] sm:$0xff] }
 0x222   :  { %v15291_v13 = vld [vmem:[#allocation8 + $0x48] ss:$16 sps:$4 sm:$0xff]  }
 0x223   :  { %3354 = vmatmul.mubr.bf16.vlgmr.msra.gmra.mrb[4].mxu0 %v15665_v36  ;;  %3526 = vmatmul.mubr.bf16.vlgmr.msra.gmra.mrb[4].mxu1 %v15665_v36 }
 0x224   :  { %3365 = vmatpush1.bf16.msra.mxu0 %v13684_v29  ;;  %3537 = vmatpush1.bf16.msra.mxu1 %v13686_v30 }
 0x225   :  { %3366 = vmatprep.subr.bf16.mxu0 %v13693_v32  ;;  %3538 = vmatprep.subr.bf16.mxu1 %v13695_v33 }
 0x226   :  { %3396 = vmatprep.mubr.bf16.mxu0 %v15868_v31  ;;  %3568 = vmatprep.mubr.bf16.mxu1 %v15868_v31  ;;  %v13717_v31 = vcombine.high %v543_v52, %v547_v53 }
 0x228   :  { %3367 = vmatpush1.bf16.msra.mxu0 %v13692_v39  ;;  %3539 = vmatpush1.bf16.msra.mxu1 %v13694_v40  ;;  %v13741_v40 = vcombine.high %v567_v22, %v571_v23 }
 0x229   :  { %3368 = vmatprep.subr.bf16.mxu0 %v13701_v41  ;;  %3540 = vmatprep.subr.bf16.mxu1 %v13703_v42 }
 0x22c   :  { %3369 = vmatpush1.bf16.msra.mxu0 %v13700_v48  ;;  %3541 = vmatpush1.bf16.msra.mxu1 %v13702_v49  ;;  %v13740_v48 = vcombine.low %v567_v22, %v571_v23  ;;  %v15308_v22 = vld [vmem:[#allocation8 + $0xa4] ss:$16 sps:$4 sm:$0xff]   ;;  %v15311_v23 = vld [vmem:[#allocation8 + $0xac] ss:$16 sps:$4 sm:$0xff]  }
 0x22d   :  { %3370 = vmatprep.subr.bf16.mxu0 %v13709_v50  ;;  %3542 = vmatprep.subr.bf16.mxu1 %v13711_v51 }
 0x230   :  { %3371 = vmatpush1.bf16.msra.mxu0 %v13708_v57  ;;  %3543 = vmatpush1.bf16.msra.mxu1 %v13710_v58  ;;  %v13742_v57 = vcombine.low %v568_v27, %v572_v28  ;;  %v15278_v58 = vld [vmem:[#allocation8 + $0x4] ss:$16 sps:$4 sm:$0xff]   ;;  %v15317_v27 = vld [vmem:[#allocation8 + $0xcc] ss:$16 sps:$4 sm:$0xff]   ;;  %v15312_v28 = vld [vmem:[#allocation8 + $0xc0] ss:$16 sps:$4 sm:$0xff]  }
 0x231   :  { %3372 = vmatprep.subr.bf16.mxu0 %v13717_v31  ;;  %3544 = vmatprep.subr.bf16.mxu1 %v13719_v59 }
 0x234   :  { %3373 = vmatpush1.bf16.msra.mxu0 %v13716_v1  ;;  %3545 = vmatpush1.bf16.msra.mxu1 %v13718_v5  ;;  %v15284_v1 = vld [vmem:[#allocation8 + $0x24] ss:$16 sps:$4 sm:$0xff]  }
 0x235   :  { %3374 = vmatprep.subr.bf16.mxu0 %v13725_v7  ;;  %3546 = vmatprep.subr.bf16.mxu1 %v13727_v8  ;;  %v15666_v5 = vld [vmem:[#allocation2 + $0x18] ss:$28 sps:$4 sm:$0xff]   ;;  %v15287_v7 = vld [vmem:[#allocation8 + $0x2c] ss:$16 sps:$4 sm:$0xff]   ;;  %v15282_v8 = vld [vmem:[#allocation8 + $0x20] ss:$16 sps:$4 sm:$0xff]  }
 0x236   :  { %v3054_v20 = vpop.f32.mrb[0].mxu0  ;;  %v3226_v25 = vpop.f32.mrb[0].mxu1 }
 0x237   :  { %v15024_v24 = vadd.f32 %v3054_v20, %v578_v11  ;;  %v3056_v26 = vpop.f32.mrb[1].mxu0  ;;  %v15028_v29 = vadd.f32 %v3226_v25, %v586_v14  ;;  %v3228_v32 = vpop.f32.mrb[1].mxu1  ;;  %v15300_v20 = vld [vmem:[#allocation8 + $0x80] ss:$16 sps:$4 sm:$0xff]   ;;  %v15309_v25 = vld [vmem:[#allocation8 + $0xa8] ss:$16 sps:$4 sm:$0xff]  }
 0x238   :  { %v15025_v30 = vadd.f32 %v3056_v26, %v582_v15  ;;  %v3058_v33 = vpop.f32.mrb[2].mxu0  ;;  %3375 = vmatpush1.bf16.msra.mxu0 %v13724_v16  ;;  %v15029_v36 = vadd.f32 %v3228_v32, %v590_v17  ;;  %v3230_v38 = vpop.f32.mrb[2].mxu1  ;;  %3547 = vmatpush1.bf16.msra.mxu1 %v13726_v18  ;;  %v15294_v16 = vld [vmem:[#allocation8 + $0x60] ss:$16 sps:$4 sm:$0xff]   ;;  %v15302_v18 = vld [vmem:[#allocation8 + $0x84] ss:$16 sps:$4 sm:$0xff]  }
 0x239   :  { %v15026_v37 = vadd.f32 %v3058_v33, %v578_v11  ;;  %v3060_v39 = vpop.f32.mrb[3].mxu0  ;;  %3376 = vmatprep.subr.bf16.mxu0 %v13733_v19  ;;  %v15030_v41 = vadd.f32 %v3230_v38, %v586_v14  ;;  %v3232_v43 = vpop.f32.mrb[3].mxu1  ;;  %3548 = vmatprep.subr.bf16.mxu1 %v13735_v21  ;;  %v3579_v45 = vmax.f32 %v15024_v24, 0.0  ;;  %v3581_v49 = vmax.f32 %v15028_v29, 0.0  ;;  %v15293_v11 = vld [vmem:[#allocation8 + $0x4c] ss:$16 sps:$4 sm:$0xff]  }
 0x23a   :  { %v15027_v42 = vadd.f32 %v3060_v39, %v582_v15  ;;  %v15031_v47 = vadd.f32 %v3232_v43, %v590_v17  ;;  %v3580_v50 = vmax.f32 %v15025_v30, 0.0  ;;  %v3582_v53 = vmax.f32 %v15029_v36, 0.0  ;;  %v15296_v14 = vld [vmem:[#allocation8 + $0x64] ss:$16 sps:$4 sm:$0xff]   ;;  %v15299_v15 = vld [vmem:[#allocation8 + $0x6c] ss:$16 sps:$4 sm:$0xff]  }
 0x23b   :  { %v3587_v46 = vmax.f32 %v15026_v37, 0.0  ;;  %v3589_v51 = vmax.f32 %v15030_v41, 0.0  ;;  %v15297_v17 = vld [vmem:[#allocation8 + $0x68] ss:$16 sps:$4 sm:$0xff]   ;;  %v15305_v19 = vld [vmem:[#allocation8 + $0x8c] ss:$16 sps:$4 sm:$0xff]  }
 0x23c   :  { %v3588_v52 = vmax.f32 %v15027_v42, 0.0  ;;  %3377 = vmatpush1.bf16.msra.mxu0 %v13732_v34  ;;  %v3590_v55 = vmax.f32 %v15031_v47, 0.0  ;;  %3549 = vmatpush1.bf16.msra.mxu1 %v13734_v35  ;;  %v15303_v21 = vld [vmem:[#allocation8 + $0x88] ss:$16 sps:$4 sm:$0xff]   ;;  %v15306_v24 = vld [vmem:[#allocation8 + $0xa0] ss:$16 sps:$4 sm:$0xff]  }
 0x23d   :  { %v16025_v54 = vpack.c.bf16 %v3587_v46, %v3579_v45  ;;  %3378 = vmatprep.subr.bf16.mxu0 %v13741_v40  ;;  %v16027_v31 = vpack.c.bf16 %v3589_v51, %v3581_v49  ;;  %3550 = vmatprep.subr.bf16.mxu1 %v13743_v44  ;;  %v15314_v26 = vld [vmem:[#allocation8 + $0xc4] ss:$16 sps:$4 sm:$0xff]   ;;  %v15315_v29 = vld [vmem:[#allocation8 + $0xc8] ss:$16 sps:$4 sm:$0xff]   ;;  %v15323_v32 = vld [vmem:[#allocation8 + $0xec] ss:$16 sps:$4 sm:$0xff]  }
 0x23e   :  { %v3596_v59 = vpack.c.bf16 %v3588_v52, %v3580_v50  ;;  %v16029_v61 = vpack.c.bf16 %v3590_v55, %v3582_v53  ;;  %v15320_v30 = vld [vmem:[#allocation8 + $0xe4] ss:$16 sps:$4 sm:$0xff]   ;;  %v15318_v33 = vld [vmem:[#allocation8 + $0xe0] ss:$16 sps:$4 sm:$0xff]   ;;  %v15321_v34 = vld [vmem:[#allocation8 + $0xe8] ss:$16 sps:$4 sm:$0xff]  }
 0x23f   :  { %v15326_v35 = vld [vmem:[#allocation8 + $0x104] ss:$16 sps:$4 sm:$0xff]   ;;  %v15329_v36 = vld [vmem:[#allocation8 + $0x10c] ss:$16 sps:$4 sm:$0xff]   ;;  %v15324_v37 = vld [vmem:[#allocation8 + $0x100] ss:$16 sps:$4 sm:$0xff]  }
 0x240   :  { %3379 = vmatpush1.bf16.msra.mxu0 %v13740_v48  ;;  %3551 = vmatpush1.bf16.msra.mxu1 %v13742_v57  ;;  %v15327_v38 = vld [vmem:[#allocation8 + $0x108] ss:$16 sps:$4 sm:$0xff]   ;;  %v15332_v39 = vld [vmem:[#allocation8 + $0x124] ss:$16 sps:$4 sm:$0xff]   ;;  %v15335_v40 = vld [vmem:[#allocation8 + $0x12c] ss:$16 sps:$4 sm:$0xff]  }
 0x241   :  { %5161 = vmatprep.subr.bf16.mxu0 %v15278_v58  ;;  %5333 = vmatprep.subr.bf16.mxu1 %v15281_v60  ;;  %v15330_v41 = vld [vmem:[#allocation8 + $0x120] ss:$16 sps:$4 sm:$0xff]   ;;  %v15333_v42 = vld [vmem:[#allocation8 + $0x128] ss:$16 sps:$4 sm:$0xff]   ;;  %v15338_v43 = vld [vmem:[#allocation8 + $0x144] ss:$16 sps:$4 sm:$0xff]  }
 0x242   :  { %v15341_v44 = vld [vmem:[#allocation8 + $0x14c] ss:$16 sps:$4 sm:$0xff]   ;;  %v15336_v45 = vld [vmem:[#allocation8 + $0x140] ss:$16 sps:$4 sm:$0xff]   ;;  %v15339_v46 = vld [vmem:[#allocation8 + $0x148] ss:$16 sps:$4 sm:$0xff]  }
 0x243   :  { %3397 = vmatmul.mubr.bf16.vlgmr.msra.gmra.mrb[4].mxu0 %v15666_v5  ;;  %3569 = vmatmul.mubr.bf16.vlgmr.msra.gmra.mrb[4].mxu1 %v15666_v5  ;;  %v15344_v47 = vld [vmem:[#allocation8 + $0x164] ss:$16 sps:$4 sm:$0xff]   ;;  %v15347_v48 = vld [vmem:[#allocation8 + $0x16c] ss:$16 sps:$4 sm:$0xff]   ;;  %v15342_v49 = vld [vmem:[#allocation8 + $0x160] ss:$16 sps:$4 sm:$0xff]  }
 0x244   :  { %5162 = vmatpush1.bf16.msra.mxu0 %v15276_v63  ;;  %5193 = vmatprep.mubr.bf16.mxu0 %v3596_v59  ;;  %v15345_v50 = vld [vmem:[#allocation8 + $0x168] ss:$16 sps:$4 sm:$0xff]   ;;  %v15350_v51 = vld [vmem:[#allocation8 + $0x184] ss:$16 sps:$4 sm:$0xff]   ;;  %v15353_v52 = vld [vmem:[#allocation8 + $0x18c] ss:$16 sps:$4 sm:$0xff]  }
 0x245   :  { %5334 = vmatpush1.bf16.msra.mxu1 %v15279_v0  ;;  %5365 = vmatprep.mubr.bf16.mxu1 %v3596_v59  ;;  %v15348_v53 = vld [vmem:[#allocation8 + $0x180] ss:$16 sps:$4 sm:$0xff]   ;;  %v15351_v55 = vld [vmem:[#allocation8 + $0x188] ss:$16 sps:$4 sm:$0xff]   ;;  %v15356_v57 = vld [vmem:[#allocation8 + $0x1a4] ss:$16 sps:$4 sm:$0xff]  }
 0x246   :  { %5163 = vmatprep.subr.bf16.mxu0 %v15284_v1  ;;  %5335 = vmatprep.subr.bf16.mxu1 %v15287_v7  ;;  %v15359_v58 = vld [vmem:[#allocation8 + $0x1ac] ss:$16 sps:$4 sm:$0xff]   ;;  %v15354_v59 = vld [vmem:[#allocation8 + $0x1a0] ss:$16 sps:$4 sm:$0xff]   ;;  %v15357_v60 = vld [vmem:[#allocation8 + $0x1a8] ss:$16 sps:$4 sm:$0xff]  }
 0x247   :  { %v15362_v63 = vld [vmem:[#allocation8 + $0x1c4] ss:$16 sps:$4 sm:$0xff]   ;;  %v15365_v0 = vld [vmem:[#allocation8 + $0x1cc] ss:$16 sps:$4 sm:$0xff]   ;;  %v15360_v1 = vld [vmem:[#allocation8 + $0x1c0] ss:$16 sps:$4 sm:$0xff]  }
 0x248   :  { %5164 = vmatpush1.bf16.msra.mxu0 %v15282_v8  ;;  %v15363_v5 = vld [vmem:[#allocation8 + $0x1c8] ss:$16 sps:$4 sm:$0xff]   ;;  %v15368_v7 = vld [vmem:[#allocation8 + $0x1e4] ss:$16 sps:$4 sm:$0xff]   ;;  %v15371_v8 = vld [vmem:[#allocation8 + $0x1ec] ss:$16 sps:$4 sm:$0xff]  }
 0x249   :  { %5336 = vmatpush1.bf16.msra.mxu1 %v15285_v9  ;;  %5165 = vmatprep.subr.bf16.mxu0 %v15290_v10  ;;  %v15366_v9 = vld [vmem:[#allocation8 + $0x1e0] ss:$16 sps:$4 sm:$0xff]   ;;  %v15369_v10 = vld [vmem:[#allocation8 + $0x1e8] ss:$16 sps:$4 sm:$0xff]  }
 0x24a   :  { %5337 = vmatprep.subr.bf16.mxu1 %v15293_v11  ;;  %v15374_v11 = vld [vmem:[#allocation8 + $0x204] ss:$16 sps:$4 sm:$0xff]  }
 0x24c   :  { %5166 = vmatpush1.bf16.msra.mxu0 %v15288_v12  ;;  %v15377_v12 = vld [vmem:[#allocation8 + $0x20c] ss:$16 sps:$4 sm:$0xff]  }
 0x24d   :  { %5338 = vmatpush1.bf16.msra.mxu1 %v15291_v13  ;;  %5167 = vmatprep.subr.bf16.mxu0 %v15296_v14  ;;  %v15372_v13 = vld [vmem:[#allocation8 + $0x200] ss:$16 sps:$4 sm:$0xff]   ;;  %v15375_v14 = vld [vmem:[#allocation8 + $0x208] ss:$16 sps:$4 sm:$0xff]  }
 0x24e   :  { %5339 = vmatprep.subr.bf16.mxu1 %v15299_v15  ;;  %v15380_v15 = vld [vmem:[#allocation8 + $0x224] ss:$16 sps:$4 sm:$0xff]  }
 0x250   :  { %5168 = vmatpush1.bf16.msra.mxu0 %v15294_v16  ;;  %v15383_v16 = vld [vmem:[#allocation8 + $0x22c] ss:$16 sps:$4 sm:$0xff]  }
 0x251   :  { %5340 = vmatpush1.bf16.msra.mxu1 %v15297_v17  ;;  %5169 = vmatprep.subr.bf16.mxu0 %v15302_v18  ;;  %v15378_v17 = vld [vmem:[#allocation8 + $0x220] ss:$16 sps:$4 sm:$0xff]   ;;  %v15381_v18 = vld [vmem:[#allocation8 + $0x228] ss:$16 sps:$4 sm:$0xff]  }
 0x252   :  { %5341 = vmatprep.subr.bf16.mxu1 %v15305_v19  ;;  %v15386_v19 = vld [vmem:[#allocation8 + $0x244] ss:$16 sps:$4 sm:$0xff]  }
 0x254   :  { %5170 = vmatpush1.bf16.msra.mxu0 %v15300_v20  ;;  %v15389_v20 = vld [vmem:[#allocation8 + $0x24c] ss:$16 sps:$4 sm:$0xff]  }
 0x255   :  { %5342 = vmatpush1.bf16.msra.mxu1 %v15303_v21  ;;  %5171 = vmatprep.subr.bf16.mxu0 %v15308_v22  ;;  %v15384_v21 = vld [vmem:[#allocation8 + $0x240] ss:$16 sps:$4 sm:$0xff]   ;;  %v15387_v22 = vld [vmem:[#allocation8 + $0x248] ss:$16 sps:$4 sm:$0xff]  }
 0x256   :  { %5343 = vmatprep.subr.bf16.mxu1 %v15311_v23  ;;  %v15392_v23 = vld [vmem:[#allocation8 + $0x264] ss:$16 sps:$4 sm:$0xff]  }
 0x258   :  { %5172 = vmatpush1.bf16.msra.mxu0 %v15306_v24  ;;  %v15390_v24 = vld [vmem:[#allocation8 + $0x260] ss:$16 sps:$4 sm:$0xff]  }
 0x259   :  { %5344 = vmatpush1.bf16.msra.mxu1 %v15309_v25  ;;  %5173 = vmatprep.subr.bf16.mxu0 %v15314_v26  ;;  %v15393_v25 = vld [vmem:[#allocation8 + $0x268] ss:$16 sps:$4 sm:$0xff]   ;;  %v15398_v26 = vld [vmem:[#allocation8 + $0x284] ss:$16 sps:$4 sm:$0xff]  }
 0x25a   :  { %5345 = vmatprep.subr.bf16.mxu1 %v15317_v27  ;;  %v15401_v27 = vld [vmem:[#allocation8 + $0x28c] ss:$16 sps:$4 sm:$0xff]  }
 0x25c   :  { %5174 = vmatpush1.bf16.msra.mxu0 %v15312_v28  ;;  %v15399_v28 = vld [vmem:[#allocation8 + $0x288] ss:$16 sps:$4 sm:$0xff]  }
 0x25d   :  { %5346 = vmatpush1.bf16.msra.mxu1 %v15315_v29  ;;  %5175 = vmatprep.subr.bf16.mxu0 %v15320_v30  ;;  %v15404_v29 = vld [vmem:[#allocation8 + $0x2a4] ss:$16 sps:$4 sm:$0xff]   ;;  %v15407_v30 = vld [vmem:[#allocation8 + $0x2ac] ss:$16 sps:$4 sm:$0xff]  }
 0x25e   :  { %5347 = vmatprep.subr.bf16.mxu1 %v15323_v32  ;;  %v15402_v32 = vld [vmem:[#allocation8 + $0x2a0] ss:$16 sps:$4 sm:$0xff]  }
 0x260   :  { %5176 = vmatpush1.bf16.msra.mxu0 %v15318_v33  ;;  %v15405_v33 = vld [vmem:[#allocation8 + $0x2a8] ss:$16 sps:$4 sm:$0xff]  }
 0x261   :  { %5348 = vmatpush1.bf16.msra.mxu1 %v15321_v34  ;;  %5177 = vmatprep.subr.bf16.mxu0 %v15326_v35  ;;  %v15410_v34 = vld [vmem:[#allocation8 + $0x2c4] ss:$16 sps:$4 sm:$0xff]   ;;  %v15413_v35 = vld [vmem:[#allocation8 + $0x2cc] ss:$16 sps:$4 sm:$0xff]  }
 0x262   :  { %5349 = vmatprep.subr.bf16.mxu1 %v15329_v36  ;;  %v15408_v36 = vld [vmem:[#allocation8 + $0x2c0] ss:$16 sps:$4 sm:$0xff]  }
 0x264   :  { %5178 = vmatpush1.bf16.msra.mxu0 %v15324_v37  ;;  %v15411_v37 = vld [vmem:[#allocation8 + $0x2c8] ss:$16 sps:$4 sm:$0xff]  }
 0x265   :  { %5350 = vmatpush1.bf16.msra.mxu1 %v15327_v38  ;;  %5179 = vmatprep.subr.bf16.mxu0 %v15332_v39  ;;  %v15416_v38 = vld [vmem:[#allocation8 + $0x2e4] ss:$16 sps:$4 sm:$0xff]   ;;  %v15419_v39 = vld [vmem:[#allocation8 + $0x2ec] ss:$16 sps:$4 sm:$0xff]  }
 0x266   :  { %5351 = vmatprep.subr.bf16.mxu1 %v15335_v40  ;;  %v15414_v40 = vld [vmem:[#allocation8 + $0x2e0] ss:$16 sps:$4 sm:$0xff]  }
 0x268   :  { %5180 = vmatpush1.bf16.msra.mxu0 %v15330_v41  ;;  %v15417_v41 = vld [vmem:[#allocation8 + $0x2e8] ss:$16 sps:$4 sm:$0xff]  }
 0x269   :  { %5352 = vmatpush1.bf16.msra.mxu1 %v15333_v42  ;;  %5181 = vmatprep.subr.bf16.mxu0 %v15338_v43  ;;  %v15422_v42 = vld [vmem:[#allocation8 + $0x304] ss:$16 sps:$4 sm:$0xff]   ;;  %v15425_v43 = vld [vmem:[#allocation8 + $0x30c] ss:$16 sps:$4 sm:$0xff]  }
 0x26a   :  { %5353 = vmatprep.subr.bf16.mxu1 %v15341_v44  ;;  %v15420_v44 = vld [vmem:[#allocation8 + $0x300] ss:$16 sps:$4 sm:$0xff]  }
 0x26c   :  { %5182 = vmatpush1.bf16.msra.mxu0 %v15336_v45  ;;  %v15423_v45 = vld [vmem:[#allocation8 + $0x308] ss:$16 sps:$4 sm:$0xff]  }
 0x26d   :  { %5354 = vmatpush1.bf16.msra.mxu1 %v15339_v46  ;;  %5183 = vmatprep.subr.bf16.mxu0 %v15344_v47  ;;  %v15428_v46 = vld [vmem:[#allocation8 + $0x324] ss:$16 sps:$4 sm:$0xff]   ;;  %v15431_v47 = vld [vmem:[#allocation8 + $0x32c] ss:$16 sps:$4 sm:$0xff]  }
 0x26e   :  { %5355 = vmatprep.subr.bf16.mxu1 %v15347_v48  ;;  %v15426_v48 = vld [vmem:[#allocation8 + $0x320] ss:$16 sps:$4 sm:$0xff]  }
 0x270   :  { %5184 = vmatpush1.bf16.msra.mxu0 %v15342_v49  ;;  %v15429_v49 = vld [vmem:[#allocation8 + $0x328] ss:$16 sps:$4 sm:$0xff]  }
 0x271   :  { %5356 = vmatpush1.bf16.msra.mxu1 %v15345_v50  ;;  %5185 = vmatprep.subr.bf16.mxu0 %v15350_v51  ;;  %v15434_v50 = vld [vmem:[#allocation8 + $0x344] ss:$16 sps:$4 sm:$0xff]   ;;  %v15437_v51 = vld [vmem:[#allocation8 + $0x34c] ss:$16 sps:$4 sm:$0xff]  }
 0x272   :  { %5357 = vmatprep.subr.bf16.mxu1 %v15353_v52  ;;  %v15432_v52 = vld [vmem:[#allocation8 + $0x340] ss:$16 sps:$4 sm:$0xff]  }
 0x274   :  { %5186 = vmatpush1.bf16.msra.mxu0 %v15348_v53  ;;  %v15435_v53 = vld [vmem:[#allocation8 + $0x348] ss:$16 sps:$4 sm:$0xff]  }
 0x275   :  { %5358 = vmatpush1.bf16.msra.mxu1 %v15351_v55  ;;  %5187 = vmatprep.subr.bf16.mxu0 %v15356_v57  ;;  %v15440_v55 = vld [vmem:[#allocation8 + $0x364] ss:$16 sps:$4 sm:$0xff]   ;;  %v15443_v57 = vld [vmem:[#allocation8 + $0x36c] ss:$16 sps:$4 sm:$0xff]  }
 0x276   :  { %5359 = vmatprep.subr.bf16.mxu1 %v15359_v58  ;;  %v15438_v58 = vld [vmem:[#allocation8 + $0x360] ss:$16 sps:$4 sm:$0xff]  }
 0x278   :  { %5188 = vmatpush1.bf16.msra.mxu0 %v15354_v59  ;;  %v15441_v59 = vld [vmem:[#allocation8 + $0x368] ss:$16 sps:$4 sm:$0xff]  }
 0x279   :  { %5360 = vmatpush1.bf16.msra.mxu1 %v15357_v60  ;;  %5189 = vmatprep.subr.bf16.mxu0 %v15362_v63  ;;  %v15446_v60 = vld [vmem:[#allocation8 + $0x384] ss:$16 sps:$4 sm:$0xff]   ;;  %v15449_v63 = vld [vmem:[#allocation8 + $0x38c] ss:$16 sps:$4 sm:$0xff]  }
 0x27a   :  { %5361 = vmatprep.subr.bf16.mxu1 %v15365_v0  ;;  %v15444_v0 = vld [vmem:[#allocation8 + $0x380] ss:$16 sps:$4 sm:$0xff]  }
 0x27c   :  { %5190 = vmatpush1.bf16.msra.mxu0 %v15360_v1  ;;  %v15447_v1 = vld [vmem:[#allocation8 + $0x388] ss:$16 sps:$4 sm:$0xff]  }
 0x27d   :  { %5362 = vmatpush1.bf16.msra.mxu1 %v15363_v5  ;;  %5191 = vmatprep.subr.bf16.mxu0 %v15368_v7  ;;  %v15452_v5 = vld [vmem:[#allocation8 + $0x3a4] ss:$16 sps:$4 sm:$0xff]   ;;  %v15455_v7 = vld [vmem:[#allocation8 + $0x3ac] ss:$16 sps:$4 sm:$0xff]  }
 0x27e   :  { %5363 = vmatprep.subr.bf16.mxu1 %v15371_v8  ;;  %v15450_v8 = vld [vmem:[#allocation8 + $0x3a0] ss:$16 sps:$4 sm:$0xff]  }
 0x280   :  { %5192 = vmatpush1.bf16.msra.mxu0 %v15366_v9  ;;  %v15453_v9 = vld [vmem:[#allocation8 + $0x3a8] ss:$16 sps:$4 sm:$0xff]  }
 0x281   :  { %5364 = vmatpush1.bf16.msra.mxu1 %v15369_v10  ;;  %5204 = vmatprep.subr.bf16.mxu0 %v15374_v11  ;;  %v15458_v10 = vld [vmem:[#allocation8 + $0x3c4] ss:$16 sps:$4 sm:$0xff]   ;;  %v15461_v11 = vld [vmem:[#allocation8 + $0x3cc] ss:$16 sps:$4 sm:$0xff]  }
 0x282   :  { %5376 = vmatprep.subr.bf16.mxu1 %v15377_v12  ;;  %v15456_v12 = vld [vmem:[#allocation8 + $0x3c0] ss:$16 sps:$4 sm:$0xff]  }
 0x283   :  { %5194 = vmatmul.mubr.bf16.vlgmr.msra.gmra.mrb[8].mxu0 %v16025_v54 }
 0x284   :  { %5366 = vmatmul.mubr.bf16.vlgmr.msra.gmra.mrb[8].mxu1 %v16025_v54  ;;  %5205 = vmatpush1.bf16.msra.mxu0 %v15372_v13  ;;  %v15395_v54 = vld [vmem:[#allocation8 + $0x26c] ss:$16 sps:$4 sm:$0xff]   ;;  %v15459_v13 = vld [vmem:[#allocation8 + $0x3c8] ss:$16 sps:$4 sm:$0xff]  }
 0x285   :  { %5236 = vmatprep.mubr.bf16.mxu0 %v16029_v61  ;;  %5377 = vmatpush1.bf16.msra.mxu1 %v15375_v14  ;;  %v15464_v14 = vld [vmem:[#allocation8 + $0x3e4] ss:$16 sps:$4 sm:$0xff]  }
 0x286   :  { %5408 = vmatprep.mubr.bf16.mxu1 %v16029_v61  ;;  %5206 = vmatprep.subr.bf16.mxu0 %v15380_v15  ;;  %v15396_v61 = vld [vmem:[#allocation8 + $0x280] ss:$16 sps:$4 sm:$0xff]   ;;  %v15467_v15 = vld [vmem:[#allocation8 + $0x3ec] ss:$16 sps:$4 sm:$0xff]  }
 0x287   :  { %5378 = vmatprep.subr.bf16.mxu1 %v15383_v16  ;;  %v15462_v16 = vld [vmem:[#allocation8 + $0x3e0] ss:$16 sps:$4 sm:$0xff]  }
 0x288   :  { %5207 = vmatpush1.bf16.msra.mxu0 %v15378_v17  ;;  %v15465_v17 = vld [vmem:[#allocation8 + $0x3e8] ss:$16 sps:$4 sm:$0xff]  }
 0x289   :  { %5379 = vmatpush1.bf16.msra.mxu1 %v15381_v18  ;;  %5208 = vmatprep.subr.bf16.mxu0 %v15386_v19  ;;  %v15470_v18 = vld [vmem:[#allocation8 + $0x404] ss:$16 sps:$4 sm:$0xff]   ;;  %v15473_v19 = vld [vmem:[#allocation8 + $0x40c] ss:$16 sps:$4 sm:$0xff]  }
 0x28a   :  { %5380 = vmatprep.subr.bf16.mxu1 %v15389_v20  ;;  %v15468_v20 = vld [vmem:[#allocation8 + $0x400] ss:$16 sps:$4 sm:$0xff]  }
 0x28c   :  { %5209 = vmatpush1.bf16.msra.mxu0 %v15384_v21  ;;  %v15471_v21 = vld [vmem:[#allocation8 + $0x408] ss:$16 sps:$4 sm:$0xff]  }
 0x28d   :  { %5381 = vmatpush1.bf16.msra.mxu1 %v15387_v22  ;;  %5210 = vmatprep.subr.bf16.mxu0 %v15392_v23  ;;  %v15476_v22 = vld [vmem:[#allocation8 + $0x424] ss:$16 sps:$4 sm:$0xff]   ;;  %v15479_v23 = vld [vmem:[#allocation8 + $0x42c] ss:$16 sps:$4 sm:$0xff]  }
 0x28e   :  { %5382 = vmatprep.subr.bf16.mxu1 %v15395_v54  ;;  %v15474_v54 = vld [vmem:[#allocation8 + $0x420] ss:$16 sps:$4 sm:$0xff]  }
 0x290   :  { %5211 = vmatpush1.bf16.msra.mxu0 %v15390_v24  ;;  %v15477_v24 = vld [vmem:[#allocation8 + $0x428] ss:$16 sps:$4 sm:$0xff]  }
 0x291   :  { %5383 = vmatpush1.bf16.msra.mxu1 %v15393_v25  ;;  %5212 = vmatprep.subr.bf16.mxu0 %v15398_v26  ;;  %v15482_v25 = vld [vmem:[#allocation8 + $0x444] ss:$16 sps:$4 sm:$0xff]   ;;  %v15485_v26 = vld [vmem:[#allocation8 + $0x44c] ss:$16 sps:$4 sm:$0xff]  }
 0x292   :  { %5384 = vmatprep.subr.bf16.mxu1 %v15401_v27  ;;  %v15480_v27 = vld [vmem:[#allocation8 + $0x440] ss:$16 sps:$4 sm:$0xff]  }
 0x294   :  { %5213 = vmatpush1.bf16.msra.mxu0 %v15396_v61  ;;  %v15483_v61 = vld [vmem:[#allocation8 + $0x448] ss:$16 sps:$4 sm:$0xff]  }
 0x295   :  { %5385 = vmatpush1.bf16.msra.mxu1 %v15399_v28  ;;  %5214 = vmatprep.subr.bf16.mxu0 %v15404_v29  ;;  %v15488_v28 = vld [vmem:[#allocation8 + $0x464] ss:$16 sps:$4 sm:$0xff]   ;;  %v15491_v29 = vld [vmem:[#allocation8 + $0x46c] ss:$16 sps:$4 sm:$0xff]  }
 0x296   :  { %5386 = vmatprep.subr.bf16.mxu1 %v15407_v30  ;;  %v15486_v30 = vld [vmem:[#allocation8 + $0x460] ss:$16 sps:$4 sm:$0xff]  }
 0x298   :  { %5215 = vmatpush1.bf16.msra.mxu0 %v15402_v32  ;;  %v15494_v32 = vld [vmem:[#allocation8 + $0x484] ss:$16 sps:$4 sm:$0xff]  }
 0x299   :  { %5387 = vmatpush1.bf16.msra.mxu1 %v15405_v33  ;;  %5216 = vmatprep.subr.bf16.mxu0 %v15410_v34  ;;  %v15497_v33 = vld [vmem:[#allocation8 + $0x48c] ss:$16 sps:$4 sm:$0xff]   ;;  %v15492_v34 = vld [vmem:[#allocation8 + $0x480] ss:$16 sps:$4 sm:$0xff]  }
 0x29a   :  { %5388 = vmatprep.subr.bf16.mxu1 %v15413_v35  ;;  %v15495_v35 = vld [vmem:[#allocation8 + $0x488] ss:$16 sps:$4 sm:$0xff]  }
 0x29c   :  { %5217 = vmatpush1.bf16.msra.mxu0 %v15408_v36  ;;  %v15500_v36 = vld [vmem:[#allocation8 + $0x4a4] ss:$16 sps:$4 sm:$0xff]  }
 0x29d   :  { %5389 = vmatpush1.bf16.msra.mxu1 %v15411_v37  ;;  %5218 = vmatprep.subr.bf16.mxu0 %v15416_v38  ;;  %v15503_v37 = vld [vmem:[#allocation8 + $0x4ac] ss:$16 sps:$4 sm:$0xff]   ;;  %v15498_v38 = vld [vmem:[#allocation8 + $0x4a0] ss:$16 sps:$4 sm:$0xff]  }
 0x29e   :  { %5390 = vmatprep.subr.bf16.mxu1 %v15419_v39  ;;  %v15501_v39 = vld [vmem:[#allocation8 + $0x4a8] ss:$16 sps:$4 sm:$0xff]  }
 0x2a0   :  { %5219 = vmatpush1.bf16.msra.mxu0 %v15414_v40  ;;  %v15506_v40 = vld [vmem:[#allocation8 + $0x4c4] ss:$16 sps:$4 sm:$0xff]  }
 0x2a1   :  { %5391 = vmatpush1.bf16.msra.mxu1 %v15417_v41  ;;  %5220 = vmatprep.subr.bf16.mxu0 %v15422_v42  ;;  %v15509_v41 = vld [vmem:[#allocation8 + $0x4cc] ss:$16 sps:$4 sm:$0xff]   ;;  %v15504_v42 = vld [vmem:[#allocation8 + $0x4c0] ss:$16 sps:$4 sm:$0xff]  }
 0x2a2   :  { %5392 = vmatprep.subr.bf16.mxu1 %v15425_v43  ;;  %v15507_v43 = vld [vmem:[#allocation8 + $0x4c8] ss:$16 sps:$4 sm:$0xff]  }
 0x2a4   :  { %5221 = vmatpush1.bf16.msra.mxu0 %v15420_v44  ;;  %v15512_v44 = vld [vmem:[#allocation8 + $0x4e4] ss:$16 sps:$4 sm:$0xff]  }
 0x2a5   :  { %5393 = vmatpush1.bf16.msra.mxu1 %v15423_v45  ;;  %5222 = vmatprep.subr.bf16.mxu0 %v15428_v46  ;;  %v15515_v45 = vld [vmem:[#allocation8 + $0x4ec] ss:$16 sps:$4 sm:$0xff]   ;;  %v15510_v46 = vld [vmem:[#allocation8 + $0x4e0] ss:$16 sps:$4 sm:$0xff]  }
 0x2a6   :  { %5394 = vmatprep.subr.bf16.mxu1 %v15431_v47  ;;  %v15513_v47 = vld [vmem:[#allocation8 + $0x4e8] ss:$16 sps:$4 sm:$0xff]  }
 0x2a8   :  { %5223 = vmatpush1.bf16.msra.mxu0 %v15426_v48  ;;  %v15518_v48 = vld [vmem:[#allocation8 + $0x504] ss:$16 sps:$4 sm:$0xff]  }
 0x2a9   :  { %5395 = vmatpush1.bf16.msra.mxu1 %v15429_v49  ;;  %5224 = vmatprep.subr.bf16.mxu0 %v15434_v50  ;;  %v15521_v49 = vld [vmem:[#allocation8 + $0x50c] ss:$16 sps:$4 sm:$0xff]   ;;  %v15516_v50 = vld [vmem:[#allocation8 + $0x500] ss:$16 sps:$4 sm:$0xff]  }
 0x2aa   :  { %5396 = vmatprep.subr.bf16.mxu1 %v15437_v51  ;;  %v15519_v51 = vld [vmem:[#allocation8 + $0x508] ss:$16 sps:$4 sm:$0xff]  }
 0x2ac   :  { %5225 = vmatpush1.bf16.msra.mxu0 %v15432_v52  ;;  %v15524_v52 = vld [vmem:[#allocation8 + $0x524] ss:$16 sps:$4 sm:$0xff]  }
 0x2ad   :  { %5397 = vmatpush1.bf16.msra.mxu1 %v15435_v53  ;;  %5226 = vmatprep.subr.bf16.mxu0 %v15440_v55  ;;  %v15527_v53 = vld [vmem:[#allocation8 + $0x52c] ss:$16 sps:$4 sm:$0xff]   ;;  %v15522_v55 = vld [vmem:[#allocation8 + $0x520] ss:$16 sps:$4 sm:$0xff]  }
 0x2ae   :  { %5398 = vmatprep.subr.bf16.mxu1 %v15443_v57  ;;  %v15525_v57 = vld [vmem:[#allocation8 + $0x528] ss:$16 sps:$4 sm:$0xff]  }
 0x2b0   :  { %5227 = vmatpush1.bf16.msra.mxu0 %v15438_v58  ;;  %v15530_v58 = vld [vmem:[#allocation8 + $0x544] ss:$16 sps:$4 sm:$0xff]  }
 0x2b1   :  { %5399 = vmatpush1.bf16.msra.mxu1 %v15441_v59  ;;  %5228 = vmatprep.subr.bf16.mxu0 %v15446_v60  ;;  %v15533_v59 = vld [vmem:[#allocation8 + $0x54c] ss:$16 sps:$4 sm:$0xff]   ;;  %v15528_v60 = vld [vmem:[#allocation8 + $0x540] ss:$16 sps:$4 sm:$0xff]  }
 0x2b2   :  { %5400 = vmatprep.subr.bf16.mxu1 %v15449_v63  ;;  %v15531_v63 = vld [vmem:[#allocation8 + $0x548] ss:$16 sps:$4 sm:$0xff]  }
 0x2b4   :  { %5229 = vmatpush1.bf16.msra.mxu0 %v15444_v0  ;;  %v15536_v0 = vld [vmem:[#allocation8 + $0x564] ss:$16 sps:$4 sm:$0xff]  }
 0x2b5   :  { %5401 = vmatpush1.bf16.msra.mxu1 %v15447_v1  ;;  %5230 = vmatprep.subr.bf16.mxu0 %v15452_v5  ;;  %v15539_v1 = vld [vmem:[#allocation8 + $0x56c] ss:$16 sps:$4 sm:$0xff]   ;;  %v15534_v5 = vld [vmem:[#allocation8 + $0x560] ss:$16 sps:$4 sm:$0xff]  }
 0x2b6   :  { %5402 = vmatprep.subr.bf16.mxu1 %v15455_v7  ;;  %v15537_v7 = vld [vmem:[#allocation8 + $0x568] ss:$16 sps:$4 sm:$0xff]  }
 0x2b8   :  { %5231 = vmatpush1.bf16.msra.mxu0 %v15450_v8  ;;  %v15542_v8 = vld [vmem:[#allocation8 + $0x584] ss:$16 sps:$4 sm:$0xff]  }
 0x2b9   :  { %5403 = vmatpush1.bf16.msra.mxu1 %v15453_v9  ;;  %5232 = vmatprep.subr.bf16.mxu0 %v15458_v10  ;;  %v15545_v9 = vld [vmem:[#allocation8 + $0x58c] ss:$16 sps:$4 sm:$0xff]   ;;  %v15540_v10 = vld [vmem:[#allocation8 + $0x580] ss:$16 sps:$4 sm:$0xff]  }
 0x2ba   :  { %5404 = vmatprep.subr.bf16.mxu1 %v15461_v11  ;;  %v15543_v11 = vld [vmem:[#allocation8 + $0x588] ss:$16 sps:$4 sm:$0xff]  }
 0x2bc   :  { %5233 = vmatpush1.bf16.msra.mxu0 %v15456_v12  ;;  %v15548_v12 = vld [vmem:[#allocation8 + $0x5a4] ss:$16 sps:$4 sm:$0xff]  }
 0x2bd   :  { %5405 = vmatpush1.bf16.msra.mxu1 %v15459_v13  ;;  %5234 = vmatprep.subr.bf16.mxu0 %v15464_v14  ;;  %v15551_v13 = vld [vmem:[#allocation8 + $0x5ac] ss:$16 sps:$4 sm:$0xff]   ;;  %v15546_v14 = vld [vmem:[#allocation8 + $0x5a0] ss:$16 sps:$4 sm:$0xff]  }
 0x2be   :  { %5406 = vmatprep.subr.bf16.mxu1 %v15467_v15  ;;  %v15549_v15 = vld [vmem:[#allocation8 + $0x5a8] ss:$16 sps:$4 sm:$0xff]  }
 0x2c0   :  { %5235 = vmatpush1.bf16.msra.mxu0 %v15462_v16  ;;  %v15554_v16 = vld [vmem:[#allocation8 + $0x5c4] ss:$16 sps:$4 sm:$0xff]  }
 0x2c1   :  { %5407 = vmatpush1.bf16.msra.mxu1 %v15465_v17  ;;  %5247 = vmatprep.subr.bf16.mxu0 %v15470_v18  ;;  %v15557_v17 = vld [vmem:[#allocation8 + $0x5cc] ss:$16 sps:$4 sm:$0xff]   ;;  %v15552_v18 = vld [vmem:[#allocation8 + $0x5c0] ss:$16 sps:$4 sm:$0xff]  }
 0x2c2   :  { %5419 = vmatprep.subr.bf16.mxu1 %v15473_v19  ;;  %v15555_v19 = vld [vmem:[#allocation8 + $0x5c8] ss:$16 sps:$4 sm:$0xff]  }
 0x2c3   :  { %5237 = vmatmul.mubr.bf16.vlgmr.msra.gmra.mrb[8].mxu0 %v16027_v31 }
 0x2c4   :  { %5409 = vmatmul.mubr.bf16.vlgmr.msra.gmra.mrb[8].mxu1 %v16027_v31  ;;  %5248 = vmatpush1.bf16.msra.mxu0 %v15468_v20  ;;  %v15489_v31 = vld [vmem:[#allocation8 + $0x468] ss:$16 sps:$4 sm:$0xff]   ;;  %v15560_v20 = vld [vmem:[#allocation8 + $0x5e4] ss:$16 sps:$4 sm:$0xff]  }
 0x2c5   :  { %5420 = vmatpush1.bf16.msra.mxu1 %v15471_v21  ;;  %5249 = vmatprep.subr.bf16.mxu0 %v15476_v22  ;;  %v15563_v21 = vld [vmem:[#allocation8 + $0x5ec] ss:$16 sps:$4 sm:$0xff]   ;;  %v15558_v22 = vld [vmem:[#allocation8 + $0x5e0] ss:$16 sps:$4 sm:$0xff]  }
 0x2c6   :  { %5421 = vmatprep.subr.bf16.mxu1 %v15479_v23  ;;  %v15561_v23 = vld [vmem:[#allocation8 + $0x5e8] ss:$16 sps:$4 sm:$0xff]  }
 0x2c8   :  { %5250 = vmatpush1.bf16.msra.mxu0 %v15474_v54  ;;  %v15566_v54 = vld [vmem:[#allocation8 + $0x604] ss:$16 sps:$4 sm:$0xff]  }
 0x2c9   :  { %5422 = vmatpush1.bf16.msra.mxu1 %v15477_v24  ;;  %5251 = vmatprep.subr.bf16.mxu0 %v15482_v25  ;;  %v15569_v24 = vld [vmem:[#allocation8 + $0x60c] ss:$16 sps:$4 sm:$0xff]   ;;  %v16038_v25 = vsub.s32 4, %v16001_v56 }
 0x2ca   :  { %5423 = vmatprep.subr.bf16.mxu1 %v15485_v26  ;;  %v16041_v26 = vsub.s32 6, %v16001_v56 }
 0x2cc   :  { %5252 = vmatpush1.bf16.msra.mxu0 %v15480_v27  ;;  %v16044_v27 = vsub.s32 5, %v16001_v56 }
 0x2cd   :  { %5424 = vmatpush1.bf16.msra.mxu1 %v15483_v61  ;;  %5253 = vmatprep.subr.bf16.mxu0 %v15488_v28  ;;  %v16047_v61 = vsub.s32 7, %v16001_v56  ;;  %v594_v28 = vrot.slane %v16006_v2, %v16038_v25 }
 0x2ce   :  { %5425 = vmatprep.subr.bf16.mxu1 %v15491_v29  ;;  %v602_v29 = vrot.slane %v16006_v2, %v16041_v26 }
 0x2d0   :  { %5254 = vmatpush1.bf16.msra.mxu0 %v15486_v30  ;;  %v598_v30 = vrot.slane %v16006_v2, %v16044_v27 }
 0x2d1   :  { %5426 = vmatpush1.bf16.msra.mxu1 %v15489_v31  ;;  %5255 = vmatprep.subr.bf16.mxu0 %v15494_v32  ;;  %v606_v31 = vrot.slane %v16006_v2, %v16047_v61 }
 0x2d2   :  { %5427 = vmatprep.subr.bf16.mxu1 %v15497_v33 }
 0x2d4   :  { %5256 = vmatpush1.bf16.msra.mxu0 %v15492_v34 }
 0x2d5   :  { %5428 = vmatpush1.bf16.msra.mxu1 %v15495_v35  ;;  %5257 = vmatprep.subr.bf16.mxu0 %v15500_v36 }
 0x2d6   :  { %5429 = vmatprep.subr.bf16.mxu1 %v15503_v37 }
 0x2d8   :  { %5258 = vmatpush1.bf16.msra.mxu0 %v15498_v38 }
 0x2d9   :  { %5430 = vmatpush1.bf16.msra.mxu1 %v15501_v39  ;;  %5259 = vmatprep.subr.bf16.mxu0 %v15506_v40 }
 0x2da   :  { %5431 = vmatprep.subr.bf16.mxu1 %v15509_v41 }
 0x2dc   :  { %5260 = vmatpush1.bf16.msra.mxu0 %v15504_v42 }
 0x2dd   :  { %5432 = vmatpush1.bf16.msra.mxu1 %v15507_v43  ;;  %5261 = vmatprep.subr.bf16.mxu0 %v15512_v44 }
 0x2de   :  { %5433 = vmatprep.subr.bf16.mxu1 %v15515_v45 }
 0x2e0   :  { %5262 = vmatpush1.bf16.msra.mxu0 %v15510_v46 }
 0x2e1   :  { %5434 = vmatpush1.bf16.msra.mxu1 %v15513_v47  ;;  %5263 = vmatprep.subr.bf16.mxu0 %v15518_v48 }
 0x2e2   :  { %5435 = vmatprep.subr.bf16.mxu1 %v15521_v49 }
 0x2e4   :  { %5264 = vmatpush1.bf16.msra.mxu0 %v15516_v50 }
 0x2e5   :  { %5436 = vmatpush1.bf16.msra.mxu1 %v15519_v51  ;;  %5265 = vmatprep.subr.bf16.mxu0 %v15524_v52 }
 0x2e6   :  { %5437 = vmatprep.subr.bf16.mxu1 %v15527_v53 }
 0x2e8   :  { %5266 = vmatpush1.bf16.msra.mxu0 %v15522_v55 }
 0x2e9   :  { %5438 = vmatpush1.bf16.msra.mxu1 %v15525_v57  ;;  %5267 = vmatprep.subr.bf16.mxu0 %v15530_v58 }
 0x2ea   :  { %5439 = vmatprep.subr.bf16.mxu1 %v15533_v59  ;;  %v15564_v59 = vld [vmem:[#allocation8 + $0x600] ss:$16 sps:$4 sm:$0xff]  }
 0x2ec   :  { %5268 = vmatpush1.bf16.msra.mxu0 %v15528_v60  ;;  %v15567_v60 = vld [vmem:[#allocation8 + $0x608] ss:$16 sps:$4 sm:$0xff]  }
 0x2ed   :  { %5440 = vmatpush1.bf16.msra.mxu1 %v15531_v63  ;;  %5269 = vmatprep.subr.bf16.mxu0 %v15536_v0  ;;  %v15572_v0 = vld [vmem:[#allocation8 + $0x624] ss:$16 sps:$4 sm:$0xff]  }
 0x2ee   :  { %5441 = vmatprep.subr.bf16.mxu1 %v15539_v1  ;;  %v15575_v1 = vld [vmem:[#allocation8 + $0x62c] ss:$16 sps:$4 sm:$0xff]  }
 0x2f0   :  { %5270 = vmatpush1.bf16.msra.mxu0 %v15534_v5  ;;  %v15570_v5 = vld [vmem:[#allocation8 + $0x620] ss:$16 sps:$4 sm:$0xff]  }
 0x2f1   :  { %5442 = vmatpush1.bf16.msra.mxu1 %v15537_v7  ;;  %5271 = vmatprep.subr.bf16.mxu0 %v15542_v8  ;;  %v15573_v7 = vld [vmem:[#allocation8 + $0x628] ss:$16 sps:$4 sm:$0xff]   ;;  %v15578_v8 = vld [vmem:[#allocation8 + $0x644] ss:$16 sps:$4 sm:$0xff]  }
 0x2f2   :  { %5443 = vmatprep.subr.bf16.mxu1 %v15545_v9  ;;  %v15581_v9 = vld [vmem:[#allocation8 + $0x64c] ss:$16 sps:$4 sm:$0xff]  }
 0x2f4   :  { %5272 = vmatpush1.bf16.msra.mxu0 %v15540_v10  ;;  %v15576_v10 = vld [vmem:[#allocation8 + $0x640] ss:$16 sps:$4 sm:$0xff]  }
 0x2f5   :  { %5444 = vmatpush1.bf16.msra.mxu1 %v15543_v11  ;;  %5273 = vmatprep.subr.bf16.mxu0 %v15548_v12  ;;  %v15579_v11 = vld [vmem:[#allocation8 + $0x648] ss:$16 sps:$4 sm:$0xff]   ;;  %v15584_v12 = vld [vmem:[#allocation8 + $0x664] ss:$16 sps:$4 sm:$0xff]  }
 0x2f6   :  { %5445 = vmatprep.subr.bf16.mxu1 %v15551_v13  ;;  %v15587_v13 = vld [vmem:[#allocation8 + $0x66c] ss:$16 sps:$4 sm:$0xff]  }
 0x2f8   :  { %5274 = vmatpush1.bf16.msra.mxu0 %v15546_v14  ;;  %v15582_v14 = vld [vmem:[#allocation8 + $0x660] ss:$16 sps:$4 sm:$0xff]  }
 0x2f9   :  { %5446 = vmatpush1.bf16.msra.mxu1 %v15549_v15  ;;  %5275 = vmatprep.subr.bf16.mxu0 %v15554_v16  ;;  %v15585_v15 = vld [vmem:[#allocation8 + $0x668] ss:$16 sps:$4 sm:$0xff]   ;;  %v15590_v16 = vld [vmem:[#allocation8 + $0x684] ss:$16 sps:$4 sm:$0xff]  }
 0x2fa   :  { %5447 = vmatprep.subr.bf16.mxu1 %v15557_v17  ;;  %v15593_v17 = vld [vmem:[#allocation8 + $0x68c] ss:$16 sps:$4 sm:$0xff]  }
 0x2fc   :  { %5276 = vmatpush1.bf16.msra.mxu0 %v15552_v18  ;;  %v15588_v18 = vld [vmem:[#allocation8 + $0x680] ss:$16 sps:$4 sm:$0xff]  }
 0x2fd   :  { %5448 = vmatpush1.bf16.msra.mxu1 %v15555_v19  ;;  %5277 = vmatprep.subr.bf16.mxu0 %v15560_v20  ;;  %v15591_v19 = vld [vmem:[#allocation8 + $0x688] ss:$16 sps:$4 sm:$0xff]   ;;  %v15596_v20 = vld [vmem:[#allocation8 + $0x6a4] ss:$16 sps:$4 sm:$0xff]  }
 0x2fe   :  { %5449 = vmatprep.subr.bf16.mxu1 %v15563_v21  ;;  %v15599_v21 = vld [vmem:[#allocation8 + $0x6ac] ss:$16 sps:$4 sm:$0xff]  }
 0x300   :  { %5278 = vmatpush1.bf16.msra.mxu0 %v15558_v22  ;;  %v15594_v22 = vld [vmem:[#allocation8 + $0x6a0] ss:$16 sps:$4 sm:$0xff]  }
 0x301   :  { %5450 = vmatpush1.bf16.msra.mxu1 %v15561_v23  ;;  %5290 = vmatprep.subr.bf16.mxu0 %v15566_v54  ;;  %v15597_v23 = vld [vmem:[#allocation8 + $0x6a8] ss:$16 sps:$4 sm:$0xff]   ;;  %v15602_v54 = vld [vmem:[#allocation8 + $0x6c4] ss:$16 sps:$4 sm:$0xff]  }
 0x302   :  { %5462 = vmatprep.subr.bf16.mxu1 %v15569_v24  ;;  %v15605_v24 = vld [vmem:[#allocation8 + $0x6cc] ss:$16 sps:$4 sm:$0xff]  }
 0x316   :  { %v3398_v32 = vpop.f32.mrb[4].mxu0  ;;  %v3570_v34 = vpop.f32.mrb[4].mxu1 }
 0x317   :  { %v15032_v33 = vadd.f32 %v3398_v32, %v594_v28  ;;  %v3400_v35 = vpop.f32.mrb[5].mxu0  ;;  %v15036_v36 = vadd.f32 %v3570_v34, %v602_v29  ;;  %v3572_v56 = vpop.f32.mrb[5].mxu1  ;;  %v15606_v32 = vld [vmem:[#allocation8 + $0x6e0] ss:$16 sps:$4 sm:$0xff]   ;;  %v15614_v34 = vld [vmem:[#allocation8 + $0x704] ss:$16 sps:$4 sm:$0xff]  }
 0x318   :  { %v15033_v37 = vadd.f32 %v3400_v35, %v598_v30  ;;  %v3402_v38 = vpop.f32.mrb[6].mxu0  ;;  %v15037_v39 = vadd.f32 %v3572_v56, %v606_v31  ;;  %v3574_v41 = vpop.f32.mrb[6].mxu1  ;;  %v15617_v35 = vld [vmem:[#allocation8 + $0x70c] ss:$16 sps:$4 sm:$0xff]   ;;  %v15620_v56 = vld [vmem:[#allocation8 + $0x724] ss:$16 sps:$4 sm:$0xff]  }
 0x319   :  { %v15034_v40 = vadd.f32 %v3402_v38, %v594_v28  ;;  %v3404_v42 = vpop.f32.mrb[7].mxu0  ;;  %v15038_v43 = vadd.f32 %v3574_v41, %v602_v29  ;;  %v3576_v45 = vpop.f32.mrb[7].mxu1  ;;  %v3583_v46 = vmax.f32 %v15032_v33, 0.0  ;;  %v3585_v49 = vmax.f32 %v15036_v36, 0.0  ;;  %v15600_v28 = vld [vmem:[#allocation8 + $0x6c0] ss:$16 sps:$4 sm:$0xff]  }
 0x31a   :  { %v15035_v44 = vadd.f32 %v3404_v42, %v598_v30  ;;  %v15039_v48 = vadd.f32 %v3576_v45, %v606_v31  ;;  %v3584_v2 = vmax.f32 %v15033_v37, 0.0  ;;  %v3586_v52 = vmax.f32 %v15037_v39, 0.0  ;;  %v15603_v29 = vld [vmem:[#allocation8 + $0x6c8] ss:$16 sps:$4 sm:$0xff]   ;;  %v15608_v30 = vld [vmem:[#allocation8 + $0x6e4] ss:$16 sps:$4 sm:$0xff]  }
 0x31b   :  { %v3591_v47 = vmax.f32 %v15034_v40, 0.0  ;;  %v3593_v50 = vmax.f32 %v15038_v43, 0.0  ;;  %v15611_v31 = vld [vmem:[#allocation8 + $0x6ec] ss:$16 sps:$4 sm:$0xff]   ;;  %v15609_v33 = vld [vmem:[#allocation8 + $0x6e8] ss:$16 sps:$4 sm:$0xff]  }
 0x31c   :  { %v3592_v51 = vmax.f32 %v15035_v44, 0.0  ;;  %v3594_v55 = vmax.f32 %v15039_v48, 0.0  ;;  %v15612_v36 = vld [vmem:[#allocation8 + $0x700] ss:$16 sps:$4 sm:$0xff]   ;;  %v15615_v37 = vld [vmem:[#allocation8 + $0x708] ss:$16 sps:$4 sm:$0xff]  }
 0x31d   :  { %v3599_v53 = vpack.c.bf16 %v3591_v47, %v3583_v46  ;;  %v16057_v57 = vpack.c.bf16 %v3593_v50, %v3585_v49  ;;  %v15623_v38 = vld [vmem:[#allocation8 + $0x72c] ss:$16 sps:$4 sm:$0xff]   ;;  %v15618_v39 = vld [vmem:[#allocation8 + $0x720] ss:$16 sps:$4 sm:$0xff]   ;;  %v15621_v40 = vld [vmem:[#allocation8 + $0x728] ss:$16 sps:$4 sm:$0xff]  }
 0x31e   :  { %v3600_v58 = vpack.c.bf16 %v3592_v51, %v3584_v2  ;;  %v3602_v63 = vpack.c.bf16 %v3594_v55, %v3586_v52  ;;  %v15626_v41 = vld [vmem:[#allocation8 + $0x744] ss:$16 sps:$4 sm:$0xff]   ;;  %v15629_v42 = vld [vmem:[#allocation8 + $0x74c] ss:$16 sps:$4 sm:$0xff]   ;;  %v15624_v43 = vld [vmem:[#allocation8 + $0x740] ss:$16 sps:$4 sm:$0xff]  }
 0x31f   :  { %v15627_v44 = vld [vmem:[#allocation8 + $0x748] ss:$16 sps:$4 sm:$0xff]   ;;  %v15632_v45 = vld [vmem:[#allocation8 + $0x764] ss:$16 sps:$4 sm:$0xff]   ;;  %v15635_v46 = vld [vmem:[#allocation8 + $0x76c] ss:$16 sps:$4 sm:$0xff]  }
 0x320   :  { %5279 = vmatprep.mubr.bf16.mxu0 %v3600_v58  ;;  %5451 = vmatprep.mubr.bf16.mxu1 %v3600_v58  ;;  %v15630_v47 = vld [vmem:[#allocation8 + $0x760] ss:$16 sps:$4 sm:$0xff]   ;;  %v15633_v48 = vld [vmem:[#allocation8 + $0x768] ss:$16 sps:$4 sm:$0xff]   ;;  %v15638_v49 = vld [vmem:[#allocation8 + $0x784] ss:$16 sps:$4 sm:$0xff]  }
 0x321   :  { %5280 = vmatmul.mubr.bf16.vlgmr.msra.gmra.mrb[8].mxu0 %v3599_v53  ;;  %5452 = vmatmul.mubr.bf16.vlgmr.msra.gmra.mrb[8].mxu1 %v3599_v53  ;;  %v15641_v2 = vld [vmem:[#allocation8 + $0x78c] ss:$16 sps:$4 sm:$0xff]   ;;  %v15636_v50 = vld [vmem:[#allocation8 + $0x780] ss:$16 sps:$4 sm:$0xff]   ;;  %v15639_v51 = vld [vmem:[#allocation8 + $0x788] ss:$16 sps:$4 sm:$0xff]  }
 0x322   :  { %5291 = vmatpush1.bf16.msra.mxu0 %v15564_v59  ;;  %5463 = vmatpush1.bf16.msra.mxu1 %v15567_v60  ;;  %v15644_v52 = vld [vmem:[#allocation8 + $0x7a4] ss:$16 sps:$4 sm:$0xff]   ;;  %v15647_v53 = vld [vmem:[#allocation8 + $0x7ac] ss:$16 sps:$4 sm:$0xff]   ;;  %v15642_v55 = vld [vmem:[#allocation8 + $0x7a0] ss:$16 sps:$4 sm:$0xff]  }
 0x323   :  { %5322 = vmatprep.mubr.bf16.mxu0 %v3602_v63  ;;  %5494 = vmatprep.mubr.bf16.mxu1 %v3602_v63  ;;  %v15645_v58 = vld [vmem:[#allocation8 + $0x7a8] ss:$16 sps:$4 sm:$0xff]   ;;  %v15650_v59 = vld [vmem:[#allocation8 + $0x7c4] ss:$16 sps:$4 sm:$0xff]   ;;  %v15653_v60 = vld [vmem:[#allocation8 + $0x7cc] ss:$16 sps:$4 sm:$0xff]  }
 0x324   :  { %5292 = vmatprep.subr.bf16.mxu0 %v15572_v0  ;;  %5464 = vmatprep.subr.bf16.mxu1 %v15575_v1  ;;  %v15648_v63 = vld [vmem:[#allocation8 + $0x7c0] ss:$16 sps:$4 sm:$0xff]   ;;  %v15651_v0 = vld [vmem:[#allocation8 + $0x7c8] ss:$16 sps:$4 sm:$0xff]   ;;  %v15656_v1 = vld [vmem:[#allocation8 + $0x7e4] ss:$16 sps:$4 sm:$0xff]  }
 0x326   :  { %5293 = vmatpush1.bf16.msra.mxu0 %v15570_v5  ;;  %5465 = vmatpush1.bf16.msra.mxu1 %v15573_v7  ;;  %v15659_v5 = vld [vmem:[#allocation8 + $0x7ec] ss:$16 sps:$4 sm:$0xff]   ;;  %v5517_v7 = vld [vmem:[#allocation11] sm:$0xff] }
 0x327   :  { %5294 = vmatprep.subr.bf16.mxu0 %v15578_v8  ;;  %5466 = vmatprep.subr.bf16.mxu1 %v15581_v9  ;;  %v5533_v8 = vld [vmem:[#allocation11 + $0x80] sm:$0xff]  ;;  %v5518_v9 = vld [vmem:[#allocation11 + $0x8] sm:$0xff] }
 0x32a   :  { %5295 = vmatpush1.bf16.msra.mxu0 %v15576_v10  ;;  %5467 = vmatpush1.bf16.msra.mxu1 %v15579_v11  ;;  %v5534_v10 = vld [vmem:[#allocation11 + $0x88] sm:$0xff] }
 0x32b   :  { %5296 = vmatprep.subr.bf16.mxu0 %v15584_v12  ;;  %5468 = vmatprep.subr.bf16.mxu1 %v15587_v13  ;;  %v15654_v11 = vld [vmem:[#allocation8 + $0x7e0] ss:$16 sps:$4 sm:$0xff]   ;;  %v15657_v12 = vld [vmem:[#allocation8 + $0x7e8] ss:$16 sps:$4 sm:$0xff]   ;;  %v14001_v13 = vcombine.high %v5517_v7, %v5533_v8 }
 0x32e   :  { %5297 = vmatpush1.bf16.msra.mxu0 %v15582_v14  ;;  %5469 = vmatpush1.bf16.msra.mxu1 %v15585_v15  ;;  %v14003_v14 = vcombine.high %v5518_v9, %v5534_v10  ;;  %v5549_v15 = vld [vmem:[#allocation11 + $0x100] sm:$0xff] }
 0x32f   :  { %5298 = vmatprep.subr.bf16.mxu0 %v15590_v16  ;;  %5470 = vmatprep.subr.bf16.mxu1 %v15593_v17  ;;  %v5565_v16 = vld [vmem:[#allocation11 + $0x180] sm:$0xff]  ;;  %v5550_v17 = vld [vmem:[#allocation11 + $0x108] sm:$0xff] }
 0x332   :  { %5299 = vmatpush1.bf16.msra.mxu0 %v15588_v18  ;;  %5471 = vmatpush1.bf16.msra.mxu1 %v15591_v19  ;;  %v5566_v18 = vld [vmem:[#allocation11 + $0x188] sm:$0xff]  ;;  %v14000_v19 = vcombine.low %v5517_v7, %v5533_v8  ;;  %v5741_v7 = vld [vmem:[#allocation11 + $0x700] sm:$0xff] }
 0x333   :  { %5300 = vmatprep.subr.bf16.mxu0 %v15596_v20  ;;  %5472 = vmatprep.subr.bf16.mxu1 %v15599_v21  ;;  %v14002_v20 = vcombine.low %v5518_v9, %v5534_v10  ;;  %v14033_v21 = vcombine.high %v5549_v15, %v5565_v16  ;;  %v5757_v8 = vld [vmem:[#allocation11 + $0x780] sm:$0xff]  ;;  %v5742_v9 = vld [vmem:[#allocation11 + $0x708] sm:$0xff] }
 0x334   :  { %v5758_v10 = vld [vmem:[#allocation11 + $0x788] sm:$0xff] }
 0x336   :  { %5301 = vmatpush1.bf16.msra.mxu0 %v15594_v22  ;;  %5473 = vmatpush1.bf16.msra.mxu1 %v15597_v23  ;;  %v14035_v22 = vcombine.high %v5550_v17, %v5566_v18  ;;  %v5581_v23 = vld [vmem:[#allocation11 + $0x200] sm:$0xff] }
 0x337   :  { %5302 = vmatprep.subr.bf16.mxu0 %v15602_v54  ;;  %5474 = vmatprep.subr.bf16.mxu1 %v15605_v24  ;;  %v5597_v54 = vld [vmem:[#allocation11 + $0x280] sm:$0xff]  ;;  %v5582_v24 = vld [vmem:[#allocation11 + $0x208] sm:$0xff] }
 0x33a   :  { %5303 = vmatpush1.bf16.msra.mxu0 %v15600_v28  ;;  %5475 = vmatpush1.bf16.msra.mxu1 %v15603_v29  ;;  %v5598_v28 = vld [vmem:[#allocation11 + $0x288] sm:$0xff]  ;;  %v14032_v29 = vcombine.low %v5549_v15, %v5565_v16  ;;  %v5773_v15 = vld [vmem:[#allocation11 + $0x800] sm:$0xff] }
 0x33b   :  { %5304 = vmatprep.subr.bf16.mxu0 %v15608_v30  ;;  %5476 = vmatprep.subr.bf16.mxu1 %v15611_v31  ;;  %v14034_v30 = vcombine.low %v5550_v17, %v5566_v18  ;;  %v14065_v31 = vcombine.high %v5581_v23, %v5597_v54  ;;  %v5789_v16 = vld [vmem:[#allocation11 + $0x880] sm:$0xff]  ;;  %v5774_v17 = vld [vmem:[#allocation11 + $0x808] sm:$0xff] }
 0x33c   :  { %v5790_v18 = vld [vmem:[#allocation11 + $0x888] sm:$0xff] }
 0x33e   :  { %5305 = vmatpush1.bf16.msra.mxu0 %v15606_v32  ;;  %5477 = vmatpush1.bf16.msra.mxu1 %v15609_v33  ;;  %v14067_v32 = vcombine.high %v5582_v24, %v5598_v28  ;;  %v5613_v33 = vld [vmem:[#allocation11 + $0x300] sm:$0xff] }
 0x33f   :  { %5306 = vmatprep.subr.bf16.mxu0 %v15614_v34  ;;  %5478 = vmatprep.subr.bf16.mxu1 %v15617_v35  ;;  %v5629_v34 = vld [vmem:[#allocation11 + $0x380] sm:$0xff]  ;;  %v5614_v35 = vld [vmem:[#allocation11 + $0x308] sm:$0xff] }
 0x342   :  { %5307 = vmatpush1.bf16.msra.mxu0 %v15612_v36  ;;  %5479 = vmatpush1.bf16.msra.mxu1 %v15615_v37  ;;  %v5630_v36 = vld [vmem:[#allocation11 + $0x388] sm:$0xff]  ;;  %v14064_v37 = vcombine.low %v5581_v23, %v5597_v54  ;;  %v5805_v23 = vld [vmem:[#allocation11 + $0x900] sm:$0xff] }
 0x343   :  { %5308 = vmatprep.subr.bf16.mxu0 %v15620_v56  ;;  %5480 = vmatprep.subr.bf16.mxu1 %v15623_v38  ;;  %v14066_v56 = vcombine.low %v5582_v24, %v5598_v28  ;;  %v14097_v38 = vcombine.high %v5613_v33, %v5629_v34  ;;  %v5821_v54 = vld [vmem:[#allocation11 + $0x980] sm:$0xff]  ;;  %v5806_v24 = vld [vmem:[#allocation11 + $0x908] sm:$0xff] }
 0x344   :  { %v5822_v28 = vld [vmem:[#allocation11 + $0x988] sm:$0xff] }
 0x346   :  { %5309 = vmatpush1.bf16.msra.mxu0 %v15618_v39  ;;  %5481 = vmatpush1.bf16.msra.mxu1 %v15621_v40  ;;  %v5645_v39 = vld [vmem:[#allocation11 + $0x400] sm:$0xff] }
 0x347   :  { %5310 = vmatprep.subr.bf16.mxu0 %v15626_v41  ;;  %5482 = vmatprep.subr.bf16.mxu1 %v15629_v42  ;;  %v5661_v40 = vld [vmem:[#allocation11 + $0x480] sm:$0xff]  ;;  %v5646_v41 = vld [vmem:[#allocation11 + $0x408] sm:$0xff] }
 0x348   :  { %v5662_v42 = vld [vmem:[#allocation11 + $0x488] sm:$0xff] }
 0x34a   :  { %5311 = vmatpush1.bf16.msra.mxu0 %v15624_v43  ;;  %5483 = vmatpush1.bf16.msra.mxu1 %v15627_v44  ;;  %v14096_v43 = vcombine.low %v5613_v33, %v5629_v34  ;;  %v14098_v44 = vcombine.low %v5614_v35, %v5630_v36  ;;  %v5837_v33 = vld [vmem:[#allocation11 + $0xa00] sm:$0xff] }
 0x34b   :  { %5312 = vmatprep.subr.bf16.mxu0 %v15632_v45  ;;  %5484 = vmatprep.subr.bf16.mxu1 %v15635_v46  ;;  %v14129_v45 = vcombine.high %v5645_v39, %v5661_v40  ;;  %v14131_v46 = vcombine.high %v5646_v41, %v5662_v42  ;;  %v5853_v34 = vld [vmem:[#allocation11 + $0xa80] sm:$0xff] }
 0x34e   :  { %5313 = vmatpush1.bf16.msra.mxu0 %v15630_v47  ;;  %5485 = vmatpush1.bf16.msra.mxu1 %v15633_v48  ;;  %v5677_v47 = vld [vmem:[#allocation11 + $0x500] sm:$0xff] }
 0x34f   :  { %5314 = vmatprep.subr.bf16.mxu0 %v15638_v49  ;;  %5486 = vmatprep.subr.bf16.mxu1 %v15641_v2  ;;  %v5693_v48 = vld [vmem:[#allocation11 + $0x580] sm:$0xff]  ;;  %v5678_v49 = vld [vmem:[#allocation11 + $0x508] sm:$0xff] }
 0x350   :  { %v5694_v2 = vld [vmem:[#allocation11 + $0x588] sm:$0xff] }
 0x352   :  { %5315 = vmatpush1.bf16.msra.mxu0 %v15636_v50  ;;  %5487 = vmatpush1.bf16.msra.mxu1 %v15639_v51  ;;  %v14128_v50 = vcombine.low %v5645_v39, %v5661_v40  ;;  %v14130_v51 = vcombine.low %v5646_v41, %v5662_v42  ;;  %v5869_v39 = vld [vmem:[#allocation11 + $0xb00] sm:$0xff]  ;;  %v5870_v41 = vld [vmem:[#allocation11 + $0xb08] sm:$0xff] }
 0x353   :  { %5316 = vmatprep.subr.bf16.mxu0 %v15644_v52  ;;  %5488 = vmatprep.subr.bf16.mxu1 %v15647_v53  ;;  %v14161_v52 = vcombine.high %v5677_v47, %v5693_v48  ;;  %v14163_v53 = vcombine.high %v5678_v49, %v5694_v2  ;;  %v5885_v40 = vld [vmem:[#allocation11 + $0xb80] sm:$0xff]  ;;  %v5886_v42 = vld [vmem:[#allocation11 + $0xb88] sm:$0xff] }
 0x356   :  { %5317 = vmatpush1.bf16.msra.mxu0 %v15642_v55  ;;  %5489 = vmatpush1.bf16.msra.mxu1 %v15645_v58  ;;  %v5709_v55 = vld [vmem:[#allocation11 + $0x600] sm:$0xff] }
 0x357   :  { %5318 = vmatprep.subr.bf16.mxu0 %v15650_v59  ;;  %5490 = vmatprep.subr.bf16.mxu1 %v15653_v60  ;;  %v5725_v58 = vld [vmem:[#allocation11 + $0x680] sm:$0xff]  ;;  %v5710_v59 = vld [vmem:[#allocation11 + $0x608] sm:$0xff] }
 0x358   :  { %v5726_v60 = vld [vmem:[#allocation11 + $0x688] sm:$0xff] }
 0x35a   :  { %5319 = vmatpush1.bf16.msra.mxu0 %v15648_v63  ;;  %5491 = vmatpush1.bf16.msra.mxu1 %v15651_v0  ;;  %v14160_v63 = vcombine.low %v5677_v47, %v5693_v48  ;;  %v14162_v0 = vcombine.low %v5678_v49, %v5694_v2  ;;  %v5901_v47 = vld [vmem:[#allocation11 + $0xc00] sm:$0xff]  ;;  %v5902_v49 = vld [vmem:[#allocation11 + $0xc08] sm:$0xff] }
 0x35b   :  { %5320 = vmatprep.subr.bf16.mxu0 %v15656_v1  ;;  %5492 = vmatprep.subr.bf16.mxu1 %v15659_v5  ;;  %v14193_v1 = vcombine.high %v5709_v55, %v5725_v58  ;;  %v14195_v5 = vcombine.high %v5710_v59, %v5726_v60  ;;  %v5917_v48 = vld [vmem:[#allocation11 + $0xc80] sm:$0xff]  ;;  %v5918_v2 = vld [vmem:[#allocation11 + $0xc88] sm:$0xff] }
 0x35e   :  { %5321 = vmatpush1.bf16.msra.mxu0 %v15654_v11  ;;  %5493 = vmatpush1.bf16.msra.mxu1 %v15657_v12  ;;  %v14192_v11 = vcombine.low %v5709_v55, %v5725_v58  ;;  %v14194_v12 = vcombine.low %v5710_v59, %v5726_v60  ;;  %v5933_v55 = vld [vmem:[#allocation11 + $0xd00] sm:$0xff]  ;;  %v5934_v59 = vld [vmem:[#allocation11 + $0xd08] sm:$0xff] }
 0x35f   :  { %11829 = vmatprep.subr.bf16.mxu0 %v14001_v13  ;;  %11915 = vmatprep.subr.bf16.mxu1 %v14003_v14  ;;  %v14225_v13 = vcombine.high %v5741_v7, %v5757_v8  ;;  %v14227_v14 = vcombine.high %v5742_v9, %v5758_v10  ;;  %v5949_v58 = vld [vmem:[#allocation11 + $0xd80] sm:$0xff]  ;;  %v5950_v60 = vld [vmem:[#allocation11 + $0xd88] sm:$0xff] }
 0x361   :  { %5323 = vmatmul.mubr.bf16.vlgmr.msra.gmra.mrb[8].mxu0 %v16057_v57  ;;  %5495 = vmatmul.mubr.bf16.vlgmr.msra.gmra.mrb[8].mxu1 %v16057_v57  ;;  %v14099_v57 = vcombine.high %v5614_v35, %v5630_v36  ;;  %v5838_v35 = vld [vmem:[#allocation11 + $0xa08] sm:$0xff] }
 0x362   :  { %11830 = vmatpush1.bf16.msra.mxu0 %v14000_v19  ;;  %11916 = vmatpush1.bf16.msra.mxu1 %v14002_v20  ;;  %v14224_v19 = vcombine.low %v5741_v7, %v5757_v8  ;;  %v14226_v20 = vcombine.low %v5742_v9, %v5758_v10  ;;  %v5854_v36 = vld [vmem:[#allocation11 + $0xa88] sm:$0xff]  ;;  %v14416_v7 = vcombine.low %v5933_v55, %v5949_v58  ;;  %v5965_v9 = vld [vmem:[#allocation11 + $0xe00] sm:$0xff] }
 0x363   :  { %11831 = vmatprep.subr.bf16.mxu0 %v14033_v21  ;;  %11917 = vmatprep.subr.bf16.mxu1 %v14035_v22  ;;  %v14257_v21 = vcombine.high %v5773_v15, %v5789_v16  ;;  %v14259_v22 = vcombine.high %v5774_v17, %v5790_v18  ;;  %v14418_v8 = vcombine.low %v5934_v59, %v5950_v60  ;;  %v5981_v10 = vld [vmem:[#allocation11 + $0xe80] sm:$0xff] }
 0x366   :  { %11832 = vmatpush1.bf16.msra.mxu0 %v14032_v29  ;;  %11918 = vmatpush1.bf16.msra.mxu1 %v14034_v30  ;;  %v14256_v29 = vcombine.low %v5773_v15, %v5789_v16  ;;  %v14258_v30 = vcombine.low %v5774_v17, %v5790_v18  ;;  %v5997_v17 = vld [vmem:[#allocation11 + $0xf00] sm:$0xff] }
 0x367   :  { %11833 = vmatprep.subr.bf16.mxu0 %v14065_v31  ;;  %11919 = vmatprep.subr.bf16.mxu1 %v14067_v32  ;;  %v14289_v31 = vcombine.high %v5805_v23, %v5821_v54  ;;  %v14291_v32 = vcombine.high %v5806_v24, %v5822_v28  ;;  %v6013_v18 = vld [vmem:[#allocation11 + $0xf80] sm:$0xff] }
 0x36a   :  { %11834 = vmatpush1.bf16.msra.mxu0 %v14064_v37  ;;  %11920 = vmatpush1.bf16.msra.mxu1 %v14066_v56  ;;  %v14288_v37 = vcombine.low %v5805_v23, %v5821_v54  ;;  %v14290_v56 = vcombine.low %v5806_v24, %v5822_v28  ;;  %v6029_v24 = vld [vmem:[#allocation11 + $0x1000] sm:$0xff] }
 0x36b   :  { %11835 = vmatprep.subr.bf16.mxu0 %v14097_v38  ;;  %11921 = vmatprep.subr.bf16.mxu1 %v14099_v57  ;;  %v14321_v38 = vcombine.high %v5837_v33, %v5853_v34  ;;  %v14323_v57 = vcombine.high %v5838_v35, %v5854_v36  ;;  %v6045_v28 = vld [vmem:[#allocation11 + $0x1080] sm:$0xff] }
 0x36e   :  { %11836 = vmatpush1.bf16.msra.mxu0 %v14096_v43  ;;  %11922 = vmatpush1.bf16.msra.mxu1 %v14098_v44  ;;  %v14320_v43 = vcombine.low %v5837_v33, %v5853_v34  ;;  %v14322_v44 = vcombine.low %v5838_v35, %v5854_v36  ;;  %v3859_v35 = vld [vmem:[#allocation10] sm:$0xf] }
 0x36f   :  { %11837 = vmatprep.subr.bf16.mxu0 %v14129_v45  ;;  %11923 = vmatprep.subr.bf16.mxu1 %v14131_v46  ;;  %v14353_v45 = vcombine.high %v5869_v39, %v5885_v40  ;;  %v14355_v46 = vcombine.high %v5870_v41, %v5886_v42  ;;  %v3864_v36 = vrot.slane %v3859_v35, %v16004_v62 }
 0x372   :  { %11838 = vmatpush1.bf16.msra.mxu0 %v14128_v50  ;;  %11924 = vmatpush1.bf16.msra.mxu1 %v14130_v51  ;;  %v14352_v50 = vcombine.low %v5869_v39, %v5885_v40  ;;  %v14354_v51 = vcombine.low %v5870_v41, %v5886_v42 }
 0x373   :  { %11839 = vmatprep.subr.bf16.mxu0 %v14161_v52  ;;  %11925 = vmatprep.subr.bf16.mxu1 %v14163_v53  ;;  %v14385_v52 = vcombine.high %v5901_v47, %v5917_v48  ;;  %v14387_v53 = vcombine.high %v5902_v49, %v5918_v2 }
 0x376   :  { %11840 = vmatpush1.bf16.msra.mxu0 %v14160_v63  ;;  %11926 = vmatpush1.bf16.msra.mxu1 %v14162_v0  ;;  %v14384_v63 = vcombine.low %v5901_v47, %v5917_v48  ;;  %v14386_v0 = vcombine.low %v5902_v49, %v5918_v2 }
 0x377   :  { %11841 = vmatprep.subr.bf16.mxu0 %v14193_v1  ;;  %11927 = vmatprep.subr.bf16.mxu1 %v14195_v5  ;;  %v14417_v1 = vcombine.high %v5933_v55, %v5949_v58  ;;  %v14419_v5 = vcombine.high %v5934_v59, %v5950_v60 }
 0x37a   :  { %11842 = vmatpush1.bf16.msra.mxu0 %v14192_v11  ;;  %11928 = vmatpush1.bf16.msra.mxu1 %v14194_v12  ;;  %v5966_v11 = vld [vmem:[#allocation11 + $0xe08] sm:$0xff]  ;;  %v14449_v12 = vcombine.high %v5965_v9, %v5981_v10 }
 0x37b   :  { %11843 = vmatprep.subr.bf16.mxu0 %v14225_v13  ;;  %11929 = vmatprep.subr.bf16.mxu1 %v14227_v14  ;;  %v5982_v13 = vld [vmem:[#allocation11 + $0xe88] sm:$0xff]  ;;  %v14448_v14 = vcombine.low %v5965_v9, %v5981_v10  ;;  %v6077_v9 = vld [vmem:[#allocation11 + $0x1180] sm:$0xff] }
 0x37c   :  { %v14450_v15 = vcombine.low %v5966_v11, %v5982_v13  ;;  %v14451_v16 = vcombine.high %v5966_v11, %v5982_v13  ;;  %v6062_v10 = vld [vmem:[#allocation11 + $0x1108] sm:$0xff] }
 0x37d   :  { %v6078_v11 = vld [vmem:[#allocation11 + $0x1188] sm:$0xff] }
 0x37e   :  { %11844 = vmatpush1.bf16.msra.mxu0 %v14224_v19  ;;  %11930 = vmatpush1.bf16.msra.mxu1 %v14226_v20  ;;  %v5998_v19 = vld [vmem:[#allocation11 + $0xf08] sm:$0xff]  ;;  %v14481_v20 = vcombine.high %v5997_v17, %v6013_v18 }
 0x37f   :  { %11845 = vmatprep.subr.bf16.mxu0 %v14257_v21  ;;  %11931 = vmatprep.subr.bf16.mxu1 %v14259_v22  ;;  %v6014_v21 = vld [vmem:[#allocation11 + $0xf88] sm:$0xff]  ;;  %v14480_v22 = vcombine.low %v5997_v17, %v6013_v18  ;;  %v6109_v17 = vld [vmem:[#allocation11 + $0x1280] sm:$0xff] }
 0x380   :  { %v14482_v23 = vcombine.low %v5998_v19, %v6014_v21  ;;  %v14483_v54 = vcombine.high %v5998_v19, %v6014_v21  ;;  %v6094_v18 = vld [vmem:[#allocation11 + $0x1208] sm:$0xff]  ;;  %v14546_v21 = vcombine.low %v6062_v10, %v6078_v11 }
 0x381   :  { %v6110_v19 = vld [vmem:[#allocation11 + $0x1288] sm:$0xff] }
 0x382   :  { %11846 = vmatpush1.bf16.msra.mxu0 %v14256_v29  ;;  %11932 = vmatpush1.bf16.msra.mxu1 %v14258_v30  ;;  %v6030_v29 = vld [vmem:[#allocation11 + $0x1008] sm:$0xff]  ;;  %v14513_v30 = vcombine.high %v6029_v24, %v6045_v28 }
 0x383   :  { %11847 = vmatprep.subr.bf16.mxu0 %v14289_v31  ;;  %11933 = vmatprep.subr.bf16.mxu1 %v14291_v32  ;;  %v6046_v31 = vld [vmem:[#allocation11 + $0x1088] sm:$0xff]  ;;  %v14512_v32 = vcombine.low %v6029_v24, %v6045_v28  ;;  %v6141_v24 = vld [vmem:[#allocation11 + $0x1380] sm:$0xff] }
 0x384   :  { %v14514_v33 = vcombine.low %v6030_v29, %v6046_v31  ;;  %v14515_v34 = vcombine.high %v6030_v29, %v6046_v31  ;;  %v6126_v28 = vld [vmem:[#allocation11 + $0x1308] sm:$0xff]  ;;  %v14578_v31 = vcombine.low %v6094_v18, %v6110_v19 }
 0x385   :  { %v6142_v29 = vld [vmem:[#allocation11 + $0x1388] sm:$0xff] }
 0x386   :  { %11848 = vmatpush1.bf16.msra.mxu0 %v14288_v37  ;;  %11934 = vmatpush1.bf16.msra.mxu1 %v14290_v56  ;;  %v3872_v37 = vrot.slane %v3859_v35, %v16009_v3  ;;  %v3868_v56 = vrot.slane %v3859_v35, %v16012_v4 }
 0x387   :  { %11849 = vmatprep.subr.bf16.mxu0 %v14321_v38  ;;  %11935 = vmatprep.subr.bf16.mxu1 %v14323_v57  ;;  %v3876_v38 = vrot.slane %v3859_v35, %v16015_v6  ;;  %v6173_v35 = vld [vmem:[#allocation11 + $0x1480] sm:$0xff] }
 0x38a   :  { %11850 = vmatpush1.bf16.msra.mxu0 %v14320_v43  ;;  %11936 = vmatpush1.bf16.msra.mxu1 %v14322_v44 }
 0x38b   :  { %11851 = vmatprep.subr.bf16.mxu0 %v14353_v45  ;;  %11937 = vmatprep.subr.bf16.mxu1 %v14355_v46 }
 0x38e   :  { %11852 = vmatpush1.bf16.msra.mxu0 %v14352_v50  ;;  %11938 = vmatpush1.bf16.msra.mxu1 %v14354_v51 }
 0x38f   :  { %11853 = vmatprep.subr.bf16.mxu0 %v14385_v52  ;;  %11939 = vmatprep.subr.bf16.mxu1 %v14387_v53 }
 0x392   :  { %11854 = vmatpush1.bf16.msra.mxu0 %v14384_v63  ;;  %11940 = vmatpush1.bf16.msra.mxu1 %v14386_v0 }
 0x393   :  { %11855 = vmatprep.subr.bf16.mxu0 %v14417_v1  ;;  %11941 = vmatprep.subr.bf16.mxu1 %v14419_v5  ;;  %v6061_v5 = vld [vmem:[#allocation11 + $0x1100] sm:$0xff] }
 0x396   :  { %11856 = vmatpush1.bf16.msra.mxu0 %v14416_v7  ;;  %11942 = vmatpush1.bf16.msra.mxu1 %v14418_v8 }
 0x397   :  { %11857 = vmatprep.subr.bf16.mxu0 %v14449_v12  ;;  %11943 = vmatprep.subr.bf16.mxu1 %v14451_v16  ;;  %v14547_v16 = vcombine.high %v6062_v10, %v6078_v11  ;;  %v6285_v10 = vld [vmem:[#allocation11 + $0x1800] sm:$0xff] }
 0x398   :  { %v6301_v11 = vld [vmem:[#allocation11 + $0x1880] sm:$0xff] }
 0x39a   :  { %11858 = vmatpush1.bf16.msra.mxu0 %v14448_v14  ;;  %11944 = vmatpush1.bf16.msra.mxu1 %v14450_v15  ;;  %v6093_v14 = vld [vmem:[#allocation11 + $0x1200] sm:$0xff]  ;;  %v14545_v15 = vcombine.high %v6061_v5, %v6077_v9 }
 0x39b   :  { %11859 = vmatprep.subr.bf16.mxu0 %v14481_v20  ;;  %11945 = vmatprep.subr.bf16.mxu1 %v14483_v54  ;;  %v14544_v20 = vcombine.low %v6061_v5, %v6077_v9  ;;  %v6125_v54 = vld [vmem:[#allocation11 + $0x1300] sm:$0xff] }
 0x39e   :  { %11860 = vmatpush1.bf16.msra.mxu0 %v14480_v22  ;;  %11946 = vmatpush1.bf16.msra.mxu1 %v14482_v23  ;;  %v14577_v22 = vcombine.high %v6093_v14, %v6109_v17  ;;  %v14579_v23 = vcombine.high %v6094_v18, %v6110_v19  ;;  %v14769_v18 = vcombine.high %v6285_v10, %v6301_v11 }
 0x39f   :  { %11872 = vmatprep.subr.bf16.mxu0 %v14513_v30  ;;  %11958 = vmatprep.subr.bf16.mxu1 %v14515_v34  ;;  %v14576_v30 = vcombine.low %v6093_v14, %v6109_v17  ;;  %v6157_v34 = vld [vmem:[#allocation11 + $0x1400] sm:$0xff]  ;;  %v6286_v14 = vld [vmem:[#allocation11 + $0x1808] sm:$0xff] }
 0x434   :  { %v5324_v57 = vpop.f32.mrb[8].mxu0  ;;  %v5496_v39 = vpop.f32.mrb[8].mxu1 }
 0x435   :  { %v15040_v40 = vadd.f32 %v5324_v57, %v3864_v36  ;;  %v15044_v41 = vadd.f32 %v5496_v39, %v3872_v37  ;;  %v5326_v42 = vpop.f32.mrb[9].mxu0  ;;  %v5498_v43 = vpop.f32.mrb[9].mxu1  ;;  %v14641_v57 = vcombine.high %v6157_v34, %v6173_v35 }
 0x436   :  { %v15041_v44 = vadd.f32 %v5326_v42, %v3868_v56  ;;  %v15045_v45 = vadd.f32 %v5498_v43, %v3876_v38  ;;  %v5328_v46 = vpop.f32.mrb[10].mxu0  ;;  %v5500_v47 = vpop.f32.mrb[10].mxu1  ;;  %v6190_v42 = vld [vmem:[#allocation11 + $0x1508] sm:$0xff] }
 0x437   :  { %v15042_v48 = vadd.f32 %v5328_v46, %v3864_v36  ;;  %v15046_v49 = vadd.f32 %v5500_v47, %v3872_v37  ;;  %v5330_v2 = vpop.f32.mrb[11].mxu0  ;;  %v5502_v50 = vpop.f32.mrb[11].mxu1  ;;  %v5505_v53 = vmax.f32 %v15040_v40, 0.0  ;;  %v5507_v55 = vmax.f32 %v15044_v41, 0.0  ;;  %v6158_v36 = vld [vmem:[#allocation11 + $0x1408] sm:$0xff]  ;;  %v6189_v40 = vld [vmem:[#allocation11 + $0x1500] sm:$0xff] }
 0x438   :  { %v15043_v51 = vadd.f32 %v5330_v2, %v3868_v56  ;;  %v15047_v52 = vadd.f32 %v5502_v50, %v3876_v38  ;;  %v5506_v60 = vmax.f32 %v15041_v44, 0.0  ;;  %v5508_v63 = vmax.f32 %v15045_v45, 0.0  ;;  %v6174_v37 = vld [vmem:[#allocation11 + $0x1488] sm:$0xff]  ;;  %v6205_v41 = vld [vmem:[#allocation11 + $0x1580] sm:$0xff] }
 0x439   :  { %v5509_v58 = vmax.f32 %v15042_v48, 0.0  ;;  %v5511_v59 = vmax.f32 %v15046_v49, 0.0  ;;  %v14608_v56 = vcombine.low %v6125_v54, %v6141_v24  ;;  %v14610_v38 = vcombine.low %v6126_v28, %v6142_v29  ;;  %v6206_v43 = vld [vmem:[#allocation11 + $0x1588] sm:$0xff]  ;;  %v6221_v48 = vld [vmem:[#allocation11 + $0x1600] sm:$0xff] }
 0x43a   :  { %v5510_v0 = vmax.f32 %v15043_v51, 0.0  ;;  %v5512_v1 = vmax.f32 %v15047_v52, 0.0  ;;  %v14643_v39 = vcombine.high %v6158_v36, %v6174_v37  ;;  %v14640_v44 = vcombine.low %v6157_v34, %v6173_v35  ;;  %v6237_v49 = vld [vmem:[#allocation11 + $0x1680] sm:$0xff]  ;;  %v6222_v2 = vld [vmem:[#allocation11 + $0x1608] sm:$0xff] }
 0x43b   :  { %v16065_v7 = vpack.c.bf16 %v5509_v58, %v5505_v53  ;;  %v16067_v8 = vpack.c.bf16 %v5511_v59, %v5507_v55  ;;  %v14642_v45 = vcombine.low %v6158_v36, %v6174_v37  ;;  %v14673_v46 = vcombine.high %v6189_v40, %v6205_v41  ;;  %v6238_v50 = vld [vmem:[#allocation11 + $0x1688] sm:$0xff]  ;;  %v6253_v58 = vld [vmem:[#allocation11 + $0x1700] sm:$0xff] }
 0x43c   :  { %v16069_v12 = vpack.c.bf16 %v5510_v0, %v5506_v60  ;;  %v16071_v13 = vpack.c.bf16 %v5512_v1, %v5508_v63  ;;  %v14675_v47 = vcombine.high %v6190_v42, %v6206_v43  ;;  %v14672_v51 = vcombine.low %v6189_v40, %v6205_v41  ;;  %v6269_v59 = vld [vmem:[#allocation11 + $0x1780] sm:$0xff]  ;;  %v6254_v60 = vld [vmem:[#allocation11 + $0x1708] sm:$0xff] }
 0x43d   :  { %v14674_v52 = vcombine.low %v6190_v42, %v6206_v43  ;;  %v14705_v53 = vcombine.high %v6221_v48, %v6237_v49  ;;  %v14707_v55 = vcombine.high %v6222_v2, %v6238_v50  ;;  %v6270_v63 = vld [vmem:[#allocation11 + $0x1788] sm:$0xff]  ;;  %v14704_v0 = vcombine.low %v6221_v48, %v6237_v49 }
 0x43e   :  { %11861 = vmatprep.mubr.bf16.mxu0 %v16069_v12  ;;  %11947 = vmatprep.mubr.bf16.mxu1 %v16069_v12  ;;  %v14706_v1 = vcombine.low %v6222_v2, %v6238_v50  ;;  %v14737_v5 = vcombine.high %v6253_v58, %v6269_v59  ;;  %v14739_v9 = vcombine.high %v6254_v60, %v6270_v63 }
 0x43f   :  { %11862 = vmatmul.mubr.bf16.vlgmr.msra.gmra.mrb[12].mxu0 %v16065_v7  ;;  %11948 = vmatmul.mubr.bf16.vlgmr.msra.gmra.mrb[12].mxu1 %v16065_v7  ;;  %v14738_v17 = vcombine.low %v6254_v60, %v6270_v63 }
 0x440   :  { %11873 = vmatpush1.bf16.msra.mxu0 %v14512_v32  ;;  %11959 = vmatpush1.bf16.msra.mxu1 %v14514_v33  ;;  %v14609_v32 = vcombine.high %v6125_v54, %v6141_v24  ;;  %v14611_v33 = vcombine.high %v6126_v28, %v6142_v29  ;;  %v14768_v54 = vcombine.low %v6285_v10, %v6301_v11 }
 0x441   :  { %11904 = vmatprep.mubr.bf16.mxu0 %v16071_v13  ;;  %11990 = vmatprep.mubr.bf16.mxu1 %v16071_v13 }
 0x442   :  { %11874 = vmatprep.subr.bf16.mxu0 %v14545_v15  ;;  %11960 = vmatprep.subr.bf16.mxu1 %v14547_v16  ;;  %v6302_v15 = vld [vmem:[#allocation11 + $0x1888] sm:$0xff]  ;;  %v14736_v16 = vcombine.low %v6253_v58, %v6269_v59 }
 0x443   :  { %v14771_v19 = vcombine.high %v6286_v14, %v6302_v15  ;;  %v14770_v24 = vcombine.low %v6286_v14, %v6302_v15 }
 0x444   :  { %11875 = vmatpush1.bf16.msra.mxu0 %v14544_v20  ;;  %11961 = vmatpush1.bf16.msra.mxu1 %v14546_v21  ;;  %v6317_v20 = vld [vmem:[#allocation11 + $0x1900] sm:$0xff] }
 0x445   :  { %11876 = vmatprep.subr.bf16.mxu0 %v14577_v22  ;;  %11962 = vmatprep.subr.bf16.mxu1 %v14579_v23  ;;  %v6333_v21 = vld [vmem:[#allocation11 + $0x1980] sm:$0xff]  ;;  %v6318_v22 = vld [vmem:[#allocation11 + $0x1908] sm:$0xff] }
 0x446   :  { %v6334_v23 = vld [vmem:[#allocation11 + $0x1988] sm:$0xff]  ;;  %v14801_v28 = vcombine.high %v6317_v20, %v6333_v21  ;;  %v14800_v34 = vcombine.low %v6317_v20, %v6333_v21 }
 0x447   :  { %v14803_v29 = vcombine.high %v6318_v22, %v6334_v23  ;;  %v14802_v35 = vcombine.low %v6318_v22, %v6334_v23 }
 0x448   :  { %11877 = vmatpush1.bf16.msra.mxu0 %v14576_v30  ;;  %11963 = vmatpush1.bf16.msra.mxu1 %v14578_v31  ;;  %v6349_v30 = vld [vmem:[#allocation11 + $0x1a00] sm:$0xff] }
 0x449   :  { %11878 = vmatprep.subr.bf16.mxu0 %v14609_v32  ;;  %11964 = vmatprep.subr.bf16.mxu1 %v14611_v33  ;;  %v6365_v31 = vld [vmem:[#allocation11 + $0x1a80] sm:$0xff]  ;;  %v6350_v32 = vld [vmem:[#allocation11 + $0x1a08] sm:$0xff] }
 0x44a   :  { %v6366_v33 = vld [vmem:[#allocation11 + $0x1a88] sm:$0xff]  ;;  %v14833_v36 = vcombine.high %v6349_v30, %v6365_v31  ;;  %v14832_v40 = vcombine.low %v6349_v30, %v6365_v31 }
 0x44b   :  { %v14835_v37 = vcombine.high %v6350_v32, %v6366_v33  ;;  %v14834_v41 = vcombine.low %v6350_v32, %v6366_v33 }
 0x44c   :  { %11879 = vmatpush1.bf16.msra.mxu0 %v14608_v56  ;;  %11965 = vmatpush1.bf16.msra.mxu1 %v14610_v38  ;;  %v6381_v56 = vld [vmem:[#allocation11 + $0x1b00] sm:$0xff] }
 0x44d   :  { %11880 = vmatprep.subr.bf16.mxu0 %v14641_v57  ;;  %11966 = vmatprep.subr.bf16.mxu1 %v14643_v39  ;;  %v6397_v38 = vld [vmem:[#allocation11 + $0x1b80] sm:$0xff]  ;;  %v6382_v57 = vld [vmem:[#allocation11 + $0x1b08] sm:$0xff] }
 0x44e   :  { %v6398_v39 = vld [vmem:[#allocation11 + $0x1b88] sm:$0xff]  ;;  %v14865_v42 = vcombine.high %v6381_v56, %v6397_v38  ;;  %v14864_v48 = vcombine.low %v6381_v56, %v6397_v38 }
 0x44f   :  { %v14867_v43 = vcombine.high %v6382_v57, %v6398_v39  ;;  %v14866_v49 = vcombine.low %v6382_v57, %v6398_v39 }
 0x450   :  { %11881 = vmatpush1.bf16.msra.mxu0 %v14640_v44  ;;  %11967 = vmatpush1.bf16.msra.mxu1 %v14642_v45  ;;  %v6413_v44 = vld [vmem:[#allocation11 + $0x1c00] sm:$0xff] }
 0x451   :  { %11882 = vmatprep.subr.bf16.mxu0 %v14673_v46  ;;  %11968 = vmatprep.subr.bf16.mxu1 %v14675_v47  ;;  %v6429_v45 = vld [vmem:[#allocation11 + $0x1c80] sm:$0xff]  ;;  %v6414_v46 = vld [vmem:[#allocation11 + $0x1c08] sm:$0xff] }
 0x452   :  { %v6430_v47 = vld [vmem:[#allocation11 + $0x1c88] sm:$0xff]  ;;  %v14897_v2 = vcombine.high %v6413_v44, %v6429_v45  ;;  %v14896_v58 = vcombine.low %v6413_v44, %v6429_v45 }
 0x453   :  { %v14899_v50 = vcombine.high %v6414_v46, %v6430_v47  ;;  %v14898_v59 = vcombine.low %v6414_v46, %v6430_v47 }
 0x454   :  { %11883 = vmatpush1.bf16.msra.mxu0 %v14672_v51  ;;  %11969 = vmatpush1.bf16.msra.mxu1 %v14674_v52  ;;  %v6445_v51 = vld [vmem:[#allocation11 + $0x1d00] sm:$0xff] }
 0x455   :  { %11884 = vmatprep.subr.bf16.mxu0 %v14705_v53  ;;  %11970 = vmatprep.subr.bf16.mxu1 %v14707_v55  ;;  %v6461_v52 = vld [vmem:[#allocation11 + $0x1d80] sm:$0xff]  ;;  %v6446_v53 = vld [vmem:[#allocation11 + $0x1d08] sm:$0xff] }
 0x456   :  { %v6462_v55 = vld [vmem:[#allocation11 + $0x1d88] sm:$0xff]  ;;  %v14929_v60 = vcombine.high %v6445_v51, %v6461_v52  ;;  %v14928_v10 = vcombine.low %v6445_v51, %v6461_v52 }
 0x457   :  { %v14931_v63 = vcombine.high %v6446_v53, %v6462_v55  ;;  %v14930_v11 = vcombine.low %v6446_v53, %v6462_v55 }
 0x458   :  { %11885 = vmatpush1.bf16.msra.mxu0 %v14704_v0  ;;  %11971 = vmatpush1.bf16.msra.mxu1 %v14706_v1  ;;  %v6477_v0 = vld [vmem:[#allocation11 + $0x1e00] sm:$0xff] }
 0x459   :  { %11886 = vmatprep.subr.bf16.mxu0 %v14737_v5  ;;  %11972 = vmatprep.subr.bf16.mxu1 %v14739_v9  ;;  %v6493_v1 = vld [vmem:[#allocation11 + $0x1e80] sm:$0xff]  ;;  %v6478_v5 = vld [vmem:[#allocation11 + $0x1e08] sm:$0xff] }
 0x45a   :  { %v6494_v9 = vld [vmem:[#allocation11 + $0x1e88] sm:$0xff]  ;;  %v14961_v14 = vcombine.high %v6477_v0, %v6493_v1  ;;  %v14960_v20 = vcombine.low %v6477_v0, %v6493_v1 }
 0x45b   :  { %v14963_v15 = vcombine.high %v6478_v5, %v6494_v9  ;;  %v14962_v21 = vcombine.low %v6478_v5, %v6494_v9 }
 0x45c   :  { %11887 = vmatpush1.bf16.msra.mxu0 %v14736_v16  ;;  %11973 = vmatpush1.bf16.msra.mxu1 %v14738_v17  ;;  %v6509_v16 = vld [vmem:[#allocation11 + $0x1f00] sm:$0xff] }
 0x45d   :  { %11888 = vmatprep.subr.bf16.mxu0 %v14769_v18  ;;  %11974 = vmatprep.subr.bf16.mxu1 %v14771_v19  ;;  %v6525_v17 = vld [vmem:[#allocation11 + $0x1f80] sm:$0xff]  ;;  %v6510_v18 = vld [vmem:[#allocation11 + $0x1f08] sm:$0xff] }
 0x45e   :  { %v6526_v19 = vld [vmem:[#allocation11 + $0x1f88] sm:$0xff]  ;;  %v14993_v22 = vcombine.high %v6509_v16, %v6525_v17  ;;  %v14992_v30 = vcombine.low %v6509_v16, %v6525_v17 }
 0x45f   :  { %v14995_v23 = vcombine.high %v6510_v18, %v6526_v19  ;;  %v14994_v31 = vcombine.low %v6510_v18, %v6526_v19 }
 0x460   :  { %11889 = vmatpush1.bf16.msra.mxu0 %v14768_v54  ;;  %11975 = vmatpush1.bf16.msra.mxu1 %v14770_v24  ;;  %v5519_v54 = vld [vmem:[#allocation11 + $0x10] sm:$0xff] }
 0x461   :  { %11890 = vmatprep.subr.bf16.mxu0 %v14801_v28  ;;  %11976 = vmatprep.subr.bf16.mxu1 %v14803_v29  ;;  %v5535_v24 = vld [vmem:[#allocation11 + $0x90] sm:$0xff]  ;;  %v5520_v28 = vld [vmem:[#allocation11 + $0x18] sm:$0xff] }
 0x462   :  { %v5536_v29 = vld [vmem:[#allocation11 + $0x98] sm:$0xff]  ;;  %v14005_v32 = vcombine.high %v5519_v54, %v5535_v24  ;;  %v14004_v56 = vcombine.low %v5519_v54, %v5535_v24 }
 0x463   :  { %v14007_v33 = vcombine.high %v5520_v28, %v5536_v29  ;;  %v14006_v38 = vcombine.low %v5520_v28, %v5536_v29 }
 0x464   :  { %11891 = vmatpush1.bf16.msra.mxu0 %v14800_v34  ;;  %11977 = vmatpush1.bf16.msra.mxu1 %v14802_v35  ;;  %v5551_v34 = vld [vmem:[#allocation11 + $0x110] sm:$0xff] }
 0x465   :  { %11892 = vmatprep.subr.bf16.mxu0 %v14833_v36  ;;  %11978 = vmatprep.subr.bf16.mxu1 %v14835_v37  ;;  %v5567_v35 = vld [vmem:[#allocation11 + $0x190] sm:$0xff]  ;;  %v5552_v36 = vld [vmem:[#allocation11 + $0x118] sm:$0xff] }
 0x466   :  { %v5568_v37 = vld [vmem:[#allocation11 + $0x198] sm:$0xff]  ;;  %v14037_v57 = vcombine.high %v5551_v34, %v5567_v35  ;;  %v14036_v44 = vcombine.low %v5551_v34, %v5567_v35 }
 0x467   :  { %v14039_v39 = vcombine.high %v5552_v36, %v5568_v37  ;;  %v14038_v45 = vcombine.low %v5552_v36, %v5568_v37 }
 0x468   :  { %11893 = vmatpush1.bf16.msra.mxu0 %v14832_v40  ;;  %11979 = vmatpush1.bf16.msra.mxu1 %v14834_v41  ;;  %v5583_v40 = vld [vmem:[#allocation11 + $0x210] sm:$0xff] }
 0x469   :  { %11894 = vmatprep.subr.bf16.mxu0 %v14865_v42  ;;  %11980 = vmatprep.subr.bf16.mxu1 %v14867_v43  ;;  %v5599_v41 = vld [vmem:[#allocation11 + $0x290] sm:$0xff]  ;;  %v5584_v42 = vld [vmem:[#allocation11 + $0x218] sm:$0xff] }
 0x46a   :  { %v5600_v43 = vld [vmem:[#allocation11 + $0x298] sm:$0xff]  ;;  %v14069_v46 = vcombine.high %v5583_v40, %v5599_v41  ;;  %v14068_v51 = vcombine.low %v5583_v40, %v5599_v41 }
 0x46b   :  { %v14071_v47 = vcombine.high %v5584_v42, %v5600_v43  ;;  %v14070_v52 = vcombine.low %v5584_v42, %v5600_v43 }
 0x46c   :  { %11895 = vmatpush1.bf16.msra.mxu0 %v14864_v48  ;;  %11981 = vmatpush1.bf16.msra.mxu1 %v14866_v49  ;;  %v5615_v48 = vld [vmem:[#allocation11 + $0x310] sm:$0xff] }
 0x46d   :  { %11896 = vmatprep.subr.bf16.mxu0 %v14897_v2  ;;  %11982 = vmatprep.subr.bf16.mxu1 %v14899_v50  ;;  %v5631_v49 = vld [vmem:[#allocation11 + $0x390] sm:$0xff]  ;;  %v5616_v2 = vld [vmem:[#allocation11 + $0x318] sm:$0xff] }
 0x46e   :  { %v5632_v50 = vld [vmem:[#allocation11 + $0x398] sm:$0xff]  ;;  %v14101_v53 = vcombine.high %v5615_v48, %v5631_v49  ;;  %v14100_v0 = vcombine.low %v5615_v48, %v5631_v49 }
 0x46f   :  { %v14103_v55 = vcombine.high %v5616_v2, %v5632_v50  ;;  %v14102_v1 = vcombine.low %v5616_v2, %v5632_v50 }
 0x470   :  { %11897 = vmatpush1.bf16.msra.mxu0 %v14896_v58  ;;  %11983 = vmatpush1.bf16.msra.mxu1 %v14898_v59  ;;  %v5647_v58 = vld [vmem:[#allocation11 + $0x410] sm:$0xff] }
 0x471   :  { %11898 = vmatprep.subr.bf16.mxu0 %v14929_v60  ;;  %11984 = vmatprep.subr.bf16.mxu1 %v14931_v63  ;;  %v5663_v59 = vld [vmem:[#allocation11 + $0x490] sm:$0xff]  ;;  %v5648_v60 = vld [vmem:[#allocation11 + $0x418] sm:$0xff] }
 0x472   :  { %v5664_v63 = vld [vmem:[#allocation11 + $0x498] sm:$0xff]  ;;  %v14133_v5 = vcombine.high %v5647_v58, %v5663_v59  ;;  %v14132_v16 = vcombine.low %v5647_v58, %v5663_v59 }
 0x473   :  { %v14135_v9 = vcombine.high %v5648_v60, %v5664_v63  ;;  %v14134_v17 = vcombine.low %v5648_v60, %v5664_v63 }
 0x474   :  { %11899 = vmatpush1.bf16.msra.mxu0 %v14928_v10  ;;  %11985 = vmatpush1.bf16.msra.mxu1 %v14930_v11  ;;  %v5679_v10 = vld [vmem:[#allocation11 + $0x510] sm:$0xff] }
 0x475   :  { %11900 = vmatprep.subr.bf16.mxu0 %v14961_v14  ;;  %11986 = vmatprep.subr.bf16.mxu1 %v14963_v15  ;;  %v5695_v11 = vld [vmem:[#allocation11 + $0x590] sm:$0xff]  ;;  %v5680_v14 = vld [vmem:[#allocation11 + $0x518] sm:$0xff] }
 0x476   :  { %v5696_v15 = vld [vmem:[#allocation11 + $0x598] sm:$0xff]  ;;  %v14165_v18 = vcombine.high %v5679_v10, %v5695_v11  ;;  %v14164_v54 = vcombine.low %v5679_v10, %v5695_v11 }
 0x477   :  { %v14167_v19 = vcombine.high %v5680_v14, %v5696_v15  ;;  %v14166_v24 = vcombine.low %v5680_v14, %v5696_v15 }
 0x478   :  { %11901 = vmatpush1.bf16.msra.mxu0 %v14960_v20  ;;  %11987 = vmatpush1.bf16.msra.mxu1 %v14962_v21  ;;  %v5711_v20 = vld [vmem:[#allocation11 + $0x610] sm:$0xff] }
 0x479   :  { %11902 = vmatprep.subr.bf16.mxu0 %v14993_v22  ;;  %11988 = vmatprep.subr.bf16.mxu1 %v14995_v23  ;;  %v5727_v21 = vld [vmem:[#allocation11 + $0x690] sm:$0xff]  ;;  %v5712_v22 = vld [vmem:[#allocation11 + $0x618] sm:$0xff] }
 0x47a   :  { %v5728_v23 = vld [vmem:[#allocation11 + $0x698] sm:$0xff]  ;;  %v14197_v28 = vcombine.high %v5711_v20, %v5727_v21  ;;  %v14196_v34 = vcombine.low %v5711_v20, %v5727_v21 }
 0x47b   :  { %v14199_v29 = vcombine.high %v5712_v22, %v5728_v23  ;;  %v14198_v35 = vcombine.low %v5712_v22, %v5728_v23 }
 0x47c   :  { %11903 = vmatpush1.bf16.msra.mxu0 %v14992_v30  ;;  %11989 = vmatpush1.bf16.msra.mxu1 %v14994_v31  ;;  %v5743_v30 = vld [vmem:[#allocation11 + $0x710] sm:$0xff] }
 0x47d   :  { %12001 = vmatprep.subr.bf16.mxu0 %v14005_v32  ;;  %12087 = vmatprep.subr.bf16.mxu1 %v14007_v33  ;;  %v5759_v31 = vld [vmem:[#allocation11 + $0x790] sm:$0xff]  ;;  %v5744_v32 = vld [vmem:[#allocation11 + $0x718] sm:$0xff] }
 0x47e   :  { %v5760_v33 = vld [vmem:[#allocation11 + $0x798] sm:$0xff]  ;;  %v14229_v36 = vcombine.high %v5743_v30, %v5759_v31  ;;  %v14228_v40 = vcombine.low %v5743_v30, %v5759_v31 }
 0x47f   :  { %11905 = vmatmul.mubr.bf16.vlgmr.msra.gmra.mrb[12].mxu0 %v16067_v8  ;;  %11991 = vmatmul.mubr.bf16.vlgmr.msra.gmra.mrb[12].mxu1 %v16067_v8  ;;  %v14231_v37 = vcombine.high %v5744_v32, %v5760_v33  ;;  %v14230_v41 = vcombine.low %v5744_v32, %v5760_v33 }
 0x480   :  { %12002 = vmatpush1.bf16.msra.mxu0 %v14004_v56  ;;  %12033 = vmatprep.mubr.bf16.mxu0 %v16069_v12  ;;  %v5775_v56 = vld [vmem:[#allocation11 + $0x810] sm:$0xff] }
 0x481   :  { %12088 = vmatpush1.bf16.msra.mxu1 %v14006_v38  ;;  %12119 = vmatprep.mubr.bf16.mxu1 %v16069_v12  ;;  %v5791_v38 = vld [vmem:[#allocation11 + $0x890] sm:$0xff] }
 0x482   :  { %12003 = vmatprep.subr.bf16.mxu0 %v14037_v57  ;;  %12089 = vmatprep.subr.bf16.mxu1 %v14039_v39  ;;  %v5776_v57 = vld [vmem:[#allocation11 + $0x818] sm:$0xff]  ;;  %v14261_v42 = vcombine.high %v5775_v56, %v5791_v38  ;;  %v14260_v48 = vcombine.low %v5775_v56, %v5791_v38 }
 0x483   :  { %v5792_v39 = vld [vmem:[#allocation11 + $0x898] sm:$0xff] }
 0x484   :  { %12004 = vmatpush1.bf16.msra.mxu0 %v14036_v44  ;;  %v14263_v43 = vcombine.high %v5776_v57, %v5792_v39  ;;  %v5807_v44 = vld [vmem:[#allocation11 + $0x910] sm:$0xff]  ;;  %v14262_v49 = vcombine.low %v5776_v57, %v5792_v39 }
 0x485   :  { %12090 = vmatpush1.bf16.msra.mxu1 %v14038_v45  ;;  %12005 = vmatprep.subr.bf16.mxu0 %v14069_v46  ;;  %v5823_v45 = vld [vmem:[#allocation11 + $0x990] sm:$0xff]  ;;  %v5808_v46 = vld [vmem:[#allocation11 + $0x918] sm:$0xff] }
 0x486   :  { %12091 = vmatprep.subr.bf16.mxu1 %v14071_v47  ;;  %v5824_v47 = vld [vmem:[#allocation11 + $0x998] sm:$0xff]  ;;  %v14293_v2 = vcombine.high %v5807_v44, %v5823_v45  ;;  %v14292_v58 = vcombine.low %v5807_v44, %v5823_v45 }
 0x487   :  { %v14295_v50 = vcombine.high %v5808_v46, %v5824_v47  ;;  %v14294_v59 = vcombine.low %v5808_v46, %v5824_v47 }
 0x488   :  { %12006 = vmatpush1.bf16.msra.mxu0 %v14068_v51  ;;  %v5839_v51 = vld [vmem:[#allocation11 + $0xa10] sm:$0xff] }
 0x489   :  { %12092 = vmatpush1.bf16.msra.mxu1 %v14070_v52  ;;  %12007 = vmatprep.subr.bf16.mxu0 %v14101_v53  ;;  %v5855_v52 = vld [vmem:[#allocation11 + $0xa90] sm:$0xff]  ;;  %v5840_v53 = vld [vmem:[#allocation11 + $0xa18] sm:$0xff] }
 0x48a   :  { %12093 = vmatprep.subr.bf16.mxu1 %v14103_v55  ;;  %v5856_v55 = vld [vmem:[#allocation11 + $0xa98] sm:$0xff]  ;;  %v14325_v60 = vcombine.high %v5839_v51, %v5855_v52  ;;  %v14324_v10 = vcombine.low %v5839_v51, %v5855_v52 }
 0x48b   :  { %v14327_v63 = vcombine.high %v5840_v53, %v5856_v55  ;;  %v14326_v11 = vcombine.low %v5840_v53, %v5856_v55 }
 0x48c   :  { %12008 = vmatpush1.bf16.msra.mxu0 %v14100_v0  ;;  %v5871_v0 = vld [vmem:[#allocation11 + $0xb10] sm:$0xff] }
 0x48d   :  { %12094 = vmatpush1.bf16.msra.mxu1 %v14102_v1  ;;  %12009 = vmatprep.subr.bf16.mxu0 %v14133_v5  ;;  %v5887_v1 = vld [vmem:[#allocation11 + $0xb90] sm:$0xff]  ;;  %v5872_v5 = vld [vmem:[#allocation11 + $0xb18] sm:$0xff] }
 0x48e   :  { %12095 = vmatprep.subr.bf16.mxu1 %v14135_v9  ;;  %v5888_v9 = vld [vmem:[#allocation11 + $0xb98] sm:$0xff]  ;;  %v14357_v14 = vcombine.high %v5871_v0, %v5887_v1  ;;  %v14356_v20 = vcombine.low %v5871_v0, %v5887_v1 }
 0x48f   :  { %v14359_v15 = vcombine.high %v5872_v5, %v5888_v9  ;;  %v14358_v21 = vcombine.low %v5872_v5, %v5888_v9  ;;  %v6080_v0 = vld [vmem:[#allocation11 + $0x1198] sm:$0xff]  ;;  %v6095_v9 = vld [vmem:[#allocation11 + $0x1210] sm:$0xff] }
 0x490   :  { %12010 = vmatpush1.bf16.msra.mxu0 %v14132_v16  ;;  %v5903_v16 = vld [vmem:[#allocation11 + $0xc10] sm:$0xff] }
 0x491   :  { %12096 = vmatpush1.bf16.msra.mxu1 %v14134_v17  ;;  %12011 = vmatprep.subr.bf16.mxu0 %v14165_v18  ;;  %v5919_v17 = vld [vmem:[#allocation11 + $0xc90] sm:$0xff]  ;;  %v5904_v18 = vld [vmem:[#allocation11 + $0xc18] sm:$0xff] }
 0x492   :  { %12097 = vmatprep.subr.bf16.mxu1 %v14167_v19  ;;  %v5920_v19 = vld [vmem:[#allocation11 + $0xc98] sm:$0xff]  ;;  %v14389_v22 = vcombine.high %v5903_v16, %v5919_v17  ;;  %v14388_v30 = vcombine.low %v5903_v16, %v5919_v17 }
 0x493   :  { %v14391_v23 = vcombine.high %v5904_v18, %v5920_v19  ;;  %v14390_v31 = vcombine.low %v5904_v18, %v5920_v19 }
 0x494   :  { %12012 = vmatpush1.bf16.msra.mxu0 %v14164_v54  ;;  %v5935_v54 = vld [vmem:[#allocation11 + $0xd10] sm:$0xff] }
 0x495   :  { %12098 = vmatpush1.bf16.msra.mxu1 %v14166_v24  ;;  %12013 = vmatprep.subr.bf16.mxu0 %v14197_v28  ;;  %v5951_v24 = vld [vmem:[#allocation11 + $0xd90] sm:$0xff]  ;;  %v5936_v28 = vld [vmem:[#allocation11 + $0xd18] sm:$0xff] }
 0x496   :  { %12099 = vmatprep.subr.bf16.mxu1 %v14199_v29  ;;  %v5952_v29 = vld [vmem:[#allocation11 + $0xd98] sm:$0xff]  ;;  %v14421_v32 = vcombine.high %v5935_v54, %v5951_v24  ;;  %v14420_v56 = vcombine.low %v5935_v54, %v5951_v24 }
 0x497   :  { %v14423_v33 = vcombine.high %v5936_v28, %v5952_v29  ;;  %v14422_v38 = vcombine.low %v5936_v28, %v5952_v29 }
 0x498   :  { %12014 = vmatpush1.bf16.msra.mxu0 %v14196_v34  ;;  %v5967_v34 = vld [vmem:[#allocation11 + $0xe10] sm:$0xff] }
 0x499   :  { %12100 = vmatpush1.bf16.msra.mxu1 %v14198_v35  ;;  %12015 = vmatprep.subr.bf16.mxu0 %v14229_v36  ;;  %v5983_v35 = vld [vmem:[#allocation11 + $0xe90] sm:$0xff]  ;;  %v5968_v36 = vld [vmem:[#allocation11 + $0xe18] sm:$0xff] }
 0x49a   :  { %12101 = vmatprep.subr.bf16.mxu1 %v14231_v37  ;;  %v5984_v37 = vld [vmem:[#allocation11 + $0xe98] sm:$0xff]  ;;  %v14453_v57 = vcombine.high %v5967_v34, %v5983_v35  ;;  %v14452_v44 = vcombine.low %v5967_v34, %v5983_v35 }
 0x49b   :  { %v14455_v39 = vcombine.high %v5968_v36, %v5984_v37  ;;  %v14454_v45 = vcombine.low %v5968_v36, %v5984_v37 }
 0x49c   :  { %12016 = vmatpush1.bf16.msra.mxu0 %v14228_v40  ;;  %v5999_v40 = vld [vmem:[#allocation11 + $0xf10] sm:$0xff] }
 0x49d   :  { %12102 = vmatpush1.bf16.msra.mxu1 %v14230_v41  ;;  %12017 = vmatprep.subr.bf16.mxu0 %v14261_v42  ;;  %v6015_v41 = vld [vmem:[#allocation11 + $0xf90] sm:$0xff]  ;;  %v6000_v42 = vld [vmem:[#allocation11 + $0xf18] sm:$0xff] }
 0x49e   :  { %12103 = vmatprep.subr.bf16.mxu1 %v14263_v43  ;;  %v6016_v43 = vld [vmem:[#allocation11 + $0xf98] sm:$0xff]  ;;  %v14485_v46 = vcombine.high %v5999_v40, %v6015_v41  ;;  %v14484_v51 = vcombine.low %v5999_v40, %v6015_v41 }
 0x49f   :  { %v14487_v47 = vcombine.high %v6000_v42, %v6016_v43  ;;  %v14486_v52 = vcombine.low %v6000_v42, %v6016_v43 }
 0x4a0   :  { %12018 = vmatpush1.bf16.msra.mxu0 %v14260_v48  ;;  %v6031_v48 = vld [vmem:[#allocation11 + $0x1010] sm:$0xff] }
 0x4a1   :  { %12104 = vmatpush1.bf16.msra.mxu1 %v14262_v49  ;;  %12019 = vmatprep.subr.bf16.mxu0 %v14293_v2  ;;  %v6047_v49 = vld [vmem:[#allocation11 + $0x1090] sm:$0xff]  ;;  %v6032_v2 = vld [vmem:[#allocation11 + $0x1018] sm:$0xff] }
 0x4a2   :  { %12105 = vmatprep.subr.bf16.mxu1 %v14295_v50  ;;  %v6048_v50 = vld [vmem:[#allocation11 + $0x1098] sm:$0xff]  ;;  %v14517_v53 = vcombine.high %v6031_v48, %v6047_v49 }
 0x4a3   :  { %v14519_v55 = vcombine.high %v6032_v2, %v6048_v50  ;;  %v14518_v1 = vcombine.low %v6032_v2, %v6048_v50 }
 0x4a4   :  { %12020 = vmatpush1.bf16.msra.mxu0 %v14292_v58  ;;  %v6063_v58 = vld [vmem:[#allocation11 + $0x1110] sm:$0xff] }
 0x4a5   :  { %12106 = vmatpush1.bf16.msra.mxu1 %v14294_v59  ;;  %12021 = vmatprep.subr.bf16.mxu0 %v14325_v60  ;;  %v6079_v59 = vld [vmem:[#allocation11 + $0x1190] sm:$0xff]  ;;  %v14516_v60 = vcombine.low %v6031_v48, %v6047_v49 }
 0x4a6   :  { %12107 = vmatprep.subr.bf16.mxu1 %v14327_v63  ;;  %v6064_v63 = vld [vmem:[#allocation11 + $0x1118] sm:$0xff]  ;;  %v14549_v5 = vcombine.high %v6063_v58, %v6079_v59  ;;  %v14548_v16 = vcombine.low %v6063_v58, %v6079_v59 }
 0x4a7   :  { %v14550_v17 = vcombine.low %v6064_v63, %v6080_v0 }
 0x4a8   :  { %12022 = vmatpush1.bf16.msra.mxu0 %v14324_v10  ;;  %v6111_v10 = vld [vmem:[#allocation11 + $0x1290] sm:$0xff] }
 0x4a9   :  { %12108 = vmatpush1.bf16.msra.mxu1 %v14326_v11  ;;  %12023 = vmatprep.subr.bf16.mxu0 %v14357_v14  ;;  %v14551_v11 = vcombine.high %v6064_v63, %v6080_v0  ;;  %v6096_v14 = vld [vmem:[#allocation11 + $0x1218] sm:$0xff]  ;;  %v14581_v18 = vcombine.high %v6095_v9, %v6111_v10  ;;  %v14580_v54 = vcombine.low %v6095_v9, %v6111_v10  ;;  %v6287_v0 = vld [vmem:[#allocation11 + $0x1810] sm:$0xff] }
 0x4aa   :  { %12109 = vmatprep.subr.bf16.mxu1 %v14359_v15  ;;  %v6112_v15 = vld [vmem:[#allocation11 + $0x1298] sm:$0xff] }
 0x4ab   :  { %v14583_v19 = vcombine.high %v6096_v14, %v6112_v15  ;;  %v14582_v24 = vcombine.low %v6096_v14, %v6112_v15  ;;  %v6304_v9 = vld [vmem:[#allocation11 + $0x1898] sm:$0xff] }
 0x4ac   :  { %12024 = vmatpush1.bf16.msra.mxu0 %v14356_v20  ;;  %v6127_v20 = vld [vmem:[#allocation11 + $0x1310] sm:$0xff] }
 0x4ad   :  { %12110 = vmatpush1.bf16.msra.mxu1 %v14358_v21  ;;  %12025 = vmatprep.subr.bf16.mxu0 %v14389_v22  ;;  %v6143_v21 = vld [vmem:[#allocation11 + $0x1390] sm:$0xff]  ;;  %v6128_v22 = vld [vmem:[#allocation11 + $0x1318] sm:$0xff] }
 0x4ae   :  { %12111 = vmatprep.subr.bf16.mxu1 %v14391_v23  ;;  %v6144_v23 = vld [vmem:[#allocation11 + $0x1398] sm:$0xff]  ;;  %v14613_v28 = vcombine.high %v6127_v20, %v6143_v21  ;;  %v14612_v34 = vcombine.low %v6127_v20, %v6143_v21 }
 0x4af   :  { %v14615_v29 = vcombine.high %v6128_v22, %v6144_v23  ;;  %v14614_v35 = vcombine.low %v6128_v22, %v6144_v23 }
 0x4b0   :  { %12026 = vmatpush1.bf16.msra.mxu0 %v14388_v30  ;;  %v6159_v30 = vld [vmem:[#allocation11 + $0x1410] sm:$0xff] }
 0x4b1   :  { %12112 = vmatpush1.bf16.msra.mxu1 %v14390_v31  ;;  %12027 = vmatprep.subr.bf16.mxu0 %v14421_v32  ;;  %v6175_v31 = vld [vmem:[#allocation11 + $0x1490] sm:$0xff]  ;;  %v6160_v32 = vld [vmem:[#allocation11 + $0x1418] sm:$0xff] }
 0x4b2   :  { %12113 = vmatprep.subr.bf16.mxu1 %v14423_v33  ;;  %v6176_v33 = vld [vmem:[#allocation11 + $0x1498] sm:$0xff]  ;;  %v14645_v36 = vcombine.high %v6159_v30, %v6175_v31  ;;  %v14644_v40 = vcombine.low %v6159_v30, %v6175_v31 }
 0x4b3   :  { %v14647_v37 = vcombine.high %v6160_v32, %v6176_v33  ;;  %v14646_v41 = vcombine.low %v6160_v32, %v6176_v33 }
 0x4b4   :  { %12028 = vmatpush1.bf16.msra.mxu0 %v14420_v56  ;;  %v6191_v56 = vld [vmem:[#allocation11 + $0x1510] sm:$0xff] }
 0x4b5   :  { %12114 = vmatpush1.bf16.msra.mxu1 %v14422_v38  ;;  %12029 = vmatprep.subr.bf16.mxu0 %v14453_v57  ;;  %v6207_v38 = vld [vmem:[#allocation11 + $0x1590] sm:$0xff]  ;;  %v6192_v57 = vld [vmem:[#allocation11 + $0x1518] sm:$0xff] }
 0x4b6   :  { %12115 = vmatprep.subr.bf16.mxu1 %v14455_v39  ;;  %v6208_v39 = vld [vmem:[#allocation11 + $0x1598] sm:$0xff]  ;;  %v14677_v42 = vcombine.high %v6191_v56, %v6207_v38  ;;  %v14676_v48 = vcombine.low %v6191_v56, %v6207_v38 }
 0x4b7   :  { %v14679_v43 = vcombine.high %v6192_v57, %v6208_v39  ;;  %v14678_v49 = vcombine.low %v6192_v57, %v6208_v39 }
 0x4b8   :  { %12030 = vmatpush1.bf16.msra.mxu0 %v14452_v44  ;;  %v6223_v44 = vld [vmem:[#allocation11 + $0x1610] sm:$0xff] }
 0x4b9   :  { %12116 = vmatpush1.bf16.msra.mxu1 %v14454_v45  ;;  %12031 = vmatprep.subr.bf16.mxu0 %v14485_v46  ;;  %v6239_v45 = vld [vmem:[#allocation11 + $0x1690] sm:$0xff]  ;;  %v6224_v46 = vld [vmem:[#allocation11 + $0x1618] sm:$0xff] }
 0x4ba   :  { %12117 = vmatprep.subr.bf16.mxu1 %v14487_v47  ;;  %v6240_v47 = vld [vmem:[#allocation11 + $0x1698] sm:$0xff]  ;;  %v14709_v2 = vcombine.high %v6223_v44, %v6239_v45  ;;  %v14708_v58 = vcombine.low %v6223_v44, %v6239_v45 }
 0x4bb   :  { %v14711_v50 = vcombine.high %v6224_v46, %v6240_v47  ;;  %v14710_v59 = vcombine.low %v6224_v46, %v6240_v47 }
 0x4bc   :  { %12032 = vmatpush1.bf16.msra.mxu0 %v14484_v51  ;;  %v6255_v51 = vld [vmem:[#allocation11 + $0x1710] sm:$0xff] }
 0x4bd   :  { %12118 = vmatpush1.bf16.msra.mxu1 %v14486_v52  ;;  %12044 = vmatprep.subr.bf16.mxu0 %v14517_v53  ;;  %v6271_v52 = vld [vmem:[#allocation11 + $0x1790] sm:$0xff]  ;;  %v6256_v53 = vld [vmem:[#allocation11 + $0x1718] sm:$0xff] }
 0x4be   :  { %12130 = vmatprep.subr.bf16.mxu1 %v14519_v55  ;;  %v6272_v55 = vld [vmem:[#allocation11 + $0x1798] sm:$0xff]  ;;  %v14740_v10 = vcombine.low %v6255_v51, %v6271_v52 }
 0x4bf   :  { %12034 = vmatmul.mubr.bf16.vlgmr.msra.gmra.mrb[16].mxu0 %v16065_v7  ;;  %v14743_v63 = vcombine.high %v6256_v53, %v6272_v55 }
 0x4c0   :  { %12120 = vmatmul.mubr.bf16.vlgmr.msra.gmra.mrb[16].mxu1 %v16065_v7  ;;  %12045 = vmatpush1.bf16.msra.mxu0 %v14516_v60  ;;  %v14741_v60 = vcombine.high %v6255_v51, %v6271_v52 }
 0x4c1   :  { %12076 = vmatprep.mubr.bf16.mxu0 %v16071_v13  ;;  %12131 = vmatpush1.bf16.msra.mxu1 %v14518_v1  ;;  %v6303_v1 = vld [vmem:[#allocation11 + $0x1890] sm:$0xff] }
 0x4c2   :  { %12162 = vmatprep.mubr.bf16.mxu1 %v16071_v13  ;;  %12046 = vmatprep.subr.bf16.mxu0 %v14549_v5  ;;  %v6288_v5 = vld [vmem:[#allocation11 + $0x1818] sm:$0xff]  ;;  %v14773_v14 = vcombine.high %v6287_v0, %v6303_v1  ;;  %v14772_v20 = vcombine.low %v6287_v0, %v6303_v1 }
 0x4c3   :  { %12132 = vmatprep.subr.bf16.mxu1 %v14551_v11  ;;  %v14742_v11 = vcombine.low %v6256_v53, %v6272_v55  ;;  %v14775_v15 = vcombine.high %v6288_v5, %v6304_v9  ;;  %v14774_v21 = vcombine.low %v6288_v5, %v6304_v9 }
 0x4c4   :  { %12047 = vmatpush1.bf16.msra.mxu0 %v14548_v16  ;;  %v6319_v16 = vld [vmem:[#allocation11 + $0x1910] sm:$0xff] }
 0x4c5   :  { %12133 = vmatpush1.bf16.msra.mxu1 %v14550_v17  ;;  %12048 = vmatprep.subr.bf16.mxu0 %v14581_v18  ;;  %v6335_v17 = vld [vmem:[#allocation11 + $0x1990] sm:$0xff]  ;;  %v6320_v18 = vld [vmem:[#allocation11 + $0x1918] sm:$0xff] }
 0x4c6   :  { %12134 = vmatprep.subr.bf16.mxu1 %v14583_v19  ;;  %v6336_v19 = vld [vmem:[#allocation11 + $0x1998] sm:$0xff]  ;;  %v14805_v22 = vcombine.high %v6319_v16, %v6335_v17  ;;  %v14804_v30 = vcombine.low %v6319_v16, %v6335_v17 }
 0x4c7   :  { %v14807_v23 = vcombine.high %v6320_v18, %v6336_v19  ;;  %v14806_v31 = vcombine.low %v6320_v18, %v6336_v19 }
 0x4c8   :  { %12049 = vmatpush1.bf16.msra.mxu0 %v14580_v54  ;;  %v6351_v54 = vld [vmem:[#allocation11 + $0x1a10] sm:$0xff] }
 0x4c9   :  { %12135 = vmatpush1.bf16.msra.mxu1 %v14582_v24  ;;  %12050 = vmatprep.subr.bf16.mxu0 %v14613_v28  ;;  %v6367_v24 = vld [vmem:[#allocation11 + $0x1a90] sm:$0xff]  ;;  %v6352_v28 = vld [vmem:[#allocation11 + $0x1a18] sm:$0xff] }
 0x4ca   :  { %12136 = vmatprep.subr.bf16.mxu1 %v14615_v29  ;;  %v6368_v29 = vld [vmem:[#allocation11 + $0x1a98] sm:$0xff]  ;;  %v14837_v32 = vcombine.high %v6351_v54, %v6367_v24  ;;  %v14836_v56 = vcombine.low %v6351_v54, %v6367_v24 }
 0x4cb   :  { %v14839_v33 = vcombine.high %v6352_v28, %v6368_v29  ;;  %v14838_v38 = vcombine.low %v6352_v28, %v6368_v29 }
 0x4cc   :  { %12051 = vmatpush1.bf16.msra.mxu0 %v14612_v34  ;;  %v6383_v34 = vld [vmem:[#allocation11 + $0x1b10] sm:$0xff] }
 0x4cd   :  { %12137 = vmatpush1.bf16.msra.mxu1 %v14614_v35  ;;  %12052 = vmatprep.subr.bf16.mxu0 %v14645_v36  ;;  %v6399_v35 = vld [vmem:[#allocation11 + $0x1b90] sm:$0xff]  ;;  %v6384_v36 = vld [vmem:[#allocation11 + $0x1b18] sm:$0xff] }
 0x4ce   :  { %12138 = vmatprep.subr.bf16.mxu1 %v14647_v37  ;;  %v6400_v37 = vld [vmem:[#allocation11 + $0x1b98] sm:$0xff]  ;;  %v14869_v57 = vcombine.high %v6383_v34, %v6399_v35  ;;  %v14868_v44 = vcombine.low %v6383_v34, %v6399_v35  ;;  %v5570_v34 = vld [vmem:[#allocation11 + $0x1a8] sm:$0xff] }
 0x4cf   :  { %v14871_v39 = vcombine.high %v6384_v36, %v6400_v37  ;;  %v14870_v45 = vcombine.low %v6384_v36, %v6400_v37  ;;  %v5585_v37 = vld [vmem:[#allocation11 + $0x220] sm:$0xff] }
 0x4d0   :  { %12053 = vmatpush1.bf16.msra.mxu0 %v14644_v40  ;;  %v6415_v40 = vld [vmem:[#allocation11 + $0x1c10] sm:$0xff] }
 0x4d1   :  { %12139 = vmatpush1.bf16.msra.mxu1 %v14646_v41  ;;  %12054 = vmatprep.subr.bf16.mxu0 %v14677_v42  ;;  %v6431_v41 = vld [vmem:[#allocation11 + $0x1c90] sm:$0xff]  ;;  %v6416_v42 = vld [vmem:[#allocation11 + $0x1c18] sm:$0xff] }
 0x4d2   :  { %12140 = vmatprep.subr.bf16.mxu1 %v14679_v43  ;;  %v6432_v43 = vld [vmem:[#allocation11 + $0x1c98] sm:$0xff]  ;;  %v14901_v46 = vcombine.high %v6415_v40, %v6431_v41  ;;  %v14900_v51 = vcombine.low %v6415_v40, %v6431_v41 }
 0x4d3   :  { %v14903_v47 = vcombine.high %v6416_v42, %v6432_v43  ;;  %v14902_v52 = vcombine.low %v6416_v42, %v6432_v43 }
 0x4d4   :  { %12055 = vmatpush1.bf16.msra.mxu0 %v14676_v48  ;;  %v6447_v48 = vld [vmem:[#allocation11 + $0x1d10] sm:$0xff] }
 0x4d5   :  { %12141 = vmatpush1.bf16.msra.mxu1 %v14678_v49  ;;  %12056 = vmatprep.subr.bf16.mxu0 %v14709_v2  ;;  %v6463_v49 = vld [vmem:[#allocation11 + $0x1d90] sm:$0xff]  ;;  %v6448_v2 = vld [vmem:[#allocation11 + $0x1d18] sm:$0xff] }
 0x4d6   :  { %12142 = vmatprep.subr.bf16.mxu1 %v14711_v50  ;;  %v6464_v50 = vld [vmem:[#allocation11 + $0x1d98] sm:$0xff]  ;;  %v14933_v53 = vcombine.high %v6447_v48, %v6463_v49  ;;  %v14932_v0 = vcombine.low %v6447_v48, %v6463_v49 }
 0x4d7   :  { %v14935_v55 = vcombine.high %v6448_v2, %v6464_v50  ;;  %v14934_v1 = vcombine.low %v6448_v2, %v6464_v50 }
 0x4d8   :  { %12057 = vmatpush1.bf16.msra.mxu0 %v14708_v58  ;;  %v6479_v58 = vld [vmem:[#allocation11 + $0x1e10] sm:$0xff] }
 0x4d9   :  { %12143 = vmatpush1.bf16.msra.mxu1 %v14710_v59  ;;  %12058 = vmatprep.subr.bf16.mxu0 %v14741_v60  ;;  %v6495_v59 = vld [vmem:[#allocation11 + $0x1e90] sm:$0xff]  ;;  %v6480_v60 = vld [vmem:[#allocation11 + $0x1e18] sm:$0xff] }
 0x4da   :  { %12144 = vmatprep.subr.bf16.mxu1 %v14743_v63  ;;  %v6496_v63 = vld [vmem:[#allocation11 + $0x1e98] sm:$0xff]  ;;  %v14965_v5 = vcombine.high %v6479_v58, %v6495_v59  ;;  %v14964_v16 = vcombine.low %v6479_v58, %v6495_v59 }
 0x4db   :  { %v14967_v9 = vcombine.high %v6480_v60, %v6496_v63  ;;  %v14966_v17 = vcombine.low %v6480_v60, %v6496_v63 }
 0x4dc   :  { %12059 = vmatpush1.bf16.msra.mxu0 %v14740_v10  ;;  %v6511_v10 = vld [vmem:[#allocation11 + $0x1f10] sm:$0xff] }
 0x4dd   :  { %12145 = vmatpush1.bf16.msra.mxu1 %v14742_v11  ;;  %12060 = vmatprep.subr.bf16.mxu0 %v14773_v14  ;;  %v6527_v11 = vld [vmem:[#allocation11 + $0x1f90] sm:$0xff]  ;;  %v6512_v14 = vld [vmem:[#allocation11 + $0x1f18] sm:$0xff] }
 0x4de   :  { %12146 = vmatprep.subr.bf16.mxu1 %v14775_v15  ;;  %v6528_v15 = vld [vmem:[#allocation11 + $0x1f98] sm:$0xff]  ;;  %v14997_v18 = vcombine.high %v6511_v10, %v6527_v11  ;;  %v14996_v54 = vcombine.low %v6511_v10, %v6527_v11 }
 0x4df   :  { %v14999_v19 = vcombine.high %v6512_v14, %v6528_v15  ;;  %v14998_v24 = vcombine.low %v6512_v14, %v6528_v15 }
 0x4e0   :  { %12061 = vmatpush1.bf16.msra.mxu0 %v14772_v20  ;;  %v5521_v20 = vld [vmem:[#allocation11 + $0x20] sm:$0xff] }
 0x4e1   :  { %12147 = vmatpush1.bf16.msra.mxu1 %v14774_v21  ;;  %12062 = vmatprep.subr.bf16.mxu0 %v14805_v22  ;;  %v5537_v21 = vld [vmem:[#allocation11 + $0xa0] sm:$0xff]  ;;  %v5522_v22 = vld [vmem:[#allocation11 + $0x28] sm:$0xff] }
 0x4e2   :  { %12148 = vmatprep.subr.bf16.mxu1 %v14807_v23  ;;  %v5538_v23 = vld [vmem:[#allocation11 + $0xa8] sm:$0xff]  ;;  %v14009_v28 = vcombine.high %v5521_v20, %v5537_v21 }
 0x4e3   :  { %v14011_v29 = vcombine.high %v5522_v22, %v5538_v23  ;;  %v14010_v35 = vcombine.low %v5522_v22, %v5538_v23 }
 0x4e4   :  { %12063 = vmatpush1.bf16.msra.mxu0 %v14804_v30  ;;  %v5553_v30 = vld [vmem:[#allocation11 + $0x120] sm:$0xff] }
 0x4e5   :  { %12149 = vmatpush1.bf16.msra.mxu1 %v14806_v31  ;;  %12064 = vmatprep.subr.bf16.mxu0 %v14837_v32  ;;  %v5569_v31 = vld [vmem:[#allocation11 + $0x1a0] sm:$0xff]  ;;  %v14008_v32 = vcombine.low %v5521_v20, %v5537_v21 }
 0x4e6   :  { %12150 = vmatprep.subr.bf16.mxu1 %v14839_v33  ;;  %v5554_v33 = vld [vmem:[#allocation11 + $0x128] sm:$0xff]  ;;  %v14041_v36 = vcombine.high %v5553_v30, %v5569_v31  ;;  %v14040_v40 = vcombine.low %v5553_v30, %v5569_v31 }
 0x4e7   :  { %v14042_v41 = vcombine.low %v5554_v33, %v5570_v34 }
 0x4e8   :  { %12065 = vmatpush1.bf16.msra.mxu0 %v14836_v56  ;;  %v5601_v56 = vld [vmem:[#allocation11 + $0x2a0] sm:$0xff] }
 0x4e9   :  { %12151 = vmatpush1.bf16.msra.mxu1 %v14838_v38  ;;  %12066 = vmatprep.subr.bf16.mxu0 %v14869_v57  ;;  %v14043_v38 = vcombine.high %v5554_v33, %v5570_v34  ;;  %v5586_v57 = vld [vmem:[#allocation11 + $0x228] sm:$0xff]  ;;  %v14073_v42 = vcombine.high %v5585_v37, %v5601_v56  ;;  %v14072_v48 = vcombine.low %v5585_v37, %v5601_v56  ;;  %v5777_v34 = vld [vmem:[#allocation11 + $0x820] sm:$0xff] }
 0x4ea   :  { %12152 = vmatprep.subr.bf16.mxu1 %v14871_v39  ;;  %v5602_v39 = vld [vmem:[#allocation11 + $0x2a8] sm:$0xff] }
 0x4eb   :  { %v14075_v43 = vcombine.high %v5586_v57, %v5602_v39  ;;  %v14074_v49 = vcombine.low %v5586_v57, %v5602_v39  ;;  %v5794_v37 = vld [vmem:[#allocation11 + $0x8a8] sm:$0xff] }
 0x4ec   :  { %12067 = vmatpush1.bf16.msra.mxu0 %v14868_v44  ;;  %v5617_v44 = vld [vmem:[#allocation11 + $0x320] sm:$0xff] }
 0x4ed   :  { %12153 = vmatpush1.bf16.msra.mxu1 %v14870_v45  ;;  %12068 = vmatprep.subr.bf16.mxu0 %v14901_v46  ;;  %v5633_v45 = vld [vmem:[#allocation11 + $0x3a0] sm:$0xff]  ;;  %v5618_v46 = vld [vmem:[#allocation11 + $0x328] sm:$0xff] }
 0x4ee   :  { %12154 = vmatprep.subr.bf16.mxu1 %v14903_v47  ;;  %v5634_v47 = vld [vmem:[#allocation11 + $0x3a8] sm:$0xff]  ;;  %v14105_v2 = vcombine.high %v5617_v44, %v5633_v45  ;;  %v14104_v58 = vcombine.low %v5617_v44, %v5633_v45 }
 0x4ef   :  { %v14107_v50 = vcombine.high %v5618_v46, %v5634_v47  ;;  %v14106_v59 = vcombine.low %v5618_v46, %v5634_v47 }
 0x4f0   :  { %12069 = vmatpush1.bf16.msra.mxu0 %v14900_v51  ;;  %v5649_v51 = vld [vmem:[#allocation11 + $0x420] sm:$0xff] }
 0x4f1   :  { %12155 = vmatpush1.bf16.msra.mxu1 %v14902_v52  ;;  %12070 = vmatprep.subr.bf16.mxu0 %v14933_v53  ;;  %v5665_v52 = vld [vmem:[#allocation11 + $0x4a0] sm:$0xff]  ;;  %v5650_v53 = vld [vmem:[#allocation11 + $0x428] sm:$0xff] }
 0x4f2   :  { %12156 = vmatprep.subr.bf16.mxu1 %v14935_v55  ;;  %v5666_v55 = vld [vmem:[#allocation11 + $0x4a8] sm:$0xff]  ;;  %v14137_v60 = vcombine.high %v5649_v51, %v5665_v52  ;;  %v14136_v10 = vcombine.low %v5649_v51, %v5665_v52 }
 0x4f3   :  { %v14139_v63 = vcombine.high %v5650_v53, %v5666_v55  ;;  %v14138_v11 = vcombine.low %v5650_v53, %v5666_v55 }
 0x4f4   :  { %12071 = vmatpush1.bf16.msra.mxu0 %v14932_v0  ;;  %v5681_v0 = vld [vmem:[#allocation11 + $0x520] sm:$0xff] }
 0x4f5   :  { %12157 = vmatpush1.bf16.msra.mxu1 %v14934_v1  ;;  %12072 = vmatprep.subr.bf16.mxu0 %v14965_v5  ;;  %v5697_v1 = vld [vmem:[#allocation11 + $0x5a0] sm:$0xff]  ;;  %v5682_v5 = vld [vmem:[#allocation11 + $0x528] sm:$0xff] }
 0x4f6   :  { %12158 = vmatprep.subr.bf16.mxu1 %v14967_v9  ;;  %v5698_v9 = vld [vmem:[#allocation11 + $0x5a8] sm:$0xff]  ;;  %v14169_v14 = vcombine.high %v5681_v0, %v5697_v1  ;;  %v14168_v20 = vcombine.low %v5681_v0, %v5697_v1 }
 0x4f7   :  { %v14171_v15 = vcombine.high %v5682_v5, %v5698_v9  ;;  %v14170_v21 = vcombine.low %v5682_v5, %v5698_v9 }
 0x4f8   :  { %12073 = vmatpush1.bf16.msra.mxu0 %v14964_v16  ;;  %v5713_v16 = vld [vmem:[#allocation11 + $0x620] sm:$0xff] }
 0x4f9   :  { %12159 = vmatpush1.bf16.msra.mxu1 %v14966_v17  ;;  %12074 = vmatprep.subr.bf16.mxu0 %v14997_v18  ;;  %v5729_v17 = vld [vmem:[#allocation11 + $0x6a0] sm:$0xff]  ;;  %v5714_v18 = vld [vmem:[#allocation11 + $0x628] sm:$0xff] }
 0x4fa   :  { %12160 = vmatprep.subr.bf16.mxu1 %v14999_v19  ;;  %v5730_v19 = vld [vmem:[#allocation11 + $0x6a8] sm:$0xff]  ;;  %v14201_v22 = vcombine.high %v5713_v16, %v5729_v17  ;;  %v14200_v30 = vcombine.low %v5713_v16, %v5729_v17 }
 0x4fb   :  { %v14203_v23 = vcombine.high %v5714_v18, %v5730_v19  ;;  %v14202_v31 = vcombine.low %v5714_v18, %v5730_v19 }
 0x4fc   :  { %12075 = vmatpush1.bf16.msra.mxu0 %v14996_v54  ;;  %v5745_v54 = vld [vmem:[#allocation11 + $0x720] sm:$0xff] }
 0x4fd   :  { %12161 = vmatpush1.bf16.msra.mxu1 %v14998_v24  ;;  %12173 = vmatprep.subr.bf16.mxu0 %v14009_v28  ;;  %v5761_v24 = vld [vmem:[#allocation11 + $0x7a0] sm:$0xff]  ;;  %v5746_v28 = vld [vmem:[#allocation11 + $0x728] sm:$0xff] }
 0x4fe   :  { %12259 = vmatprep.subr.bf16.mxu1 %v14011_v29  ;;  %v5762_v29 = vld [vmem:[#allocation11 + $0x7a8] sm:$0xff]  ;;  %v14232_v56 = vcombine.low %v5745_v54, %v5761_v24 }
 0x4ff   :  { %12077 = vmatmul.mubr.bf16.vlgmr.msra.gmra.mrb[16].mxu0 %v16067_v8  ;;  %v14235_v33 = vcombine.high %v5746_v28, %v5762_v29 }
 0x500   :  { %12163 = vmatmul.mubr.bf16.vlgmr.msra.gmra.mrb[16].mxu1 %v16067_v8  ;;  %12174 = vmatpush1.bf16.msra.mxu0 %v14008_v32  ;;  %v14233_v32 = vcombine.high %v5745_v54, %v5761_v24 }
 0x501   :  { %12205 = vmatprep.mubr.bf16.mxu0 %v16069_v12  ;;  %12260 = vmatpush1.bf16.msra.mxu1 %v14010_v35  ;;  %v5793_v35 = vld [vmem:[#allocation11 + $0x8a0] sm:$0xff] }
 0x502   :  { %12291 = vmatprep.mubr.bf16.mxu1 %v16069_v12  ;;  %12175 = vmatprep.subr.bf16.mxu0 %v14041_v36  ;;  %v5778_v36 = vld [vmem:[#allocation11 + $0x828] sm:$0xff]  ;;  %v14265_v57 = vcombine.high %v5777_v34, %v5793_v35  ;;  %v14264_v44 = vcombine.low %v5777_v34, %v5793_v35 }
 0x503   :  { %12261 = vmatprep.subr.bf16.mxu1 %v14043_v38  ;;  %v14234_v38 = vcombine.low %v5746_v28, %v5762_v29  ;;  %v14267_v39 = vcombine.high %v5778_v36, %v5794_v37  ;;  %v14266_v45 = vcombine.low %v5778_v36, %v5794_v37 }
 0x504   :  { %12176 = vmatpush1.bf16.msra.mxu0 %v14040_v40  ;;  %v5809_v40 = vld [vmem:[#allocation11 + $0x920] sm:$0xff] }
 0x505   :  { %12262 = vmatpush1.bf16.msra.mxu1 %v14042_v41  ;;  %12177 = vmatprep.subr.bf16.mxu0 %v14073_v42  ;;  %v5825_v41 = vld [vmem:[#allocation11 + $0x9a0] sm:$0xff]  ;;  %v5810_v42 = vld [vmem:[#allocation11 + $0x928] sm:$0xff] }
 0x506   :  { %12263 = vmatprep.subr.bf16.mxu1 %v14075_v43  ;;  %v5826_v43 = vld [vmem:[#allocation11 + $0x9a8] sm:$0xff]  ;;  %v14297_v46 = vcombine.high %v5809_v40, %v5825_v41  ;;  %v14296_v51 = vcombine.low %v5809_v40, %v5825_v41 }
 0x507   :  { %v14299_v47 = vcombine.high %v5810_v42, %v5826_v43  ;;  %v14298_v52 = vcombine.low %v5810_v42, %v5826_v43 }
 0x508   :  { %12178 = vmatpush1.bf16.msra.mxu0 %v14072_v48  ;;  %v5841_v48 = vld [vmem:[#allocation11 + $0xa20] sm:$0xff] }
 0x509   :  { %12264 = vmatpush1.bf16.msra.mxu1 %v14074_v49  ;;  %12179 = vmatprep.subr.bf16.mxu0 %v14105_v2  ;;  %v5857_v49 = vld [vmem:[#allocation11 + $0xaa0] sm:$0xff]  ;;  %v5842_v2 = vld [vmem:[#allocation11 + $0xa28] sm:$0xff] }
 0x50a   :  { %12265 = vmatprep.subr.bf16.mxu1 %v14107_v50  ;;  %v5858_v50 = vld [vmem:[#allocation11 + $0xaa8] sm:$0xff]  ;;  %v14329_v53 = vcombine.high %v5841_v48, %v5857_v49  ;;  %v14328_v0 = vcombine.low %v5841_v48, %v5857_v49 }
 0x50b   :  { %v14331_v55 = vcombine.high %v5842_v2, %v5858_v50  ;;  %v14330_v1 = vcombine.low %v5842_v2, %v5858_v50 }
 0x50c   :  { %12180 = vmatpush1.bf16.msra.mxu0 %v14104_v58  ;;  %v5873_v58 = vld [vmem:[#allocation11 + $0xb20] sm:$0xff] }
 0x50d   :  { %12266 = vmatpush1.bf16.msra.mxu1 %v14106_v59  ;;  %12181 = vmatprep.subr.bf16.mxu0 %v14137_v60  ;;  %v5889_v59 = vld [vmem:[#allocation11 + $0xba0] sm:$0xff]  ;;  %v5874_v60 = vld [vmem:[#allocation11 + $0xb28] sm:$0xff] }
 0x50e   :  { %12267 = vmatprep.subr.bf16.mxu1 %v14139_v63  ;;  %v5890_v63 = vld [vmem:[#allocation11 + $0xba8] sm:$0xff]  ;;  %v14361_v5 = vcombine.high %v5873_v58, %v5889_v59  ;;  %v14360_v16 = vcombine.low %v5873_v58, %v5889_v59 }
 0x50f   :  { %v14363_v9 = vcombine.high %v5874_v60, %v5890_v63  ;;  %v14362_v17 = vcombine.low %v5874_v60, %v5890_v63  ;;  %v6082_v58 = vld [vmem:[#allocation11 + $0x11a8] sm:$0xff]  ;;  %v6097_v63 = vld [vmem:[#allocation11 + $0x1220] sm:$0xff] }
 0x510   :  { %12182 = vmatpush1.bf16.msra.mxu0 %v14136_v10  ;;  %v5905_v10 = vld [vmem:[#allocation11 + $0xc20] sm:$0xff] }
 0x511   :  { %12268 = vmatpush1.bf16.msra.mxu1 %v14138_v11  ;;  %12183 = vmatprep.subr.bf16.mxu0 %v14169_v14  ;;  %v5921_v11 = vld [vmem:[#allocation11 + $0xca0] sm:$0xff]  ;;  %v5906_v14 = vld [vmem:[#allocation11 + $0xc28] sm:$0xff] }
 0x512   :  { %12269 = vmatprep.subr.bf16.mxu1 %v14171_v15  ;;  %v5922_v15 = vld [vmem:[#allocation11 + $0xca8] sm:$0xff]  ;;  %v14393_v18 = vcombine.high %v5905_v10, %v5921_v11  ;;  %v14392_v54 = vcombine.low %v5905_v10, %v5921_v11 }
 0x513   :  { %v14395_v19 = vcombine.high %v5906_v14, %v5922_v15  ;;  %v14394_v24 = vcombine.low %v5906_v14, %v5922_v15 }
 0x514   :  { %12184 = vmatpush1.bf16.msra.mxu0 %v14168_v20  ;;  %v5937_v20 = vld [vmem:[#allocation11 + $0xd20] sm:$0xff] }
 0x515   :  { %12270 = vmatpush1.bf16.msra.mxu1 %v14170_v21  ;;  %12185 = vmatprep.subr.bf16.mxu0 %v14201_v22  ;;  %v5953_v21 = vld [vmem:[#allocation11 + $0xda0] sm:$0xff]  ;;  %v5938_v22 = vld [vmem:[#allocation11 + $0xd28] sm:$0xff] }
 0x516   :  { %12271 = vmatprep.subr.bf16.mxu1 %v14203_v23  ;;  %v5954_v23 = vld [vmem:[#allocation11 + $0xda8] sm:$0xff]  ;;  %v14425_v28 = vcombine.high %v5937_v20, %v5953_v21  ;;  %v14424_v34 = vcombine.low %v5937_v20, %v5953_v21 }
 0x517   :  { %v14427_v29 = vcombine.high %v5938_v22, %v5954_v23  ;;  %v14426_v35 = vcombine.low %v5938_v22, %v5954_v23 }
 0x518   :  { %12186 = vmatpush1.bf16.msra.mxu0 %v14200_v30  ;;  %v5969_v30 = vld [vmem:[#allocation11 + $0xe20] sm:$0xff] }
 0x519   :  { %12272 = vmatpush1.bf16.msra.mxu1 %v14202_v31  ;;  %12187 = vmatprep.subr.bf16.mxu0 %v14233_v32  ;;  %v5985_v31 = vld [vmem:[#allocation11 + $0xea0] sm:$0xff]  ;;  %v5970_v32 = vld [vmem:[#allocation11 + $0xe28] sm:$0xff] }
 0x51a   :  { %12273 = vmatprep.subr.bf16.mxu1 %v14235_v33  ;;  %v5986_v33 = vld [vmem:[#allocation11 + $0xea8] sm:$0xff]  ;;  %v14457_v36 = vcombine.high %v5969_v30, %v5985_v31  ;;  %v14456_v40 = vcombine.low %v5969_v30, %v5985_v31 }
 0x51b   :  { %v14459_v37 = vcombine.high %v5970_v32, %v5986_v33  ;;  %v14458_v41 = vcombine.low %v5970_v32, %v5986_v33 }
 0x51c   :  { %12188 = vmatpush1.bf16.msra.mxu0 %v14232_v56  ;;  %v6001_v56 = vld [vmem:[#allocation11 + $0xf20] sm:$0xff] }
 0x51d   :  { %12274 = vmatpush1.bf16.msra.mxu1 %v14234_v38  ;;  %12189 = vmatprep.subr.bf16.mxu0 %v14265_v57  ;;  %v6017_v38 = vld [vmem:[#allocation11 + $0xfa0] sm:$0xff]  ;;  %v6002_v57 = vld [vmem:[#allocation11 + $0xf28] sm:$0xff] }
 0x51e   :  { %12275 = vmatprep.subr.bf16.mxu1 %v14267_v39  ;;  %v6018_v39 = vld [vmem:[#allocation11 + $0xfa8] sm:$0xff]  ;;  %v14489_v42 = vcombine.high %v6001_v56, %v6017_v38  ;;  %v14488_v48 = vcombine.low %v6001_v56, %v6017_v38  ;;  %v16095_v38 = vld [vmem:[#allocation13] sm:$0xff] }
 0x51f   :  { %v14491_v43 = vcombine.high %v6002_v57, %v6018_v39  ;;  %v14490_v49 = vcombine.low %v6002_v57, %v6018_v39 }
 0x520   :  { %12190 = vmatpush1.bf16.msra.mxu0 %v14264_v44  ;;  %v6033_v44 = vld [vmem:[#allocation11 + $0x1020] sm:$0xff] }
 0x521   :  { %12276 = vmatpush1.bf16.msra.mxu1 %v14266_v45  ;;  %12191 = vmatprep.subr.bf16.mxu0 %v14297_v46  ;;  %v6049_v45 = vld [vmem:[#allocation11 + $0x10a0] sm:$0xff]  ;;  %v6034_v46 = vld [vmem:[#allocation11 + $0x1028] sm:$0xff] }
 0x522   :  { %12277 = vmatprep.subr.bf16.mxu1 %v14299_v47  ;;  %v6050_v47 = vld [vmem:[#allocation11 + $0x10a8] sm:$0xff]  ;;  %v14521_v2 = vcombine.high %v6033_v44, %v6049_v45 }
 0x523   :  { %v14523_v50 = vcombine.high %v6034_v46, %v6050_v47  ;;  %v14522_v59 = vcombine.low %v6034_v46, %v6050_v47  ;;  %v6242_v46 = vld [vmem:[#allocation11 + $0x16a8] sm:$0xff]  ;;  %v6556_v47 = vrot.slane %v16095_v38, %v16012_v4 }
 0x524   :  { %12192 = vmatpush1.bf16.msra.mxu0 %v14296_v51  ;;  %v6065_v51 = vld [vmem:[#allocation11 + $0x1120] sm:$0xff] }
 0x525   :  { %12278 = vmatpush1.bf16.msra.mxu1 %v14298_v52  ;;  %12193 = vmatprep.subr.bf16.mxu0 %v14329_v53  ;;  %v6081_v52 = vld [vmem:[#allocation11 + $0x11a0] sm:$0xff]  ;;  %v14520_v53 = vcombine.low %v6033_v44, %v6049_v45  ;;  %v6560_v44 = vrot.slane %v16095_v38, %v16009_v3  ;;  %v6226_v45 = vld [vmem:[#allocation11 + $0x1628] sm:$0xff] }
 0x526   :  { %12279 = vmatprep.subr.bf16.mxu1 %v14331_v55  ;;  %v6066_v55 = vld [vmem:[#allocation11 + $0x1128] sm:$0xff]  ;;  %v14553_v60 = vcombine.high %v6065_v51, %v6081_v52  ;;  %v14552_v10 = vcombine.low %v6065_v51, %v6081_v52 }
 0x527   :  { %v14554_v11 = vcombine.low %v6066_v55, %v6082_v58 }
 0x528   :  { %12194 = vmatpush1.bf16.msra.mxu0 %v14328_v0  ;;  %v6113_v0 = vld [vmem:[#allocation11 + $0x12a0] sm:$0xff] }
 0x529   :  { %12280 = vmatpush1.bf16.msra.mxu1 %v14330_v1  ;;  %12195 = vmatprep.subr.bf16.mxu0 %v14361_v5  ;;  %v14555_v1 = vcombine.high %v6066_v55, %v6082_v58  ;;  %v6098_v5 = vld [vmem:[#allocation11 + $0x1228] sm:$0xff]  ;;  %v14585_v14 = vcombine.high %v6097_v63, %v6113_v0  ;;  %v14584_v20 = vcombine.low %v6097_v63, %v6113_v0  ;;  %v6257_v55 = vld [vmem:[#allocation11 + $0x1720] sm:$0xff] }
 0x52a   :  { %12281 = vmatprep.subr.bf16.mxu1 %v14363_v9  ;;  %v6114_v9 = vld [vmem:[#allocation11 + $0x12a8] sm:$0xff]  ;;  %v6273_v58 = vld [vmem:[#allocation11 + $0x17a0] sm:$0xff] }
 0x52b   :  { %v14587_v15 = vcombine.high %v6098_v5, %v6114_v9  ;;  %v14586_v21 = vcombine.low %v6098_v5, %v6114_v9  ;;  %v6274_v5 = vld [vmem:[#allocation11 + $0x17a8] sm:$0xff] }
 0x52c   :  { %12196 = vmatpush1.bf16.msra.mxu0 %v14360_v16  ;;  %v6129_v16 = vld [vmem:[#allocation11 + $0x1320] sm:$0xff] }
 0x52d   :  { %12282 = vmatpush1.bf16.msra.mxu1 %v14362_v17  ;;  %12197 = vmatprep.subr.bf16.mxu0 %v14393_v18  ;;  %v6145_v17 = vld [vmem:[#allocation11 + $0x13a0] sm:$0xff]  ;;  %v6130_v18 = vld [vmem:[#allocation11 + $0x1328] sm:$0xff] }
 0x52e   :  { %12283 = vmatprep.subr.bf16.mxu1 %v14395_v19  ;;  %v6146_v19 = vld [vmem:[#allocation11 + $0x13a8] sm:$0xff]  ;;  %v14617_v22 = vcombine.high %v6129_v16, %v6145_v17  ;;  %v14616_v30 = vcombine.low %v6129_v16, %v6145_v17  ;;  %v14714_v16 = vcombine.low %v6226_v45, %v6242_v46 }
 0x52f   :  { %v14619_v23 = vcombine.high %v6130_v18, %v6146_v19  ;;  %v14618_v31 = vcombine.low %v6130_v18, %v6146_v19 }
 0x530   :  { %12198 = vmatpush1.bf16.msra.mxu0 %v14392_v54  ;;  %v6161_v54 = vld [vmem:[#allocation11 + $0x1420] sm:$0xff] }
 0x531   :  { %12284 = vmatpush1.bf16.msra.mxu1 %v14394_v24  ;;  %12199 = vmatprep.subr.bf16.mxu0 %v14425_v28  ;;  %v6177_v24 = vld [vmem:[#allocation11 + $0x14a0] sm:$0xff]  ;;  %v6162_v28 = vld [vmem:[#allocation11 + $0x1428] sm:$0xff] }
 0x532   :  { %12285 = vmatprep.subr.bf16.mxu1 %v14427_v29  ;;  %v6178_v29 = vld [vmem:[#allocation11 + $0x14a8] sm:$0xff]  ;;  %v14649_v32 = vcombine.high %v6161_v54, %v6177_v24  ;;  %v14648_v56 = vcombine.low %v6161_v54, %v6177_v24  ;;  %v6289_v24 = vld [vmem:[#allocation11 + $0x1820] sm:$0xff] }
 0x533   :  { %v14651_v33 = vcombine.high %v6162_v28, %v6178_v29  ;;  %v14650_v57 = vcombine.low %v6162_v28, %v6178_v29  ;;  %v6305_v28 = vld [vmem:[#allocation11 + $0x18a0] sm:$0xff]  ;;  %v6290_v29 = vld [vmem:[#allocation11 + $0x1828] sm:$0xff] }
 0x534   :  { %12200 = vmatpush1.bf16.msra.mxu0 %v14424_v34  ;;  %v6193_v34 = vld [vmem:[#allocation11 + $0x1520] sm:$0xff] }
 0x535   :  { %12286 = vmatpush1.bf16.msra.mxu1 %v14426_v35  ;;  %12201 = vmatprep.subr.bf16.mxu0 %v14457_v36  ;;  %v6209_v35 = vld [vmem:[#allocation11 + $0x15a0] sm:$0xff]  ;;  %v6194_v36 = vld [vmem:[#allocation11 + $0x1528] sm:$0xff] }
 0x536   :  { %12287 = vmatprep.subr.bf16.mxu1 %v14459_v37  ;;  %v6210_v37 = vld [vmem:[#allocation11 + $0x15a8] sm:$0xff]  ;;  %v14681_v39 = vcombine.high %v6193_v34, %v6209_v35 }
 0x538   :  { %12202 = vmatpush1.bf16.msra.mxu0 %v14456_v40  ;;  %v14683_v40 = vcombine.high %v6194_v36, %v6210_v37 }
 0x539   :  { %12288 = vmatpush1.bf16.msra.mxu1 %v14458_v41  ;;  %12203 = vmatprep.subr.bf16.mxu0 %v14489_v42  ;;  %v6225_v41 = vld [vmem:[#allocation11 + $0x1620] sm:$0xff] }
 0x53a   :  { %12289 = vmatprep.subr.bf16.mxu1 %v14491_v43  ;;  %v6241_v42 = vld [vmem:[#allocation11 + $0x16a0] sm:$0xff]  ;;  %v6552_v43 = vrot.slane %v16095_v38, %v16004_v62 }
 0x53c   :  { %12204 = vmatpush1.bf16.msra.mxu0 %v14488_v48  ;;  %v6564_v48 = vrot.slane %v16095_v38, %v16015_v6 }
 0x53d   :  { %12290 = vmatpush1.bf16.msra.mxu1 %v14490_v49  ;;  %12216 = vmatprep.subr.bf16.mxu0 %v14521_v2  ;;  %v14680_v49 = vcombine.low %v6193_v34, %v6209_v35  ;;  %v14682_v2 = vcombine.low %v6194_v36, %v6210_v37  ;;  %v6321_v35 = vld [vmem:[#allocation11 + $0x1920] sm:$0xff]  ;;  %v6322_v37 = vld [vmem:[#allocation11 + $0x1928] sm:$0xff] }
 0x53e   :  { %12302 = vmatprep.subr.bf16.mxu1 %v14523_v50  ;;  %v14713_v50 = vcombine.high %v6225_v41, %v6241_v42  ;;  %v6337_v36 = vld [vmem:[#allocation11 + $0x19a0] sm:$0xff] }
 0x53f   :  { %12206 = vmatmul.mubr.bf16.vlgmr.msra.gmra.mrb[20].mxu0 %v16065_v7 }
 0x540   :  { %12292 = vmatmul.mubr.bf16.vlgmr.msra.gmra.mrb[20].mxu1 %v16065_v7  ;;  %12217 = vmatpush1.bf16.msra.mxu0 %v14520_v53  ;;  %v14715_v53 = vcombine.high %v6226_v45, %v6242_v46  ;;  %v6370_v45 = vld [vmem:[#allocation11 + $0x1aa8] sm:$0xff]  ;;  %v14808_v46 = vcombine.low %v6321_v35, %v6337_v36 }
 0x541   :  { %12248 = vmatprep.mubr.bf16.mxu0 %v16071_v13  ;;  %12303 = vmatpush1.bf16.msra.mxu1 %v14522_v59 }
 0x542   :  { %12334 = vmatprep.mubr.bf16.mxu1 %v16071_v13  ;;  %12218 = vmatprep.subr.bf16.mxu0 %v14553_v60 }
 0x543   :  { %12304 = vmatprep.subr.bf16.mxu1 %v14555_v1  ;;  %v6258_v1 = vld [vmem:[#allocation11 + $0x1728] sm:$0xff] }
 0x544   :  { %12219 = vmatpush1.bf16.msra.mxu0 %v14552_v10  ;;  %v14747_v54 = vcombine.high %v6258_v1, %v6274_v5 }
 0x545   :  { %12305 = vmatpush1.bf16.msra.mxu1 %v14554_v11  ;;  %12220 = vmatprep.subr.bf16.mxu0 %v14585_v14 }
 0x546   :  { %12306 = vmatprep.subr.bf16.mxu1 %v14587_v15  ;;  %v14712_v15 = vcombine.low %v6225_v41, %v6241_v42  ;;  %v6353_v42 = vld [vmem:[#allocation11 + $0x1a20] sm:$0xff] }
 0x548   :  { %12221 = vmatpush1.bf16.msra.mxu0 %v14584_v20 }
 0x549   :  { %12307 = vmatpush1.bf16.msra.mxu1 %v14586_v21  ;;  %12222 = vmatprep.subr.bf16.mxu0 %v14617_v22  ;;  %v14745_v21 = vcombine.high %v6257_v55, %v6273_v58 }
 0x54a   :  { %12308 = vmatprep.subr.bf16.mxu1 %v14619_v23 }
 0x54c   :  { %12223 = vmatpush1.bf16.msra.mxu0 %v14616_v30  ;;  %v6306_v30 = vld [vmem:[#allocation11 + $0x18a8] sm:$0xff] }
 0x54d   :  { %12309 = vmatpush1.bf16.msra.mxu1 %v14618_v31  ;;  %12224 = vmatprep.subr.bf16.mxu0 %v14649_v32  ;;  %v14744_v31 = vcombine.low %v6257_v55, %v6273_v58  ;;  %v14746_v32 = vcombine.low %v6258_v1, %v6274_v5  ;;  %v14779_v34 = vcombine.high %v6290_v29, %v6306_v30  ;;  %v6434_v1 = vld [vmem:[#allocation11 + $0x1ca8] sm:$0xff] }
 0x54e   :  { %12310 = vmatprep.subr.bf16.mxu1 %v14651_v33  ;;  %v14777_v33 = vcombine.high %v6289_v24, %v6305_v28 }
 0x550   :  { %12225 = vmatpush1.bf16.msra.mxu0 %v14648_v56  ;;  %v6338_v56 = vld [vmem:[#allocation11 + $0x19a8] sm:$0xff] }
 0x551   :  { %12311 = vmatpush1.bf16.msra.mxu1 %v14650_v57  ;;  %12226 = vmatprep.subr.bf16.mxu0 %v14681_v39  ;;  %v14776_v57 = vcombine.low %v6289_v24, %v6305_v28  ;;  %v14778_v39 = vcombine.low %v6290_v29, %v6306_v30  ;;  %v14811_v41 = vcombine.high %v6322_v37, %v6338_v56  ;;  %v6498_v24 = vld [vmem:[#allocation11 + $0x1ea8] sm:$0xff] }
 0x552   :  { %v11906_v51 = vpop.f32.mrb[12].mxu0  ;;  %v11992_v52 = vpop.f32.mrb[12].mxu1  ;;  %12312 = vmatprep.subr.bf16.mxu1 %v14683_v40  ;;  %v14809_v40 = vcombine.high %v6321_v35, %v6337_v36  ;;  %v6530_v35 = vld [vmem:[#allocation11 + $0x1fa8] sm:$0xff] }
 0x553   :  { %v15048_v59 = vadd.f32 %v11906_v51, %v6552_v43  ;;  %v15052_v60 = vadd.f32 %v11992_v52, %v6560_v44  ;;  %v11908_v63 = vpop.f32.mrb[13].mxu0  ;;  %v11994_v0 = vpop.f32.mrb[13].mxu1  ;;  %v6386_v51 = vld [vmem:[#allocation11 + $0x1b28] sm:$0xff] }
 0x554   :  { %v15049_v9 = vadd.f32 %v11908_v63, %v6556_v47  ;;  %v15053_v10 = vadd.f32 %v11994_v0, %v6564_v48  ;;  %v11910_v11 = vpop.f32.mrb[14].mxu0  ;;  %v11996_v14 = vpop.f32.mrb[14].mxu1  ;;  %12227 = vmatpush1.bf16.msra.mxu0 %v14680_v49  ;;  %v6402_v52 = vld [vmem:[#allocation11 + $0x1ba8] sm:$0xff]  ;;  %v6433_v63 = vld [vmem:[#allocation11 + $0x1ca0] sm:$0xff] }
 0x555   :  { %13205 = vst [vmem:[#allocation14] sm:$0xff] %v15048_v59  ;;  %13207 = vst [vmem:[#allocation14 + $0x10] sm:$0xff] %v15052_v60  ;;  %v15050_v17 = vadd.f32 %v11910_v11, %v6552_v43  ;;  %v15054_v18 = vadd.f32 %v11996_v14, %v6560_v44  ;;  %12313 = vmatpush1.bf16.msra.mxu1 %v14682_v2  ;;  %v11912_v19 = vpop.f32.mrb[15].mxu0  ;;  %v11998_v20 = vpop.f32.mrb[15].mxu1  ;;  %12228 = vmatprep.subr.bf16.mxu0 %v14713_v50  ;;  %v6369_v43 = vld [vmem:[#allocation11 + $0x1aa0] sm:$0xff]  ;;  %v6354_v44 = vld [vmem:[#allocation11 + $0x1a28] sm:$0xff] }
 0x556   :  { %13206 = vst [vmem:[#allocation14 + $0x8] sm:$0xff] %v15049_v9  ;;  %13208 = vst [vmem:[#allocation14 + $0x18] sm:$0xff] %v15053_v10  ;;  %v15051_v22 = vadd.f32 %v11912_v19, %v6556_v47  ;;  %v15055_v23 = vadd.f32 %v11998_v20, %v6564_v48  ;;  %12314 = vmatprep.subr.bf16.mxu1 %v14715_v53  ;;  %v14810_v47 = vcombine.low %v6322_v37, %v6338_v56  ;;  %v6385_v2 = vld [vmem:[#allocation11 + $0x1b20] sm:$0xff]  ;;  %v6418_v0 = vld [vmem:[#allocation11 + $0x1c28] sm:$0xff] }
 0x557   :  { %13237 = vst [vmem:[#allocation14 + $0x100] sm:$0xff] %v15050_v17  ;;  %13239 = vst [vmem:[#allocation14 + $0x110] sm:$0xff] %v15054_v18  ;;  %v14841_v48 = vcombine.high %v6353_v42, %v6369_v43  ;;  %v14843_v49 = vcombine.high %v6354_v44, %v6370_v45  ;;  %v6401_v50 = vld [vmem:[#allocation11 + $0x1ba0] sm:$0xff]  ;;  %v14840_v53 = vcombine.low %v6353_v42, %v6369_v43  ;;  %v6466_v17 = vld [vmem:[#allocation11 + $0x1da8] sm:$0xff] }
 0x558   :  { %13238 = vst [vmem:[#allocation14 + $0x108] sm:$0xff] %v15051_v22  ;;  %13240 = vst [vmem:[#allocation14 + $0x118] sm:$0xff] %v15055_v23  ;;  %12229 = vmatpush1.bf16.msra.mxu0 %v14712_v15  ;;  %v14842_v55 = vcombine.low %v6354_v44, %v6370_v45  ;;  %v14873_v58 = vcombine.high %v6385_v2, %v6401_v50  ;;  %v14875_v59 = vcombine.high %v6386_v51, %v6402_v52  ;;  %v6417_v60 = vld [vmem:[#allocation11 + $0x1c20] sm:$0xff]  ;;  %v5540_v42 = vld [vmem:[#allocation11 + $0xb8] sm:$0xff] }
 0x559   :  { %12315 = vmatpush1.bf16.msra.mxu1 %v14714_v16  ;;  %12230 = vmatprep.subr.bf16.mxu0 %v14745_v21  ;;  %v14872_v5 = vcombine.low %v6385_v2, %v6401_v50  ;;  %v14874_v9 = vcombine.low %v6386_v51, %v6402_v52  ;;  %v14905_v10 = vcombine.high %v6417_v60, %v6433_v63  ;;  %v6449_v14 = vld [vmem:[#allocation11 + $0x1d20] sm:$0xff]  ;;  %v6450_v16 = vld [vmem:[#allocation11 + $0x1d28] sm:$0xff]  ;;  %v5556_v2 = vld [vmem:[#allocation11 + $0x138] sm:$0xff] }
 0x55a   :  { %12316 = vmatprep.subr.bf16.mxu1 %v14747_v54  ;;  %v14907_v11 = vcombine.high %v6418_v0, %v6434_v1  ;;  %v6465_v15 = vld [vmem:[#allocation11 + $0x1da0] sm:$0xff]  ;;  %v14904_v18 = vcombine.low %v6417_v60, %v6433_v63  ;;  %v14906_v19 = vcombine.low %v6418_v0, %v6434_v1  ;;  %v14939_v21 = vcombine.high %v6450_v16, %v6466_v17  ;;  %v6482_v54 = vld [vmem:[#allocation11 + $0x1e28] sm:$0xff]  ;;  %v5572_v50 = vld [vmem:[#allocation11 + $0x1b8] sm:$0xff] }
 0x55b   :  { %v14937_v20 = vcombine.high %v6449_v14, %v6465_v15  ;;  %v6481_v22 = vld [vmem:[#allocation11 + $0x1e20] sm:$0xff]  ;;  %v14936_v28 = vcombine.low %v6449_v14, %v6465_v15  ;;  %v14938_v29 = vcombine.low %v6450_v16, %v6466_v17  ;;  %v14970_v37 = vcombine.low %v6482_v54, %v6498_v24  ;;  %v5604_v60 = vld [vmem:[#allocation11 + $0x2b8] sm:$0xff] }
 0x55c   :  { %12231 = vmatpush1.bf16.msra.mxu0 %v14744_v31  ;;  %v6497_v23 = vld [vmem:[#allocation11 + $0x1ea0] sm:$0xff]  ;;  %v14971_v31 = vcombine.high %v6482_v54, %v6498_v24  ;;  %v14046_v0 = vcombine.low %v5556_v2, %v5572_v50  ;;  %v5636_v14 = vld [vmem:[#allocation11 + $0x3b8] sm:$0xff] }
 0x55d   :  { %12317 = vmatpush1.bf16.msra.mxu1 %v14746_v32  ;;  %12232 = vmatprep.subr.bf16.mxu0 %v14777_v33  ;;  %v14969_v30 = vcombine.high %v6481_v22, %v6497_v23  ;;  %v6513_v32 = vld [vmem:[#allocation11 + $0x1f20] sm:$0xff]  ;;  %v14968_v36 = vcombine.low %v6481_v22, %v6497_v23  ;;  %v5668_v22 = vld [vmem:[#allocation11 + $0x4b8] sm:$0xff] }
 0x55e   :  { %12318 = vmatprep.subr.bf16.mxu1 %v14779_v34  ;;  %v6529_v33 = vld [vmem:[#allocation11 + $0x1fa0] sm:$0xff]  ;;  %v6514_v34 = vld [vmem:[#allocation11 + $0x1f28] sm:$0xff] }
 0x55f   :  { %v15001_v56 = vcombine.high %v6513_v32, %v6529_v33  ;;  %v15000_v43 = vcombine.low %v6513_v32, %v6529_v33  ;;  %v15002_v44 = vcombine.low %v6514_v34, %v6530_v35  ;;  %v5700_v32 = vld [vmem:[#allocation11 + $0x5b8] sm:$0xff] }
 0x560   :  { %12233 = vmatpush1.bf16.msra.mxu0 %v14776_v57  ;;  %v15003_v57 = vcombine.high %v6514_v34, %v6530_v35 }
 0x561   :  { %12319 = vmatpush1.bf16.msra.mxu1 %v14778_v39  ;;  %12234 = vmatprep.subr.bf16.mxu0 %v14809_v40  ;;  %v5523_v39 = vld [vmem:[#allocation11 + $0x30] sm:$0xff] }
 0x562   :  { %12320 = vmatprep.subr.bf16.mxu1 %v14811_v41  ;;  %v5539_v40 = vld [vmem:[#allocation11 + $0xb0] sm:$0xff]  ;;  %v5524_v41 = vld [vmem:[#allocation11 + $0x38] sm:$0xff] }
 0x563   :  { %v14013_v45 = vcombine.high %v5523_v39, %v5539_v40  ;;  %v14014_v51 = vcombine.low %v5524_v41, %v5540_v42 }
 0x564   :  { %12235 = vmatpush1.bf16.msra.mxu0 %v14808_v46  ;;  %v14015_v46 = vcombine.high %v5524_v41, %v5540_v42 }
 0x565   :  { %12321 = vmatpush1.bf16.msra.mxu1 %v14810_v47  ;;  %12236 = vmatprep.subr.bf16.mxu0 %v14841_v48  ;;  %v5555_v47 = vld [vmem:[#allocation11 + $0x130] sm:$0xff] }
 0x566   :  { %12322 = vmatprep.subr.bf16.mxu1 %v14843_v49  ;;  %v5571_v48 = vld [vmem:[#allocation11 + $0x1b0] sm:$0xff]  ;;  %v14012_v49 = vcombine.low %v5523_v39, %v5539_v40  ;;  %v5732_v39 = vld [vmem:[#allocation11 + $0x6b8] sm:$0xff] }
 0x567   :  { %v14045_v52 = vcombine.high %v5555_v47, %v5571_v48  ;;  %v14044_v63 = vcombine.low %v5555_v47, %v5571_v48  ;;  %v5764_v47 = vld [vmem:[#allocation11 + $0x7b8] sm:$0xff] }
 0x568   :  { %12237 = vmatpush1.bf16.msra.mxu0 %v14840_v53  ;;  %v5587_v53 = vld [vmem:[#allocation11 + $0x230] sm:$0xff] }
 0x569   :  { %12323 = vmatpush1.bf16.msra.mxu1 %v14842_v55  ;;  %12238 = vmatprep.subr.bf16.mxu0 %v14873_v58  ;;  %v5603_v55 = vld [vmem:[#allocation11 + $0x2b0] sm:$0xff]  ;;  %v14047_v58 = vcombine.high %v5556_v2, %v5572_v50 }
 0x56a   :  { %12324 = vmatprep.subr.bf16.mxu1 %v14875_v59  ;;  %v5588_v59 = vld [vmem:[#allocation11 + $0x238] sm:$0xff]  ;;  %v14077_v1 = vcombine.high %v5587_v53, %v5603_v55  ;;  %v14076_v15 = vcombine.low %v5587_v53, %v5603_v55 }
 0x56b   :  { %v14078_v16 = vcombine.low %v5588_v59, %v5604_v60  ;;  %v5780_v53 = vld [vmem:[#allocation11 + $0x838] sm:$0xff] }
 0x56c   :  { %12239 = vmatpush1.bf16.msra.mxu0 %v14872_v5  ;;  %v14079_v5 = vcombine.high %v5588_v59, %v5604_v60  ;;  %v5796_v55 = vld [vmem:[#allocation11 + $0x8b8] sm:$0xff] }
 0x56d   :  { %12325 = vmatpush1.bf16.msra.mxu1 %v14874_v9  ;;  %12240 = vmatprep.subr.bf16.mxu0 %v14905_v10  ;;  %v5619_v9 = vld [vmem:[#allocation11 + $0x330] sm:$0xff] }
 0x56e   :  { %12326 = vmatprep.subr.bf16.mxu1 %v14907_v11  ;;  %v5635_v10 = vld [vmem:[#allocation11 + $0x3b0] sm:$0xff]  ;;  %v5620_v11 = vld [vmem:[#allocation11 + $0x338] sm:$0xff] }
 0x56f   :  { %v14109_v17 = vcombine.high %v5619_v9, %v5635_v10  ;;  %v14108_v23 = vcombine.low %v5619_v9, %v5635_v10  ;;  %v14110_v54 = vcombine.low %v5620_v11, %v5636_v14  ;;  %v5828_v9 = vld [vmem:[#allocation11 + $0x9b8] sm:$0xff] }
 0x570   :  { %12241 = vmatpush1.bf16.msra.mxu0 %v14904_v18  ;;  %v14111_v18 = vcombine.high %v5620_v11, %v5636_v14  ;;  %v14270_v11 = vcombine.low %v5780_v53, %v5796_v55 }
 0x571   :  { %12327 = vmatpush1.bf16.msra.mxu1 %v14906_v19  ;;  %12242 = vmatprep.subr.bf16.mxu0 %v14937_v20  ;;  %v5651_v19 = vld [vmem:[#allocation11 + $0x430] sm:$0xff] }
 0x572   :  { %12328 = vmatprep.subr.bf16.mxu1 %v14939_v21  ;;  %v5667_v20 = vld [vmem:[#allocation11 + $0x4b0] sm:$0xff]  ;;  %v5652_v21 = vld [vmem:[#allocation11 + $0x438] sm:$0xff] }
 0x573   :  { %v14141_v24 = vcombine.high %v5651_v19, %v5667_v20  ;;  %v14140_v33 = vcombine.low %v5651_v19, %v5667_v20  ;;  %v14142_v34 = vcombine.low %v5652_v21, %v5668_v22  ;;  %v5860_v19 = vld [vmem:[#allocation11 + $0xab8] sm:$0xff] }
 0x574   :  { %12243 = vmatpush1.bf16.msra.mxu0 %v14936_v28  ;;  %v14143_v28 = vcombine.high %v5652_v21, %v5668_v22 }
 0x575   :  { %12329 = vmatpush1.bf16.msra.mxu1 %v14938_v29  ;;  %12244 = vmatprep.subr.bf16.mxu0 %v14969_v30  ;;  %v5683_v29 = vld [vmem:[#allocation11 + $0x530] sm:$0xff] }
 0x576   :  { %12330 = vmatprep.subr.bf16.mxu1 %v14971_v31  ;;  %v5699_v30 = vld [vmem:[#allocation11 + $0x5b0] sm:$0xff]  ;;  %v5684_v31 = vld [vmem:[#allocation11 + $0x538] sm:$0xff] }
 0x577   :  { %v14173_v35 = vcombine.high %v5683_v29, %v5699_v30  ;;  %v14172_v40 = vcombine.low %v5683_v29, %v5699_v30  ;;  %v14174_v41 = vcombine.low %v5684_v31, %v5700_v32  ;;  %v5892_v29 = vld [vmem:[#allocation11 + $0xbb8] sm:$0xff] }
 0x578   :  { %12245 = vmatpush1.bf16.msra.mxu0 %v14968_v36  ;;  %v14175_v36 = vcombine.high %v5684_v31, %v5700_v32 }
 0x579   :  { %12331 = vmatpush1.bf16.msra.mxu1 %v14970_v37  ;;  %12246 = vmatprep.subr.bf16.mxu0 %v15001_v56  ;;  %v5715_v37 = vld [vmem:[#allocation11 + $0x630] sm:$0xff] }
 0x57a   :  { %12332 = vmatprep.subr.bf16.mxu1 %v15003_v57  ;;  %v5731_v56 = vld [vmem:[#allocation11 + $0x6b0] sm:$0xff]  ;;  %v5716_v57 = vld [vmem:[#allocation11 + $0x638] sm:$0xff] }
 0x57b   :  { %v14205_v42 = vcombine.high %v5715_v37, %v5731_v56  ;;  %v14204_v48 = vcombine.low %v5715_v37, %v5731_v56  ;;  %v5924_v37 = vld [vmem:[#allocation11 + $0xcb8] sm:$0xff] }
 0x57c   :  { %12247 = vmatpush1.bf16.msra.mxu0 %v15000_v43  ;;  %v14207_v43 = vcombine.high %v5716_v57, %v5732_v39 }
 0x57d   :  { %12333 = vmatpush1.bf16.msra.mxu1 %v15002_v44  ;;  %12345 = vmatprep.subr.bf16.mxu0 %v14013_v45  ;;  %v5747_v44 = vld [vmem:[#allocation11 + $0x730] sm:$0xff] }
 0x57e   :  { %12431 = vmatprep.subr.bf16.mxu1 %v14015_v46  ;;  %v5763_v45 = vld [vmem:[#allocation11 + $0x7b0] sm:$0xff]  ;;  %v5748_v46 = vld [vmem:[#allocation11 + $0x738] sm:$0xff] }
 0x57f   :  { %12249 = vmatmul.mubr.bf16.vlgmr.msra.gmra.mrb[20].mxu0 %v16067_v8  ;;  %v14237_v2 = vcombine.high %v5747_v44, %v5763_v45  ;;  %v14239_v50 = vcombine.high %v5748_v46, %v5764_v47  ;;  %v14238_v59 = vcombine.low %v5748_v46, %v5764_v47 }
 0x580   :  { %12335 = vmatmul.mubr.bf16.vlgmr.msra.gmra.mrb[20].mxu1 %v16067_v8  ;;  %12346 = vmatpush1.bf16.msra.mxu0 %v14012_v49  ;;  %v14206_v49 = vcombine.low %v5716_v57, %v5732_v39 }
 0x581   :  { %12377 = vmatprep.mubr.bf16.mxu0 %v16069_v12  ;;  %12432 = vmatpush1.bf16.msra.mxu1 %v14014_v51  ;;  %v5779_v51 = vld [vmem:[#allocation11 + $0x830] sm:$0xff] }
 0x582   :  { %12463 = vmatprep.mubr.bf16.mxu1 %v16069_v12  ;;  %12347 = vmatprep.subr.bf16.mxu0 %v14045_v52  ;;  %v5795_v52 = vld [vmem:[#allocation11 + $0x8b0] sm:$0xff] }
 0x583   :  { %12433 = vmatprep.subr.bf16.mxu1 %v14047_v58  ;;  %v14236_v58 = vcombine.low %v5747_v44, %v5763_v45  ;;  %v14269_v60 = vcombine.high %v5779_v51, %v5795_v52  ;;  %v14268_v10 = vcombine.low %v5779_v51, %v5795_v52  ;;  %v5956_v44 = vld [vmem:[#allocation11 + $0xdb8] sm:$0xff] }
 0x584   :  { %12348 = vmatpush1.bf16.msra.mxu0 %v14044_v63  ;;  %v14271_v63 = vcombine.high %v5780_v53, %v5796_v55  ;;  %v5988_v51 = vld [vmem:[#allocation11 + $0xeb8] sm:$0xff] }
 0x585   :  { %12434 = vmatpush1.bf16.msra.mxu1 %v14046_v0  ;;  %12349 = vmatprep.subr.bf16.mxu0 %v14077_v1  ;;  %v5811_v0 = vld [vmem:[#allocation11 + $0x930] sm:$0xff] }
 0x586   :  { %12435 = vmatprep.subr.bf16.mxu1 %v14079_v5  ;;  %v5827_v1 = vld [vmem:[#allocation11 + $0x9b0] sm:$0xff]  ;;  %v5812_v5 = vld [vmem:[#allocation11 + $0x938] sm:$0xff] }
 0x587   :  { %v14301_v14 = vcombine.high %v5811_v0, %v5827_v1  ;;  %v14300_v20 = vcombine.low %v5811_v0, %v5827_v1  ;;  %v14302_v21 = vcombine.low %v5812_v5, %v5828_v9  ;;  %v6020_v0 = vld [vmem:[#allocation11 + $0xfb8] sm:$0xff] }
 0x588   :  { %12350 = vmatpush1.bf16.msra.mxu0 %v14076_v15  ;;  %v14303_v15 = vcombine.high %v5812_v5, %v5828_v9 }
 0x589   :  { %12436 = vmatpush1.bf16.msra.mxu1 %v14078_v16  ;;  %12351 = vmatprep.subr.bf16.mxu0 %v14109_v17  ;;  %v5843_v16 = vld [vmem:[#allocation11 + $0xa30] sm:$0xff] }
 0x58a   :  { %12437 = vmatprep.subr.bf16.mxu1 %v14111_v18  ;;  %v5859_v17 = vld [vmem:[#allocation11 + $0xab0] sm:$0xff]  ;;  %v5844_v18 = vld [vmem:[#allocation11 + $0xa38] sm:$0xff] }
 0x58b   :  { %v14333_v22 = vcombine.high %v5843_v16, %v5859_v17  ;;  %v14332_v30 = vcombine.low %v5843_v16, %v5859_v17  ;;  %v14334_v31 = vcombine.low %v5844_v18, %v5860_v19  ;;  %v6052_v16 = vld [vmem:[#allocation11 + $0x10b8] sm:$0xff] }
 0x58c   :  { %12352 = vmatpush1.bf16.msra.mxu0 %v14108_v23  ;;  %v14335_v23 = vcombine.high %v5844_v18, %v5860_v19 }
 0x58d   :  { %12438 = vmatpush1.bf16.msra.mxu1 %v14110_v54  ;;  %12353 = vmatprep.subr.bf16.mxu0 %v14141_v24  ;;  %v5875_v54 = vld [vmem:[#allocation11 + $0xb30] sm:$0xff] }
 0x58e   :  { %12439 = vmatprep.subr.bf16.mxu1 %v14143_v28  ;;  %v5891_v24 = vld [vmem:[#allocation11 + $0xbb0] sm:$0xff]  ;;  %v5876_v28 = vld [vmem:[#allocation11 + $0xb38] sm:$0xff] }
 0x58f   :  { %v14365_v32 = vcombine.high %v5875_v54, %v5891_v24  ;;  %v14364_v56 = vcombine.low %v5875_v54, %v5891_v24  ;;  %v14366_v57 = vcombine.low %v5876_v28, %v5892_v29  ;;  %v6068_v54 = vld [vmem:[#allocation11 + $0x1138] sm:$0xff] }
 0x590   :  { %12354 = vmatpush1.bf16.msra.mxu0 %v14140_v33  ;;  %v14367_v33 = vcombine.high %v5876_v28, %v5892_v29  ;;  %v6084_v24 = vld [vmem:[#allocation11 + $0x11b8] sm:$0xff] }
 0x591   :  { %12440 = vmatpush1.bf16.msra.mxu1 %v14142_v34  ;;  %12355 = vmatprep.subr.bf16.mxu0 %v14173_v35  ;;  %v5907_v34 = vld [vmem:[#allocation11 + $0xc30] sm:$0xff] }
 0x592   :  { %12441 = vmatprep.subr.bf16.mxu1 %v14175_v36  ;;  %v5923_v35 = vld [vmem:[#allocation11 + $0xcb0] sm:$0xff]  ;;  %v5908_v36 = vld [vmem:[#allocation11 + $0xc38] sm:$0xff] }
 0x593   :  { %v14397_v39 = vcombine.high %v5907_v34, %v5923_v35  ;;  %v14396_v45 = vcombine.low %v5907_v34, %v5923_v35  ;;  %v14398_v46 = vcombine.low %v5908_v36, %v5924_v37  ;;  %v6116_v34 = vld [vmem:[#allocation11 + $0x12b8] sm:$0xff] }
 0x594   :  { %12356 = vmatpush1.bf16.msra.mxu0 %v14172_v40  ;;  %v14399_v40 = vcombine.high %v5908_v36, %v5924_v37  ;;  %v14558_v36 = vcombine.low %v6068_v54, %v6084_v24 }
 0x595   :  { %12442 = vmatpush1.bf16.msra.mxu1 %v14174_v41  ;;  %12357 = vmatprep.subr.bf16.mxu0 %v14205_v42  ;;  %v5939_v41 = vld [vmem:[#allocation11 + $0xd30] sm:$0xff] }
 0x596   :  { %12443 = vmatprep.subr.bf16.mxu1 %v14207_v43  ;;  %v5955_v42 = vld [vmem:[#allocation11 + $0xdb0] sm:$0xff]  ;;  %v5940_v43 = vld [vmem:[#allocation11 + $0xd38] sm:$0xff] }
 0x597   :  { %v14429_v47 = vcombine.high %v5939_v41, %v5955_v42  ;;  %v14428_v52 = vcombine.low %v5939_v41, %v5955_v42  ;;  %v14430_v53 = vcombine.low %v5940_v43, %v5956_v44  ;;  %v6148_v41 = vld [vmem:[#allocation11 + $0x13b8] sm:$0xff] }
 0x598   :  { %12358 = vmatpush1.bf16.msra.mxu0 %v14204_v48  ;;  %v14431_v48 = vcombine.high %v5940_v43, %v5956_v44 }
 0x599   :  { %12444 = vmatpush1.bf16.msra.mxu1 %v14206_v49  ;;  %12359 = vmatprep.subr.bf16.mxu0 %v14237_v2  ;;  %v5971_v49 = vld [vmem:[#allocation11 + $0xe30] sm:$0xff] }
 0x59a   :  { %12445 = vmatprep.subr.bf16.mxu1 %v14239_v50  ;;  %v5987_v2 = vld [vmem:[#allocation11 + $0xeb0] sm:$0xff]  ;;  %v5972_v50 = vld [vmem:[#allocation11 + $0xe38] sm:$0xff] }
 0x59b   :  { %v14461_v55 = vcombine.high %v5971_v49, %v5987_v2  ;;  %v14460_v1 = vcombine.low %v5971_v49, %v5987_v2  ;;  %v14462_v5 = vcombine.low %v5972_v50, %v5988_v51  ;;  %v6180_v49 = vld [vmem:[#allocation11 + $0x14b8] sm:$0xff] }
 0x59c   :  { %12360 = vmatpush1.bf16.msra.mxu0 %v14236_v58  ;;  %v14463_v58 = vcombine.high %v5972_v50, %v5988_v51 }
 0x59d   :  { %12446 = vmatpush1.bf16.msra.mxu1 %v14238_v59  ;;  %12361 = vmatprep.subr.bf16.mxu0 %v14269_v60  ;;  %v6003_v59 = vld [vmem:[#allocation11 + $0xf30] sm:$0xff] }
 0x59e   :  { %12447 = vmatprep.subr.bf16.mxu1 %v14271_v63  ;;  %v6019_v60 = vld [vmem:[#allocation11 + $0xfb0] sm:$0xff]  ;;  %v6004_v63 = vld [vmem:[#allocation11 + $0xf38] sm:$0xff] }
 0x59f   :  { %v14493_v9 = vcombine.high %v6003_v59, %v6019_v60  ;;  %v14492_v17 = vcombine.low %v6003_v59, %v6019_v60  ;;  %v14494_v18 = vcombine.low %v6004_v63, %v6020_v0  ;;  %v6212_v59 = vld [vmem:[#allocation11 + $0x15b8] sm:$0xff] }
 0x5a0   :  { %12362 = vmatpush1.bf16.msra.mxu0 %v14268_v10  ;;  %v14495_v10 = vcombine.high %v6004_v63, %v6020_v0 }
 0x5a1   :  { %12448 = vmatpush1.bf16.msra.mxu1 %v14270_v11  ;;  %12363 = vmatprep.subr.bf16.mxu0 %v14301_v14  ;;  %v6035_v11 = vld [vmem:[#allocation11 + $0x1030] sm:$0xff] }
 0x5a2   :  { %12449 = vmatprep.subr.bf16.mxu1 %v14303_v15  ;;  %v6051_v14 = vld [vmem:[#allocation11 + $0x10b0] sm:$0xff]  ;;  %v6036_v15 = vld [vmem:[#allocation11 + $0x1038] sm:$0xff] }
 0x5a3   :  { %v14525_v19 = vcombine.high %v6035_v11, %v6051_v14  ;;  %v14526_v28 = vcombine.low %v6036_v15, %v6052_v16 }
 0x5a4   :  { %12364 = vmatpush1.bf16.msra.mxu0 %v14300_v20  ;;  %v14527_v20 = vcombine.high %v6036_v15, %v6052_v16  ;;  %v6576_v15 = vrot.slane %v16095_v38, %v16041_v26  ;;  %v6572_v16 = vrot.slane %v16095_v38, %v16044_v27 }
 0x5a5   :  { %12450 = vmatpush1.bf16.msra.mxu1 %v14302_v21  ;;  %12365 = vmatprep.subr.bf16.mxu0 %v14333_v22  ;;  %v6067_v21 = vld [vmem:[#allocation11 + $0x1130] sm:$0xff] }
 0x5a6   :  { %12451 = vmatprep.subr.bf16.mxu1 %v14335_v23  ;;  %v6083_v22 = vld [vmem:[#allocation11 + $0x11b0] sm:$0xff]  ;;  %v14524_v23 = vcombine.low %v6035_v11, %v6051_v14  ;;  %v6228_v11 = vld [vmem:[#allocation11 + $0x1638] sm:$0xff] }
 0x5a7   :  { %v14557_v29 = vcombine.high %v6067_v21, %v6083_v22  ;;  %v14556_v35 = vcombine.low %v6067_v21, %v6083_v22  ;;  %v6244_v14 = vld [vmem:[#allocation11 + $0x16b8] sm:$0xff] }
 0x5a8   :  { %12366 = vmatpush1.bf16.msra.mxu0 %v14332_v30  ;;  %v6099_v30 = vld [vmem:[#allocation11 + $0x1230] sm:$0xff]  ;;  %v14719_v22 = vcombine.high %v6228_v11, %v6244_v14 }
 0x5a9   :  { %12452 = vmatpush1.bf16.msra.mxu1 %v14334_v31  ;;  %12367 = vmatprep.subr.bf16.mxu0 %v14365_v32  ;;  %v6115_v31 = vld [vmem:[#allocation11 + $0x12b0] sm:$0xff]  ;;  %v14559_v32 = vcombine.high %v6068_v54, %v6084_v24 }
 0x5aa   :  { %12453 = vmatprep.subr.bf16.mxu1 %v14367_v33  ;;  %v6100_v33 = vld [vmem:[#allocation11 + $0x1238] sm:$0xff]  ;;  %v14589_v37 = vcombine.high %v6099_v30, %v6115_v31  ;;  %v14588_v42 = vcombine.low %v6099_v30, %v6115_v31  ;;  %v6275_v54 = vld [vmem:[#allocation11 + $0x17b0] sm:$0xff] }
 0x5ab   :  { %v14590_v43 = vcombine.low %v6100_v33, %v6116_v34  ;;  %v6260_v30 = vld [vmem:[#allocation11 + $0x1738] sm:$0xff] }
 0x5ac   :  { %12368 = vmatpush1.bf16.msra.mxu0 %v14364_v56  ;;  %v14591_v56 = vcombine.high %v6100_v33, %v6116_v34  ;;  %v6276_v31 = vld [vmem:[#allocation11 + $0x17b8] sm:$0xff] }
 0x5ad   :  { %12454 = vmatpush1.bf16.msra.mxu1 %v14366_v57  ;;  %12369 = vmatprep.subr.bf16.mxu0 %v14397_v39  ;;  %v6131_v57 = vld [vmem:[#allocation11 + $0x1330] sm:$0xff] }
 0x5ae   :  { %12455 = vmatprep.subr.bf16.mxu1 %v14399_v40  ;;  %v6147_v39 = vld [vmem:[#allocation11 + $0x13b0] sm:$0xff]  ;;  %v6132_v40 = vld [vmem:[#allocation11 + $0x1338] sm:$0xff] }
 0x5af   :  { %v14621_v44 = vcombine.high %v6131_v57, %v6147_v39  ;;  %v14620_v2 = vcombine.low %v6131_v57, %v6147_v39  ;;  %v14622_v50 = vcombine.low %v6132_v40, %v6148_v41 }
 0x5b0   :  { %12370 = vmatpush1.bf16.msra.mxu0 %v14396_v45  ;;  %v14623_v45 = vcombine.high %v6132_v40, %v6148_v41 }
 0x5b1   :  { %12456 = vmatpush1.bf16.msra.mxu1 %v14398_v46  ;;  %12371 = vmatprep.subr.bf16.mxu0 %v14429_v47  ;;  %v6163_v46 = vld [vmem:[#allocation11 + $0x1430] sm:$0xff] }
 0x5b2   :  { %12457 = vmatprep.subr.bf16.mxu1 %v14431_v48  ;;  %v6179_v47 = vld [vmem:[#allocation11 + $0x14b0] sm:$0xff]  ;;  %v6164_v48 = vld [vmem:[#allocation11 + $0x1438] sm:$0xff] }
 0x5b3   :  { %v14653_v51 = vcombine.high %v6163_v46, %v6179_v47  ;;  %v14652_v60 = vcombine.low %v6163_v46, %v6179_v47  ;;  %v14654_v63 = vcombine.low %v6164_v48, %v6180_v49  ;;  %v6307_v46 = vld [vmem:[#allocation11 + $0x18b0] sm:$0xff] }
 0x5b4   :  { %12372 = vmatpush1.bf16.msra.mxu0 %v14428_v52  ;;  %v14655_v52 = vcombine.high %v6164_v48, %v6180_v49  ;;  %v6292_v48 = vld [vmem:[#allocation11 + $0x1838] sm:$0xff] }
 0x5b5   :  { %12458 = vmatpush1.bf16.msra.mxu1 %v14430_v53  ;;  %12373 = vmatprep.subr.bf16.mxu0 %v14461_v55  ;;  %v6195_v53 = vld [vmem:[#allocation11 + $0x1530] sm:$0xff]  ;;  %v6308_v49 = vld [vmem:[#allocation11 + $0x18b8] sm:$0xff] }
 0x5b6   :  { %12459 = vmatprep.subr.bf16.mxu1 %v14463_v58  ;;  %v6211_v55 = vld [vmem:[#allocation11 + $0x15b0] sm:$0xff]  ;;  %v6196_v58 = vld [vmem:[#allocation11 + $0x1538] sm:$0xff] }
 0x5b7   :  { %v14685_v0 = vcombine.high %v6195_v53, %v6211_v55 }
 0x5b8   :  { %12374 = vmatpush1.bf16.msra.mxu0 %v14460_v1  ;;  %v14687_v1 = vcombine.high %v6196_v58, %v6212_v59 }
 0x5b9   :  { %12460 = vmatpush1.bf16.msra.mxu1 %v14462_v5  ;;  %12375 = vmatprep.subr.bf16.mxu0 %v14493_v9  ;;  %v6227_v5 = vld [vmem:[#allocation11 + $0x1630] sm:$0xff] }
 0x5ba   :  { %12461 = vmatprep.subr.bf16.mxu1 %v14495_v10  ;;  %v6243_v9 = vld [vmem:[#allocation11 + $0x16b0] sm:$0xff]  ;;  %v6568_v10 = vrot.slane %v16095_v38, %v16038_v25 }
 0x5bc   :  { %12376 = vmatpush1.bf16.msra.mxu0 %v14492_v17  ;;  %v14684_v17 = vcombine.low %v6195_v53, %v6211_v55  ;;  %v6323_v53 = vld [vmem:[#allocation11 + $0x1930] sm:$0xff] }
 0x5bd   :  { %12462 = vmatpush1.bf16.msra.mxu1 %v14494_v18  ;;  %12388 = vmatprep.subr.bf16.mxu0 %v14525_v19  ;;  %v6580_v18 = vrot.slane %v16095_v38, %v16047_v61  ;;  %v14686_v19 = vcombine.low %v6196_v58, %v6212_v59  ;;  %v14718_v38 = vcombine.low %v6228_v11, %v6244_v14  ;;  %v6339_v55 = vld [vmem:[#allocation11 + $0x19b0] sm:$0xff]  ;;  %v6324_v58 = vld [vmem:[#allocation11 + $0x1938] sm:$0xff] }
 0x5be   :  { %12474 = vmatprep.subr.bf16.mxu1 %v14527_v20  ;;  %v14717_v20 = vcombine.high %v6227_v5, %v6243_v9  ;;  %v6340_v59 = vld [vmem:[#allocation11 + $0x19b8] sm:$0xff]  ;;  %v14812_v14 = vcombine.low %v6323_v53, %v6339_v55 }
 0x5bf   :  { %12378 = vmatmul.mubr.bf16.vlgmr.msra.gmra.mrb[24].mxu0 %v16065_v7  ;;  %v6372_v11 = vld [vmem:[#allocation11 + $0x1ab8] sm:$0xff] }
 0x5c0   :  { %12464 = vmatmul.mubr.bf16.vlgmr.msra.gmra.mrb[24].mxu1 %v16065_v7  ;;  %12389 = vmatpush1.bf16.msra.mxu0 %v14524_v23  ;;  %v6259_v23 = vld [vmem:[#allocation11 + $0x1730] sm:$0xff] }
 0x5c1   :  { %12420 = vmatprep.mubr.bf16.mxu0 %v16071_v13  ;;  %12475 = vmatpush1.bf16.msra.mxu1 %v14526_v28  ;;  %v14749_v40 = vcombine.high %v6259_v23, %v6275_v54 }
 0x5c2   :  { %12506 = vmatprep.mubr.bf16.mxu1 %v16071_v13  ;;  %12390 = vmatprep.subr.bf16.mxu0 %v14557_v29 }
 0x5c3   :  { %12476 = vmatprep.subr.bf16.mxu1 %v14559_v32 }
 0x5c4   :  { %12391 = vmatpush1.bf16.msra.mxu0 %v14556_v35 }
 0x5c5   :  { %12477 = vmatpush1.bf16.msra.mxu1 %v14558_v36  ;;  %12392 = vmatprep.subr.bf16.mxu0 %v14589_v37  ;;  %v14716_v36 = vcombine.low %v6227_v5, %v6243_v9  ;;  %v6355_v5 = vld [vmem:[#allocation11 + $0x1a30] sm:$0xff] }
 0x5c6   :  { %12478 = vmatprep.subr.bf16.mxu1 %v14591_v56  ;;  %v6371_v9 = vld [vmem:[#allocation11 + $0x1ab0] sm:$0xff] }
 0x5c8   :  { %12393 = vmatpush1.bf16.msra.mxu0 %v14588_v42 }
 0x5c9   :  { %12479 = vmatpush1.bf16.msra.mxu1 %v14590_v43  ;;  %12394 = vmatprep.subr.bf16.mxu0 %v14621_v44  ;;  %v14751_v44 = vcombine.high %v6260_v30, %v6276_v31 }
 0x5ca   :  { %12480 = vmatprep.subr.bf16.mxu1 %v14623_v45  ;;  %v6291_v45 = vld [vmem:[#allocation11 + $0x1830] sm:$0xff] }
 0x5cc   :  { %12395 = vmatpush1.bf16.msra.mxu0 %v14620_v2  ;;  %v14748_v2 = vcombine.low %v6259_v23, %v6275_v54 }
 0x5cd   :  { %12481 = vmatpush1.bf16.msra.mxu1 %v14622_v50  ;;  %12396 = vmatprep.subr.bf16.mxu0 %v14653_v51  ;;  %v14750_v50 = vcombine.low %v6260_v30, %v6276_v31  ;;  %v14781_v51 = vcombine.high %v6291_v45, %v6307_v46  ;;  %v6420_v30 = vld [vmem:[#allocation11 + $0x1c38] sm:$0xff] }
 0x5ce   :  { %12482 = vmatprep.subr.bf16.mxu1 %v14655_v52  ;;  %v14783_v52 = vcombine.high %v6292_v48, %v6308_v49  ;;  %v6436_v31 = vld [vmem:[#allocation11 + $0x1cb8] sm:$0xff] }
 0x5d0   :  { %12397 = vmatpush1.bf16.msra.mxu0 %v14652_v60  ;;  %v14780_v60 = vcombine.low %v6291_v45, %v6307_v46  ;;  %v6500_v45 = vld [vmem:[#allocation11 + $0x1eb8] sm:$0xff] }
 0x5d1   :  { %12483 = vmatpush1.bf16.msra.mxu1 %v14654_v63  ;;  %12398 = vmatprep.subr.bf16.mxu0 %v14685_v0  ;;  %v14782_v63 = vcombine.low %v6292_v48, %v6308_v49  ;;  %v14813_v0 = vcombine.high %v6323_v53, %v6339_v55 }
 0x5d2   :  { %v12078_v21 = vpop.f32.mrb[16].mxu0  ;;  %12484 = vmatprep.subr.bf16.mxu1 %v14687_v1  ;;  %v14815_v1 = vcombine.high %v6324_v58, %v6340_v59 }
 0x5d3   :  { %v15056_v24 = vadd.f32 %v12078_v21, %v6568_v10  ;;  %v12164_v28 = vpop.f32.mrb[16].mxu1  ;;  %v12080_v29 = vpop.f32.mrb[17].mxu0  ;;  %v6404_v21 = vld [vmem:[#allocation11 + $0x1bb8] sm:$0xff] }
 0x5d4   :  { %v15060_v32 = vadd.f32 %v12164_v28, %v6576_v15  ;;  %v15057_v33 = vadd.f32 %v12080_v29, %v6572_v16  ;;  %v12166_v34 = vpop.f32.mrb[17].mxu1  ;;  %v12082_v35 = vpop.f32.mrb[18].mxu0  ;;  %12399 = vmatpush1.bf16.msra.mxu0 %v14684_v17  ;;  %v6419_v28 = vld [vmem:[#allocation11 + $0x1c30] sm:$0xff] }
 0x5d5   :  { %13209 = vst [vmem:[#allocation14 + $0x20] sm:$0xff] %v15056_v24  ;;  %v15061_v37 = vadd.f32 %v12166_v34, %v6580_v18  ;;  %v15058_v56 = vadd.f32 %v12082_v35, %v6568_v10  ;;  %v12168_v57 = vpop.f32.mrb[18].mxu1  ;;  %12485 = vmatpush1.bf16.msra.mxu1 %v14686_v19  ;;  %v12084_v39 = vpop.f32.mrb[19].mxu0  ;;  %12400 = vmatprep.subr.bf16.mxu0 %v14717_v20  ;;  %v6356_v10 = vld [vmem:[#allocation11 + $0x1a38] sm:$0xff]  ;;  %v6403_v19 = vld [vmem:[#allocation11 + $0x1bb0] sm:$0xff] }
 0x5d6   :  { %13211 = vst [vmem:[#allocation14 + $0x30] sm:$0xff] %v15060_v32  ;;  %13210 = vst [vmem:[#allocation14 + $0x28] sm:$0xff] %v15057_v33  ;;  %v15062_v41 = vadd.f32 %v12168_v57, %v6576_v15  ;;  %v15059_v42 = vadd.f32 %v12084_v39, %v6572_v16  ;;  %v12170_v43 = vpop.f32.mrb[19].mxu1  ;;  %12486 = vmatprep.subr.bf16.mxu1 %v14719_v22  ;;  %v14814_v15 = vcombine.low %v6324_v58, %v6340_v59  ;;  %v6388_v20 = vld [vmem:[#allocation11 + $0x1b38] sm:$0xff]  ;;  %v6435_v29 = vld [vmem:[#allocation11 + $0x1cb0] sm:$0xff] }
 0x5d7   :  { %13212 = vst [vmem:[#allocation14 + $0x38] sm:$0xff] %v15061_v37  ;;  %13241 = vst [vmem:[#allocation14 + $0x120] sm:$0xff] %v15058_v56  ;;  %v15063_v47 = vadd.f32 %v12170_v43, %v6580_v18  ;;  %v14845_v16 = vcombine.high %v6355_v5, %v6371_v9  ;;  %v14847_v17 = vcombine.high %v6356_v10, %v6372_v11  ;;  %v6387_v18 = vld [vmem:[#allocation11 + $0x1b30] sm:$0xff]  ;;  %v6452_v37 = vld [vmem:[#allocation11 + $0x1d38] sm:$0xff] }
 0x5d8   :  { %13243 = vst [vmem:[#allocation14 + $0x130] sm:$0xff] %v15062_v41  ;;  %13242 = vst [vmem:[#allocation14 + $0x128] sm:$0xff] %v15059_v42  ;;  %12401 = vmatpush1.bf16.msra.mxu0 %v14716_v36  ;;  %v14844_v22 = vcombine.low %v6355_v5, %v6371_v9  ;;  %v14846_v23 = vcombine.low %v6356_v10, %v6372_v11  ;;  %v14877_v54 = vcombine.high %v6387_v18, %v6403_v19  ;;  %v6451_v36 = vld [vmem:[#allocation11 + $0x1d30] sm:$0xff]  ;;  %v6468_v56 = vld [vmem:[#allocation11 + $0x1db8] sm:$0xff] }
 0x5d9   :  { %13244 = vst [vmem:[#allocation14 + $0x138] sm:$0xff] %v15063_v47  ;;  %12487 = vmatpush1.bf16.msra.mxu1 %v14718_v38  ;;  %12402 = vmatprep.subr.bf16.mxu0 %v14749_v40  ;;  %v14879_v24 = vcombine.high %v6388_v20, %v6404_v21  ;;  %v14876_v32 = vcombine.low %v6387_v18, %v6403_v19  ;;  %v6467_v38 = vld [vmem:[#allocation11 + $0x1db0] sm:$0xff]  ;;  %v5574_v18 = vld [vmem:[#allocation11 + $0x1c8] sm:$0xff] }
 0x5da   :  { %12488 = vmatprep.subr.bf16.mxu1 %v14751_v44  ;;  %v14878_v33 = vcombine.low %v6388_v20, %v6404_v21  ;;  %v14909_v34 = vcombine.high %v6419_v28, %v6435_v29  ;;  %v14911_v35 = vcombine.high %v6420_v30, %v6436_v31  ;;  %v14908_v57 = vcombine.low %v6419_v28, %v6435_v29  ;;  %v6483_v42 = vld [vmem:[#allocation11 + $0x1e30] sm:$0xff]  ;;  %v6484_v44 = vld [vmem:[#allocation11 + $0x1e38] sm:$0xff]  ;;  %v5589_v21 = vld [vmem:[#allocation11 + $0x240] sm:$0xff] }
 0x5db   :  { %v14910_v39 = vcombine.low %v6420_v30, %v6436_v31  ;;  %v14941_v40 = vcombine.high %v6451_v36, %v6467_v38  ;;  %v14943_v41 = vcombine.high %v6452_v37, %v6468_v56  ;;  %v6499_v43 = vld [vmem:[#allocation11 + $0x1eb0] sm:$0xff]  ;;  %v14940_v46 = vcombine.low %v6451_v36, %v6467_v38 }
 0x5dc   :  { %12403 = vmatpush1.bf16.msra.mxu0 %v14748_v2  ;;  %v14942_v47 = vcombine.low %v6452_v37, %v6468_v56  ;;  %v14973_v48 = vcombine.high %v6483_v42, %v6499_v43  ;;  %v14975_v49 = vcombine.high %v6484_v44, %v6500_v45  ;;  %v6515_v2 = vld [vmem:[#allocation11 + $0x1f30] sm:$0xff]  ;;  %v14972_v53 = vcombine.low %v6483_v42, %v6499_v43 }
 0x5dd   :  { %12489 = vmatpush1.bf16.msra.mxu1 %v14750_v50  ;;  %12404 = vmatprep.subr.bf16.mxu0 %v14781_v51  ;;  %v6531_v50 = vld [vmem:[#allocation11 + $0x1fb0] sm:$0xff]  ;;  %v6516_v51 = vld [vmem:[#allocation11 + $0x1f38] sm:$0xff]  ;;  %v14974_v55 = vcombine.low %v6484_v44, %v6500_v45 }
 0x5de   :  { %12490 = vmatprep.subr.bf16.mxu1 %v14783_v52  ;;  %v6532_v52 = vld [vmem:[#allocation11 + $0x1fb8] sm:$0xff]  ;;  %v15005_v58 = vcombine.high %v6515_v2, %v6531_v50  ;;  %v15004_v5 = vcombine.low %v6515_v2, %v6531_v50 }
 0x5df   :  { %v15007_v59 = vcombine.high %v6516_v51, %v6532_v52  ;;  %v15006_v9 = vcombine.low %v6516_v51, %v6532_v52 }
 0x5e0   :  { %12405 = vmatpush1.bf16.msra.mxu0 %v14780_v60  ;;  %v5525_v60 = vld [vmem:[#allocation11 + $0x40] sm:$0xff] }
 0x5e1   :  { %12491 = vmatpush1.bf16.msra.mxu1 %v14782_v63  ;;  %12406 = vmatprep.subr.bf16.mxu0 %v14813_v0  ;;  %v5541_v63 = vld [vmem:[#allocation11 + $0xc0] sm:$0xff]  ;;  %v5526_v0 = vld [vmem:[#allocation11 + $0x48] sm:$0xff] }
 0x5e2   :  { %12492 = vmatprep.subr.bf16.mxu1 %v14815_v1  ;;  %v5542_v1 = vld [vmem:[#allocation11 + $0xc8] sm:$0xff]  ;;  %v14017_v10 = vcombine.high %v5525_v60, %v5541_v63 }
 0x5e3   :  { %v14019_v11 = vcombine.high %v5526_v0, %v5542_v1  ;;  %v14018_v19 = vcombine.low %v5526_v0, %v5542_v1 }
 0x5e4   :  { %12407 = vmatpush1.bf16.msra.mxu0 %v14812_v14  ;;  %v5557_v14 = vld [vmem:[#allocation11 + $0x140] sm:$0xff] }
 0x5e5   :  { %12493 = vmatpush1.bf16.msra.mxu1 %v14814_v15  ;;  %12408 = vmatprep.subr.bf16.mxu0 %v14845_v16  ;;  %v5573_v15 = vld [vmem:[#allocation11 + $0x1c0] sm:$0xff]  ;;  %v14016_v16 = vcombine.low %v5525_v60, %v5541_v63 }
 0x5e6   :  { %12494 = vmatprep.subr.bf16.mxu1 %v14847_v17  ;;  %v5558_v17 = vld [vmem:[#allocation11 + $0x148] sm:$0xff]  ;;  %v14049_v20 = vcombine.high %v5557_v14, %v5573_v15  ;;  %v14048_v28 = vcombine.low %v5557_v14, %v5573_v15 }
 0x5e7   :  { %v14050_v29 = vcombine.low %v5558_v17, %v5574_v18 }
 0x5e8   :  { %12409 = vmatpush1.bf16.msra.mxu0 %v14844_v22  ;;  %v5605_v22 = vld [vmem:[#allocation11 + $0x2c0] sm:$0xff] }
 0x5e9   :  { %12495 = vmatpush1.bf16.msra.mxu1 %v14846_v23  ;;  %12410 = vmatprep.subr.bf16.mxu0 %v14877_v54  ;;  %v14051_v23 = vcombine.high %v5558_v17, %v5574_v18  ;;  %v5590_v54 = vld [vmem:[#allocation11 + $0x248] sm:$0xff]  ;;  %v14081_v30 = vcombine.high %v5589_v21, %v5605_v22  ;;  %v14080_v36 = vcombine.low %v5589_v21, %v5605_v22  ;;  %v5781_v18 = vld [vmem:[#allocation11 + $0x840] sm:$0xff] }
 0x5ea   :  { %12496 = vmatprep.subr.bf16.mxu1 %v14879_v24  ;;  %v5606_v24 = vld [vmem:[#allocation11 + $0x2c8] sm:$0xff] }
 0x5eb   :  { %v14083_v31 = vcombine.high %v5590_v54, %v5606_v24  ;;  %v14082_v38 = vcombine.low %v5590_v54, %v5606_v24  ;;  %v5798_v21 = vld [vmem:[#allocation11 + $0x8c8] sm:$0xff] }
 0x5ec   :  { %12411 = vmatpush1.bf16.msra.mxu0 %v14876_v32  ;;  %v5621_v32 = vld [vmem:[#allocation11 + $0x340] sm:$0xff] }
 0x5ed   :  { %12497 = vmatpush1.bf16.msra.mxu1 %v14878_v33  ;;  %12412 = vmatprep.subr.bf16.mxu0 %v14909_v34  ;;  %v5637_v33 = vld [vmem:[#allocation11 + $0x3c0] sm:$0xff]  ;;  %v5622_v34 = vld [vmem:[#allocation11 + $0x348] sm:$0xff] }
 0x5ee   :  { %12498 = vmatprep.subr.bf16.mxu1 %v14911_v35  ;;  %v5638_v35 = vld [vmem:[#allocation11 + $0x3c8] sm:$0xff]  ;;  %v14113_v37 = vcombine.high %v5621_v32, %v5637_v33  ;;  %v14112_v42 = vcombine.low %v5621_v32, %v5637_v33 }
 0x5ef   :  { %v14115_v56 = vcombine.high %v5622_v34, %v5638_v35  ;;  %v14114_v43 = vcombine.low %v5622_v34, %v5638_v35 }
 0x5f0   :  { %12413 = vmatpush1.bf16.msra.mxu0 %v14908_v57  ;;  %v5653_v57 = vld [vmem:[#allocation11 + $0x440] sm:$0xff] }
 0x5f1   :  { %12499 = vmatpush1.bf16.msra.mxu1 %v14910_v39  ;;  %12414 = vmatprep.subr.bf16.mxu0 %v14941_v40  ;;  %v5669_v39 = vld [vmem:[#allocation11 + $0x4c0] sm:$0xff]  ;;  %v5654_v40 = vld [vmem:[#allocation11 + $0x448] sm:$0xff] }
 0x5f2   :  { %12500 = vmatprep.subr.bf16.mxu1 %v14943_v41  ;;  %v5670_v41 = vld [vmem:[#allocation11 + $0x4c8] sm:$0xff]  ;;  %v14145_v44 = vcombine.high %v5653_v57, %v5669_v39  ;;  %v14144_v2 = vcombine.low %v5653_v57, %v5669_v39 }
 0x5f3   :  { %v14147_v45 = vcombine.high %v5654_v40, %v5670_v41  ;;  %v14146_v50 = vcombine.low %v5654_v40, %v5670_v41 }
 0x5f4   :  { %12415 = vmatpush1.bf16.msra.mxu0 %v14940_v46  ;;  %v5685_v46 = vld [vmem:[#allocation11 + $0x540] sm:$0xff] }
 0x5f5   :  { %12501 = vmatpush1.bf16.msra.mxu1 %v14942_v47  ;;  %12416 = vmatprep.subr.bf16.mxu0 %v14973_v48  ;;  %v5701_v47 = vld [vmem:[#allocation11 + $0x5c0] sm:$0xff]  ;;  %v5686_v48 = vld [vmem:[#allocation11 + $0x548] sm:$0xff] }
 0x5f6   :  { %12502 = vmatprep.subr.bf16.mxu1 %v14975_v49  ;;  %v5702_v49 = vld [vmem:[#allocation11 + $0x5c8] sm:$0xff]  ;;  %v14177_v51 = vcombine.high %v5685_v46, %v5701_v47  ;;  %v14176_v60 = vcombine.low %v5685_v46, %v5701_v47 }
 0x5f7   :  { %v14179_v52 = vcombine.high %v5686_v48, %v5702_v49  ;;  %v14178_v63 = vcombine.low %v5686_v48, %v5702_v49 }
 0x5f8   :  { %12417 = vmatpush1.bf16.msra.mxu0 %v14972_v53  ;;  %v5717_v53 = vld [vmem:[#allocation11 + $0x640] sm:$0xff] }
 0x5f9   :  { %12503 = vmatpush1.bf16.msra.mxu1 %v14974_v55  ;;  %12418 = vmatprep.subr.bf16.mxu0 %v15005_v58  ;;  %v5733_v55 = vld [vmem:[#allocation11 + $0x6c0] sm:$0xff]  ;;  %v5718_v58 = vld [vmem:[#allocation11 + $0x648] sm:$0xff] }
 0x5fa   :  { %12504 = vmatprep.subr.bf16.mxu1 %v15007_v59  ;;  %v5734_v59 = vld [vmem:[#allocation11 + $0x6c8] sm:$0xff]  ;;  %v14209_v0 = vcombine.high %v5717_v53, %v5733_v55  ;;  %v14208_v14 = vcombine.low %v5717_v53, %v5733_v55 }
 0x5fb   :  { %v14211_v1 = vcombine.high %v5718_v58, %v5734_v59  ;;  %v14210_v15 = vcombine.low %v5718_v58, %v5734_v59 }
 0x5fc   :  { %12419 = vmatpush1.bf16.msra.mxu0 %v15004_v5  ;;  %v5749_v5 = vld [vmem:[#allocation11 + $0x740] sm:$0xff] }
 0x5fd   :  { %12505 = vmatpush1.bf16.msra.mxu1 %v15006_v9  ;;  %12517 = vmatprep.subr.bf16.mxu0 %v14017_v10  ;;  %v5765_v9 = vld [vmem:[#allocation11 + $0x7c0] sm:$0xff]  ;;  %v5750_v10 = vld [vmem:[#allocation11 + $0x748] sm:$0xff] }
 0x5fe   :  { %12603 = vmatprep.subr.bf16.mxu1 %v14019_v11  ;;  %v5766_v11 = vld [vmem:[#allocation11 + $0x7c8] sm:$0xff]  ;;  %v14240_v22 = vcombine.low %v5749_v5, %v5765_v9 }
 0x5ff   :  { %12421 = vmatmul.mubr.bf16.vlgmr.msra.gmra.mrb[24].mxu0 %v16067_v8  ;;  %v14243_v17 = vcombine.high %v5750_v10, %v5766_v11 }
 0x600   :  { %12507 = vmatmul.mubr.bf16.vlgmr.msra.gmra.mrb[24].mxu1 %v16067_v8  ;;  %12518 = vmatpush1.bf16.msra.mxu0 %v14016_v16  ;;  %v14241_v16 = vcombine.high %v5749_v5, %v5765_v9 }
 0x601   :  { %12549 = vmatprep.mubr.bf16.mxu0 %v16069_v12  ;;  %12604 = vmatpush1.bf16.msra.mxu1 %v14018_v19  ;;  %v5797_v19 = vld [vmem:[#allocation11 + $0x8c0] sm:$0xff] }
 0x602   :  { %12635 = vmatprep.mubr.bf16.mxu1 %v16069_v12  ;;  %12519 = vmatprep.subr.bf16.mxu0 %v14049_v20  ;;  %v5782_v20 = vld [vmem:[#allocation11 + $0x848] sm:$0xff]  ;;  %v14273_v54 = vcombine.high %v5781_v18, %v5797_v19  ;;  %v14272_v32 = vcombine.low %v5781_v18, %v5797_v19 }
 0x603   :  { %12605 = vmatprep.subr.bf16.mxu1 %v14051_v23  ;;  %v14242_v23 = vcombine.low %v5750_v10, %v5766_v11  ;;  %v14275_v24 = vcombine.high %v5782_v20, %v5798_v21  ;;  %v14274_v33 = vcombine.low %v5782_v20, %v5798_v21 }
 0x604   :  { %12520 = vmatpush1.bf16.msra.mxu0 %v14048_v28  ;;  %v5813_v28 = vld [vmem:[#allocation11 + $0x940] sm:$0xff] }
 0x605   :  { %12606 = vmatpush1.bf16.msra.mxu1 %v14050_v29  ;;  %12521 = vmatprep.subr.bf16.mxu0 %v14081_v30  ;;  %v5829_v29 = vld [vmem:[#allocation11 + $0x9c0] sm:$0xff]  ;;  %v5814_v30 = vld [vmem:[#allocation11 + $0x948] sm:$0xff] }
 0x606   :  { %12607 = vmatprep.subr.bf16.mxu1 %v14083_v31  ;;  %v5830_v31 = vld [vmem:[#allocation11 + $0x9c8] sm:$0xff]  ;;  %v14305_v34 = vcombine.high %v5813_v28, %v5829_v29  ;;  %v14304_v57 = vcombine.low %v5813_v28, %v5829_v29 }
 0x607   :  { %v14307_v35 = vcombine.high %v5814_v30, %v5830_v31  ;;  %v14306_v39 = vcombine.low %v5814_v30, %v5830_v31 }
 0x608   :  { %12522 = vmatpush1.bf16.msra.mxu0 %v14080_v36  ;;  %v5845_v36 = vld [vmem:[#allocation11 + $0xa40] sm:$0xff] }
 0x609   :  { %12608 = vmatpush1.bf16.msra.mxu1 %v14082_v38  ;;  %12523 = vmatprep.subr.bf16.mxu0 %v14113_v37  ;;  %v5861_v38 = vld [vmem:[#allocation11 + $0xac0] sm:$0xff]  ;;  %v5846_v37 = vld [vmem:[#allocation11 + $0xa48] sm:$0xff] }
 0x60a   :  { %12609 = vmatprep.subr.bf16.mxu1 %v14115_v56  ;;  %v5862_v56 = vld [vmem:[#allocation11 + $0xac8] sm:$0xff]  ;;  %v14337_v40 = vcombine.high %v5845_v36, %v5861_v38  ;;  %v14336_v46 = vcombine.low %v5845_v36, %v5861_v38 }
 0x60b   :  { %v14339_v41 = vcombine.high %v5846_v37, %v5862_v56  ;;  %v14338_v47 = vcombine.low %v5846_v37, %v5862_v56 }
 0x60c   :  { %12524 = vmatpush1.bf16.msra.mxu0 %v14112_v42  ;;  %v5877_v42 = vld [vmem:[#allocation11 + $0xb40] sm:$0xff] }
 0x60d   :  { %12610 = vmatpush1.bf16.msra.mxu1 %v14114_v43  ;;  %12525 = vmatprep.subr.bf16.mxu0 %v14145_v44  ;;  %v5893_v43 = vld [vmem:[#allocation11 + $0xbc0] sm:$0xff]  ;;  %v5878_v44 = vld [vmem:[#allocation11 + $0xb48] sm:$0xff] }
 0x60e   :  { %12611 = vmatprep.subr.bf16.mxu1 %v14147_v45  ;;  %v5894_v45 = vld [vmem:[#allocation11 + $0xbc8] sm:$0xff]  ;;  %v14369_v48 = vcombine.high %v5877_v42, %v5893_v43  ;;  %v14368_v53 = vcombine.low %v5877_v42, %v5893_v43 }
 0x60f   :  { %v14371_v49 = vcombine.high %v5878_v44, %v5894_v45  ;;  %v14370_v55 = vcombine.low %v5878_v44, %v5894_v45  ;;  %v6086_v42 = vld [vmem:[#allocation11 + $0x11c8] sm:$0xff]  ;;  %v6101_v45 = vld [vmem:[#allocation11 + $0x1240] sm:$0xff] }
 0x610   :  { %12526 = vmatpush1.bf16.msra.mxu0 %v14144_v2  ;;  %v5909_v2 = vld [vmem:[#allocation11 + $0xc40] sm:$0xff] }
 0x611   :  { %12612 = vmatpush1.bf16.msra.mxu1 %v14146_v50  ;;  %12527 = vmatprep.subr.bf16.mxu0 %v14177_v51  ;;  %v5925_v50 = vld [vmem:[#allocation11 + $0xcc0] sm:$0xff]  ;;  %v5910_v51 = vld [vmem:[#allocation11 + $0xc48] sm:$0xff] }
 0x612   :  { %12613 = vmatprep.subr.bf16.mxu1 %v14179_v52  ;;  %v5926_v52 = vld [vmem:[#allocation11 + $0xcc8] sm:$0xff]  ;;  %v14401_v58 = vcombine.high %v5909_v2, %v5925_v50  ;;  %v14400_v5 = vcombine.low %v5909_v2, %v5925_v50 }
 0x613   :  { %v14403_v59 = vcombine.high %v5910_v51, %v5926_v52  ;;  %v14402_v9 = vcombine.low %v5910_v51, %v5926_v52 }
 0x614   :  { %12528 = vmatpush1.bf16.msra.mxu0 %v14176_v60  ;;  %v5941_v60 = vld [vmem:[#allocation11 + $0xd40] sm:$0xff] }
 0x615   :  { %12614 = vmatpush1.bf16.msra.mxu1 %v14178_v63  ;;  %12529 = vmatprep.subr.bf16.mxu0 %v14209_v0  ;;  %v5957_v63 = vld [vmem:[#allocation11 + $0xdc0] sm:$0xff]  ;;  %v5942_v0 = vld [vmem:[#allocation11 + $0xd48] sm:$0xff] }
 0x616   :  { %12615 = vmatprep.subr.bf16.mxu1 %v14211_v1  ;;  %v5958_v1 = vld [vmem:[#allocation11 + $0xdc8] sm:$0xff]  ;;  %v14433_v10 = vcombine.high %v5941_v60, %v5957_v63  ;;  %v14432_v18 = vcombine.low %v5941_v60, %v5957_v63 }
 0x617   :  { %v14435_v11 = vcombine.high %v5942_v0, %v5958_v1  ;;  %v14434_v19 = vcombine.low %v5942_v0, %v5958_v1 }
 0x618   :  { %12530 = vmatpush1.bf16.msra.mxu0 %v14208_v14  ;;  %v5973_v14 = vld [vmem:[#allocation11 + $0xe40] sm:$0xff] }
 0x619   :  { %12616 = vmatpush1.bf16.msra.mxu1 %v14210_v15  ;;  %12531 = vmatprep.subr.bf16.mxu0 %v14241_v16  ;;  %v5989_v15 = vld [vmem:[#allocation11 + $0xec0] sm:$0xff]  ;;  %v5974_v16 = vld [vmem:[#allocation11 + $0xe48] sm:$0xff] }
 0x61a   :  { %12617 = vmatprep.subr.bf16.mxu1 %v14243_v17  ;;  %v5990_v17 = vld [vmem:[#allocation11 + $0xec8] sm:$0xff]  ;;  %v14465_v20 = vcombine.high %v5973_v14, %v5989_v15  ;;  %v14464_v28 = vcombine.low %v5973_v14, %v5989_v15 }
 0x61b   :  { %v14467_v21 = vcombine.high %v5974_v16, %v5990_v17  ;;  %v14466_v29 = vcombine.low %v5974_v16, %v5990_v17 }
 0x61c   :  { %12532 = vmatpush1.bf16.msra.mxu0 %v14240_v22  ;;  %v6005_v22 = vld [vmem:[#allocation11 + $0xf40] sm:$0xff] }
 0x61d   :  { %12618 = vmatpush1.bf16.msra.mxu1 %v14242_v23  ;;  %12533 = vmatprep.subr.bf16.mxu0 %v14273_v54  ;;  %v6021_v23 = vld [vmem:[#allocation11 + $0xfc0] sm:$0xff]  ;;  %v6006_v54 = vld [vmem:[#allocation11 + $0xf48] sm:$0xff] }
 0x61e   :  { %12619 = vmatprep.subr.bf16.mxu1 %v14275_v24  ;;  %v6022_v24 = vld [vmem:[#allocation11 + $0xfc8] sm:$0xff]  ;;  %v14497_v30 = vcombine.high %v6005_v22, %v6021_v23  ;;  %v14496_v36 = vcombine.low %v6005_v22, %v6021_v23 }
 0x61f   :  { %v14499_v31 = vcombine.high %v6006_v54, %v6022_v24  ;;  %v14498_v38 = vcombine.low %v6006_v54, %v6022_v24  ;;  %v16129_v23 = vld [vmem:[#allocation13 + $0x8] sm:$0xff] }
 0x620   :  { %12534 = vmatpush1.bf16.msra.mxu0 %v14272_v32  ;;  %v6037_v32 = vld [vmem:[#allocation11 + $0x1040] sm:$0xff] }
 0x621   :  { %12620 = vmatpush1.bf16.msra.mxu1 %v14274_v33  ;;  %12535 = vmatprep.subr.bf16.mxu0 %v14305_v34  ;;  %v6053_v33 = vld [vmem:[#allocation11 + $0x10c0] sm:$0xff]  ;;  %v6038_v34 = vld [vmem:[#allocation11 + $0x1048] sm:$0xff] }
 0x622   :  { %12621 = vmatprep.subr.bf16.mxu1 %v14307_v35  ;;  %v6054_v35 = vld [vmem:[#allocation11 + $0x10c8] sm:$0xff]  ;;  %v14529_v37 = vcombine.high %v6037_v32, %v6053_v33 }
 0x623   :  { %v14531_v56 = vcombine.high %v6038_v34, %v6054_v35  ;;  %v14530_v43 = vcombine.low %v6038_v34, %v6054_v35  ;;  %v6592_v34 = vrot.slane %v16129_v23, %v16009_v3  ;;  %v6588_v35 = vrot.slane %v16129_v23, %v16012_v4 }
 0x624   :  { %12536 = vmatpush1.bf16.msra.mxu0 %v14304_v57  ;;  %v6069_v57 = vld [vmem:[#allocation11 + $0x1140] sm:$0xff] }
 0x625   :  { %12622 = vmatpush1.bf16.msra.mxu1 %v14306_v39  ;;  %12537 = vmatprep.subr.bf16.mxu0 %v14337_v40  ;;  %v6085_v39 = vld [vmem:[#allocation11 + $0x11c0] sm:$0xff]  ;;  %v14528_v40 = vcombine.low %v6037_v32, %v6053_v33  ;;  %v6230_v32 = vld [vmem:[#allocation11 + $0x1648] sm:$0xff] }
 0x626   :  { %12623 = vmatprep.subr.bf16.mxu1 %v14339_v41  ;;  %v6070_v41 = vld [vmem:[#allocation11 + $0x1148] sm:$0xff]  ;;  %v14561_v44 = vcombine.high %v6069_v57, %v6085_v39  ;;  %v14560_v2 = vcombine.low %v6069_v57, %v6085_v39 }
 0x627   :  { %v14562_v50 = vcombine.low %v6070_v41, %v6086_v42  ;;  %v6246_v33 = vld [vmem:[#allocation11 + $0x16c8] sm:$0xff] }
 0x628   :  { %12538 = vmatpush1.bf16.msra.mxu0 %v14336_v46  ;;  %v6117_v46 = vld [vmem:[#allocation11 + $0x12c0] sm:$0xff]  ;;  %v14723_v39 = vcombine.high %v6230_v32, %v6246_v33 }
 0x629   :  { %12624 = vmatpush1.bf16.msra.mxu1 %v14338_v47  ;;  %12539 = vmatprep.subr.bf16.mxu0 %v14369_v48  ;;  %v14563_v47 = vcombine.high %v6070_v41, %v6086_v42  ;;  %v6102_v48 = vld [vmem:[#allocation11 + $0x1248] sm:$0xff]  ;;  %v14593_v51 = vcombine.high %v6101_v45, %v6117_v46  ;;  %v14592_v60 = vcombine.low %v6101_v45, %v6117_v46  ;;  %v6277_v41 = vld [vmem:[#allocation11 + $0x17c0] sm:$0xff] }
 0x62a   :  { %12625 = vmatprep.subr.bf16.mxu1 %v14371_v49  ;;  %v6118_v49 = vld [vmem:[#allocation11 + $0x12c8] sm:$0xff] }
 0x62b   :  { %v14595_v52 = vcombine.high %v6102_v48, %v6118_v49  ;;  %v14594_v63 = vcombine.low %v6102_v48, %v6118_v49  ;;  %v6262_v45 = vld [vmem:[#allocation11 + $0x1748] sm:$0xff] }
 0x62c   :  { %12540 = vmatpush1.bf16.msra.mxu0 %v14368_v53  ;;  %v6133_v53 = vld [vmem:[#allocation11 + $0x1340] sm:$0xff]  ;;  %v6278_v46 = vld [vmem:[#allocation11 + $0x17c8] sm:$0xff] }
 0x62d   :  { %12626 = vmatpush1.bf16.msra.mxu1 %v14370_v55  ;;  %12541 = vmatprep.subr.bf16.mxu0 %v14401_v58  ;;  %v6149_v55 = vld [vmem:[#allocation11 + $0x13c0] sm:$0xff]  ;;  %v6134_v58 = vld [vmem:[#allocation11 + $0x1348] sm:$0xff] }
 0x62e   :  { %12627 = vmatprep.subr.bf16.mxu1 %v14403_v59  ;;  %v6150_v59 = vld [vmem:[#allocation11 + $0x13c8] sm:$0xff]  ;;  %v14625_v0 = vcombine.high %v6133_v53, %v6149_v55  ;;  %v14624_v14 = vcombine.low %v6133_v53, %v6149_v55 }
 0x62f   :  { %v14627_v1 = vcombine.high %v6134_v58, %v6150_v59  ;;  %v14626_v15 = vcombine.low %v6134_v58, %v6150_v59 }
 0x630   :  { %12542 = vmatpush1.bf16.msra.mxu0 %v14400_v5  ;;  %v6165_v5 = vld [vmem:[#allocation11 + $0x1440] sm:$0xff] }
 0x631   :  { %12628 = vmatpush1.bf16.msra.mxu1 %v14402_v9  ;;  %12543 = vmatprep.subr.bf16.mxu0 %v14433_v10  ;;  %v6181_v9 = vld [vmem:[#allocation11 + $0x14c0] sm:$0xff]  ;;  %v6166_v10 = vld [vmem:[#allocation11 + $0x1448] sm:$0xff] }
 0x632   :  { %12629 = vmatprep.subr.bf16.mxu1 %v14435_v11  ;;  %v6182_v11 = vld [vmem:[#allocation11 + $0x14c8] sm:$0xff]  ;;  %v14657_v16 = vcombine.high %v6165_v5, %v6181_v9  ;;  %v14656_v22 = vcombine.low %v6165_v5, %v6181_v9  ;;  %v6293_v5 = vld [vmem:[#allocation11 + $0x1840] sm:$0xff] }
 0x633   :  { %v14659_v17 = vcombine.high %v6166_v10, %v6182_v11  ;;  %v14658_v54 = vcombine.low %v6166_v10, %v6182_v11  ;;  %v6309_v9 = vld [vmem:[#allocation11 + $0x18c0] sm:$0xff]  ;;  %v6294_v11 = vld [vmem:[#allocation11 + $0x1848] sm:$0xff] }
 0x634   :  { %12544 = vmatpush1.bf16.msra.mxu0 %v14432_v18  ;;  %v6197_v18 = vld [vmem:[#allocation11 + $0x1540] sm:$0xff] }
 0x635   :  { %12630 = vmatpush1.bf16.msra.mxu1 %v14434_v19  ;;  %12545 = vmatprep.subr.bf16.mxu0 %v14465_v20  ;;  %v6213_v19 = vld [vmem:[#allocation11 + $0x15c0] sm:$0xff]  ;;  %v6198_v20 = vld [vmem:[#allocation11 + $0x1548] sm:$0xff] }
 0x636   :  { %12631 = vmatprep.subr.bf16.mxu1 %v14467_v21  ;;  %v6214_v21 = vld [vmem:[#allocation11 + $0x15c8] sm:$0xff]  ;;  %v14689_v24 = vcombine.high %v6197_v18, %v6213_v19 }
 0x638   :  { %12546 = vmatpush1.bf16.msra.mxu0 %v14464_v28  ;;  %v14691_v28 = vcombine.high %v6198_v20, %v6214_v21 }
 0x639   :  { %12632 = vmatpush1.bf16.msra.mxu1 %v14466_v29  ;;  %12547 = vmatprep.subr.bf16.mxu0 %v14497_v30  ;;  %v6229_v29 = vld [vmem:[#allocation11 + $0x1640] sm:$0xff] }
 0x63a   :  { %12633 = vmatprep.subr.bf16.mxu1 %v14499_v31  ;;  %v6245_v30 = vld [vmem:[#allocation11 + $0x16c0] sm:$0xff]  ;;  %v6584_v31 = vrot.slane %v16129_v23, %v16004_v62 }
 0x63c   :  { %12548 = vmatpush1.bf16.msra.mxu0 %v14496_v36  ;;  %v14688_v36 = vcombine.low %v6197_v18, %v6213_v19  ;;  %v6325_v19 = vld [vmem:[#allocation11 + $0x1940] sm:$0xff] }
 0x63d   :  { %12634 = vmatpush1.bf16.msra.mxu1 %v14498_v38  ;;  %12560 = vmatprep.subr.bf16.mxu0 %v14529_v37  ;;  %v6596_v38 = vrot.slane %v16129_v23, %v16015_v6  ;;  %v14690_v37 = vcombine.low %v6198_v20, %v6214_v21  ;;  %v6341_v20 = vld [vmem:[#allocation11 + $0x19c0] sm:$0xff]  ;;  %v6326_v21 = vld [vmem:[#allocation11 + $0x1948] sm:$0xff] }
 0x63e   :  { %12646 = vmatprep.subr.bf16.mxu1 %v14531_v56  ;;  %v14721_v56 = vcombine.high %v6229_v29, %v6245_v30 }
 0x63f   :  { %12550 = vmatmul.mubr.bf16.vlgmr.msra.gmra.mrb[28].mxu0 %v16065_v7 }
 0x640   :  { %12636 = vmatmul.mubr.bf16.vlgmr.msra.gmra.mrb[28].mxu1 %v16065_v7  ;;  %12561 = vmatpush1.bf16.msra.mxu0 %v14528_v40  ;;  %v6261_v40 = vld [vmem:[#allocation11 + $0x1740] sm:$0xff] }
 0x641   :  { %12592 = vmatprep.mubr.bf16.mxu0 %v16071_v13  ;;  %12647 = vmatpush1.bf16.msra.mxu1 %v14530_v43  ;;  %v14753_v59 = vcombine.high %v6261_v40, %v6277_v41 }
 0x642   :  { %12678 = vmatprep.mubr.bf16.mxu1 %v16071_v13  ;;  %12562 = vmatprep.subr.bf16.mxu0 %v14561_v44 }
 0x643   :  { %12648 = vmatprep.subr.bf16.mxu1 %v14563_v47 }
 0x644   :  { %12563 = vmatpush1.bf16.msra.mxu0 %v14560_v2 }
 0x645   :  { %12649 = vmatpush1.bf16.msra.mxu1 %v14562_v50  ;;  %12564 = vmatprep.subr.bf16.mxu0 %v14593_v51  ;;  %v14720_v50 = vcombine.low %v6229_v29, %v6245_v30  ;;  %v14722_v51 = vcombine.low %v6230_v32, %v6246_v33  ;;  %v6357_v30 = vld [vmem:[#allocation11 + $0x1a40] sm:$0xff]  ;;  %v6358_v32 = vld [vmem:[#allocation11 + $0x1a48] sm:$0xff] }
 0x646   :  { %12650 = vmatprep.subr.bf16.mxu1 %v14595_v52  ;;  %v6374_v33 = vld [vmem:[#allocation11 + $0x1ac8] sm:$0xff] }
 0x648   :  { %12565 = vmatpush1.bf16.msra.mxu0 %v14592_v60 }
 0x649   :  { %12651 = vmatpush1.bf16.msra.mxu1 %v14594_v63  ;;  %12566 = vmatprep.subr.bf16.mxu0 %v14625_v0 }
 0x64a   :  { %12652 = vmatprep.subr.bf16.mxu1 %v14627_v1  ;;  %v14755_v1 = vcombine.high %v6262_v45, %v6278_v46 }
 0x64c   :  { %12567 = vmatpush1.bf16.msra.mxu0 %v14624_v14  ;;  %v6310_v14 = vld [vmem:[#allocation11 + $0x18c8] sm:$0xff] }
 0x64d   :  { %12653 = vmatpush1.bf16.msra.mxu1 %v14626_v15  ;;  %12568 = vmatprep.subr.bf16.mxu0 %v14657_v16  ;;  %v14752_v15 = vcombine.low %v6261_v40, %v6277_v41  ;;  %v14754_v16 = vcombine.low %v6262_v45, %v6278_v46  ;;  %v14787_v18 = vcombine.high %v6294_v11, %v6310_v14  ;;  %v6437_v45 = vld [vmem:[#allocation11 + $0x1cc0] sm:$0xff]  ;;  %v6422_v46 = vld [vmem:[#allocation11 + $0x1c48] sm:$0xff] }
 0x64e   :  { %12654 = vmatprep.subr.bf16.mxu1 %v14659_v17  ;;  %v14785_v17 = vcombine.high %v6293_v5, %v6309_v9  ;;  %v14850_v41 = vcombine.low %v6358_v32, %v6374_v33 }
 0x650   :  { %12569 = vmatpush1.bf16.msra.mxu0 %v14656_v22  ;;  %v6342_v22 = vld [vmem:[#allocation11 + $0x19c8] sm:$0xff] }
 0x651   :  { %12655 = vmatpush1.bf16.msra.mxu1 %v14658_v54  ;;  %12570 = vmatprep.subr.bf16.mxu0 %v14689_v24  ;;  %v14784_v54 = vcombine.low %v6293_v5, %v6309_v9  ;;  %v14786_v24 = vcombine.low %v6294_v11, %v6310_v14  ;;  %v14819_v29 = vcombine.high %v6326_v21, %v6342_v22  ;;  %v6486_v5 = vld [vmem:[#allocation11 + $0x1e48] sm:$0xff] }
 0x652   :  { %v12250_v57 = vpop.f32.mrb[20].mxu0  ;;  %12656 = vmatprep.subr.bf16.mxu1 %v14691_v28  ;;  %v14817_v28 = vcombine.high %v6325_v19, %v6341_v20  ;;  %v6502_v9 = vld [vmem:[#allocation11 + $0x1ec8] sm:$0xff] }
 0x653   :  { %v15064_v42 = vadd.f32 %v12250_v57, %v6584_v31  ;;  %v12336_v43 = vpop.f32.mrb[20].mxu1  ;;  %v12252_v44 = vpop.f32.mrb[21].mxu0  ;;  %v6390_v57 = vld [vmem:[#allocation11 + $0x1b48] sm:$0xff] }
 0x654   :  { %v15068_v47 = vadd.f32 %v12336_v43, %v6592_v34  ;;  %v15065_v48 = vadd.f32 %v12252_v44, %v6588_v35  ;;  %v12338_v49 = vpop.f32.mrb[21].mxu1  ;;  %v12254_v2 = vpop.f32.mrb[22].mxu0  ;;  %12571 = vmatpush1.bf16.msra.mxu0 %v14688_v36  ;;  %v6421_v44 = vld [vmem:[#allocation11 + $0x1c40] sm:$0xff] }
 0x655   :  { %13213 = vst [vmem:[#allocation14 + $0x40] sm:$0xff] %v15064_v42  ;;  %v15069_v52 = vadd.f32 %v12338_v49, %v6596_v38  ;;  %v15066_v53 = vadd.f32 %v12254_v2, %v6584_v31  ;;  %v12340_v55 = vpop.f32.mrb[22].mxu1  ;;  %12657 = vmatpush1.bf16.msra.mxu1 %v14690_v37  ;;  %v12256_v58 = vpop.f32.mrb[23].mxu0  ;;  %12572 = vmatprep.subr.bf16.mxu0 %v14721_v56  ;;  %v6373_v31 = vld [vmem:[#allocation11 + $0x1ac0] sm:$0xff] }
 0x656   :  { %13215 = vst [vmem:[#allocation14 + $0x50] sm:$0xff] %v15068_v47  ;;  %13214 = vst [vmem:[#allocation14 + $0x48] sm:$0xff] %v15065_v48  ;;  %v15070_v60 = vadd.f32 %v12340_v55, %v6592_v34  ;;  %v15067_v63 = vadd.f32 %v12256_v58, %v6588_v35  ;;  %v12342_v0 = vpop.f32.mrb[23].mxu1  ;;  %12658 = vmatprep.subr.bf16.mxu1 %v14723_v39  ;;  %v14816_v34 = vcombine.low %v6325_v19, %v6341_v20  ;;  %v6389_v37 = vld [vmem:[#allocation11 + $0x1b40] sm:$0xff]  ;;  %v6406_v39 = vld [vmem:[#allocation11 + $0x1bc8] sm:$0xff] }
 0x657   :  { %13216 = vst [vmem:[#allocation14 + $0x58] sm:$0xff] %v15069_v52  ;;  %13245 = vst [vmem:[#allocation14 + $0x140] sm:$0xff] %v15066_v53  ;;  %v15071_v10 = vadd.f32 %v12342_v0, %v6596_v38  ;;  %v14818_v35 = vcombine.low %v6326_v21, %v6342_v22  ;;  %v14849_v36 = vcombine.high %v6357_v30, %v6373_v31  ;;  %v6405_v56 = vld [vmem:[#allocation11 + $0x1bc0] sm:$0xff]  ;;  %v6438_v47 = vld [vmem:[#allocation11 + $0x1cc8] sm:$0xff] }
 0x658   :  { %13247 = vst [vmem:[#allocation14 + $0x150] sm:$0xff] %v15070_v60  ;;  %13246 = vst [vmem:[#allocation14 + $0x148] sm:$0xff] %v15067_v63  ;;  %12573 = vmatpush1.bf16.msra.mxu0 %v14720_v50  ;;  %v14851_v38 = vcombine.high %v6358_v32, %v6374_v33  ;;  %v14848_v40 = vcombine.low %v6357_v30, %v6373_v31  ;;  %v14881_v42 = vcombine.high %v6389_v37, %v6405_v56  ;;  %v6469_v52 = vld [vmem:[#allocation11 + $0x1dc0] sm:$0xff]  ;;  %v6454_v53 = vld [vmem:[#allocation11 + $0x1d48] sm:$0xff] }
 0x659   :  { %13248 = vst [vmem:[#allocation14 + $0x158] sm:$0xff] %v15071_v10  ;;  %12659 = vmatpush1.bf16.msra.mxu1 %v14722_v51  ;;  %12574 = vmatprep.subr.bf16.mxu0 %v14753_v59  ;;  %v14883_v43 = vcombine.high %v6390_v57, %v6406_v39  ;;  %v14880_v48 = vcombine.low %v6389_v37, %v6405_v56  ;;  %v6453_v51 = vld [vmem:[#allocation11 + $0x1d40] sm:$0xff]  ;;  %v6470_v55 = vld [vmem:[#allocation11 + $0x1dc8] sm:$0xff]  ;;  %v5544_v30 = vld [vmem:[#allocation11 + $0xd8] sm:$0xff] }
 0x65a   :  { %12660 = vmatprep.subr.bf16.mxu1 %v14755_v1  ;;  %v14882_v49 = vcombine.low %v6390_v57, %v6406_v39  ;;  %v14913_v2 = vcombine.high %v6421_v44, %v6437_v45  ;;  %v14915_v50 = vcombine.high %v6422_v46, %v6438_v47  ;;  %v14912_v58 = vcombine.low %v6421_v44, %v6437_v45  ;;  %v6485_v0 = vld [vmem:[#allocation11 + $0x1e40] sm:$0xff]  ;;  %v6534_v19 = vld [vmem:[#allocation11 + $0x1fc8] sm:$0xff]  ;;  %v5560_v37 = vld [vmem:[#allocation11 + $0x158] sm:$0xff] }
 0x65b   :  { %v14914_v59 = vcombine.low %v6422_v46, %v6438_v47  ;;  %v14945_v60 = vcombine.high %v6453_v51, %v6469_v52  ;;  %v14947_v63 = vcombine.high %v6454_v53, %v6470_v55  ;;  %v6501_v1 = vld [vmem:[#allocation11 + $0x1ec0] sm:$0xff]  ;;  %v14944_v10 = vcombine.low %v6453_v51, %v6469_v52  ;;  %v5576_v56 = vld [vmem:[#allocation11 + $0x1d8] sm:$0xff] }
 0x65c   :  { %12575 = vmatpush1.bf16.msra.mxu0 %v14752_v15  ;;  %v14946_v11 = vcombine.low %v6454_v53, %v6470_v55  ;;  %v14977_v14 = vcombine.high %v6485_v0, %v6501_v1  ;;  %v14979_v15 = vcombine.high %v6486_v5, %v6502_v9  ;;  %v14976_v20 = vcombine.low %v6485_v0, %v6501_v1  ;;  %v5608_v44 = vld [vmem:[#allocation11 + $0x2d8] sm:$0xff] }
 0x65d   :  { %12661 = vmatpush1.bf16.msra.mxu1 %v14754_v16  ;;  %12576 = vmatprep.subr.bf16.mxu0 %v14785_v17  ;;  %v6517_v16 = vld [vmem:[#allocation11 + $0x1f40] sm:$0xff]  ;;  %v14978_v21 = vcombine.low %v6486_v5, %v6502_v9  ;;  %v14054_v46 = vcombine.low %v5560_v37, %v5576_v56  ;;  %v5640_v51 = vld [vmem:[#allocation11 + $0x3d8] sm:$0xff] }
 0x65e   :  { %12662 = vmatprep.subr.bf16.mxu1 %v14787_v18  ;;  %v6533_v17 = vld [vmem:[#allocation11 + $0x1fc0] sm:$0xff]  ;;  %v6518_v18 = vld [vmem:[#allocation11 + $0x1f48] sm:$0xff]  ;;  %v5672_v0 = vld [vmem:[#allocation11 + $0x4d8] sm:$0xff] }
 0x65f   :  { %v15009_v22 = vcombine.high %v6517_v16, %v6533_v17  ;;  %v15008_v31 = vcombine.low %v6517_v16, %v6533_v17  ;;  %v15010_v32 = vcombine.low %v6518_v18, %v6534_v19  ;;  %v5704_v16 = vld [vmem:[#allocation11 + $0x5d8] sm:$0xff] }
 0x660   :  { %12577 = vmatpush1.bf16.msra.mxu0 %v14784_v54  ;;  %v15011_v54 = vcombine.high %v6518_v18, %v6534_v19 }
 0x661   :  { %12663 = vmatpush1.bf16.msra.mxu1 %v14786_v24  ;;  %12578 = vmatprep.subr.bf16.mxu0 %v14817_v28  ;;  %v5527_v24 = vld [vmem:[#allocation11 + $0x50] sm:$0xff] }
 0x662   :  { %12664 = vmatprep.subr.bf16.mxu1 %v14819_v29  ;;  %v5543_v28 = vld [vmem:[#allocation11 + $0xd0] sm:$0xff]  ;;  %v5528_v29 = vld [vmem:[#allocation11 + $0x58] sm:$0xff] }
 0x663   :  { %v14021_v33 = vcombine.high %v5527_v24, %v5543_v28  ;;  %v14022_v57 = vcombine.low %v5528_v29, %v5544_v30 }
 0x664   :  { %12579 = vmatpush1.bf16.msra.mxu0 %v14816_v34  ;;  %v14023_v34 = vcombine.high %v5528_v29, %v5544_v30 }
 0x665   :  { %12665 = vmatpush1.bf16.msra.mxu1 %v14818_v35  ;;  %12580 = vmatprep.subr.bf16.mxu0 %v14849_v36  ;;  %v5559_v35 = vld [vmem:[#allocation11 + $0x150] sm:$0xff] }
 0x666   :  { %12666 = vmatprep.subr.bf16.mxu1 %v14851_v38  ;;  %v5575_v36 = vld [vmem:[#allocation11 + $0x1d0] sm:$0xff]  ;;  %v14020_v38 = vcombine.low %v5527_v24, %v5543_v28  ;;  %v5736_v24 = vld [vmem:[#allocation11 + $0x6d8] sm:$0xff] }
 0x667   :  { %v14053_v39 = vcombine.high %v5559_v35, %v5575_v36  ;;  %v14052_v45 = vcombine.low %v5559_v35, %v5575_v36  ;;  %v5768_v35 = vld [vmem:[#allocation11 + $0x7d8] sm:$0xff] }
 0x668   :  { %12581 = vmatpush1.bf16.msra.mxu0 %v14848_v40  ;;  %v5591_v40 = vld [vmem:[#allocation11 + $0x250] sm:$0xff] }
 0x669   :  { %12667 = vmatpush1.bf16.msra.mxu1 %v14850_v41  ;;  %12582 = vmatprep.subr.bf16.mxu0 %v14881_v42  ;;  %v5607_v41 = vld [vmem:[#allocation11 + $0x2d0] sm:$0xff]  ;;  %v14055_v42 = vcombine.high %v5560_v37, %v5576_v56 }
 0x66a   :  { %12668 = vmatprep.subr.bf16.mxu1 %v14883_v43  ;;  %v5592_v43 = vld [vmem:[#allocation11 + $0x258] sm:$0xff]  ;;  %v14085_v47 = vcombine.high %v5591_v40, %v5607_v41  ;;  %v14084_v52 = vcombine.low %v5591_v40, %v5607_v41 }
 0x66b   :  { %v14086_v53 = vcombine.low %v5592_v43, %v5608_v44  ;;  %v5784_v40 = vld [vmem:[#allocation11 + $0x858] sm:$0xff] }
 0x66c   :  { %12583 = vmatpush1.bf16.msra.mxu0 %v14880_v48  ;;  %v14087_v48 = vcombine.high %v5592_v43, %v5608_v44  ;;  %v5800_v41 = vld [vmem:[#allocation11 + $0x8d8] sm:$0xff] }
 0x66d   :  { %12669 = vmatpush1.bf16.msra.mxu1 %v14882_v49  ;;  %12584 = vmatprep.subr.bf16.mxu0 %v14913_v2  ;;  %v5623_v49 = vld [vmem:[#allocation11 + $0x350] sm:$0xff] }
 0x66e   :  { %12670 = vmatprep.subr.bf16.mxu1 %v14915_v50  ;;  %v5639_v2 = vld [vmem:[#allocation11 + $0x3d0] sm:$0xff]  ;;  %v5624_v50 = vld [vmem:[#allocation11 + $0x358] sm:$0xff] }
 0x66f   :  { %v14117_v55 = vcombine.high %v5623_v49, %v5639_v2  ;;  %v14116_v1 = vcombine.low %v5623_v49, %v5639_v2  ;;  %v14118_v5 = vcombine.low %v5624_v50, %v5640_v51  ;;  %v5832_v49 = vld [vmem:[#allocation11 + $0x9d8] sm:$0xff] }
 0x670   :  { %12585 = vmatpush1.bf16.msra.mxu0 %v14912_v58  ;;  %v14119_v58 = vcombine.high %v5624_v50, %v5640_v51  ;;  %v14278_v50 = vcombine.low %v5784_v40, %v5800_v41 }
 0x671   :  { %12671 = vmatpush1.bf16.msra.mxu1 %v14914_v59  ;;  %12586 = vmatprep.subr.bf16.mxu0 %v14945_v60  ;;  %v5655_v59 = vld [vmem:[#allocation11 + $0x450] sm:$0xff] }
 0x672   :  { %12672 = vmatprep.subr.bf16.mxu1 %v14947_v63  ;;  %v5671_v60 = vld [vmem:[#allocation11 + $0x4d0] sm:$0xff]  ;;  %v5656_v63 = vld [vmem:[#allocation11 + $0x458] sm:$0xff] }
 0x673   :  { %v14149_v9 = vcombine.high %v5655_v59, %v5671_v60  ;;  %v14148_v17 = vcombine.low %v5655_v59, %v5671_v60  ;;  %v14150_v18 = vcombine.low %v5656_v63, %v5672_v0  ;;  %v5864_v59 = vld [vmem:[#allocation11 + $0xad8] sm:$0xff] }
 0x674   :  { %12587 = vmatpush1.bf16.msra.mxu0 %v14944_v10  ;;  %v14151_v10 = vcombine.high %v5656_v63, %v5672_v0 }
 0x675   :  { %12673 = vmatpush1.bf16.msra.mxu1 %v14946_v11  ;;  %12588 = vmatprep.subr.bf16.mxu0 %v14977_v14  ;;  %v5687_v11 = vld [vmem:[#allocation11 + $0x550] sm:$0xff] }
 0x676   :  { %12674 = vmatprep.subr.bf16.mxu1 %v14979_v15  ;;  %v5703_v14 = vld [vmem:[#allocation11 + $0x5d0] sm:$0xff]  ;;  %v5688_v15 = vld [vmem:[#allocation11 + $0x558] sm:$0xff] }
 0x677   :  { %v14181_v19 = vcombine.high %v5687_v11, %v5703_v14  ;;  %v14180_v28 = vcombine.low %v5687_v11, %v5703_v14  ;;  %v14182_v29 = vcombine.low %v5688_v15, %v5704_v16  ;;  %v5896_v11 = vld [vmem:[#allocation11 + $0xbd8] sm:$0xff] }
 0x678   :  { %12589 = vmatpush1.bf16.msra.mxu0 %v14976_v20  ;;  %v14183_v20 = vcombine.high %v5688_v15, %v5704_v16 }
 0x679   :  { %12675 = vmatpush1.bf16.msra.mxu1 %v14978_v21  ;;  %12590 = vmatprep.subr.bf16.mxu0 %v15009_v22  ;;  %v5719_v21 = vld [vmem:[#allocation11 + $0x650] sm:$0xff] }
 0x67a   :  { %12676 = vmatprep.subr.bf16.mxu1 %v15011_v54  ;;  %v5735_v22 = vld [vmem:[#allocation11 + $0x6d0] sm:$0xff]  ;;  %v5720_v54 = vld [vmem:[#allocation11 + $0x658] sm:$0xff] }
 0x67b   :  { %v14213_v30 = vcombine.high %v5719_v21, %v5735_v22  ;;  %v14212_v36 = vcombine.low %v5719_v21, %v5735_v22  ;;  %v5928_v21 = vld [vmem:[#allocation11 + $0xcd8] sm:$0xff] }
 0x67c   :  { %12591 = vmatpush1.bf16.msra.mxu0 %v15008_v31  ;;  %v14215_v31 = vcombine.high %v5720_v54, %v5736_v24 }
 0x67d   :  { %12677 = vmatpush1.bf16.msra.mxu1 %v15010_v32  ;;  %12689 = vmatprep.subr.bf16.mxu0 %v14021_v33  ;;  %v5751_v32 = vld [vmem:[#allocation11 + $0x750] sm:$0xff] }
 0x67e   :  { %12775 = vmatprep.subr.bf16.mxu1 %v14023_v34  ;;  %v5767_v33 = vld [vmem:[#allocation11 + $0x7d0] sm:$0xff]  ;;  %v5752_v34 = vld [vmem:[#allocation11 + $0x758] sm:$0xff] }
 0x67f   :  { %12593 = vmatmul.mubr.bf16.vlgmr.msra.gmra.mrb[28].mxu0 %v16067_v8  ;;  %v14245_v37 = vcombine.high %v5751_v32, %v5767_v33  ;;  %v14247_v56 = vcombine.high %v5752_v34, %v5768_v35  ;;  %v14246_v43 = vcombine.low %v5752_v34, %v5768_v35 }
 0x680   :  { %12679 = vmatmul.mubr.bf16.vlgmr.msra.gmra.mrb[28].mxu1 %v16067_v8  ;;  %12690 = vmatpush1.bf16.msra.mxu0 %v14020_v38  ;;  %v14214_v38 = vcombine.low %v5720_v54, %v5736_v24 }
 0x681   :  { %12721 = vmatprep.mubr.bf16.mxu0 %v16069_v12  ;;  %12776 = vmatpush1.bf16.msra.mxu1 %v14022_v57  ;;  %v5783_v57 = vld [vmem:[#allocation11 + $0x850] sm:$0xff] }
 0x682   :  { %12807 = vmatprep.mubr.bf16.mxu1 %v16069_v12  ;;  %12691 = vmatprep.subr.bf16.mxu0 %v14053_v39  ;;  %v5799_v39 = vld [vmem:[#allocation11 + $0x8d0] sm:$0xff] }
 0x683   :  { %12777 = vmatprep.subr.bf16.mxu1 %v14055_v42  ;;  %v14244_v42 = vcombine.low %v5751_v32, %v5767_v33  ;;  %v14277_v44 = vcombine.high %v5783_v57, %v5799_v39  ;;  %v14276_v2 = vcombine.low %v5783_v57, %v5799_v39  ;;  %v5960_v32 = vld [vmem:[#allocation11 + $0xdd8] sm:$0xff] }
 0x684   :  { %12692 = vmatpush1.bf16.msra.mxu0 %v14052_v45  ;;  %v14279_v45 = vcombine.high %v5784_v40, %v5800_v41  ;;  %v5992_v57 = vld [vmem:[#allocation11 + $0xed8] sm:$0xff] }
 0x685   :  { %12778 = vmatpush1.bf16.msra.mxu1 %v14054_v46  ;;  %12693 = vmatprep.subr.bf16.mxu0 %v14085_v47  ;;  %v5815_v46 = vld [vmem:[#allocation11 + $0x950] sm:$0xff] }
 0x686   :  { %12779 = vmatprep.subr.bf16.mxu1 %v14087_v48  ;;  %v5831_v47 = vld [vmem:[#allocation11 + $0x9d0] sm:$0xff]  ;;  %v5816_v48 = vld [vmem:[#allocation11 + $0x958] sm:$0xff] }
 0x687   :  { %v14309_v51 = vcombine.high %v5815_v46, %v5831_v47  ;;  %v14308_v60 = vcombine.low %v5815_v46, %v5831_v47  ;;  %v14310_v63 = vcombine.low %v5816_v48, %v5832_v49  ;;  %v6024_v46 = vld [vmem:[#allocation11 + $0xfd8] sm:$0xff] }
 0x688   :  { %12694 = vmatpush1.bf16.msra.mxu0 %v14084_v52  ;;  %v14311_v52 = vcombine.high %v5816_v48, %v5832_v49 }
 0x689   :  { %12780 = vmatpush1.bf16.msra.mxu1 %v14086_v53  ;;  %12695 = vmatprep.subr.bf16.mxu0 %v14117_v55  ;;  %v5847_v53 = vld [vmem:[#allocation11 + $0xa50] sm:$0xff] }
 0x68a   :  { %12781 = vmatprep.subr.bf16.mxu1 %v14119_v58  ;;  %v5863_v55 = vld [vmem:[#allocation11 + $0xad0] sm:$0xff]  ;;  %v5848_v58 = vld [vmem:[#allocation11 + $0xa58] sm:$0xff] }
 0x68b   :  { %v14341_v0 = vcombine.high %v5847_v53, %v5863_v55  ;;  %v14340_v14 = vcombine.low %v5847_v53, %v5863_v55  ;;  %v14342_v15 = vcombine.low %v5848_v58, %v5864_v59  ;;  %v6056_v53 = vld [vmem:[#allocation11 + $0x10d8] sm:$0xff] }
 0x68c   :  { %12696 = vmatpush1.bf16.msra.mxu0 %v14116_v1  ;;  %v14343_v1 = vcombine.high %v5848_v58, %v5864_v59 }
 0x68d   :  { %12782 = vmatpush1.bf16.msra.mxu1 %v14118_v5  ;;  %12697 = vmatprep.subr.bf16.mxu0 %v14149_v9  ;;  %v5879_v5 = vld [vmem:[#allocation11 + $0xb50] sm:$0xff] }
 0x68e   :  { %12783 = vmatprep.subr.bf16.mxu1 %v14151_v10  ;;  %v5895_v9 = vld [vmem:[#allocation11 + $0xbd0] sm:$0xff]  ;;  %v5880_v10 = vld [vmem:[#allocation11 + $0xb58] sm:$0xff] }
 0x68f   :  { %v14373_v16 = vcombine.high %v5879_v5, %v5895_v9  ;;  %v14372_v22 = vcombine.low %v5879_v5, %v5895_v9  ;;  %v14374_v54 = vcombine.low %v5880_v10, %v5896_v11  ;;  %v6072_v5 = vld [vmem:[#allocation11 + $0x1158] sm:$0xff] }
 0x690   :  { %12698 = vmatpush1.bf16.msra.mxu0 %v14148_v17  ;;  %v14375_v17 = vcombine.high %v5880_v10, %v5896_v11  ;;  %v6088_v9 = vld [vmem:[#allocation11 + $0x11d8] sm:$0xff] }
 0x691   :  { %12784 = vmatpush1.bf16.msra.mxu1 %v14150_v18  ;;  %12699 = vmatprep.subr.bf16.mxu0 %v14181_v19  ;;  %v5911_v18 = vld [vmem:[#allocation11 + $0xc50] sm:$0xff] }
 0x692   :  { %12785 = vmatprep.subr.bf16.mxu1 %v14183_v20  ;;  %v5927_v19 = vld [vmem:[#allocation11 + $0xcd0] sm:$0xff]  ;;  %v5912_v20 = vld [vmem:[#allocation11 + $0xc58] sm:$0xff] }
 0x693   :  { %v14405_v24 = vcombine.high %v5911_v18, %v5927_v19  ;;  %v14404_v33 = vcombine.low %v5911_v18, %v5927_v19  ;;  %v14406_v34 = vcombine.low %v5912_v20, %v5928_v21  ;;  %v6120_v18 = vld [vmem:[#allocation11 + $0x12d8] sm:$0xff] }
 0x694   :  { %12700 = vmatpush1.bf16.msra.mxu0 %v14180_v28  ;;  %v14407_v28 = vcombine.high %v5912_v20, %v5928_v21  ;;  %v14566_v20 = vcombine.low %v6072_v5, %v6088_v9 }
 0x695   :  { %12786 = vmatpush1.bf16.msra.mxu1 %v14182_v29  ;;  %12701 = vmatprep.subr.bf16.mxu0 %v14213_v30  ;;  %v5943_v29 = vld [vmem:[#allocation11 + $0xd50] sm:$0xff] }
 0x696   :  { %12787 = vmatprep.subr.bf16.mxu1 %v14215_v31  ;;  %v5959_v30 = vld [vmem:[#allocation11 + $0xdd0] sm:$0xff]  ;;  %v5944_v31 = vld [vmem:[#allocation11 + $0xd58] sm:$0xff] }
 0x697   :  { %v14437_v35 = vcombine.high %v5943_v29, %v5959_v30  ;;  %v14436_v39 = vcombine.low %v5943_v29, %v5959_v30  ;;  %v14438_v40 = vcombine.low %v5944_v31, %v5960_v32  ;;  %v6152_v29 = vld [vmem:[#allocation11 + $0x13d8] sm:$0xff] }
 0x698   :  { %12702 = vmatpush1.bf16.msra.mxu0 %v14212_v36  ;;  %v14439_v36 = vcombine.high %v5944_v31, %v5960_v32 }
 0x699   :  { %12788 = vmatpush1.bf16.msra.mxu1 %v14214_v38  ;;  %12703 = vmatprep.subr.bf16.mxu0 %v14245_v37  ;;  %v5975_v38 = vld [vmem:[#allocation11 + $0xe50] sm:$0xff] }
 0x69a   :  { %12789 = vmatprep.subr.bf16.mxu1 %v14247_v56  ;;  %v5991_v37 = vld [vmem:[#allocation11 + $0xed0] sm:$0xff]  ;;  %v5976_v56 = vld [vmem:[#allocation11 + $0xe58] sm:$0xff] }
 0x69b   :  { %v14469_v41 = vcombine.high %v5975_v38, %v5991_v37  ;;  %v14468_v47 = vcombine.low %v5975_v38, %v5991_v37  ;;  %v14470_v48 = vcombine.low %v5976_v56, %v5992_v57  ;;  %v6184_v38 = vld [vmem:[#allocation11 + $0x14d8] sm:$0xff] }
 0x69c   :  { %12704 = vmatpush1.bf16.msra.mxu0 %v14244_v42  ;;  %v14471_v42 = vcombine.high %v5976_v56, %v5992_v57 }
 0x69d   :  { %12790 = vmatpush1.bf16.msra.mxu1 %v14246_v43  ;;  %12705 = vmatprep.subr.bf16.mxu0 %v14277_v44  ;;  %v6007_v43 = vld [vmem:[#allocation11 + $0xf50] sm:$0xff] }
 0x69e   :  { %12791 = vmatprep.subr.bf16.mxu1 %v14279_v45  ;;  %v6023_v44 = vld [vmem:[#allocation11 + $0xfd0] sm:$0xff]  ;;  %v6008_v45 = vld [vmem:[#allocation11 + $0xf58] sm:$0xff] }
 0x69f   :  { %v14501_v49 = vcombine.high %v6007_v43, %v6023_v44  ;;  %v14500_v55 = vcombine.low %v6007_v43, %v6023_v44  ;;  %v14502_v58 = vcombine.low %v6008_v45, %v6024_v46  ;;  %v6216_v43 = vld [vmem:[#allocation11 + $0x15d8] sm:$0xff] }
 0x6a0   :  { %12706 = vmatpush1.bf16.msra.mxu0 %v14276_v2  ;;  %v14503_v2 = vcombine.high %v6008_v45, %v6024_v46 }
 0x6a1   :  { %12792 = vmatpush1.bf16.msra.mxu1 %v14278_v50  ;;  %12707 = vmatprep.subr.bf16.mxu0 %v14309_v51  ;;  %v6039_v50 = vld [vmem:[#allocation11 + $0x1050] sm:$0xff] }
 0x6a2   :  { %12793 = vmatprep.subr.bf16.mxu1 %v14311_v52  ;;  %v6055_v51 = vld [vmem:[#allocation11 + $0x10d0] sm:$0xff]  ;;  %v6040_v52 = vld [vmem:[#allocation11 + $0x1058] sm:$0xff] }
 0x6a3   :  { %v14533_v59 = vcombine.high %v6039_v50, %v6055_v51  ;;  %v14534_v10 = vcombine.low %v6040_v52, %v6056_v53 }
 0x6a4   :  { %12708 = vmatpush1.bf16.msra.mxu0 %v14308_v60  ;;  %v14535_v60 = vcombine.high %v6040_v52, %v6056_v53  ;;  %v6608_v52 = vrot.slane %v16129_v23, %v16041_v26  ;;  %v6604_v53 = vrot.slane %v16129_v23, %v16044_v27 }
 0x6a5   :  { %12794 = vmatpush1.bf16.msra.mxu1 %v14310_v63  ;;  %12709 = vmatprep.subr.bf16.mxu0 %v14341_v0  ;;  %v6071_v63 = vld [vmem:[#allocation11 + $0x1150] sm:$0xff] }
 0x6a6   :  { %12795 = vmatprep.subr.bf16.mxu1 %v14343_v1  ;;  %v6087_v0 = vld [vmem:[#allocation11 + $0x11d0] sm:$0xff]  ;;  %v14532_v1 = vcombine.low %v6039_v50, %v6055_v51  ;;  %v6232_v50 = vld [vmem:[#allocation11 + $0x1658] sm:$0xff] }
 0x6a7   :  { %v14565_v11 = vcombine.high %v6071_v63, %v6087_v0  ;;  %v14564_v19 = vcombine.low %v6071_v63, %v6087_v0  ;;  %v6248_v51 = vld [vmem:[#allocation11 + $0x16d8] sm:$0xff] }
 0x6a8   :  { %12710 = vmatpush1.bf16.msra.mxu0 %v14340_v14  ;;  %v6103_v14 = vld [vmem:[#allocation11 + $0x1250] sm:$0xff]  ;;  %v14727_v0 = vcombine.high %v6232_v50, %v6248_v51 }
 0x6a9   :  { %12796 = vmatpush1.bf16.msra.mxu1 %v14342_v15  ;;  %12711 = vmatprep.subr.bf16.mxu0 %v14373_v16  ;;  %v6119_v15 = vld [vmem:[#allocation11 + $0x12d0] sm:$0xff]  ;;  %v14567_v16 = vcombine.high %v6072_v5, %v6088_v9 }
 0x6aa   :  { %12797 = vmatprep.subr.bf16.mxu1 %v14375_v17  ;;  %v6104_v17 = vld [vmem:[#allocation11 + $0x1258] sm:$0xff]  ;;  %v14597_v21 = vcombine.high %v6103_v14, %v6119_v15  ;;  %v14596_v30 = vcombine.low %v6103_v14, %v6119_v15  ;;  %v6279_v5 = vld [vmem:[#allocation11 + $0x17d0] sm:$0xff] }
 0x6ab   :  { %v14598_v31 = vcombine.low %v6104_v17, %v6120_v18  ;;  %v6264_v14 = vld [vmem:[#allocation11 + $0x1758] sm:$0xff] }
 0x6ac   :  { %12712 = vmatpush1.bf16.msra.mxu0 %v14372_v22  ;;  %v14599_v22 = vcombine.high %v6104_v17, %v6120_v18  ;;  %v6280_v15 = vld [vmem:[#allocation11 + $0x17d8] sm:$0xff] }
 0x6ad   :  { %12798 = vmatpush1.bf16.msra.mxu1 %v14374_v54  ;;  %12713 = vmatprep.subr.bf16.mxu0 %v14405_v24  ;;  %v6135_v54 = vld [vmem:[#allocation11 + $0x1350] sm:$0xff] }
 0x6ae   :  { %12799 = vmatprep.subr.bf16.mxu1 %v14407_v28  ;;  %v6151_v24 = vld [vmem:[#allocation11 + $0x13d0] sm:$0xff]  ;;  %v6136_v28 = vld [vmem:[#allocation11 + $0x1358] sm:$0xff] }
 0x6af   :  { %v14629_v32 = vcombine.high %v6135_v54, %v6151_v24  ;;  %v14628_v37 = vcombine.low %v6135_v54, %v6151_v24  ;;  %v14630_v56 = vcombine.low %v6136_v28, %v6152_v29 }
 0x6b0   :  { %12714 = vmatpush1.bf16.msra.mxu0 %v14404_v33  ;;  %v14631_v33 = vcombine.high %v6136_v28, %v6152_v29 }
 0x6b1   :  { %12800 = vmatpush1.bf16.msra.mxu1 %v14406_v34  ;;  %12715 = vmatprep.subr.bf16.mxu0 %v14437_v35  ;;  %v6167_v34 = vld [vmem:[#allocation11 + $0x1450] sm:$0xff] }
 0x6b2   :  { %12801 = vmatprep.subr.bf16.mxu1 %v14439_v36  ;;  %v6183_v35 = vld [vmem:[#allocation11 + $0x14d0] sm:$0xff]  ;;  %v6168_v36 = vld [vmem:[#allocation11 + $0x1458] sm:$0xff] }
 0x6b3   :  { %v14661_v57 = vcombine.high %v6167_v34, %v6183_v35  ;;  %v14660_v44 = vcombine.low %v6167_v34, %v6183_v35  ;;  %v14662_v45 = vcombine.low %v6168_v36, %v6184_v38  ;;  %v6311_v34 = vld [vmem:[#allocation11 + $0x18d0] sm:$0xff] }
 0x6b4   :  { %12716 = vmatpush1.bf16.msra.mxu0 %v14436_v39  ;;  %v14663_v39 = vcombine.high %v6168_v36, %v6184_v38  ;;  %v6296_v36 = vld [vmem:[#allocation11 + $0x1858] sm:$0xff] }
 0x6b5   :  { %12802 = vmatpush1.bf16.msra.mxu1 %v14438_v40  ;;  %12717 = vmatprep.subr.bf16.mxu0 %v14469_v41  ;;  %v6199_v40 = vld [vmem:[#allocation11 + $0x1550] sm:$0xff]  ;;  %v6312_v38 = vld [vmem:[#allocation11 + $0x18d8] sm:$0xff] }
 0x6b6   :  { %12803 = vmatprep.subr.bf16.mxu1 %v14471_v42  ;;  %v6215_v41 = vld [vmem:[#allocation11 + $0x15d0] sm:$0xff]  ;;  %v6200_v42 = vld [vmem:[#allocation11 + $0x1558] sm:$0xff] }
 0x6b7   :  { %v14693_v46 = vcombine.high %v6199_v40, %v6215_v41 }
 0x6b8   :  { %12718 = vmatpush1.bf16.msra.mxu0 %v14468_v47  ;;  %v14695_v47 = vcombine.high %v6200_v42, %v6216_v43 }
 0x6b9   :  { %12804 = vmatpush1.bf16.msra.mxu1 %v14470_v48  ;;  %12719 = vmatprep.subr.bf16.mxu0 %v14501_v49  ;;  %v6231_v48 = vld [vmem:[#allocation11 + $0x1650] sm:$0xff] }
 0x6ba   :  { %12805 = vmatprep.subr.bf16.mxu1 %v14503_v2  ;;  %v6247_v49 = vld [vmem:[#allocation11 + $0x16d0] sm:$0xff]  ;;  %v6600_v2 = vrot.slane %v16129_v23, %v16038_v25 }
 0x6bc   :  { %12720 = vmatpush1.bf16.msra.mxu0 %v14500_v55  ;;  %v14692_v55 = vcombine.low %v6199_v40, %v6215_v41  ;;  %v6327_v40 = vld [vmem:[#allocation11 + $0x1950] sm:$0xff] }
 0x6bd   :  { %12806 = vmatpush1.bf16.msra.mxu1 %v14502_v58  ;;  %12732 = vmatprep.subr.bf16.mxu0 %v14533_v59  ;;  %v6612_v58 = vrot.slane %v16129_v23, %v16047_v61  ;;  %v14694_v59 = vcombine.low %v6200_v42, %v6216_v43  ;;  %v14726_v23 = vcombine.low %v6232_v50, %v6248_v51  ;;  %v6343_v41 = vld [vmem:[#allocation11 + $0x19d0] sm:$0xff]  ;;  %v6328_v42 = vld [vmem:[#allocation11 + $0x1958] sm:$0xff] }
 0x6be   :  { %12818 = vmatprep.subr.bf16.mxu1 %v14535_v60  ;;  %v14725_v60 = vcombine.high %v6231_v48, %v6247_v49  ;;  %v6344_v43 = vld [vmem:[#allocation11 + $0x19d8] sm:$0xff]  ;;  %v14820_v51 = vcombine.low %v6327_v40, %v6343_v41 }
 0x6bf   :  { %12722 = vmatmul.mubr.bf16.vlgmr.msra.gmra.mrb[32].mxu0 %v16065_v7  ;;  %v6376_v50 = vld [vmem:[#allocation11 + $0x1ad8] sm:$0xff] }
 0x6c0   :  { %12808 = vmatmul.mubr.bf16.vlgmr.msra.gmra.mrb[32].mxu1 %v16065_v7  ;;  %12733 = vmatpush1.bf16.msra.mxu0 %v14532_v1  ;;  %v6263_v1 = vld [vmem:[#allocation11 + $0x1750] sm:$0xff] }
 0x6c1   :  { %12764 = vmatprep.mubr.bf16.mxu0 %v16071_v13  ;;  %12819 = vmatpush1.bf16.msra.mxu1 %v14534_v10  ;;  %v14757_v28 = vcombine.high %v6263_v1, %v6279_v5 }
 0x6c2   :  { %12850 = vmatprep.mubr.bf16.mxu1 %v16071_v13  ;;  %12734 = vmatprep.subr.bf16.mxu0 %v14565_v11 }
 0x6c3   :  { %12820 = vmatprep.subr.bf16.mxu1 %v14567_v16 }
 0x6c4   :  { %12735 = vmatpush1.bf16.msra.mxu0 %v14564_v19 }
 0x6c5   :  { %12821 = vmatpush1.bf16.msra.mxu1 %v14566_v20  ;;  %12736 = vmatprep.subr.bf16.mxu0 %v14597_v21  ;;  %v14724_v20 = vcombine.low %v6231_v48, %v6247_v49  ;;  %v6359_v48 = vld [vmem:[#allocation11 + $0x1a50] sm:$0xff] }
 0x6c6   :  { %12822 = vmatprep.subr.bf16.mxu1 %v14599_v22  ;;  %v6375_v49 = vld [vmem:[#allocation11 + $0x1ad0] sm:$0xff] }
 0x6c8   :  { %12737 = vmatpush1.bf16.msra.mxu0 %v14596_v30 }
 0x6c9   :  { %12823 = vmatpush1.bf16.msra.mxu1 %v14598_v31  ;;  %12738 = vmatprep.subr.bf16.mxu0 %v14629_v32  ;;  %v14759_v32 = vcombine.high %v6264_v14, %v6280_v15 }
 0x6ca   :  { %12824 = vmatprep.subr.bf16.mxu1 %v14631_v33  ;;  %v6295_v33 = vld [vmem:[#allocation11 + $0x1850] sm:$0xff] }
 0x6cc   :  { %12739 = vmatpush1.bf16.msra.mxu0 %v14628_v37  ;;  %v14756_v37 = vcombine.low %v6263_v1, %v6279_v5 }
 0x6cd   :  { %12825 = vmatpush1.bf16.msra.mxu1 %v14630_v56  ;;  %12740 = vmatprep.subr.bf16.mxu0 %v14661_v57  ;;  %v14758_v56 = vcombine.low %v6264_v14, %v6280_v15  ;;  %v14789_v57 = vcombine.high %v6295_v33, %v6311_v34  ;;  %v6424_v14 = vld [vmem:[#allocation11 + $0x1c58] sm:$0xff] }
 0x6ce   :  { %12826 = vmatprep.subr.bf16.mxu1 %v14663_v39  ;;  %v14791_v39 = vcombine.high %v6296_v36, %v6312_v38  ;;  %v6440_v15 = vld [vmem:[#allocation11 + $0x1cd8] sm:$0xff] }
 0x6d0   :  { %12741 = vmatpush1.bf16.msra.mxu0 %v14660_v44  ;;  %v14788_v44 = vcombine.low %v6295_v33, %v6311_v34  ;;  %v6504_v33 = vld [vmem:[#allocation11 + $0x1ed8] sm:$0xff] }
 0x6d1   :  { %12827 = vmatpush1.bf16.msra.mxu1 %v14662_v45  ;;  %12742 = vmatprep.subr.bf16.mxu0 %v14693_v46  ;;  %v14790_v45 = vcombine.low %v6296_v36, %v6312_v38  ;;  %v14821_v46 = vcombine.high %v6327_v40, %v6343_v41 }
 0x6d2   :  { %v12422_v63 = vpop.f32.mrb[24].mxu0  ;;  %12828 = vmatprep.subr.bf16.mxu1 %v14695_v47  ;;  %v14823_v47 = vcombine.high %v6328_v42, %v6344_v43 }
 0x6d3   :  { %v15072_v9 = vadd.f32 %v12422_v63, %v6600_v2  ;;  %v12508_v10 = vpop.f32.mrb[24].mxu1  ;;  %v12424_v11 = vpop.f32.mrb[25].mxu0  ;;  %v6408_v63 = vld [vmem:[#allocation11 + $0x1bd8] sm:$0xff] }
 0x6d4   :  { %v15076_v16 = vadd.f32 %v12508_v10, %v6608_v52  ;;  %v15073_v17 = vadd.f32 %v12424_v11, %v6604_v53  ;;  %v12510_v18 = vpop.f32.mrb[25].mxu1  ;;  %v12426_v19 = vpop.f32.mrb[26].mxu0  ;;  %12743 = vmatpush1.bf16.msra.mxu0 %v14692_v55  ;;  %v6423_v10 = vld [vmem:[#allocation11 + $0x1c50] sm:$0xff] }
 0x6d5   :  { %13217 = vst [vmem:[#allocation14 + $0x60] sm:$0xff] %v15072_v9  ;;  %v15077_v21 = vadd.f32 %v12510_v18, %v6612_v58  ;;  %v15074_v22 = vadd.f32 %v12426_v19, %v6600_v2  ;;  %v12512_v54 = vpop.f32.mrb[26].mxu1  ;;  %12829 = vmatpush1.bf16.msra.mxu1 %v14694_v59  ;;  %v12428_v24 = vpop.f32.mrb[27].mxu0  ;;  %12744 = vmatprep.subr.bf16.mxu0 %v14725_v60  ;;  %v6360_v2 = vld [vmem:[#allocation11 + $0x1a58] sm:$0xff]  ;;  %v6407_v59 = vld [vmem:[#allocation11 + $0x1bd0] sm:$0xff] }
 0x6d6   :  { %13219 = vst [vmem:[#allocation14 + $0x70] sm:$0xff] %v15076_v16  ;;  %13218 = vst [vmem:[#allocation14 + $0x68] sm:$0xff] %v15073_v17  ;;  %v15078_v29 = vadd.f32 %v12512_v54, %v6608_v52  ;;  %v15075_v30 = vadd.f32 %v12428_v24, %v6604_v53  ;;  %v12514_v31 = vpop.f32.mrb[27].mxu1  ;;  %12830 = vmatprep.subr.bf16.mxu1 %v14727_v0  ;;  %v14822_v52 = vcombine.low %v6328_v42, %v6344_v43  ;;  %v6392_v60 = vld [vmem:[#allocation11 + $0x1b58] sm:$0xff]  ;;  %v6439_v11 = vld [vmem:[#allocation11 + $0x1cd0] sm:$0xff] }
 0x6d7   :  { %13220 = vst [vmem:[#allocation14 + $0x78] sm:$0xff] %v15077_v21  ;;  %13249 = vst [vmem:[#allocation14 + $0x160] sm:$0xff] %v15074_v22  ;;  %v15079_v35 = vadd.f32 %v12514_v31, %v6612_v58  ;;  %v14853_v53 = vcombine.high %v6359_v48, %v6375_v49  ;;  %v14855_v55 = vcombine.high %v6360_v2, %v6376_v50  ;;  %v6391_v58 = vld [vmem:[#allocation11 + $0x1b50] sm:$0xff]  ;;  %v6456_v21 = vld [vmem:[#allocation11 + $0x1d58] sm:$0xff] }
 0x6d8   :  { %13251 = vst [vmem:[#allocation14 + $0x170] sm:$0xff] %v15078_v29  ;;  %13250 = vst [vmem:[#allocation14 + $0x168] sm:$0xff] %v15075_v30  ;;  %12745 = vmatpush1.bf16.msra.mxu0 %v14724_v20  ;;  %v14852_v0 = vcombine.low %v6359_v48, %v6375_v49  ;;  %v14854_v1 = vcombine.low %v6360_v2, %v6376_v50  ;;  %v14885_v5 = vcombine.high %v6391_v58, %v6407_v59  ;;  %v6455_v20 = vld [vmem:[#allocation11 + $0x1d50] sm:$0xff]  ;;  %v6472_v22 = vld [vmem:[#allocation11 + $0x1dd8] sm:$0xff] }
 0x6d9   :  { %13252 = vst [vmem:[#allocation14 + $0x178] sm:$0xff] %v15079_v35  ;;  %12831 = vmatpush1.bf16.msra.mxu1 %v14726_v23  ;;  %12746 = vmatprep.subr.bf16.mxu0 %v14757_v28  ;;  %v14887_v9 = vcombine.high %v6392_v60, %v6408_v63  ;;  %v14884_v16 = vcombine.low %v6391_v58, %v6407_v59  ;;  %v6471_v23 = vld [vmem:[#allocation11 + $0x1dd0] sm:$0xff]  ;;  %v5578_v58 = vld [vmem:[#allocation11 + $0x1e8] sm:$0xff] }
 0x6da   :  { %12832 = vmatprep.subr.bf16.mxu1 %v14759_v32  ;;  %v14886_v17 = vcombine.low %v6392_v60, %v6408_v63  ;;  %v14917_v18 = vcombine.high %v6423_v10, %v6439_v11  ;;  %v14919_v19 = vcombine.high %v6424_v14, %v6440_v15  ;;  %v14916_v54 = vcombine.low %v6423_v10, %v6439_v11  ;;  %v6487_v30 = vld [vmem:[#allocation11 + $0x1e50] sm:$0xff]  ;;  %v6488_v32 = vld [vmem:[#allocation11 + $0x1e58] sm:$0xff]  ;;  %v5593_v63 = vld [vmem:[#allocation11 + $0x260] sm:$0xff] }
 0x6db   :  { %v14918_v24 = vcombine.low %v6424_v14, %v6440_v15  ;;  %v14949_v28 = vcombine.high %v6455_v20, %v6471_v23  ;;  %v14951_v29 = vcombine.high %v6456_v21, %v6472_v22  ;;  %v6503_v31 = vld [vmem:[#allocation11 + $0x1ed0] sm:$0xff]  ;;  %v14948_v34 = vcombine.low %v6455_v20, %v6471_v23 }
 0x6dc   :  { %12747 = vmatpush1.bf16.msra.mxu0 %v14756_v37  ;;  %v14950_v35 = vcombine.low %v6456_v21, %v6472_v22  ;;  %v14981_v36 = vcombine.high %v6487_v30, %v6503_v31  ;;  %v14983_v38 = vcombine.high %v6488_v32, %v6504_v33  ;;  %v6519_v37 = vld [vmem:[#allocation11 + $0x1f50] sm:$0xff]  ;;  %v14980_v40 = vcombine.low %v6487_v30, %v6503_v31 }
 0x6dd   :  { %12833 = vmatpush1.bf16.msra.mxu1 %v14758_v56  ;;  %12748 = vmatprep.subr.bf16.mxu0 %v14789_v57  ;;  %v6535_v56 = vld [vmem:[#allocation11 + $0x1fd0] sm:$0xff]  ;;  %v6520_v57 = vld [vmem:[#allocation11 + $0x1f58] sm:$0xff]  ;;  %v14982_v41 = vcombine.low %v6488_v32, %v6504_v33 }
 0x6de   :  { %12834 = vmatprep.subr.bf16.mxu1 %v14791_v39  ;;  %v6536_v39 = vld [vmem:[#allocation11 + $0x1fd8] sm:$0xff]  ;;  %v15013_v42 = vcombine.high %v6519_v37, %v6535_v56  ;;  %v15012_v48 = vcombine.low %v6519_v37, %v6535_v56 }
 0x6df   :  { %v15015_v43 = vcombine.high %v6520_v57, %v6536_v39  ;;  %v15014_v49 = vcombine.low %v6520_v57, %v6536_v39 }
 0x6e0   :  { %12749 = vmatpush1.bf16.msra.mxu0 %v14788_v44  ;;  %v5529_v44 = vld [vmem:[#allocation11 + $0x60] sm:$0xff] }
 0x6e1   :  { %12835 = vmatpush1.bf16.msra.mxu1 %v14790_v45  ;;  %12750 = vmatprep.subr.bf16.mxu0 %v14821_v46  ;;  %v5545_v45 = vld [vmem:[#allocation11 + $0xe0] sm:$0xff]  ;;  %v5530_v46 = vld [vmem:[#allocation11 + $0x68] sm:$0xff] }
 0x6e2   :  { %12836 = vmatprep.subr.bf16.mxu1 %v14823_v47  ;;  %v5546_v47 = vld [vmem:[#allocation11 + $0xe8] sm:$0xff]  ;;  %v14025_v2 = vcombine.high %v5529_v44, %v5545_v45 }
 0x6e3   :  { %v14027_v50 = vcombine.high %v5530_v46, %v5546_v47  ;;  %v14026_v59 = vcombine.low %v5530_v46, %v5546_v47 }
 0x6e4   :  { %12751 = vmatpush1.bf16.msra.mxu0 %v14820_v51  ;;  %v5561_v51 = vld [vmem:[#allocation11 + $0x160] sm:$0xff] }
 0x6e5   :  { %12837 = vmatpush1.bf16.msra.mxu1 %v14822_v52  ;;  %12752 = vmatprep.subr.bf16.mxu0 %v14853_v53  ;;  %v5577_v52 = vld [vmem:[#allocation11 + $0x1e0] sm:$0xff]  ;;  %v14024_v53 = vcombine.low %v5529_v44, %v5545_v45 }
 0x6e6   :  { %12838 = vmatprep.subr.bf16.mxu1 %v14855_v55  ;;  %v5562_v55 = vld [vmem:[#allocation11 + $0x168] sm:$0xff]  ;;  %v14057_v60 = vcombine.high %v5561_v51, %v5577_v52  ;;  %v14056_v10 = vcombine.low %v5561_v51, %v5577_v52 }
 0x6e7   :  { %v14058_v11 = vcombine.low %v5562_v55, %v5578_v58 }
 0x6e8   :  { %12753 = vmatpush1.bf16.msra.mxu0 %v14852_v0  ;;  %v5609_v0 = vld [vmem:[#allocation11 + $0x2e0] sm:$0xff] }
 0x6e9   :  { %12839 = vmatpush1.bf16.msra.mxu1 %v14854_v1  ;;  %12754 = vmatprep.subr.bf16.mxu0 %v14885_v5  ;;  %v14059_v1 = vcombine.high %v5562_v55, %v5578_v58  ;;  %v5594_v5 = vld [vmem:[#allocation11 + $0x268] sm:$0xff]  ;;  %v14089_v14 = vcombine.high %v5593_v63, %v5609_v0  ;;  %v14088_v20 = vcombine.low %v5593_v63, %v5609_v0  ;;  %v5785_v58 = vld [vmem:[#allocation11 + $0x860] sm:$0xff] }
 0x6ea   :  { %12840 = vmatprep.subr.bf16.mxu1 %v14887_v9  ;;  %v5610_v9 = vld [vmem:[#allocation11 + $0x2e8] sm:$0xff] }
 0x6eb   :  { %v14091_v15 = vcombine.high %v5594_v5, %v5610_v9  ;;  %v14090_v23 = vcombine.low %v5594_v5, %v5610_v9  ;;  %v5802_v63 = vld [vmem:[#allocation11 + $0x8e8] sm:$0xff] }
 0x6ec   :  { %12755 = vmatpush1.bf16.msra.mxu0 %v14884_v16  ;;  %v5625_v16 = vld [vmem:[#allocation11 + $0x360] sm:$0xff] }
 0x6ed   :  { %12841 = vmatpush1.bf16.msra.mxu1 %v14886_v17  ;;  %12756 = vmatprep.subr.bf16.mxu0 %v14917_v18  ;;  %v5641_v17 = vld [vmem:[#allocation11 + $0x3e0] sm:$0xff]  ;;  %v5626_v18 = vld [vmem:[#allocation11 + $0x368] sm:$0xff] }
 0x6ee   :  { %12842 = vmatprep.subr.bf16.mxu1 %v14919_v19  ;;  %v5642_v19 = vld [vmem:[#allocation11 + $0x3e8] sm:$0xff]  ;;  %v14121_v21 = vcombine.high %v5625_v16, %v5641_v17  ;;  %v14120_v30 = vcombine.low %v5625_v16, %v5641_v17 }
 0x6ef   :  { %v14123_v22 = vcombine.high %v5626_v18, %v5642_v19  ;;  %v14122_v31 = vcombine.low %v5626_v18, %v5642_v19 }
 0x6f0   :  { %12757 = vmatpush1.bf16.msra.mxu0 %v14916_v54  ;;  %v5657_v54 = vld [vmem:[#allocation11 + $0x460] sm:$0xff] }
 0x6f1   :  { %12843 = vmatpush1.bf16.msra.mxu1 %v14918_v24  ;;  %12758 = vmatprep.subr.bf16.mxu0 %v14949_v28  ;;  %v5673_v24 = vld [vmem:[#allocation11 + $0x4e0] sm:$0xff]  ;;  %v5658_v28 = vld [vmem:[#allocation11 + $0x468] sm:$0xff] }
 0x6f2   :  { %12844 = vmatprep.subr.bf16.mxu1 %v14951_v29  ;;  %v5674_v29 = vld [vmem:[#allocation11 + $0x4e8] sm:$0xff]  ;;  %v14153_v32 = vcombine.high %v5657_v54, %v5673_v24  ;;  %v14152_v37 = vcombine.low %v5657_v54, %v5673_v24 }
 0x6f3   :  { %v14155_v33 = vcombine.high %v5658_v28, %v5674_v29  ;;  %v14154_v56 = vcombine.low %v5658_v28, %v5674_v29 }
 0x6f4   :  { %12759 = vmatpush1.bf16.msra.mxu0 %v14948_v34  ;;  %v5689_v34 = vld [vmem:[#allocation11 + $0x560] sm:$0xff] }
 0x6f5   :  { %12845 = vmatpush1.bf16.msra.mxu1 %v14950_v35  ;;  %12760 = vmatprep.subr.bf16.mxu0 %v14981_v36  ;;  %v5705_v35 = vld [vmem:[#allocation11 + $0x5e0] sm:$0xff]  ;;  %v5690_v36 = vld [vmem:[#allocation11 + $0x568] sm:$0xff] }
 0x6f6   :  { %12846 = vmatprep.subr.bf16.mxu1 %v14983_v38  ;;  %v5706_v38 = vld [vmem:[#allocation11 + $0x5e8] sm:$0xff]  ;;  %v14185_v57 = vcombine.high %v5689_v34, %v5705_v35  ;;  %v14184_v44 = vcombine.low %v5689_v34, %v5705_v35 }
 0x6f7   :  { %v14187_v39 = vcombine.high %v5690_v36, %v5706_v38  ;;  %v14186_v45 = vcombine.low %v5690_v36, %v5706_v38 }
 0x6f8   :  { %12761 = vmatpush1.bf16.msra.mxu0 %v14980_v40  ;;  %v5721_v40 = vld [vmem:[#allocation11 + $0x660] sm:$0xff] }
 0x6f9   :  { %12847 = vmatpush1.bf16.msra.mxu1 %v14982_v41  ;;  %12762 = vmatprep.subr.bf16.mxu0 %v15013_v42  ;;  %v5737_v41 = vld [vmem:[#allocation11 + $0x6e0] sm:$0xff]  ;;  %v5722_v42 = vld [vmem:[#allocation11 + $0x668] sm:$0xff] }
 0x6fa   :  { %12848 = vmatprep.subr.bf16.mxu1 %v15015_v43  ;;  %v5738_v43 = vld [vmem:[#allocation11 + $0x6e8] sm:$0xff]  ;;  %v14217_v46 = vcombine.high %v5721_v40, %v5737_v41  ;;  %v14216_v51 = vcombine.low %v5721_v40, %v5737_v41 }
 0x6fb   :  { %v14219_v47 = vcombine.high %v5722_v42, %v5738_v43  ;;  %v14218_v52 = vcombine.low %v5722_v42, %v5738_v43 }
 0x6fc   :  { %12763 = vmatpush1.bf16.msra.mxu0 %v15012_v48  ;;  %v5753_v48 = vld [vmem:[#allocation11 + $0x760] sm:$0xff] }
 0x6fd   :  { %12849 = vmatpush1.bf16.msra.mxu1 %v15014_v49  ;;  %12861 = vmatprep.subr.bf16.mxu0 %v14025_v2  ;;  %v5769_v49 = vld [vmem:[#allocation11 + $0x7e0] sm:$0xff]  ;;  %v5754_v2 = vld [vmem:[#allocation11 + $0x768] sm:$0xff] }
 0x6fe   :  { %12947 = vmatprep.subr.bf16.mxu1 %v14027_v50  ;;  %v5770_v50 = vld [vmem:[#allocation11 + $0x7e8] sm:$0xff]  ;;  %v14248_v0 = vcombine.low %v5753_v48, %v5769_v49 }
 0x6ff   :  { %12765 = vmatmul.mubr.bf16.vlgmr.msra.gmra.mrb[32].mxu0 %v16067_v8  ;;  %v14251_v55 = vcombine.high %v5754_v2, %v5770_v50 }
 0x700   :  { %12851 = vmatmul.mubr.bf16.vlgmr.msra.gmra.mrb[32].mxu1 %v16067_v8  ;;  %12862 = vmatpush1.bf16.msra.mxu0 %v14024_v53  ;;  %v14249_v53 = vcombine.high %v5753_v48, %v5769_v49 }
 0x701   :  { %12893 = vmatprep.mubr.bf16.mxu0 %v16069_v12  ;;  %12948 = vmatpush1.bf16.msra.mxu1 %v14026_v59  ;;  %v5801_v59 = vld [vmem:[#allocation11 + $0x8e0] sm:$0xff] }
 0x702   :  { %12979 = vmatprep.mubr.bf16.mxu1 %v16069_v12  ;;  %12863 = vmatprep.subr.bf16.mxu0 %v14057_v60  ;;  %v5786_v60 = vld [vmem:[#allocation11 + $0x868] sm:$0xff]  ;;  %v14281_v5 = vcombine.high %v5785_v58, %v5801_v59  ;;  %v14280_v16 = vcombine.low %v5785_v58, %v5801_v59 }
 0x703   :  { %12949 = vmatprep.subr.bf16.mxu1 %v14059_v1  ;;  %v14250_v1 = vcombine.low %v5754_v2, %v5770_v50  ;;  %v14283_v9 = vcombine.high %v5786_v60, %v5802_v63  ;;  %v14282_v17 = vcombine.low %v5786_v60, %v5802_v63 }
 0x704   :  { %12864 = vmatpush1.bf16.msra.mxu0 %v14056_v10  ;;  %v5817_v10 = vld [vmem:[#allocation11 + $0x960] sm:$0xff] }
 0x705   :  { %12950 = vmatpush1.bf16.msra.mxu1 %v14058_v11  ;;  %12865 = vmatprep.subr.bf16.mxu0 %v14089_v14  ;;  %v5833_v11 = vld [vmem:[#allocation11 + $0x9e0] sm:$0xff]  ;;  %v5818_v14 = vld [vmem:[#allocation11 + $0x968] sm:$0xff] }
 0x706   :  { %12951 = vmatprep.subr.bf16.mxu1 %v14091_v15  ;;  %v5834_v15 = vld [vmem:[#allocation11 + $0x9e8] sm:$0xff]  ;;  %v14313_v18 = vcombine.high %v5817_v10, %v5833_v11  ;;  %v14312_v54 = vcombine.low %v5817_v10, %v5833_v11 }
 0x707   :  { %v14315_v19 = vcombine.high %v5818_v14, %v5834_v15  ;;  %v14314_v24 = vcombine.low %v5818_v14, %v5834_v15 }
 0x708   :  { %12866 = vmatpush1.bf16.msra.mxu0 %v14088_v20  ;;  %v5849_v20 = vld [vmem:[#allocation11 + $0xa60] sm:$0xff] }
 0x709   :  { %12952 = vmatpush1.bf16.msra.mxu1 %v14090_v23  ;;  %12867 = vmatprep.subr.bf16.mxu0 %v14121_v21  ;;  %v5865_v23 = vld [vmem:[#allocation11 + $0xae0] sm:$0xff]  ;;  %v5850_v21 = vld [vmem:[#allocation11 + $0xa68] sm:$0xff] }
 0x70a   :  { %12953 = vmatprep.subr.bf16.mxu1 %v14123_v22  ;;  %v5866_v22 = vld [vmem:[#allocation11 + $0xae8] sm:$0xff]  ;;  %v14345_v28 = vcombine.high %v5849_v20, %v5865_v23  ;;  %v14344_v34 = vcombine.low %v5849_v20, %v5865_v23 }
 0x70b   :  { %v14347_v29 = vcombine.high %v5850_v21, %v5866_v22  ;;  %v14346_v35 = vcombine.low %v5850_v21, %v5866_v22 }
 0x70c   :  { %12868 = vmatpush1.bf16.msra.mxu0 %v14120_v30  ;;  %v5881_v30 = vld [vmem:[#allocation11 + $0xb60] sm:$0xff] }
 0x70d   :  { %12954 = vmatpush1.bf16.msra.mxu1 %v14122_v31  ;;  %12869 = vmatprep.subr.bf16.mxu0 %v14153_v32  ;;  %v5897_v31 = vld [vmem:[#allocation11 + $0xbe0] sm:$0xff]  ;;  %v5882_v32 = vld [vmem:[#allocation11 + $0xb68] sm:$0xff] }
 0x70e   :  { %12955 = vmatprep.subr.bf16.mxu1 %v14155_v33  ;;  %v5898_v33 = vld [vmem:[#allocation11 + $0xbe8] sm:$0xff]  ;;  %v14377_v36 = vcombine.high %v5881_v30, %v5897_v31  ;;  %v14376_v40 = vcombine.low %v5881_v30, %v5897_v31 }
 0x70f   :  { %v14379_v38 = vcombine.high %v5882_v32, %v5898_v33  ;;  %v14378_v41 = vcombine.low %v5882_v32, %v5898_v33  ;;  %v6090_v30 = vld [vmem:[#allocation11 + $0x11e8] sm:$0xff]  ;;  %v6105_v33 = vld [vmem:[#allocation11 + $0x1260] sm:$0xff] }
 0x710   :  { %12870 = vmatpush1.bf16.msra.mxu0 %v14152_v37  ;;  %v5913_v37 = vld [vmem:[#allocation11 + $0xc60] sm:$0xff] }
 0x711   :  { %12956 = vmatpush1.bf16.msra.mxu1 %v14154_v56  ;;  %12871 = vmatprep.subr.bf16.mxu0 %v14185_v57  ;;  %v5929_v56 = vld [vmem:[#allocation11 + $0xce0] sm:$0xff]  ;;  %v5914_v57 = vld [vmem:[#allocation11 + $0xc68] sm:$0xff] }
 0x712   :  { %12957 = vmatprep.subr.bf16.mxu1 %v14187_v39  ;;  %v5930_v39 = vld [vmem:[#allocation11 + $0xce8] sm:$0xff]  ;;  %v14409_v42 = vcombine.high %v5913_v37, %v5929_v56  ;;  %v14408_v48 = vcombine.low %v5913_v37, %v5929_v56 }
 0x713   :  { %v14411_v43 = vcombine.high %v5914_v57, %v5930_v39  ;;  %v14410_v49 = vcombine.low %v5914_v57, %v5930_v39 }
 0x714   :  { %12872 = vmatpush1.bf16.msra.mxu0 %v14184_v44  ;;  %v5945_v44 = vld [vmem:[#allocation11 + $0xd60] sm:$0xff] }
 0x715   :  { %12958 = vmatpush1.bf16.msra.mxu1 %v14186_v45  ;;  %12873 = vmatprep.subr.bf16.mxu0 %v14217_v46  ;;  %v5961_v45 = vld [vmem:[#allocation11 + $0xde0] sm:$0xff]  ;;  %v5946_v46 = vld [vmem:[#allocation11 + $0xd68] sm:$0xff] }
 0x716   :  { %12959 = vmatprep.subr.bf16.mxu1 %v14219_v47  ;;  %v5962_v47 = vld [vmem:[#allocation11 + $0xde8] sm:$0xff]  ;;  %v14441_v2 = vcombine.high %v5945_v44, %v5961_v45  ;;  %v14440_v58 = vcombine.low %v5945_v44, %v5961_v45 }
 0x717   :  { %v14443_v50 = vcombine.high %v5946_v46, %v5962_v47  ;;  %v14442_v59 = vcombine.low %v5946_v46, %v5962_v47 }
 0x718   :  { %12874 = vmatpush1.bf16.msra.mxu0 %v14216_v51  ;;  %v5977_v51 = vld [vmem:[#allocation11 + $0xe60] sm:$0xff] }
 0x719   :  { %12960 = vmatpush1.bf16.msra.mxu1 %v14218_v52  ;;  %12875 = vmatprep.subr.bf16.mxu0 %v14249_v53  ;;  %v5993_v52 = vld [vmem:[#allocation11 + $0xee0] sm:$0xff]  ;;  %v5978_v53 = vld [vmem:[#allocation11 + $0xe68] sm:$0xff] }
 0x71a   :  { %12961 = vmatprep.subr.bf16.mxu1 %v14251_v55  ;;  %v5994_v55 = vld [vmem:[#allocation11 + $0xee8] sm:$0xff]  ;;  %v14473_v60 = vcombine.high %v5977_v51, %v5993_v52  ;;  %v14472_v10 = vcombine.low %v5977_v51, %v5993_v52 }
 0x71b   :  { %v14475_v63 = vcombine.high %v5978_v53, %v5994_v55  ;;  %v14474_v11 = vcombine.low %v5978_v53, %v5994_v55 }
 0x71c   :  { %12876 = vmatpush1.bf16.msra.mxu0 %v14248_v0  ;;  %v6009_v0 = vld [vmem:[#allocation11 + $0xf60] sm:$0xff] }
 0x71d   :  { %12962 = vmatpush1.bf16.msra.mxu1 %v14250_v1  ;;  %12877 = vmatprep.subr.bf16.mxu0 %v14281_v5  ;;  %v6025_v1 = vld [vmem:[#allocation11 + $0xfe0] sm:$0xff]  ;;  %v6010_v5 = vld [vmem:[#allocation11 + $0xf68] sm:$0xff] }
 0x71e   :  { %12963 = vmatprep.subr.bf16.mxu1 %v14283_v9  ;;  %v6026_v9 = vld [vmem:[#allocation11 + $0xfe8] sm:$0xff]  ;;  %v14505_v14 = vcombine.high %v6009_v0, %v6025_v1  ;;  %v14504_v20 = vcombine.low %v6009_v0, %v6025_v1  ;;  %v16163_v1 = vld [vmem:[#allocation13 + $0x10] sm:$0xff] }
 0x71f   :  { %v14507_v15 = vcombine.high %v6010_v5, %v6026_v9  ;;  %v14506_v23 = vcombine.low %v6010_v5, %v6026_v9 }
 0x720   :  { %12878 = vmatpush1.bf16.msra.mxu0 %v14280_v16  ;;  %v6041_v16 = vld [vmem:[#allocation11 + $0x1060] sm:$0xff] }
 0x721   :  { %12964 = vmatpush1.bf16.msra.mxu1 %v14282_v17  ;;  %12879 = vmatprep.subr.bf16.mxu0 %v14313_v18  ;;  %v6057_v17 = vld [vmem:[#allocation11 + $0x10e0] sm:$0xff]  ;;  %v6042_v18 = vld [vmem:[#allocation11 + $0x1068] sm:$0xff] }
 0x722   :  { %12965 = vmatprep.subr.bf16.mxu1 %v14315_v19  ;;  %v6058_v19 = vld [vmem:[#allocation11 + $0x10e8] sm:$0xff]  ;;  %v14537_v21 = vcombine.high %v6041_v16, %v6057_v17 }
 0x723   :  { %v14539_v22 = vcombine.high %v6042_v18, %v6058_v19  ;;  %v14538_v31 = vcombine.low %v6042_v18, %v6058_v19  ;;  %v6624_v18 = vrot.slane %v16163_v1, %v16009_v3  ;;  %v6620_v19 = vrot.slane %v16163_v1, %v16012_v4 }
 0x724   :  { %12880 = vmatpush1.bf16.msra.mxu0 %v14312_v54  ;;  %v6073_v54 = vld [vmem:[#allocation11 + $0x1160] sm:$0xff] }
 0x725   :  { %12966 = vmatpush1.bf16.msra.mxu1 %v14314_v24  ;;  %12881 = vmatprep.subr.bf16.mxu0 %v14345_v28  ;;  %v6089_v24 = vld [vmem:[#allocation11 + $0x11e0] sm:$0xff]  ;;  %v14536_v28 = vcombine.low %v6041_v16, %v6057_v17  ;;  %v6234_v16 = vld [vmem:[#allocation11 + $0x1668] sm:$0xff] }
 0x726   :  { %12967 = vmatprep.subr.bf16.mxu1 %v14347_v29  ;;  %v6074_v29 = vld [vmem:[#allocation11 + $0x1168] sm:$0xff]  ;;  %v14569_v32 = vcombine.high %v6073_v54, %v6089_v24  ;;  %v14568_v37 = vcombine.low %v6073_v54, %v6089_v24 }
 0x727   :  { %v14570_v56 = vcombine.low %v6074_v29, %v6090_v30  ;;  %v6250_v17 = vld [vmem:[#allocation11 + $0x16e8] sm:$0xff] }
 0x728   :  { %12882 = vmatpush1.bf16.msra.mxu0 %v14344_v34  ;;  %v6121_v34 = vld [vmem:[#allocation11 + $0x12e0] sm:$0xff]  ;;  %v14731_v24 = vcombine.high %v6234_v16, %v6250_v17 }
 0x729   :  { %12968 = vmatpush1.bf16.msra.mxu1 %v14346_v35  ;;  %12883 = vmatprep.subr.bf16.mxu0 %v14377_v36  ;;  %v14571_v35 = vcombine.high %v6074_v29, %v6090_v30  ;;  %v6106_v36 = vld [vmem:[#allocation11 + $0x1268] sm:$0xff]  ;;  %v14601_v57 = vcombine.high %v6105_v33, %v6121_v34  ;;  %v14600_v44 = vcombine.low %v6105_v33, %v6121_v34  ;;  %v6281_v29 = vld [vmem:[#allocation11 + $0x17e0] sm:$0xff] }
 0x72a   :  { %12969 = vmatprep.subr.bf16.mxu1 %v14379_v38  ;;  %v6122_v38 = vld [vmem:[#allocation11 + $0x12e8] sm:$0xff] }
 0x72b   :  { %v14603_v39 = vcombine.high %v6106_v36, %v6122_v38  ;;  %v14602_v45 = vcombine.low %v6106_v36, %v6122_v38  ;;  %v6266_v33 = vld [vmem:[#allocation11 + $0x1768] sm:$0xff] }
 0x72c   :  { %12884 = vmatpush1.bf16.msra.mxu0 %v14376_v40  ;;  %v6137_v40 = vld [vmem:[#allocation11 + $0x1360] sm:$0xff]  ;;  %v6282_v34 = vld [vmem:[#allocation11 + $0x17e8] sm:$0xff] }
 0x72d   :  { %12970 = vmatpush1.bf16.msra.mxu1 %v14378_v41  ;;  %12885 = vmatprep.subr.bf16.mxu0 %v14409_v42  ;;  %v6153_v41 = vld [vmem:[#allocation11 + $0x13e0] sm:$0xff]  ;;  %v6138_v42 = vld [vmem:[#allocation11 + $0x1368] sm:$0xff] }
 0x72e   :  { %12971 = vmatprep.subr.bf16.mxu1 %v14411_v43  ;;  %v6154_v43 = vld [vmem:[#allocation11 + $0x13e8] sm:$0xff]  ;;  %v14633_v46 = vcombine.high %v6137_v40, %v6153_v41  ;;  %v14632_v51 = vcombine.low %v6137_v40, %v6153_v41 }
 0x72f   :  { %v14635_v47 = vcombine.high %v6138_v42, %v6154_v43  ;;  %v14634_v52 = vcombine.low %v6138_v42, %v6154_v43 }
 0x730   :  { %12886 = vmatpush1.bf16.msra.mxu0 %v14408_v48  ;;  %v6169_v48 = vld [vmem:[#allocation11 + $0x1460] sm:$0xff] }
 0x731   :  { %12972 = vmatpush1.bf16.msra.mxu1 %v14410_v49  ;;  %12887 = vmatprep.subr.bf16.mxu0 %v14441_v2  ;;  %v6185_v49 = vld [vmem:[#allocation11 + $0x14e0] sm:$0xff]  ;;  %v6170_v2 = vld [vmem:[#allocation11 + $0x1468] sm:$0xff] }
 0x732   :  { %12973 = vmatprep.subr.bf16.mxu1 %v14443_v50  ;;  %v6186_v50 = vld [vmem:[#allocation11 + $0x14e8] sm:$0xff]  ;;  %v14665_v53 = vcombine.high %v6169_v48, %v6185_v49  ;;  %v14664_v0 = vcombine.low %v6169_v48, %v6185_v49  ;;  %v6297_v48 = vld [vmem:[#allocation11 + $0x1860] sm:$0xff] }
 0x733   :  { %v14667_v55 = vcombine.high %v6170_v2, %v6186_v50  ;;  %v14666_v5 = vcombine.low %v6170_v2, %v6186_v50  ;;  %v6313_v49 = vld [vmem:[#allocation11 + $0x18e0] sm:$0xff]  ;;  %v6298_v50 = vld [vmem:[#allocation11 + $0x1868] sm:$0xff] }
 0x734   :  { %12888 = vmatpush1.bf16.msra.mxu0 %v14440_v58  ;;  %v6201_v58 = vld [vmem:[#allocation11 + $0x1560] sm:$0xff] }
 0x735   :  { %12974 = vmatpush1.bf16.msra.mxu1 %v14442_v59  ;;  %12889 = vmatprep.subr.bf16.mxu0 %v14473_v60  ;;  %v6217_v59 = vld [vmem:[#allocation11 + $0x15e0] sm:$0xff]  ;;  %v6202_v60 = vld [vmem:[#allocation11 + $0x1568] sm:$0xff] }
 0x736   :  { %12975 = vmatprep.subr.bf16.mxu1 %v14475_v63  ;;  %v6218_v63 = vld [vmem:[#allocation11 + $0x15e8] sm:$0xff]  ;;  %v14697_v9 = vcombine.high %v6201_v58, %v6217_v59 }
 0x738   :  { %12890 = vmatpush1.bf16.msra.mxu0 %v14472_v10  ;;  %v14699_v10 = vcombine.high %v6202_v60, %v6218_v63 }
 0x739   :  { %12976 = vmatpush1.bf16.msra.mxu1 %v14474_v11  ;;  %12891 = vmatprep.subr.bf16.mxu0 %v14505_v14  ;;  %v6233_v11 = vld [vmem:[#allocation11 + $0x1660] sm:$0xff] }
 0x73a   :  { %12977 = vmatprep.subr.bf16.mxu1 %v14507_v15  ;;  %v6249_v14 = vld [vmem:[#allocation11 + $0x16e0] sm:$0xff]  ;;  %v6616_v15 = vrot.slane %v16163_v1, %v16004_v62 }
 0x73c   :  { %12892 = vmatpush1.bf16.msra.mxu0 %v14504_v20  ;;  %v14696_v20 = vcombine.low %v6201_v58, %v6217_v59  ;;  %v6329_v59 = vld [vmem:[#allocation11 + $0x1960] sm:$0xff] }
 0x73d   :  { %12978 = vmatpush1.bf16.msra.mxu1 %v14506_v23  ;;  %12904 = vmatprep.subr.bf16.mxu0 %v14537_v21  ;;  %v6628_v23 = vrot.slane %v16163_v1, %v16015_v6  ;;  %v14698_v21 = vcombine.low %v6202_v60, %v6218_v63  ;;  %v6345_v60 = vld [vmem:[#allocation11 + $0x19e0] sm:$0xff]  ;;  %v6330_v63 = vld [vmem:[#allocation11 + $0x1968] sm:$0xff] }
 0x73e   :  { %12990 = vmatprep.subr.bf16.mxu1 %v14539_v22  ;;  %v14729_v22 = vcombine.high %v6233_v11, %v6249_v14 }
 0x73f   :  { %12894 = vmatmul.mubr.bf16.vlgmr.msra.gmra.mrb[36].mxu0 %v16065_v7 }
 0x740   :  { %12980 = vmatmul.mubr.bf16.vlgmr.msra.gmra.mrb[36].mxu1 %v16065_v7  ;;  %12905 = vmatpush1.bf16.msra.mxu0 %v14536_v28  ;;  %v6265_v28 = vld [vmem:[#allocation11 + $0x1760] sm:$0xff] }
 0x741   :  { %12936 = vmatprep.mubr.bf16.mxu0 %v16071_v13  ;;  %12991 = vmatpush1.bf16.msra.mxu1 %v14538_v31  ;;  %v14761_v43 = vcombine.high %v6265_v28, %v6281_v29 }
 0x742   :  { %13022 = vmatprep.mubr.bf16.mxu1 %v16071_v13  ;;  %12906 = vmatprep.subr.bf16.mxu0 %v14569_v32 }
 0x743   :  { %12992 = vmatprep.subr.bf16.mxu1 %v14571_v35 }
 0x744   :  { %12907 = vmatpush1.bf16.msra.mxu0 %v14568_v37 }
 0x745   :  { %12993 = vmatpush1.bf16.msra.mxu1 %v14570_v56  ;;  %12908 = vmatprep.subr.bf16.mxu0 %v14601_v57  ;;  %v14728_v56 = vcombine.low %v6233_v11, %v6249_v14  ;;  %v14730_v57 = vcombine.low %v6234_v16, %v6250_v17  ;;  %v6361_v14 = vld [vmem:[#allocation11 + $0x1a60] sm:$0xff]  ;;  %v6362_v16 = vld [vmem:[#allocation11 + $0x1a68] sm:$0xff] }
 0x746   :  { %12994 = vmatprep.subr.bf16.mxu1 %v14603_v39  ;;  %v6378_v17 = vld [vmem:[#allocation11 + $0x1ae8] sm:$0xff] }
 0x748   :  { %12909 = vmatpush1.bf16.msra.mxu0 %v14600_v44 }
 0x749   :  { %12995 = vmatpush1.bf16.msra.mxu1 %v14602_v45  ;;  %12910 = vmatprep.subr.bf16.mxu0 %v14633_v46 }
 0x74a   :  { %12996 = vmatprep.subr.bf16.mxu1 %v14635_v47  ;;  %v14763_v47 = vcombine.high %v6266_v33, %v6282_v34 }
 0x74c   :  { %12911 = vmatpush1.bf16.msra.mxu0 %v14632_v51  ;;  %v6314_v51 = vld [vmem:[#allocation11 + $0x18e8] sm:$0xff] }
 0x74d   :  { %12997 = vmatpush1.bf16.msra.mxu1 %v14634_v52  ;;  %12912 = vmatprep.subr.bf16.mxu0 %v14665_v53  ;;  %v14760_v52 = vcombine.low %v6265_v28, %v6281_v29  ;;  %v14762_v53 = vcombine.low %v6266_v33, %v6282_v34  ;;  %v14795_v58 = vcombine.high %v6298_v50, %v6314_v51  ;;  %v6441_v33 = vld [vmem:[#allocation11 + $0x1ce0] sm:$0xff]  ;;  %v6426_v34 = vld [vmem:[#allocation11 + $0x1c68] sm:$0xff] }
 0x74e   :  { %12998 = vmatprep.subr.bf16.mxu1 %v14667_v55  ;;  %v14793_v55 = vcombine.high %v6297_v48, %v6313_v49  ;;  %v14858_v29 = vcombine.low %v6362_v16, %v6378_v17 }
 0x750   :  { %12913 = vmatpush1.bf16.msra.mxu0 %v14664_v0  ;;  %v6346_v0 = vld [vmem:[#allocation11 + $0x19e8] sm:$0xff] }
 0x751   :  { %12999 = vmatpush1.bf16.msra.mxu1 %v14666_v5  ;;  %12914 = vmatprep.subr.bf16.mxu0 %v14697_v9  ;;  %v14792_v5 = vcombine.low %v6297_v48, %v6313_v49  ;;  %v14794_v9 = vcombine.low %v6298_v50, %v6314_v51  ;;  %v14827_v11 = vcombine.high %v6330_v63, %v6346_v0  ;;  %v6490_v48 = vld [vmem:[#allocation11 + $0x1e68] sm:$0xff] }
 0x752   :  { %v12594_v54 = vpop.f32.mrb[28].mxu0  ;;  %13000 = vmatprep.subr.bf16.mxu1 %v14699_v10  ;;  %v14825_v10 = vcombine.high %v6329_v59, %v6345_v60  ;;  %v6506_v49 = vld [vmem:[#allocation11 + $0x1ee8] sm:$0xff] }
 0x753   :  { %v15080_v30 = vadd.f32 %v12594_v54, %v6616_v15  ;;  %v12680_v31 = vpop.f32.mrb[28].mxu1  ;;  %v12596_v32 = vpop.f32.mrb[29].mxu0  ;;  %v6394_v54 = vld [vmem:[#allocation11 + $0x1b68] sm:$0xff] }
 0x754   :  { %v15084_v35 = vadd.f32 %v12680_v31, %v6624_v18  ;;  %v15081_v36 = vadd.f32 %v12596_v32, %v6620_v19  ;;  %v12682_v38 = vpop.f32.mrb[29].mxu1  ;;  %v12598_v37 = vpop.f32.mrb[30].mxu0  ;;  %12915 = vmatpush1.bf16.msra.mxu0 %v14696_v20  ;;  %v6425_v32 = vld [vmem:[#allocation11 + $0x1c60] sm:$0xff] }
 0x755   :  { %13221 = vst [vmem:[#allocation14 + $0x80] sm:$0xff] %v15080_v30  ;;  %v15085_v39 = vadd.f32 %v12682_v38, %v6628_v23  ;;  %v15082_v40 = vadd.f32 %v12598_v37, %v6616_v15  ;;  %v12684_v41 = vpop.f32.mrb[30].mxu1  ;;  %13001 = vmatpush1.bf16.msra.mxu1 %v14698_v21  ;;  %v12600_v42 = vpop.f32.mrb[31].mxu0  ;;  %12916 = vmatprep.subr.bf16.mxu0 %v14729_v22  ;;  %v6377_v15 = vld [vmem:[#allocation11 + $0x1ae0] sm:$0xff] }
 0x756   :  { %13223 = vst [vmem:[#allocation14 + $0x90] sm:$0xff] %v15084_v35  ;;  %13222 = vst [vmem:[#allocation14 + $0x88] sm:$0xff] %v15081_v36  ;;  %v15086_v44 = vadd.f32 %v12684_v41, %v6624_v18  ;;  %v15083_v45 = vadd.f32 %v12600_v42, %v6620_v19  ;;  %v12686_v46 = vpop.f32.mrb[31].mxu1  ;;  %13002 = vmatprep.subr.bf16.mxu1 %v14731_v24  ;;  %v14824_v18 = vcombine.low %v6329_v59, %v6345_v60  ;;  %v6393_v21 = vld [vmem:[#allocation11 + $0x1b60] sm:$0xff]  ;;  %v6410_v24 = vld [vmem:[#allocation11 + $0x1be8] sm:$0xff] }
 0x757   :  { %13224 = vst [vmem:[#allocation14 + $0x98] sm:$0xff] %v15085_v39  ;;  %13253 = vst [vmem:[#allocation14 + $0x180] sm:$0xff] %v15082_v40  ;;  %v15087_v2 = vadd.f32 %v12686_v46, %v6628_v23  ;;  %v14826_v19 = vcombine.low %v6330_v63, %v6346_v0  ;;  %v14857_v20 = vcombine.high %v6361_v14, %v6377_v15  ;;  %v6409_v22 = vld [vmem:[#allocation11 + $0x1be0] sm:$0xff]  ;;  %v6442_v35 = vld [vmem:[#allocation11 + $0x1ce8] sm:$0xff] }
 0x758   :  { %13255 = vst [vmem:[#allocation14 + $0x190] sm:$0xff] %v15086_v44  ;;  %13254 = vst [vmem:[#allocation14 + $0x188] sm:$0xff] %v15083_v45  ;;  %12917 = vmatpush1.bf16.msra.mxu0 %v14728_v56  ;;  %v14859_v23 = vcombine.high %v6362_v16, %v6378_v17  ;;  %v14856_v28 = vcombine.low %v6361_v14, %v6377_v15  ;;  %v14889_v30 = vcombine.high %v6393_v21, %v6409_v22  ;;  %v6473_v39 = vld [vmem:[#allocation11 + $0x1de0] sm:$0xff]  ;;  %v6458_v40 = vld [vmem:[#allocation11 + $0x1d68] sm:$0xff] }
 0x759   :  { %13256 = vst [vmem:[#allocation14 + $0x198] sm:$0xff] %v15087_v2  ;;  %13003 = vmatpush1.bf16.msra.mxu1 %v14730_v57  ;;  %12918 = vmatprep.subr.bf16.mxu0 %v14761_v43  ;;  %v14891_v31 = vcombine.high %v6394_v54, %v6410_v24  ;;  %v14888_v36 = vcombine.low %v6393_v21, %v6409_v22  ;;  %v6457_v57 = vld [vmem:[#allocation11 + $0x1d60] sm:$0xff]  ;;  %v6474_v41 = vld [vmem:[#allocation11 + $0x1de8] sm:$0xff]  ;;  %v5548_v14 = vld [vmem:[#allocation11 + $0xf8] sm:$0xff] }
 0x75a   :  { %13004 = vmatprep.subr.bf16.mxu1 %v14763_v47  ;;  %v14890_v38 = vcombine.low %v6394_v54, %v6410_v24  ;;  %v14921_v37 = vcombine.high %v6425_v32, %v6441_v33  ;;  %v14923_v56 = vcombine.high %v6426_v34, %v6442_v35  ;;  %v14920_v42 = vcombine.low %v6425_v32, %v6441_v33  ;;  %v6489_v46 = vld [vmem:[#allocation11 + $0x1e60] sm:$0xff]  ;;  %v6538_v59 = vld [vmem:[#allocation11 + $0x1fe8] sm:$0xff]  ;;  %v5564_v21 = vld [vmem:[#allocation11 + $0x178] sm:$0xff] }
 0x75b   :  { %v14922_v43 = vcombine.low %v6426_v34, %v6442_v35  ;;  %v14953_v44 = vcombine.high %v6457_v57, %v6473_v39  ;;  %v14955_v45 = vcombine.high %v6458_v40, %v6474_v41  ;;  %v6505_v47 = vld [vmem:[#allocation11 + $0x1ee0] sm:$0xff]  ;;  %v14952_v2 = vcombine.low %v6457_v57, %v6473_v39  ;;  %v5580_v22 = vld [vmem:[#allocation11 + $0x1f8] sm:$0xff] }
 0x75c   :  { %12919 = vmatpush1.bf16.msra.mxu0 %v14760_v52  ;;  %v14954_v50 = vcombine.low %v6458_v40, %v6474_v41  ;;  %v14985_v51 = vcombine.high %v6489_v46, %v6505_v47  ;;  %v14987_v52 = vcombine.high %v6490_v48, %v6506_v49  ;;  %v14984_v60 = vcombine.low %v6489_v46, %v6505_v47  ;;  %v5612_v32 = vld [vmem:[#allocation11 + $0x2f8] sm:$0xff] }
 0x75d   :  { %13005 = vmatpush1.bf16.msra.mxu1 %v14762_v53  ;;  %12920 = vmatprep.subr.bf16.mxu0 %v14793_v55  ;;  %v6521_v53 = vld [vmem:[#allocation11 + $0x1f60] sm:$0xff]  ;;  %v14986_v63 = vcombine.low %v6490_v48, %v6506_v49  ;;  %v14062_v34 = vcombine.low %v5564_v21, %v5580_v22  ;;  %v5644_v57 = vld [vmem:[#allocation11 + $0x3f8] sm:$0xff] }
 0x75e   :  { %13006 = vmatprep.subr.bf16.mxu1 %v14795_v58  ;;  %v6537_v55 = vld [vmem:[#allocation11 + $0x1fe0] sm:$0xff]  ;;  %v6522_v58 = vld [vmem:[#allocation11 + $0x1f68] sm:$0xff]  ;;  %v5676_v46 = vld [vmem:[#allocation11 + $0x4f8] sm:$0xff] }
 0x75f   :  { %v15017_v0 = vcombine.high %v6521_v53, %v6537_v55  ;;  %v15016_v15 = vcombine.low %v6521_v53, %v6537_v55  ;;  %v15018_v16 = vcombine.low %v6522_v58, %v6538_v59 }
 0x760   :  { %12921 = vmatpush1.bf16.msra.mxu0 %v14792_v5  ;;  %v15019_v5 = vcombine.high %v6522_v58, %v6538_v59 }
 0x761   :  { %13007 = vmatpush1.bf16.msra.mxu1 %v14794_v9  ;;  %12922 = vmatprep.subr.bf16.mxu0 %v14825_v10  ;;  %v5531_v9 = vld [vmem:[#allocation11 + $0x70] sm:$0xff] }
 0x762   :  { %13008 = vmatprep.subr.bf16.mxu1 %v14827_v11  ;;  %v5547_v10 = vld [vmem:[#allocation11 + $0xf0] sm:$0xff]  ;;  %v5532_v11 = vld [vmem:[#allocation11 + $0x78] sm:$0xff] }
 0x763   :  { %v14029_v17 = vcombine.high %v5531_v9, %v5547_v10  ;;  %v14030_v54 = vcombine.low %v5532_v11, %v5548_v14 }
 0x764   :  { %12923 = vmatpush1.bf16.msra.mxu0 %v14824_v18  ;;  %v14031_v18 = vcombine.high %v5532_v11, %v5548_v14 }
 0x765   :  { %13009 = vmatpush1.bf16.msra.mxu1 %v14826_v19  ;;  %12924 = vmatprep.subr.bf16.mxu0 %v14857_v20  ;;  %v5563_v19 = vld [vmem:[#allocation11 + $0x170] sm:$0xff] }
 0x766   :  { %13010 = vmatprep.subr.bf16.mxu1 %v14859_v23  ;;  %v5579_v20 = vld [vmem:[#allocation11 + $0x1f0] sm:$0xff]  ;;  %v14028_v23 = vcombine.low %v5531_v9, %v5547_v10 }
 0x767   :  { %v14061_v24 = vcombine.high %v5563_v19, %v5579_v20  ;;  %v14060_v33 = vcombine.low %v5563_v19, %v5579_v20 }
 0x768   :  { %12925 = vmatpush1.bf16.msra.mxu0 %v14856_v28  ;;  %v5595_v28 = vld [vmem:[#allocation11 + $0x270] sm:$0xff] }
 0x769   :  { %13011 = vmatpush1.bf16.msra.mxu1 %v14858_v29  ;;  %12926 = vmatprep.subr.bf16.mxu0 %v14889_v30  ;;  %v5611_v29 = vld [vmem:[#allocation11 + $0x2f0] sm:$0xff]  ;;  %v14063_v30 = vcombine.high %v5564_v21, %v5580_v22 }
 0x76a   :  { %13012 = vmatprep.subr.bf16.mxu1 %v14891_v31  ;;  %v5596_v31 = vld [vmem:[#allocation11 + $0x278] sm:$0xff]  ;;  %v14093_v35 = vcombine.high %v5595_v28, %v5611_v29  ;;  %v14092_v39 = vcombine.low %v5595_v28, %v5611_v29  ;;  %v5787_v22 = vld [vmem:[#allocation11 + $0x870] sm:$0xff] }
 0x76b   :  { %v14094_v40 = vcombine.low %v5596_v31, %v5612_v32  ;;  %v5804_v28 = vld [vmem:[#allocation11 + $0x8f8] sm:$0xff] }
 0x76c   :  { %12927 = vmatpush1.bf16.msra.mxu0 %v14888_v36  ;;  %v14095_v36 = vcombine.high %v5596_v31, %v5612_v32 }
 0x76d   :  { %13013 = vmatpush1.bf16.msra.mxu1 %v14890_v38  ;;  %12928 = vmatprep.subr.bf16.mxu0 %v14921_v37  ;;  %v5627_v38 = vld [vmem:[#allocation11 + $0x370] sm:$0xff] }
 0x76e   :  { %13014 = vmatprep.subr.bf16.mxu1 %v14923_v56  ;;  %v5643_v37 = vld [vmem:[#allocation11 + $0x3f0] sm:$0xff]  ;;  %v5628_v56 = vld [vmem:[#allocation11 + $0x378] sm:$0xff] }
 0x76f   :  { %v14125_v41 = vcombine.high %v5627_v38, %v5643_v37  ;;  %v14126_v47 = vcombine.low %v5628_v56, %v5644_v57 }
 0x770   :  { %12929 = vmatpush1.bf16.msra.mxu0 %v14920_v42  ;;  %v14127_v42 = vcombine.high %v5628_v56, %v5644_v57 }
 0x771   :  { %13015 = vmatpush1.bf16.msra.mxu1 %v14922_v43  ;;  %12930 = vmatprep.subr.bf16.mxu0 %v14953_v44  ;;  %v5659_v43 = vld [vmem:[#allocation11 + $0x470] sm:$0xff] }
 0x772   :  { %13016 = vmatprep.subr.bf16.mxu1 %v14955_v45  ;;  %v5675_v44 = vld [vmem:[#allocation11 + $0x4f0] sm:$0xff]  ;;  %v5660_v45 = vld [vmem:[#allocation11 + $0x478] sm:$0xff] }
 0x773   :  { %v14157_v48 = vcombine.high %v5659_v43, %v5675_v44  ;;  %v14159_v49 = vcombine.high %v5660_v45, %v5676_v46  ;;  %v14156_v53 = vcombine.low %v5659_v43, %v5675_v44  ;;  %v14158_v55 = vcombine.low %v5660_v45, %v5676_v46 }
 0x774   :  { %12931 = vmatpush1.bf16.msra.mxu0 %v14952_v2  ;;  %v5691_v2 = vld [vmem:[#allocation11 + $0x570] sm:$0xff] }
 0x775   :  { %13017 = vmatpush1.bf16.msra.mxu1 %v14954_v50  ;;  %12932 = vmatprep.subr.bf16.mxu0 %v14985_v51  ;;  %v5707_v50 = vld [vmem:[#allocation11 + $0x5f0] sm:$0xff]  ;;  %v5692_v51 = vld [vmem:[#allocation11 + $0x578] sm:$0xff] }
 0x776   :  { %13018 = vmatprep.subr.bf16.mxu1 %v14987_v52  ;;  %v5708_v52 = vld [vmem:[#allocation11 + $0x5f8] sm:$0xff]  ;;  %v14189_v58 = vcombine.high %v5691_v2, %v5707_v50  ;;  %v14188_v9 = vcombine.low %v5691_v2, %v5707_v50 }
 0x777   :  { %v14191_v59 = vcombine.high %v5692_v51, %v5708_v52  ;;  %v14190_v10 = vcombine.low %v5692_v51, %v5708_v52 }
 0x778   :  { %12933 = vmatpush1.bf16.msra.mxu0 %v14984_v60  ;;  %v5723_v60 = vld [vmem:[#allocation11 + $0x670] sm:$0xff] }
 0x779   :  { %13019 = vmatpush1.bf16.msra.mxu1 %v14986_v63  ;;  %12934 = vmatprep.subr.bf16.mxu0 %v15017_v0  ;;  %v5739_v63 = vld [vmem:[#allocation11 + $0x6f0] sm:$0xff]  ;;  %v5724_v0 = vld [vmem:[#allocation11 + $0x678] sm:$0xff] }
 0x77a   :  { %13020 = vmatprep.subr.bf16.mxu1 %v15019_v5  ;;  %v5740_v5 = vld [vmem:[#allocation11 + $0x6f8] sm:$0xff]  ;;  %v14221_v11 = vcombine.high %v5723_v60, %v5739_v63  ;;  %v14220_v19 = vcombine.low %v5723_v60, %v5739_v63 }
 0x77b   :  { %v14223_v14 = vcombine.high %v5724_v0, %v5740_v5  ;;  %v14222_v20 = vcombine.low %v5724_v0, %v5740_v5 }
 0x77c   :  { %12935 = vmatpush1.bf16.msra.mxu0 %v15016_v15  ;;  %v5755_v15 = vld [vmem:[#allocation11 + $0x770] sm:$0xff] }
 0x77d   :  { %13021 = vmatpush1.bf16.msra.mxu1 %v15018_v16  ;;  %13033 = vmatprep.subr.bf16.mxu0 %v14029_v17  ;;  %v5771_v16 = vld [vmem:[#allocation11 + $0x7f0] sm:$0xff]  ;;  %v5756_v17 = vld [vmem:[#allocation11 + $0x778] sm:$0xff] }
 0x77e   :  { %13119 = vmatprep.subr.bf16.mxu1 %v14031_v18  ;;  %v5772_v18 = vld [vmem:[#allocation11 + $0x7f8] sm:$0xff]  ;;  %v14252_v29 = vcombine.low %v5755_v15, %v5771_v16 }
 0x77f   :  { %12937 = vmatmul.mubr.bf16.vlgmr.msra.gmra.mrb[36].mxu0 %v16067_v8  ;;  %v14255_v21 = vcombine.high %v5756_v17, %v5772_v18 }
 0x780   :  { %13023 = vmatmul.mubr.bf16.vlgmr.msra.gmra.mrb[36].mxu1 %v16067_v8  ;;  %13034 = vmatpush1.bf16.msra.mxu0 %v14028_v23  ;;  %v14253_v23 = vcombine.high %v5755_v15, %v5771_v16 }
 0x781   :  { %13065 = vmatprep.mubr.bf16.mxu0 %v16069_v12  ;;  %13120 = vmatpush1.bf16.msra.mxu1 %v14030_v54  ;;  %v5803_v54 = vld [vmem:[#allocation11 + $0x8f0] sm:$0xff] }
 0x782   :  { %13151 = vmatprep.mubr.bf16.mxu1 %v16069_v12  ;;  %13035 = vmatprep.subr.bf16.mxu0 %v14061_v24  ;;  %v14124_v12 = vcombine.low %v5627_v38, %v5643_v37  ;;  %v5788_v24 = vld [vmem:[#allocation11 + $0x878] sm:$0xff]  ;;  %v14285_v31 = vcombine.high %v5787_v22, %v5803_v54  ;;  %v14284_v38 = vcombine.low %v5787_v22, %v5803_v54 }
 0x783   :  { %13121 = vmatprep.subr.bf16.mxu1 %v14063_v30  ;;  %v14254_v30 = vcombine.low %v5756_v17, %v5772_v18  ;;  %v14287_v32 = vcombine.high %v5788_v24, %v5804_v28  ;;  %v14286_v37 = vcombine.low %v5788_v24, %v5804_v28 }
 0x784   :  { %13036 = vmatpush1.bf16.msra.mxu0 %v14060_v33  ;;  %v5819_v33 = vld [vmem:[#allocation11 + $0x970] sm:$0xff] }
 0x785   :  { %13122 = vmatpush1.bf16.msra.mxu1 %v14062_v34  ;;  %13037 = vmatprep.subr.bf16.mxu0 %v14093_v35  ;;  %v5835_v34 = vld [vmem:[#allocation11 + $0x9f0] sm:$0xff]  ;;  %v5820_v35 = vld [vmem:[#allocation11 + $0x978] sm:$0xff] }
 0x786   :  { %13123 = vmatprep.subr.bf16.mxu1 %v14095_v36  ;;  %v5836_v36 = vld [vmem:[#allocation11 + $0x9f8] sm:$0xff]  ;;  %v14317_v56 = vcombine.high %v5819_v33, %v5835_v34  ;;  %v14316_v43 = vcombine.low %v5819_v33, %v5835_v34 }
 0x787   :  { %v14319_v57 = vcombine.high %v5820_v35, %v5836_v36  ;;  %v14318_v44 = vcombine.low %v5820_v35, %v5836_v36 }
 0x788   :  { %13038 = vmatpush1.bf16.msra.mxu0 %v14092_v39  ;;  %v5851_v39 = vld [vmem:[#allocation11 + $0xa70] sm:$0xff] }
 0x789   :  { %13124 = vmatpush1.bf16.msra.mxu1 %v14094_v40  ;;  %13039 = vmatprep.subr.bf16.mxu0 %v14125_v41  ;;  %v5867_v40 = vld [vmem:[#allocation11 + $0xaf0] sm:$0xff]  ;;  %v5852_v41 = vld [vmem:[#allocation11 + $0xa78] sm:$0xff] }
 0x78a   :  { %13125 = vmatprep.subr.bf16.mxu1 %v14127_v42  ;;  %v5868_v42 = vld [vmem:[#allocation11 + $0xaf8] sm:$0xff]  ;;  %v14349_v45 = vcombine.high %v5851_v39, %v5867_v40  ;;  %v14348_v2 = vcombine.low %v5851_v39, %v5867_v40 }
 0x78b   :  { %v14351_v46 = vcombine.high %v5852_v41, %v5868_v42  ;;  %v14350_v50 = vcombine.low %v5852_v41, %v5868_v42 }
 0x78c   :  { %13040 = vmatpush1.bf16.msra.mxu0 %v14124_v12  ;;  %v5883_v12 = vld [vmem:[#allocation11 + $0xb70] sm:$0xff] }
 0x78d   :  { %13126 = vmatpush1.bf16.msra.mxu1 %v14126_v47  ;;  %13041 = vmatprep.subr.bf16.mxu0 %v14157_v48  ;;  %v5899_v47 = vld [vmem:[#allocation11 + $0xbf0] sm:$0xff]  ;;  %v5884_v48 = vld [vmem:[#allocation11 + $0xb78] sm:$0xff] }
 0x78e   :  { %13127 = vmatprep.subr.bf16.mxu1 %v14159_v49  ;;  %v5900_v49 = vld [vmem:[#allocation11 + $0xbf8] sm:$0xff]  ;;  %v14381_v51 = vcombine.high %v5883_v12, %v5899_v47  ;;  %v14380_v60 = vcombine.low %v5883_v12, %v5899_v47 }
 0x78f   :  { %v14383_v52 = vcombine.high %v5884_v48, %v5900_v49  ;;  %v14382_v63 = vcombine.low %v5884_v48, %v5900_v49  ;;  %v6092_v12 = vld [vmem:[#allocation11 + $0x11f8] sm:$0xff]  ;;  %v6107_v49 = vld [vmem:[#allocation11 + $0x1270] sm:$0xff] }
 0x790   :  { %13042 = vmatpush1.bf16.msra.mxu0 %v14156_v53  ;;  %v5915_v53 = vld [vmem:[#allocation11 + $0xc70] sm:$0xff] }
 0x791   :  { %13128 = vmatpush1.bf16.msra.mxu1 %v14158_v55  ;;  %13043 = vmatprep.subr.bf16.mxu0 %v14189_v58  ;;  %v5931_v55 = vld [vmem:[#allocation11 + $0xcf0] sm:$0xff]  ;;  %v5916_v58 = vld [vmem:[#allocation11 + $0xc78] sm:$0xff] }
 0x792   :  { %13129 = vmatprep.subr.bf16.mxu1 %v14191_v59  ;;  %v5932_v59 = vld [vmem:[#allocation11 + $0xcf8] sm:$0xff]  ;;  %v14413_v0 = vcombine.high %v5915_v53, %v5931_v55  ;;  %v14412_v15 = vcombine.low %v5915_v53, %v5931_v55 }
 0x793   :  { %v14415_v5 = vcombine.high %v5916_v58, %v5932_v59  ;;  %v14414_v16 = vcombine.low %v5916_v58, %v5932_v59 }
 0x794   :  { %13044 = vmatpush1.bf16.msra.mxu0 %v14188_v9  ;;  %v5947_v9 = vld [vmem:[#allocation11 + $0xd70] sm:$0xff] }
 0x795   :  { %13130 = vmatpush1.bf16.msra.mxu1 %v14190_v10  ;;  %13045 = vmatprep.subr.bf16.mxu0 %v14221_v11  ;;  %v5963_v10 = vld [vmem:[#allocation11 + $0xdf0] sm:$0xff]  ;;  %v5948_v11 = vld [vmem:[#allocation11 + $0xd78] sm:$0xff] }
 0x796   :  { %13131 = vmatprep.subr.bf16.mxu1 %v14223_v14  ;;  %v5964_v14 = vld [vmem:[#allocation11 + $0xdf8] sm:$0xff]  ;;  %v14445_v17 = vcombine.high %v5947_v9, %v5963_v10  ;;  %v14444_v22 = vcombine.low %v5947_v9, %v5963_v10 }
 0x797   :  { %v14447_v18 = vcombine.high %v5948_v11, %v5964_v14  ;;  %v14446_v54 = vcombine.low %v5948_v11, %v5964_v14  ;;  %v6171_v14 = vld [vmem:[#allocation11 + $0x1470] sm:$0xff] }
 0x798   :  { %13046 = vmatpush1.bf16.msra.mxu0 %v14220_v19  ;;  %v5979_v19 = vld [vmem:[#allocation11 + $0xe70] sm:$0xff] }
 0x799   :  { %13132 = vmatpush1.bf16.msra.mxu1 %v14222_v20  ;;  %13047 = vmatprep.subr.bf16.mxu0 %v14253_v23  ;;  %v5995_v20 = vld [vmem:[#allocation11 + $0xef0] sm:$0xff]  ;;  %v5980_v23 = vld [vmem:[#allocation11 + $0xe78] sm:$0xff] }
 0x79a   :  { %13133 = vmatprep.subr.bf16.mxu1 %v14255_v21  ;;  %v5996_v21 = vld [vmem:[#allocation11 + $0xef8] sm:$0xff]  ;;  %v14477_v24 = vcombine.high %v5979_v19, %v5995_v20  ;;  %v14476_v33 = vcombine.low %v5979_v19, %v5995_v20 }
 0x79b   :  { %v14479_v28 = vcombine.high %v5980_v23, %v5996_v21  ;;  %v14478_v34 = vcombine.low %v5980_v23, %v5996_v21  ;;  %v6203_v23 = vld [vmem:[#allocation11 + $0x1570] sm:$0xff] }
 0x79c   :  { %13048 = vmatpush1.bf16.msra.mxu0 %v14252_v29  ;;  %v6011_v29 = vld [vmem:[#allocation11 + $0xf70] sm:$0xff] }
 0x79d   :  { %13134 = vmatpush1.bf16.msra.mxu1 %v14254_v30  ;;  %13049 = vmatprep.subr.bf16.mxu0 %v14285_v31  ;;  %v6027_v30 = vld [vmem:[#allocation11 + $0xff0] sm:$0xff]  ;;  %v6012_v31 = vld [vmem:[#allocation11 + $0xf78] sm:$0xff] }
 0x79e   :  { %13135 = vmatprep.subr.bf16.mxu1 %v14287_v32  ;;  %v6028_v32 = vld [vmem:[#allocation11 + $0xff8] sm:$0xff]  ;;  %v14509_v35 = vcombine.high %v6011_v29, %v6027_v30  ;;  %v14508_v39 = vcombine.low %v6011_v29, %v6027_v30  ;;  %v6219_v21 = vld [vmem:[#allocation11 + $0x15f0] sm:$0xff] }
 0x79f   :  { %v14511_v36 = vcombine.high %v6012_v31, %v6028_v32  ;;  %v14510_v40 = vcombine.low %v6012_v31, %v6028_v32  ;;  %v14701_v29 = vcombine.high %v6203_v23, %v6219_v21  ;;  %v6235_v31 = vld [vmem:[#allocation11 + $0x1670] sm:$0xff] }
 0x7a0   :  { %13050 = vmatpush1.bf16.msra.mxu0 %v14284_v38  ;;  %v6043_v38 = vld [vmem:[#allocation11 + $0x1070] sm:$0xff] }
 0x7a1   :  { %13136 = vmatpush1.bf16.msra.mxu1 %v14286_v37  ;;  %13051 = vmatprep.subr.bf16.mxu0 %v14317_v56  ;;  %v6059_v37 = vld [vmem:[#allocation11 + $0x10f0] sm:$0xff]  ;;  %v6044_v56 = vld [vmem:[#allocation11 + $0x1078] sm:$0xff] }
 0x7a2   :  { %13137 = vmatprep.subr.bf16.mxu1 %v14319_v57  ;;  %v6060_v57 = vld [vmem:[#allocation11 + $0x10f8] sm:$0xff]  ;;  %v14541_v41 = vcombine.high %v6043_v38, %v6059_v37  ;;  %v6251_v32 = vld [vmem:[#allocation11 + $0x16f0] sm:$0xff] }
 0x7a3   :  { %v14543_v42 = vcombine.high %v6044_v56, %v6060_v57  ;;  %v14542_v47 = vcombine.low %v6044_v56, %v6060_v57  ;;  %v6644_v56 = vrot.slane %v16163_v1, %v16047_v61 }
 0x7a4   :  { %13052 = vmatpush1.bf16.msra.mxu0 %v14316_v43  ;;  %v6075_v43 = vld [vmem:[#allocation11 + $0x1170] sm:$0xff] }
 0x7a5   :  { %13138 = vmatpush1.bf16.msra.mxu1 %v14318_v44  ;;  %13053 = vmatprep.subr.bf16.mxu0 %v14349_v45  ;;  %v6091_v44 = vld [vmem:[#allocation11 + $0x11f0] sm:$0xff]  ;;  %v14540_v45 = vcombine.low %v6043_v38, %v6059_v37  ;;  %v6636_v38 = vrot.slane %v16163_v1, %v16044_v27  ;;  %v14700_v37 = vcombine.low %v6203_v23, %v6219_v21  ;;  %v6348_v23 = vld [vmem:[#allocation11 + $0x19f8] sm:$0xff] }
 0x7a6   :  { %13139 = vmatprep.subr.bf16.mxu1 %v14351_v46  ;;  %v6076_v46 = vld [vmem:[#allocation11 + $0x1178] sm:$0xff]  ;;  %v14573_v48 = vcombine.high %v6075_v43, %v6091_v44  ;;  %v14572_v53 = vcombine.low %v6075_v43, %v6091_v44  ;;  %v6283_v43 = vld [vmem:[#allocation11 + $0x17f0] sm:$0xff] }
 0x7a7   :  { %v14574_v55 = vcombine.low %v6076_v46, %v6092_v12 }
 0x7a8   :  { %13054 = vmatpush1.bf16.msra.mxu0 %v14348_v2  ;;  %v6123_v2 = vld [vmem:[#allocation11 + $0x12f0] sm:$0xff] }
 0x7a9   :  { %13140 = vmatpush1.bf16.msra.mxu1 %v14350_v50  ;;  %13055 = vmatprep.subr.bf16.mxu0 %v14381_v51  ;;  %v14575_v50 = vcombine.high %v6076_v46, %v6092_v12  ;;  %v6108_v51 = vld [vmem:[#allocation11 + $0x1278] sm:$0xff]  ;;  %v14605_v58 = vcombine.high %v6107_v49, %v6123_v2  ;;  %v14604_v9 = vcombine.low %v6107_v49, %v6123_v2 }
 0x7aa   :  { %13141 = vmatprep.subr.bf16.mxu1 %v14383_v52  ;;  %v6124_v52 = vld [vmem:[#allocation11 + $0x12f8] sm:$0xff] }
 0x7ab   :  { %v14607_v59 = vcombine.high %v6108_v51, %v6124_v52  ;;  %v6268_v12 = vld [vmem:[#allocation11 + $0x1778] sm:$0xff] }
 0x7ac   :  { %13056 = vmatpush1.bf16.msra.mxu0 %v14380_v60  ;;  %v6139_v60 = vld [vmem:[#allocation11 + $0x1370] sm:$0xff] }
 0x7ad   :  { %13142 = vmatpush1.bf16.msra.mxu1 %v14382_v63  ;;  %13057 = vmatprep.subr.bf16.mxu0 %v14413_v0  ;;  %v6155_v63 = vld [vmem:[#allocation11 + $0x13f0] sm:$0xff]  ;;  %v6140_v0 = vld [vmem:[#allocation11 + $0x1378] sm:$0xff] }
 0x7ae   :  { %13143 = vmatprep.subr.bf16.mxu1 %v14415_v5  ;;  %v6156_v5 = vld [vmem:[#allocation11 + $0x13f8] sm:$0xff]  ;;  %v14637_v10 = vcombine.high %v6139_v60, %v6155_v63 }
 0x7af   :  { %v14639_v11 = vcombine.high %v6140_v0, %v6156_v5 }
 0x7b0   :  { %13058 = vmatpush1.bf16.msra.mxu0 %v14412_v15  ;;  %v6187_v15 = vld [vmem:[#allocation11 + $0x14f0] sm:$0xff] }
 0x7b1   :  { %13144 = vmatpush1.bf16.msra.mxu1 %v14414_v16  ;;  %13059 = vmatprep.subr.bf16.mxu0 %v14445_v17  ;;  %v6172_v16 = vld [vmem:[#allocation11 + $0x1478] sm:$0xff]  ;;  %v14669_v19 = vcombine.high %v6171_v14, %v6187_v15 }
 0x7b2   :  { %13145 = vmatprep.subr.bf16.mxu1 %v14447_v18  ;;  %v6188_v17 = vld [vmem:[#allocation11 + $0x14f8] sm:$0xff]  ;;  %v14638_v18 = vcombine.low %v6140_v0, %v6156_v5 }
 0x7b3   :  { %v14671_v20 = vcombine.high %v6172_v16, %v6188_v17 }
 0x7b4   :  { %13060 = vmatpush1.bf16.msra.mxu0 %v14444_v22  ;;  %v6204_v22 = vld [vmem:[#allocation11 + $0x1578] sm:$0xff] }
 0x7b5   :  { %13146 = vmatpush1.bf16.msra.mxu1 %v14446_v54  ;;  %13061 = vmatprep.subr.bf16.mxu0 %v14477_v24  ;;  %v6220_v54 = vld [vmem:[#allocation11 + $0x15f8] sm:$0xff]  ;;  %v14668_v24 = vcombine.low %v6171_v14, %v6187_v15 }
 0x7b6   :  { %13147 = vmatprep.subr.bf16.mxu1 %v14479_v28  ;;  %v14670_v28 = vcombine.low %v6172_v16, %v6188_v17  ;;  %v14703_v30 = vcombine.high %v6204_v22, %v6220_v54  ;;  %v14702_v57 = vcombine.low %v6204_v22, %v6220_v54  ;;  %v6316_v14 = vld [vmem:[#allocation11 + $0x18f8] sm:$0xff] }
 0x7b8   :  { %13062 = vmatpush1.bf16.msra.mxu0 %v14476_v33  ;;  %v6632_v33 = vrot.slane %v16163_v1, %v16038_v25 }
 0x7b9   :  { %13148 = vmatpush1.bf16.msra.mxu1 %v14478_v34  ;;  %13063 = vmatprep.subr.bf16.mxu0 %v14509_v35  ;;  %v6236_v34 = vld [vmem:[#allocation11 + $0x1678] sm:$0xff] }
 0x7ba   :  { %13149 = vmatprep.subr.bf16.mxu1 %v14511_v36  ;;  %v6252_v35 = vld [vmem:[#allocation11 + $0x16f8] sm:$0xff]  ;;  %v6640_v36 = vrot.slane %v16163_v1, %v16041_v26 }
 0x7bb   :  { %v14734_v1 = vcombine.low %v6236_v34, %v6252_v35 }
 0x7bc   :  { %13064 = vmatpush1.bf16.msra.mxu0 %v14508_v39  ;;  %v14733_v39 = vcombine.high %v6235_v31, %v6251_v32 }
 0x7bd   :  { %13150 = vmatpush1.bf16.msra.mxu1 %v14510_v40  ;;  %13076 = vmatprep.subr.bf16.mxu0 %v14541_v41  ;;  %v14735_v41 = vcombine.high %v6236_v34, %v6252_v35 }
 0x7be   :  { %13162 = vmatprep.subr.bf16.mxu1 %v14543_v42  ;;  %v6267_v42 = vld [vmem:[#allocation11 + $0x1770] sm:$0xff] }
 0x7bf   :  { %13066 = vmatmul.mubr.bf16.vlgmr.msra.gmra.mrb[40].mxu0 %v16065_v7  ;;  %v14764_v15 = vcombine.low %v6267_v42, %v6283_v43 }
 0x7c0   :  { %13152 = vmatmul.mubr.bf16.vlgmr.msra.gmra.mrb[40].mxu1 %v16065_v7  ;;  %13077 = vmatpush1.bf16.msra.mxu0 %v14540_v45  ;;  %v14606_v7 = vcombine.low %v6108_v51, %v6124_v52  ;;  %v14732_v51 = vcombine.low %v6235_v31, %v6251_v32  ;;  %v6380_v31 = vld [vmem:[#allocation11 + $0x1af8] sm:$0xff] }
 0x7c1   :  { %13108 = vmatprep.mubr.bf16.mxu0 %v16071_v13  ;;  %13163 = vmatpush1.bf16.msra.mxu1 %v14542_v47  ;;  %v6284_v47 = vld [vmem:[#allocation11 + $0x17f8] sm:$0xff] }
 0x7c2   :  { %13194 = vmatprep.mubr.bf16.mxu1 %v16071_v13  ;;  %13078 = vmatprep.subr.bf16.mxu0 %v14573_v48  ;;  %v14636_v13 = vcombine.low %v6139_v60, %v6155_v63  ;;  %v14767_v5 = vcombine.high %v6268_v12, %v6284_v47  ;;  %v14766_v16 = vcombine.low %v6268_v12, %v6284_v47 }
 0x7c3   :  { %13164 = vmatprep.subr.bf16.mxu1 %v14575_v50 }
 0x7c4   :  { %13079 = vmatpush1.bf16.msra.mxu0 %v14572_v53 }
 0x7c5   :  { %13165 = vmatpush1.bf16.msra.mxu1 %v14574_v55  ;;  %13080 = vmatprep.subr.bf16.mxu0 %v14605_v58 }
 0x7c6   :  { %13166 = vmatprep.subr.bf16.mxu1 %v14607_v59  ;;  %v14765_v59 = vcombine.high %v6267_v42, %v6283_v43  ;;  %v6427_v42 = vld [vmem:[#allocation11 + $0x1c70] sm:$0xff] }
 0x7c7   :  { %v6443_v43 = vld [vmem:[#allocation11 + $0x1cf0] sm:$0xff] }
 0x7c8   :  { %13081 = vmatpush1.bf16.msra.mxu0 %v14604_v9  ;;  %v6299_v9 = vld [vmem:[#allocation11 + $0x1870] sm:$0xff]  ;;  %v14925_v47 = vcombine.high %v6427_v42, %v6443_v43 }
 0x7c9   :  { %13167 = vmatpush1.bf16.msra.mxu1 %v14606_v7  ;;  %13082 = vmatprep.subr.bf16.mxu0 %v14637_v10  ;;  %v6315_v7 = vld [vmem:[#allocation11 + $0x18f0] sm:$0xff] }
 0x7ca   :  { %13168 = vmatprep.subr.bf16.mxu1 %v14639_v11  ;;  %v6300_v11 = vld [vmem:[#allocation11 + $0x1878] sm:$0xff]  ;;  %v14797_v17 = vcombine.high %v6299_v9, %v6315_v7  ;;  %v14796_v21 = vcombine.low %v6299_v9, %v6315_v7 }
 0x7cb   :  { %v14798_v22 = vcombine.low %v6300_v11, %v6316_v14 }
 0x7cc   :  { %13083 = vmatpush1.bf16.msra.mxu0 %v14636_v13  ;;  %v14799_v13 = vcombine.high %v6300_v11, %v6316_v14  ;;  %v6539_v11 = vld [vmem:[#allocation11 + $0x1ff0] sm:$0xff]  ;;  %v6524_v14 = vld [vmem:[#allocation11 + $0x1f78] sm:$0xff] }
 0x7cd   :  { %13169 = vmatpush1.bf16.msra.mxu1 %v14638_v18  ;;  %13084 = vmatprep.subr.bf16.mxu0 %v14669_v19  ;;  %v6331_v18 = vld [vmem:[#allocation11 + $0x1970] sm:$0xff] }
 0x7ce   :  { %13170 = vmatprep.subr.bf16.mxu1 %v14671_v20  ;;  %v6347_v19 = vld [vmem:[#allocation11 + $0x19f0] sm:$0xff]  ;;  %v6332_v20 = vld [vmem:[#allocation11 + $0x1978] sm:$0xff] }
 0x7cf   :  { %v14829_v54 = vcombine.high %v6331_v18, %v6347_v19  ;;  %v14828_v32 = vcombine.low %v6331_v18, %v6347_v19 }
 0x7d0   :  { %13085 = vmatpush1.bf16.msra.mxu0 %v14668_v24  ;;  %v14831_v24 = vcombine.high %v6332_v20, %v6348_v23 }
 0x7d1   :  { %13171 = vmatpush1.bf16.msra.mxu1 %v14670_v28  ;;  %13086 = vmatprep.subr.bf16.mxu0 %v14701_v29  ;;  %v6363_v28 = vld [vmem:[#allocation11 + $0x1a70] sm:$0xff] }
 0x7d2   :  { %v12766_v40 = vpop.f32.mrb[32].mxu0  ;;  %13172 = vmatprep.subr.bf16.mxu1 %v14703_v30  ;;  %v6379_v29 = vld [vmem:[#allocation11 + $0x1af0] sm:$0xff]  ;;  %v6364_v30 = vld [vmem:[#allocation11 + $0x1a78] sm:$0xff] }
 0x7d3   :  { %v15088_v44 = vadd.f32 %v12766_v40, %v6632_v33  ;;  %v12852_v45 = vpop.f32.mrb[32].mxu1  ;;  %v12768_v46 = vpop.f32.mrb[33].mxu0  ;;  %v14861_v34 = vcombine.high %v6363_v28, %v6379_v29  ;;  %v14863_v35 = vcombine.high %v6364_v30, %v6380_v31 }
 0x7d4   :  { %v15092_v48 = vadd.f32 %v12852_v45, %v6640_v36  ;;  %v15089_v49 = vadd.f32 %v12768_v46, %v6636_v38  ;;  %v12854_v2 = vpop.f32.mrb[33].mxu1  ;;  %v12770_v50 = vpop.f32.mrb[34].mxu0  ;;  %13087 = vmatpush1.bf16.msra.mxu0 %v14700_v37  ;;  %v6396_v37 = vld [vmem:[#allocation11 + $0x1b78] sm:$0xff] }
 0x7d5   :  { %13225 = vst [vmem:[#allocation14 + $0xa0] sm:$0xff] %v15088_v44  ;;  %v15093_v52 = vadd.f32 %v12854_v2, %v6644_v56  ;;  %v15090_v53 = vadd.f32 %v12770_v50, %v6632_v33  ;;  %v12856_v55 = vpop.f32.mrb[34].mxu1  ;;  %13173 = vmatpush1.bf16.msra.mxu1 %v14702_v57  ;;  %v12772_v58 = vpop.f32.mrb[35].mxu0  ;;  %13088 = vmatprep.subr.bf16.mxu0 %v14733_v39  ;;  %v6428_v44 = vld [vmem:[#allocation11 + $0x1c78] sm:$0xff]  ;;  %v6475_v2 = vld [vmem:[#allocation11 + $0x1df0] sm:$0xff] }
 0x7d6   :  { %13227 = vst [vmem:[#allocation14 + $0xb0] sm:$0xff] %v15092_v48  ;;  %13226 = vst [vmem:[#allocation14 + $0xa8] sm:$0xff] %v15089_v49  ;;  %v15094_v60 = vadd.f32 %v12856_v55, %v6640_v36  ;;  %v15091_v63 = vadd.f32 %v12772_v58, %v6636_v38  ;;  %v12858_v0 = vpop.f32.mrb[35].mxu1  ;;  %13174 = vmatprep.subr.bf16.mxu1 %v14735_v41  ;;  %v14830_v33 = vcombine.low %v6332_v20, %v6348_v23  ;;  %v6395_v36 = vld [vmem:[#allocation11 + $0x1b70] sm:$0xff]  ;;  %v6444_v45 = vld [vmem:[#allocation11 + $0x1cf8] sm:$0xff] }
 0x7d7   :  { %13228 = vst [vmem:[#allocation14 + $0xb8] sm:$0xff] %v15093_v52  ;;  %13257 = vst [vmem:[#allocation14 + $0x1a0] sm:$0xff] %v15090_v53  ;;  %v15095_v10 = vadd.f32 %v12858_v0, %v6644_v56  ;;  %v6411_v38 = vld [vmem:[#allocation11 + $0x1bf0] sm:$0xff]  ;;  %v6412_v56 = vld [vmem:[#allocation11 + $0x1bf8] sm:$0xff]  ;;  %v14860_v57 = vcombine.low %v6363_v28, %v6379_v29  ;;  %v14862_v39 = vcombine.low %v6364_v30, %v6380_v31 }
 0x7d8   :  { %13259 = vst [vmem:[#allocation14 + $0x1b0] sm:$0xff] %v15094_v60  ;;  %13258 = vst [vmem:[#allocation14 + $0x1a8] sm:$0xff] %v15091_v63  ;;  %13089 = vmatpush1.bf16.msra.mxu0 %v14732_v51  ;;  %v14893_v40 = vcombine.high %v6395_v36, %v6411_v38  ;;  %v14895_v41 = vcombine.high %v6396_v37, %v6412_v56  ;;  %v14892_v46 = vcombine.low %v6395_v36, %v6411_v38  ;;  %v6459_v49 = vld [vmem:[#allocation11 + $0x1d70] sm:$0xff]  ;;  %v6460_v50 = vld [vmem:[#allocation11 + $0x1d78] sm:$0xff] }
 0x7d9   :  { %13260 = vst [vmem:[#allocation14 + $0x1b8] sm:$0xff] %v15095_v10  ;;  %13175 = vmatpush1.bf16.msra.mxu1 %v14734_v1  ;;  %13090 = vmatprep.subr.bf16.mxu0 %v14765_v59  ;;  %v14894_v12 = vcombine.low %v6396_v37, %v6412_v56  ;;  %v14927_v48 = vcombine.high %v6428_v44, %v6444_v45  ;;  %v6476_v51 = vld [vmem:[#allocation11 + $0x1df8] sm:$0xff]  ;;  %v6491_v58 = vld [vmem:[#allocation11 + $0x1e70] sm:$0xff] }
 0x7da   :  { %13176 = vmatprep.subr.bf16.mxu1 %v14767_v5  ;;  %v14924_v1 = vcombine.low %v6427_v42, %v6443_v43  ;;  %v14926_v52 = vcombine.low %v6428_v44, %v6444_v45  ;;  %v14957_v53 = vcombine.high %v6459_v49, %v6475_v2  ;;  %v14959_v55 = vcombine.high %v6460_v50, %v6476_v51  ;;  %v6507_v59 = vld [vmem:[#allocation11 + $0x1ef0] sm:$0xff]  ;;  %v6492_v60 = vld [vmem:[#allocation11 + $0x1e78] sm:$0xff] }
 0x7db   :  { %v6508_v63 = vld [vmem:[#allocation11 + $0x1ef8] sm:$0xff]  ;;  %v14956_v0 = vcombine.low %v6459_v49, %v6475_v2  ;;  %v14958_v5 = vcombine.low %v6460_v50, %v6476_v51  ;;  %v14989_v9 = vcombine.high %v6491_v58, %v6507_v59  ;;  %v6523_v10 = vld [vmem:[#allocation11 + $0x1f70] sm:$0xff] }
 0x7dc   :  { %13091 = vmatpush1.bf16.msra.mxu0 %v14764_v15  ;;  %v14991_v7 = vcombine.high %v6492_v60, %v6508_v63  ;;  %v6540_v15 = vld [vmem:[#allocation11 + $0x1ff8] sm:$0xff]  ;;  %v15020_v19 = vcombine.low %v6523_v10, %v6539_v11 }
 0x7dd   :  { %13177 = vmatpush1.bf16.msra.mxu1 %v14766_v16  ;;  %13092 = vmatprep.subr.bf16.mxu0 %v14797_v17  ;;  %v14988_v16 = vcombine.low %v6491_v58, %v6507_v59  ;;  %v14990_v17 = vcombine.low %v6492_v60, %v6508_v63  ;;  %v15023_v18 = vcombine.high %v6524_v14, %v6540_v15  ;;  %v6544_v23 = vld [vmem:[#allocation13 + $0x18] sm:$0xff] }
 0x7de   :  { %13178 = vmatprep.subr.bf16.mxu1 %v14799_v13  ;;  %v15021_v13 = vcombine.high %v6523_v10, %v6539_v11  ;;  %v15022_v20 = vcombine.low %v6524_v14, %v6540_v15  ;;  %v6664_v56 = vrot.slane %v6544_v23, %v16038_v25 }
 0x7e0   :  { %13093 = vmatpush1.bf16.msra.mxu0 %v14796_v21  ;;  %v6648_v21 = vrot.slane %v6544_v23, %v16004_v62 }
 0x7e1   :  { %13179 = vmatpush1.bf16.msra.mxu1 %v14798_v22  ;;  %13094 = vmatprep.subr.bf16.mxu0 %v14829_v54  ;;  %v6656_v22 = vrot.slane %v6544_v23, %v16009_v3  ;;  %v6652_v54 = vrot.slane %v6544_v23, %v16012_v4 }
 0x7e2   :  { %13180 = vmatprep.subr.bf16.mxu1 %v14831_v24  ;;  %v6660_v24 = vrot.slane %v6544_v23, %v16015_v6 }
 0x7e4   :  { %13095 = vmatpush1.bf16.msra.mxu0 %v14828_v32 }
 0x7e5   :  { %13181 = vmatpush1.bf16.msra.mxu1 %v14830_v33  ;;  %13096 = vmatprep.subr.bf16.mxu0 %v14861_v34 }
 0x7e6   :  { %13182 = vmatprep.subr.bf16.mxu1 %v14863_v35 }
 0x7e8   :  { %13097 = vmatpush1.bf16.msra.mxu0 %v14860_v57  ;;  %v6672_v57 = vrot.slane %v6544_v23, %v16041_v26 }
 0x7e9   :  { %13183 = vmatpush1.bf16.msra.mxu1 %v14862_v39  ;;  %13098 = vmatprep.subr.bf16.mxu0 %v14893_v40  ;;  %v6668_v39 = vrot.slane %v6544_v23, %v16044_v27  ;;  %v6676_v40 = vrot.slane %v6544_v23, %v16047_v61 }
 0x7ea   :  { %13184 = vmatprep.subr.bf16.mxu1 %v14895_v41 }
 0x7ec   :  { %13099 = vmatpush1.bf16.msra.mxu0 %v14892_v46 }
 0x7ed   :  { %13185 = vmatpush1.bf16.msra.mxu1 %v14894_v12  ;;  %13100 = vmatprep.subr.bf16.mxu0 %v14925_v47 }
 0x7ee   :  { %13186 = vmatprep.subr.bf16.mxu1 %v14927_v48 }
 0x7f0   :  { %13101 = vmatpush1.bf16.msra.mxu0 %v14924_v1 }
 0x7f1   :  { %13187 = vmatpush1.bf16.msra.mxu1 %v14926_v52  ;;  %13102 = vmatprep.subr.bf16.mxu0 %v14957_v53 }
 0x7f2   :  { %13188 = vmatprep.subr.bf16.mxu1 %v14959_v55 }
 0x7f4   :  { %13103 = vmatpush1.bf16.msra.mxu0 %v14956_v0 }
 0x7f5   :  { %13189 = vmatpush1.bf16.msra.mxu1 %v14958_v5  ;;  %13104 = vmatprep.subr.bf16.mxu0 %v14989_v9 }
 0x7f6   :  { %13190 = vmatprep.subr.bf16.mxu1 %v14991_v7 }
 0x7f8   :  { %13105 = vmatpush1.bf16.msra.mxu0 %v14988_v16 }
 0x7f9   :  { %13191 = vmatpush1.bf16.msra.mxu1 %v14990_v17  ;;  %13106 = vmatprep.subr.bf16.mxu0 %v15021_v13 }
 0x7fa   :  { %13192 = vmatprep.subr.bf16.mxu1 %v15023_v18 }
 0x7fc   :  { %13107 = vmatpush1.bf16.msra.mxu0 %v15020_v19 }
 0x7fd   :  { %13193 = vmatpush1.bf16.msra.mxu1 %v15022_v20 }
 0x7ff   :  { %13109 = vmatmul.mubr.bf16.vlgmr.msra.gmra.mrb[40].mxu0 %v16067_v8 }
 0x800   :  { %13195 = vmatmul.mubr.bf16.vlgmr.msra.gmra.mrb[40].mxu1 %v16067_v8 }
 0x852   :  { %v12938_v28 = vpop.f32.mrb[36].mxu0 }
 0x853   :  { %v15096_v29 = vadd.f32 %v12938_v28, %v6648_v21  ;;  %v13024_v30 = vpop.f32.mrb[36].mxu1  ;;  %v12940_v31 = vpop.f32.mrb[37].mxu0 }
 0x854   :  { %v15100_v32 = vadd.f32 %v13024_v30, %v6656_v22  ;;  %v15097_v33 = vadd.f32 %v12940_v31, %v6652_v54  ;;  %v13026_v34 = vpop.f32.mrb[37].mxu1  ;;  %v12942_v35 = vpop.f32.mrb[38].mxu0 }
 0x855   :  { %13229 = vst [vmem:[#allocation14 + $0xc0] sm:$0xff] %v15096_v29  ;;  %v15101_v36 = vadd.f32 %v13026_v34, %v6660_v24  ;;  %v15098_v8 = vadd.f32 %v12942_v35, %v6648_v21  ;;  %v13028_v38 = vpop.f32.mrb[38].mxu1  ;;  %v12944_v37 = vpop.f32.mrb[39].mxu0 }
 0x856   :  { %13231 = vst [vmem:[#allocation14 + $0xd0] sm:$0xff] %v15100_v32  ;;  %13230 = vst [vmem:[#allocation14 + $0xc8] sm:$0xff] %v15097_v33  ;;  %v15102_v62 = vadd.f32 %v13028_v38, %v6656_v22  ;;  %v15099_v3 = vadd.f32 %v12944_v37, %v6652_v54  ;;  %v13030_v4 = vpop.f32.mrb[39].mxu1 }
 0x857   :  { %13232 = vst [vmem:[#allocation14 + $0xd8] sm:$0xff] %v15101_v36  ;;  %13261 = vst [vmem:[#allocation14 + $0x1c0] sm:$0xff] %v15098_v8  ;;  %v15103_v6 = vadd.f32 %v13030_v4, %v6660_v24 }
 0x858   :  { %13263 = vst [vmem:[#allocation14 + $0x1d0] sm:$0xff] %v15102_v62  ;;  %13262 = vst [vmem:[#allocation14 + $0x1c8] sm:$0xff] %v15099_v3 }
 0x859   :  { %13264 = vst [vmem:[#allocation14 + $0x1d8] sm:$0xff] %v15103_v6 }
 0x8d2   :  { %v13110_v41 = vpop.f32.mrb[40].mxu0 }
 0x8d3   :  { %v15104_v42 = vadd.f32 %v13110_v41, %v6664_v56  ;;  %v13196_v43 = vpop.f32.mrb[40].mxu1  ;;  %v13112_v44 = vpop.f32.mrb[41].mxu0 }
 0x8d4   :  { %v15108_v45 = vadd.f32 %v13196_v43, %v6672_v57  ;;  %v15105_v46 = vadd.f32 %v13112_v44, %v6668_v39  ;;  %v13198_v12 = vpop.f32.mrb[41].mxu1  ;;  %v13114_v47 = vpop.f32.mrb[42].mxu0 }
 0x8d5   :  { %13233 = vst [vmem:[#allocation14 + $0xe0] sm:$0xff] %v15104_v42  ;;  %v15109_v48 = vadd.f32 %v13198_v12, %v6676_v40  ;;  %v15106_v49 = vadd.f32 %v13114_v47, %v6664_v56  ;;  %v13200_v25 = vpop.f32.mrb[42].mxu1  ;;  %v13116_v2 = vpop.f32.mrb[43].mxu0 }
 0x8d6   :  { %13235 = vst [vmem:[#allocation14 + $0xf0] sm:$0xff] %v15108_v45  ;;  %13234 = vst [vmem:[#allocation14 + $0xe8] sm:$0xff] %v15105_v46  ;;  %v15110_v26 = vadd.f32 %v13200_v25, %v6672_v57  ;;  %v15107_v27 = vadd.f32 %v13116_v2, %v6668_v39  ;;  %v13202_v61 = vpop.f32.mrb[43].mxu1 }
 0x8d7   :  { %13236 = vst [vmem:[#allocation14 + $0xf8] sm:$0xff] %v15109_v48  ;;  %13265 = vst [vmem:[#allocation14 + $0x1e0] sm:$0xff] %v15106_v49  ;;  %v15111_v50 = vadd.f32 %v13202_v61, %v6676_v40 }
 0x8d8   :  { %13267 = vst [vmem:[#allocation14 + $0x1f0] sm:$0xff] %v15110_v26  ;;  %13266 = vst [vmem:[#allocation14 + $0x1e8] sm:$0xff] %v15107_v27 }
 0x8d9   :  { %13268 = vst [vmem:[#allocation14 + $0x1f8] sm:$0xff] %v15111_v50 }
 0x8da   :  { %15832 = shalt.err (!%p15829_p4)
}
 0x8db   :  { %s15833_s18 = scalar_lea.hbm %s16219_s7, 8192 }
 0x8dc   :  { %p15834_p5 = scmp.ne.s32.totalorder %s16219_s7, %s15833_s18  ;;  %p15837_p6 = scmp.lt.u32.totalorder %s15833_s18, %s16219_s7 }
 0x8de   :  { %p15839_p7 = pnand %p15837_p6, %p15834_p5 }
 0x8e0   :  { %15842 = shalt.err (!%p15839_p7)
}
 0x8e1   :  { %s15870_s23 = smov 4096  }
 0x8e2   :  { %13280 = dma.vmem_to_hbm [thread:$0]  %s13275_s15, 8192, %s16219_s7, [#allocation4], %s15870_s23, %s15870_s23, %s15857_s1  }
 0x8e3   :  { %15851 = dma.done.wait [#allocation4], 8192  }
 0x8e4   :  { %15852 = vsyncadd [#allocation4], 4294959104 }
 0x8e5   :  { %13284 = vsyncpa [#allocation3], 1 }
 0x8e6   :  { %13285 = vsyncpa [#allocation6], 1 }
 0x8e7   :  { %13286 = vsyncpa [#allocation9], 1 }
 0x8e8   :  { %13287 = vsyncpa [#allocation12], 1 }
 0x8e9   :  { %13288 = vsyncpa [#allocation4], 1 }

</bundles_post_ra>
